<compile_context>
chip_gen: v5e
topology: v5e:2x2
jax: 0.10.0
libtpu: 0.0.40
codegen_flags: <defaults>
</compile_context>

<pallas_src>
import functools

import numpy as np

import jax
import jax.numpy as jnp
from jax import lax
from jax.experimental import pallas as pl
from jax.experimental.pallas import tpu as pltpu


# ----------------------------------------------------------------------------
# Whole-network fused kernel (one image per grid step)
# ----------------------------------------------------------------------------
def _resnet_kernel(*refs, plan, num_classes):
    it = iter(refs)
    x_ref = next(it)

    def rd():                                   # next weight ref -> value
        return next(it)[...]

    def conv3x3(a, H, W, w):
        """a: (Cin, (H+2)*(W+2)) bf16 padded-flat.  w: (Cout, 9*Cin) bf16.
        Returns pre-BN conv output (Cout, Q) f32 in 'junk-wrap' layout,
        Q = (H-1)*(W+2) + W (junk columns at q % (W+2) >= W)."""
        Wp = W + 2
        Q = (H - 1) * Wp + W
        taps = [dy * Wp + dx for dy in range(3) for dx in range(3)]
        # implicit im2col: one lane-shifted contiguous slice per tap,
        # concatenated along K so the conv is ONE matmul with K = 9*Cin.
        lhs = jnp.concatenate([a[:, off:off + Q] for off in taps], axis=0)
        return jnp.dot(w, lhs, preferred_element_type=jnp.float32)

    def valid_mask(H, W):
        Wp = W + 2
        Q = (H - 1) * Wp + W
        col = lax.broadcasted_iota(jnp.int32, (1, Q), 1)
        return (col % Wp) < W

    def epilogue(t, H, W, scale, bias, shortcut=None):
        """folded BN (+residual) + ReLU + zero the junk-wrap columns."""
        out = t * scale + bias
        if shortcut is not None:
            out = out + shortcut
        out = jnp.maximum(out, 0.0)
        return jnp.where(valid_mask(H, W), out, 0.0)

    def repad(out, H, W):
        """(C, Q) f32 -> (C, (H+2)*(W+2)) bf16 padded-flat (zero halos only)."""
        Wp = W + 2
        z = jnp.zeros((out.shape[0], Wp + 1), jnp.bfloat16)
        return jnp.concatenate([z, out.astype(jnp.bfloat16), z], axis=1)

    H, W = plan["H"], plan["W"]
    x = x_ref[0]                                # (Cpad, (H+2)*(W+2)) bf16

    # --- stem: conv3x3 + BN + ReLU -------------------------------------------
    w0, s0, b0 = rd(), rd(), rd()
    a = repad(epilogue(conv3x3(x, H, W, w0), H, W, s0, b0), H, W)

    # --- BasicBlocks ----------------------------------------------------------
    for blk in plan["blocks"]:
        a_in, Hin, Win = a, H, W
        w1, s1, b1 = rd(), rd(), rd()
        w2, s2, b2 = rd(), rd(), rd()
        if blk["proj"]:
            scw, scs, scb = rd(), rd(), rd()
        if blk["stride"] == 2:
            S = rd()                            # (Q_in, Q_half) bf16 selection

        # conv1 (+ fused stride-2 subsample) + BN + ReLU
        t = conv3x3(a_in, Hin, Win, w1)
        if blk["stride"] == 2:
            t = jnp.dot(t.astype(jnp.bfloat16), S,
                        preferred_element_type=jnp.float32)
            H, W = Hin // 2, Win // 2
        h = repad(epilogue(t, H, W, s1, b1), H, W)

        # conv2 + BN
        u = conv3x3(h, H, W, w2)

        # shortcut branch (identity, or 1x1 projection + BN)
        Wp_in = Win + 2
        Q_in = (Hin - 1) * Wp_in + Win
        x_int = a_in[:, Wp_in + 1:Wp_in + 1 + Q_in]          # (Cin, Q_in) bf16
        if blk["stride"] == 2:
            x_int = jnp.dot(x_int, S,
                            preferred_element_type=jnp.float32).astype(jnp.bfloat16)
        if blk["proj"]:
            sc = jnp.dot(scw, x_int, preferred_element_type=jnp.float32)
            sc = sc * scs + scb
        else:
            sc = x_int.astype(jnp.float32)

        out = epilogue(u, H, W, s2, b2, shortcut=sc)

        if blk["last"]:
            # global average pool (junk columns already zero) + fc (1x1 conv)
            fcw, fcb = rd(), rd()
            pooled = jnp.sum(out, axis=1, keepdims=True) * (1.0 / (H * W))
            logits = jnp.dot(fcw, pooled.astype(jnp.bfloat16),
                             preferred_element_type=jnp.float32) + fcb
            o_ref = next(it)
            o_ref[...] = logits.reshape(1, num_classes, 1)
        else:
            a = repad(out, H, W)


# ----------------------------------------------------------------------------
# Host-side helpers
# ----------------------------------------------------------------------------
def _ds_select_matrix(H, W):
    """(Q, Q_half) 0/1 matrix: right-multiplying a junk-wrap (C, Q) map at
    resolution HxW yields the exact 2x-subsampled map in the half-resolution
    junk-wrap layout (its junk columns land on zero)."""
    Wp = W + 2
    Q = (H - 1) * Wp + W
    Hh, Wh = H // 2, W // 2
    Wph = Wh + 2
    Qh = (Hh - 1) * Wph + Wh
    S = np.zeros((Q, Qh), np.float32)
    for r in range(Hh):
        for c in range(Wh):
            S[2 * r * Wp + 2 * c, r * Wph + c] = 1.0
    return jnp.asarray(S, dtype=jnp.bfloat16)


def _full_spec(arr):
    zero = (0,) * arr.ndim
    return pl.BlockSpec(arr.shape, lambda n, _z=zero: _z)


# ----------------------------------------------------------------------------
# ResNet forward (eval-mode BN folded into scale/bias)
# ----------------------------------------------------------------------------
def resnet_forward(x_nchw, params):
    N, Cin, H, W = x_nchw.shape
    Cpad = params["conv1_w"].shape[1] // 9       # stem input channels (padded)
    Lp = (H + 2) * (W + 2)

    # channels-on-sublanes, zero-haloed padded-flat layout: (N, C, (H+2)*(W+2))
    x_pf = jnp.pad(x_nchw, ((0, 0), (0, Cpad - Cin), (1, 1), (1, 1)))
    x_pf = x_pf.reshape(N, Cpad, Lp).astype(jnp.bfloat16)

    args = [x_pf]
    in_specs = [pl.BlockSpec((1, Cpad, Lp), lambda n: (n, 0, 0))]

    def push(arr):
        args.append(arr)
        in_specs.append(_full_spec(arr))

    push(params["conv1_w"]); push(params["bn1_s"]); push(params["bn1_b"])

    blocks_meta = []
    curH, curW = H, W
    for blk in params["blocks"]:
        for k in ("w1", "s1", "b1", "w2", "s2", "b2"):
            push(blk[k])
        proj = "sc_w" in blk
        if proj:
            push(blk["sc_w"]); push(blk["sc_s"]); push(blk["sc_b"])
        if blk["stride"] == 2:
            push(_ds_select_matrix(curH, curW))
            curH, curW = curH // 2, curW // 2
        blocks_meta.append({"stride": blk["stride"], "proj": proj, "last": False})
    blocks_meta[-1]["last"] = True

    push(params["fc_w"]); push(params["fc_b"])

    num_classes = params["fc_w"].shape[0]
    plan = {"H": H, "W": W, "blocks": blocks_meta}
    kernel = functools.partial(_resnet_kernel, plan=plan, num_classes=num_classes)

    out = pl.pallas_call(
        kernel,
        out_shape=jax.ShapeDtypeStruct((N, num_classes, 1), jnp.float32),
        grid=(N,),
        in_specs=in_specs,
        out_specs=pl.BlockSpec((1, num_classes, 1), lambda n: (n, 0, 0)),
        compiler_params=pltpu.CompilerParams(
            dimension_semantics=("parallel",)),
    )(*args)
    return out.reshape(N, num_classes)           # == out.flatten(1)


# ----------------------------------------------------------------------------
# Deterministic params, pre-formatted for the kernel (reshape/cast done ONCE)
# ----------------------------------------------------------------------------
def init_params(key, base_width=16, num_blocks=(1, 1, 1, 1), num_classes=10):
    keys = iter(jax.random.split(key, 256))

    def conv3x3_w(cin, cout):
        std = (2.0 / (9 * cin)) ** 0.5
        w = std * jax.random.normal(next(keys), (3, 3, cin, cout), jnp.float32)
        # (Cout, 9*Cin); K ordered (tap=dy*3+dx, cin) to match in-kernel im2col
        return jnp.transpose(w, (3, 0, 1, 2)).reshape(cout, 9 * cin).astype(jnp.bfloat16)

    def stem_w(cin, cout, cpad=16):
        # input channels zero-padded to 16 so every im2col slice is 16-sublane
        # aligned for bf16 (the padded input channels are exactly zero).
        std = (2.0 / (9 * cin)) ** 0.5
        w = std * jax.random.normal(next(keys), (3, 3, cin, cout), jnp.float32)
        wp = jnp.zeros((3, 3, cpad, cout), jnp.float32).at[:, :, :cin, :].set(w)
        return jnp.transpose(wp, (3, 0, 1, 2)).reshape(cout, 9 * cpad).astype(jnp.bfloat16)

    def conv1x1_w(cin, cout):
        std = (2.0 / cin) ** 0.5
        w = std * jax.random.normal(next(keys), (cin, cout), jnp.float32)
        return jnp.transpose(w, (1, 0)).astype(jnp.bfloat16)      # (Cout, Cin)

    def bn_fold(c):
        k1, k2, k3, k4 = jax.random.split(next(keys), 4)
        gamma = 1.0 + 0.1 * jax.random.normal(k1, (c,), jnp.float32)
        beta = 0.1 * jax.random.normal(k2, (c,), jnp.float32)
        mean = 0.1 * jax.random.normal(k3, (c,), jnp.float32)
        var = 1.0 + 0.1 * jnp.abs(jax.random.normal(k4, (c,), jnp.float32))
        scale = gamma / jnp.sqrt(var + 1e-5)
        bias = beta - mean * scale
        return scale.reshape(c, 1), bias.reshape(c, 1)

    params = {"conv1_w": stem_w(3, base_width)}
    params["bn1_s"], params["bn1_b"] = bn_fold(base_width)

    in_planes = base_width
    blocks = []
    for planes_mult, nb, first_stride in zip((1, 2, 4, 8), num_blocks, (1, 2, 2, 2)):
        planes = base_width * planes_mult
        for s in [first_stride] + [1] * (nb - 1):
            blk = {"stride": s,
                   "w1": conv3x3_w(in_planes, planes),
                   "w2": conv3x3_w(planes, planes)}
            blk["s1"], blk["b1"] = bn_fold(planes)
            blk["s2"], blk["b2"] = bn_fold(planes)
            if s != 1 or in_planes != planes:
                blk["sc_w"] = conv1x1_w(in_planes, planes)
                blk["sc_s"], blk["sc_b"] = bn_fold(planes)
            blocks.append(blk)
            in_planes = planes                  # BasicBlock expansion = 1
    params["blocks"] = blocks

    # fc == 1x1 conv classifier (bias=True) applied after global avg pool
    fcw = 0.05 * jax.random.normal(next(keys), (in_planes, num_classes), jnp.float32)
    params["fc_w"] = jnp.transpose(fcw, (1, 0)).astype(jnp.bfloat16)   # (ncls, C)
    params["fc_b"] = 0.05 * jax.random.normal(next(keys), (num_classes, 1), jnp.float32)
    return params


# ----------------------------------------------------------------------------
if __name__ == "__main__":
    key = jax.random.PRNGKey(0)
    pkey, xkey = jax.random.split(key)

    base_width, num_blocks, num_classes = 16, (1, 1, 1, 1), 10
    params = init_params(pkey, base_width, num_blocks, num_classes)

    x = jax.random.normal(xkey, (2, 3, 16, 16), jnp.float32)   # NCHW, like PyTorch

    fwd = jax.jit(lambda inp: resnet_forward(inp, params))
    logits = jax.block_until_ready(fwd(x))

    assert logits.shape == (2, num_classes), logits.shape
    assert bool(jnp.all(jnp.isfinite(logits)))
    print("KERNEL_OK")
</pallas_src>

<mosaic_0001>
module attributes {stable_mosaic.version = 11 : i64} {
  func.func @_resnet_kernel(%arg0: i32, %arg1: memref<1x16x324xbf16, #tpu.memory_space<vmem>>, %arg2: memref<16x144xbf16, #tpu.memory_space<vmem>>, %arg3: memref<16x1xf32, #tpu.memory_space<vmem>>, %arg4: memref<16x1xf32, #tpu.memory_space<vmem>>, %arg5: memref<16x144xbf16, #tpu.memory_space<vmem>>, %arg6: memref<16x1xf32, #tpu.memory_space<vmem>>, %arg7: memref<16x1xf32, #tpu.memory_space<vmem>>, %arg8: memref<16x144xbf16, #tpu.memory_space<vmem>>, %arg9: memref<16x1xf32, #tpu.memory_space<vmem>>, %arg10: memref<16x1xf32, #tpu.memory_space<vmem>>, %arg11: memref<32x144xbf16, #tpu.memory_space<vmem>>, %arg12: memref<32x1xf32, #tpu.memory_space<vmem>>, %arg13: memref<32x1xf32, #tpu.memory_space<vmem>>, %arg14: memref<32x288xbf16, #tpu.memory_space<vmem>>, %arg15: memref<32x1xf32, #tpu.memory_space<vmem>>, %arg16: memref<32x1xf32, #tpu.memory_space<vmem>>, %arg17: memref<32x16xbf16, #tpu.memory_space<vmem>>, %arg18: memref<32x1xf32, #tpu.memory_space<vmem>>, %arg19: memref<32x1xf32, #tpu.memory_space<vmem>>, %arg20: memref<286x78xbf16, #tpu.memory_space<vmem>>, %arg21: memref<64x288xbf16, #tpu.memory_space<vmem>>, %arg22: memref<64x1xf32, #tpu.memory_space<vmem>>, %arg23: memref<64x1xf32, #tpu.memory_space<vmem>>, %arg24: memref<64x576xbf16, #tpu.memory_space<vmem>>, %arg25: memref<64x1xf32, #tpu.memory_space<vmem>>, %arg26: memref<64x1xf32, #tpu.memory_space<vmem>>, %arg27: memref<64x32xbf16, #tpu.memory_space<vmem>>, %arg28: memref<64x1xf32, #tpu.memory_space<vmem>>, %arg29: memref<64x1xf32, #tpu.memory_space<vmem>>, %arg30: memref<78x22xbf16, #tpu.memory_space<vmem>>, %arg31: memref<128x576xbf16, #tpu.memory_space<vmem>>, %arg32: memref<128x1xf32, #tpu.memory_space<vmem>>, %arg33: memref<128x1xf32, #tpu.memory_space<vmem>>, %arg34: memref<128x1152xbf16, #tpu.memory_space<vmem>>, %arg35: memref<128x1xf32, #tpu.memory_space<vmem>>, %arg36: memref<128x1xf32, #tpu.memory_space<vmem>>, %arg37: memref<128x64xbf16, #tpu.memory_space<vmem>>, %arg38: memref<128x1xf32, #tpu.memory_space<vmem>>, %arg39: memref<128x1xf32, #tpu.memory_space<vmem>>, %arg40: memref<22x6xbf16, #tpu.memory_space<vmem>>, %arg41: memref<10x128xbf16, #tpu.memory_space<vmem>>, %arg42: memref<10x1xf32, #tpu.memory_space<vmem>>, %arg43: memref<1x10x1xf32, #tpu.memory_space<vmem>>) attributes {dimension_semantics = [#tpu.dimension_semantics<parallel>], iteration_bounds = array<i64: 2>, scalar_prefetch = 0 : i64, scratch_operands = 0 : i64, tpu.core_type = #tpu.core_type<tc>, window_params = [{transform_indices = @transform_0, window_bounds = array<i64: 1, 16, 324>}, {pipeline_mode = #tpu.pipeline_mode<synchronous>, transform_indices = @transform_1, window_bounds = array<i64: 16, 144>}, {pipeline_mode = #tpu.pipeline_mode<synchronous>, transform_indices = @transform_2, window_bounds = array<i64: 16, 1>}, {pipeline_mode = #tpu.pipeline_mode<synchronous>, transform_indices = @transform_3, window_bounds = array<i64: 16, 1>}, {pipeline_mode = #tpu.pipeline_mode<synchronous>, transform_indices = @transform_4, window_bounds = array<i64: 16, 144>}, {pipeline_mode = #tpu.pipeline_mode<synchronous>, transform_indices = @transform_5, window_bounds = array<i64: 16, 1>}, {pipeline_mode = #tpu.pipeline_mode<synchronous>, transform_indices = @transform_6, window_bounds = array<i64: 16, 1>}, {pipeline_mode = #tpu.pipeline_mode<synchronous>, transform_indices = @transform_7, window_bounds = array<i64: 16, 144>}, {pipeline_mode = #tpu.pipeline_mode<synchronous>, transform_indices = @transform_8, window_bounds = array<i64: 16, 1>}, {pipeline_mode = #tpu.pipeline_mode<synchronous>, transform_indices = @transform_9, window_bounds = array<i64: 16, 1>}, {pipeline_mode = #tpu.pipeline_mode<synchronous>, transform_indices = @transform_10, window_bounds = array<i64: 32, 144>}, {pipeline_mode = #tpu.pipeline_mode<synchronous>, transform_indices = @transform_11, window_bounds = array<i64: 32, 1>}, {pipeline_mode = #tpu.pipeline_mode<synchronous>, transform_indices = @transform_12, window_bounds = array<i64: 32, 1>}, {pipeline_mode = #tpu.pipeline_mode<synchronous>, transform_indices = @transform_13, window_bounds = array<i64: 32, 288>}, {pipeline_mode = #tpu.pipeline_mode<synchronous>, transform_indices = @transform_14, window_bounds = array<i64: 32, 1>}, {pipeline_mode = #tpu.pipeline_mode<synchronous>, transform_indices = @transform_15, window_bounds = array<i64: 32, 1>}, {pipeline_mode = #tpu.pipeline_mode<synchronous>, transform_indices = @transform_16, window_bounds = array<i64: 32, 16>}, {pipeline_mode = #tpu.pipeline_mode<synchronous>, transform_indices = @transform_17, window_bounds = array<i64: 32, 1>}, {pipeline_mode = #tpu.pipeline_mode<synchronous>, transform_indices = @transform_18, window_bounds = array<i64: 32, 1>}, {pipeline_mode = #tpu.pipeline_mode<synchronous>, transform_indices = @transform_19, window_bounds = array<i64: 286, 78>}, {pipeline_mode = #tpu.pipeline_mode<synchronous>, transform_indices = @transform_20, window_bounds = array<i64: 64, 288>}, {pipeline_mode = #tpu.pipeline_mode<synchronous>, transform_indices = @transform_21, window_bounds = array<i64: 64, 1>}, {pipeline_mode = #tpu.pipeline_mode<synchronous>, transform_indices = @transform_22, window_bounds = array<i64: 64, 1>}, {pipeline_mode = #tpu.pipeline_mode<synchronous>, transform_indices = @transform_23, window_bounds = array<i64: 64, 576>}, {pipeline_mode = #tpu.pipeline_mode<synchronous>, transform_indices = @transform_24, window_bounds = array<i64: 64, 1>}, {pipeline_mode = #tpu.pipeline_mode<synchronous>, transform_indices = @transform_25, window_bounds = array<i64: 64, 1>}, {pipeline_mode = #tpu.pipeline_mode<synchronous>, transform_indices = @transform_26, window_bounds = array<i64: 64, 32>}, {pipeline_mode = #tpu.pipeline_mode<synchronous>, transform_indices = @transform_27, window_bounds = array<i64: 64, 1>}, {pipeline_mode = #tpu.pipeline_mode<synchronous>, transform_indices = @transform_28, window_bounds = array<i64: 64, 1>}, {pipeline_mode = #tpu.pipeline_mode<synchronous>, transform_indices = @transform_29, window_bounds = array<i64: 78, 22>}, {pipeline_mode = #tpu.pipeline_mode<synchronous>, transform_indices = @transform_30, window_bounds = array<i64: 128, 576>}, {pipeline_mode = #tpu.pipeline_mode<synchronous>, transform_indices = @transform_31, window_bounds = array<i64: 128, 1>}, {pipeline_mode = #tpu.pipeline_mode<synchronous>, transform_indices = @transform_32, window_bounds = array<i64: 128, 1>}, {pipeline_mode = #tpu.pipeline_mode<synchronous>, transform_indices = @transform_33, window_bounds = array<i64: 128, 1152>}, {pipeline_mode = #tpu.pipeline_mode<synchronous>, transform_indices = @transform_34, window_bounds = array<i64: 128, 1>}, {pipeline_mode = #tpu.pipeline_mode<synchronous>, transform_indices = @transform_35, window_bounds = array<i64: 128, 1>}, {pipeline_mode = #tpu.pipeline_mode<synchronous>, transform_indices = @transform_36, window_bounds = array<i64: 128, 64>}, {pipeline_mode = #tpu.pipeline_mode<synchronous>, transform_indices = @transform_37, window_bounds = array<i64: 128, 1>}, {pipeline_mode = #tpu.pipeline_mode<synchronous>, transform_indices = @transform_38, window_bounds = array<i64: 128, 1>}, {pipeline_mode = #tpu.pipeline_mode<synchronous>, transform_indices = @transform_39, window_bounds = array<i64: 22, 6>}, {pipeline_mode = #tpu.pipeline_mode<synchronous>, transform_indices = @transform_40, window_bounds = array<i64: 10, 128>}, {pipeline_mode = #tpu.pipeline_mode<synchronous>, transform_indices = @transform_41, window_bounds = array<i64: 10, 1>}, {transform_indices = @transform_42, window_bounds = array<i64: 1, 10, 1>}]} {
    %c0 = arith.constant 0 : index
    %c0_0 = arith.constant 0 : index
    %c0_1 = arith.constant 0 : index
    %0 = vector.load %arg1[%c0, %c0_0, %c0_1] : memref<1x16x324xbf16, #tpu.memory_space<vmem>>, vector<1x16x324xbf16>
    %1 = vector.shape_cast %0 : vector<1x16x324xbf16> to vector<16x324xbf16>
    %c0_2 = arith.constant 0 : index
    %c0_3 = arith.constant 0 : index
    %2 = vector.load %arg2[%c0_2, %c0_3] : memref<16x144xbf16, #tpu.memory_space<vmem>>, vector<16x144xbf16>
    %c0_4 = arith.constant 0 : index
    %c0_5 = arith.constant 0 : index
    %3 = vector.load %arg3[%c0_4, %c0_5] : memref<16x1xf32, #tpu.memory_space<vmem>>, vector<16x1xf32>
    %c0_6 = arith.constant 0 : index
    %c0_7 = arith.constant 0 : index
    %4 = vector.load %arg4[%c0_6, %c0_7] : memref<16x1xf32, #tpu.memory_space<vmem>>, vector<16x1xf32>
    %5 = vector.extract_strided_slice %1 {offsets = [0, 0], sizes = [16, 286], strides = [1, 1]} : vector<16x324xbf16> to vector<16x286xbf16>
    %6 = vector.extract_strided_slice %1 {offsets = [0, 1], sizes = [16, 286], strides = [1, 1]} : vector<16x324xbf16> to vector<16x286xbf16>
    %7 = vector.extract_strided_slice %1 {offsets = [0, 2], sizes = [16, 286], strides = [1, 1]} : vector<16x324xbf16> to vector<16x286xbf16>
    %8 = vector.extract_strided_slice %1 {offsets = [0, 18], sizes = [16, 286], strides = [1, 1]} : vector<16x324xbf16> to vector<16x286xbf16>
    %9 = vector.extract_strided_slice %1 {offsets = [0, 19], sizes = [16, 286], strides = [1, 1]} : vector<16x324xbf16> to vector<16x286xbf16>
    %10 = vector.extract_strided_slice %1 {offsets = [0, 20], sizes = [16, 286], strides = [1, 1]} : vector<16x324xbf16> to vector<16x286xbf16>
    %11 = vector.extract_strided_slice %1 {offsets = [0, 36], sizes = [16, 286], strides = [1, 1]} : vector<16x324xbf16> to vector<16x286xbf16>
    %12 = vector.extract_strided_slice %1 {offsets = [0, 37], sizes = [16, 286], strides = [1, 1]} : vector<16x324xbf16> to vector<16x286xbf16>
    %13 = vector.extract_strided_slice %1 {offsets = [0, 38], sizes = [16, 286], strides = [1, 1]} : vector<16x324xbf16> to vector<16x286xbf16>
    %14 = tpu.concatenate %5, %6, %7, %8, %9, %10, %11, %12, %13 in 0 : vector<16x286xbf16>, vector<16x286xbf16>, vector<16x286xbf16>, vector<16x286xbf16>, vector<16x286xbf16>, vector<16x286xbf16>, vector<16x286xbf16>, vector<16x286xbf16>, vector<16x286xbf16> -> vector<144x286xbf16>
    %cst = arith.constant dense<0.000000e+00> : vector<16x286xf32>
    %15 = tpu.matmul %2, %14, %cst {dimension_numbers = #tpu.dot_dimension_numbers<[1], [0], [0], [1], [0, 0, 1, 1], [], []>} : vector<16x144xbf16>, vector<144x286xbf16>, vector<16x286xf32> -> vector<16x286xf32>
    %16 = vector.broadcast %3 : vector<16x1xf32> to vector<16x286xf32>
    %17 = arith.mulf %15, %16 : vector<16x286xf32>
    %18 = vector.broadcast %4 : vector<16x1xf32> to vector<16x286xf32>
    %19 = arith.addf %17, %18 : vector<16x286xf32>
    %cst_8 = arith.constant 0.000000e+00 : f32
    %20 = vector.broadcast %cst_8 : f32 to vector<16x286xf32>
    %21 = arith.maximumf %19, %20 : vector<16x286xf32>
    %22 = tpu.iota {dimensions = array<i32: 1>} : vector<1x286xi32>
    %c18_i32 = arith.constant 18 : i32
    %c0_i32 = arith.constant 0 : i32
    %23 = arith.cmpi eq, %c18_i32, %c0_i32 : i32
    %c1_i32 = arith.constant 1 : i32
    %24 = arith.select %23, %c1_i32, %c18_i32 : i32
    %25 = vector.broadcast %24 : i32 to vector<1x286xi32>
    %26 = arith.remsi %22, %25 : vector<1x286xi32>
    %c0_i32_9 = arith.constant 0 : i32
    %27 = vector.broadcast %c0_i32_9 : i32 to vector<1x286xi32>
    %28 = arith.cmpi ne, %26, %27 : vector<1x286xi32>
    %c0_i32_10 = arith.constant 0 : i32
    %29 = vector.broadcast %c0_i32_10 : i32 to vector<1x286xi32>
    %30 = arith.cmpi slt, %26, %29 : vector<1x286xi32>
    %c0_i32_11 = arith.constant 0 : i32
    %31 = arith.cmpi slt, %24, %c0_i32_11 : i32
    %32 = vector.broadcast %31 : i1 to vector<1x286xi1>
    %33 = vector.broadcast %32 : vector<1x286xi1> to vector<1x286xi1>
    %34 = arith.xori %30, %33 : vector<1x286xi1>
    %35 = arith.andi %34, %28 : vector<1x286xi1>
    %36 = vector.broadcast %24 : i32 to vector<1x286xi32>
    %37 = arith.addi %26, %36 : vector<1x286xi32>
    %38 = arith.select %35, %37, %26 : vector<1x286xi1>, vector<1x286xi32>
    %c16_i32 = arith.constant 16 : i32
    %39 = vector.broadcast %c16_i32 : i32 to vector<1x286xi32>
    %40 = arith.cmpi slt, %38, %39 : vector<1x286xi32>
    %cst_12 = arith.constant 0.000000e+00 : f32
    %41 = vector.shape_cast %40 : vector<1x286xi1> to vector<1x286xi1>
    %42 = vector.broadcast %41 : vector<1x286xi1> to vector<16x286xi1>
    %43 = vector.broadcast %cst_12 : f32 to vector<16x286xf32>
    %44 = arith.select %42, %21, %43 : vector<16x286xi1>, vector<16x286xf32>
    %cst_13 = arith.constant 0.000000e+00 : bf16
    %45 = vector.broadcast %cst_13 : bf16 to vector<16x19xbf16>
    %46 = arith.truncf %44 : vector<16x286xf32> to vector<16x286xbf16>
    %47 = tpu.concatenate %45, %46, %45 in 1 : vector<16x19xbf16>, vector<16x286xbf16>, vector<16x19xbf16> -> vector<16x324xbf16>
    %c0_14 = arith.constant 0 : index
    %c0_15 = arith.constant 0 : index
    %48 = vector.load %arg5[%c0_14, %c0_15] : memref<16x144xbf16, #tpu.memory_space<vmem>>, vector<16x144xbf16>
    %c0_16 = arith.constant 0 : index
    %c0_17 = arith.constant 0 : index
    %49 = vector.load %arg6[%c0_16, %c0_17] : memref<16x1xf32, #tpu.memory_space<vmem>>, vector<16x1xf32>
    %c0_18 = arith.constant 0 : index
    %c0_19 = arith.constant 0 : index
    %50 = vector.load %arg7[%c0_18, %c0_19] : memref<16x1xf32, #tpu.memory_space<vmem>>, vector<16x1xf32>
    %c0_20 = arith.constant 0 : index
    %c0_21 = arith.constant 0 : index
    %51 = vector.load %arg8[%c0_20, %c0_21] : memref<16x144xbf16, #tpu.memory_space<vmem>>, vector<16x144xbf16>
    %c0_22 = arith.constant 0 : index
    %c0_23 = arith.constant 0 : index
    %52 = vector.load %arg9[%c0_22, %c0_23] : memref<16x1xf32, #tpu.memory_space<vmem>>, vector<16x1xf32>
    %c0_24 = arith.constant 0 : index
    %c0_25 = arith.constant 0 : index
    %53 = vector.load %arg10[%c0_24, %c0_25] : memref<16x1xf32, #tpu.memory_space<vmem>>, vector<16x1xf32>
    %54 = vector.extract_strided_slice %47 {offsets = [0, 0], sizes = [16, 286], strides = [1, 1]} : vector<16x324xbf16> to vector<16x286xbf16>
    %55 = vector.extract_strided_slice %47 {offsets = [0, 1], sizes = [16, 286], strides = [1, 1]} : vector<16x324xbf16> to vector<16x286xbf16>
    %56 = vector.extract_strided_slice %47 {offsets = [0, 2], sizes = [16, 286], strides = [1, 1]} : vector<16x324xbf16> to vector<16x286xbf16>
    %57 = vector.extract_strided_slice %47 {offsets = [0, 18], sizes = [16, 286], strides = [1, 1]} : vector<16x324xbf16> to vector<16x286xbf16>
    %58 = vector.extract_strided_slice %47 {offsets = [0, 19], sizes = [16, 286], strides = [1, 1]} : vector<16x324xbf16> to vector<16x286xbf16>
    %59 = vector.extract_strided_slice %47 {offsets = [0, 20], sizes = [16, 286], strides = [1, 1]} : vector<16x324xbf16> to vector<16x286xbf16>
    %60 = vector.extract_strided_slice %47 {offsets = [0, 36], sizes = [16, 286], strides = [1, 1]} : vector<16x324xbf16> to vector<16x286xbf16>
    %61 = vector.extract_strided_slice %47 {offsets = [0, 37], sizes = [16, 286], strides = [1, 1]} : vector<16x324xbf16> to vector<16x286xbf16>
    %62 = vector.extract_strided_slice %47 {offsets = [0, 38], sizes = [16, 286], strides = [1, 1]} : vector<16x324xbf16> to vector<16x286xbf16>
    %63 = tpu.concatenate %54, %55, %56, %57, %58, %59, %60, %61, %62 in 0 : vector<16x286xbf16>, vector<16x286xbf16>, vector<16x286xbf16>, vector<16x286xbf16>, vector<16x286xbf16>, vector<16x286xbf16>, vector<16x286xbf16>, vector<16x286xbf16>, vector<16x286xbf16> -> vector<144x286xbf16>
    %cst_26 = arith.constant dense<0.000000e+00> : vector<16x286xf32>
    %64 = tpu.matmul %48, %63, %cst_26 {dimension_numbers = #tpu.dot_dimension_numbers<[1], [0], [0], [1], [0, 0, 1, 1], [], []>} : vector<16x144xbf16>, vector<144x286xbf16>, vector<16x286xf32> -> vector<16x286xf32>
    %65 = vector.broadcast %49 : vector<16x1xf32> to vector<16x286xf32>
    %66 = arith.mulf %64, %65 : vector<16x286xf32>
    %67 = vector.broadcast %50 : vector<16x1xf32> to vector<16x286xf32>
    %68 = arith.addf %66, %67 : vector<16x286xf32>
    %cst_27 = arith.constant 0.000000e+00 : f32
    %69 = vector.broadcast %cst_27 : f32 to vector<16x286xf32>
    %70 = arith.maximumf %68, %69 : vector<16x286xf32>
    %71 = tpu.iota {dimensions = array<i32: 1>} : vector<1x286xi32>
    %c18_i32_28 = arith.constant 18 : i32
    %c0_i32_29 = arith.constant 0 : i32
    %72 = arith.cmpi eq, %c18_i32_28, %c0_i32_29 : i32
    %c1_i32_30 = arith.constant 1 : i32
    %73 = arith.select %72, %c1_i32_30, %c18_i32_28 : i32
    %74 = vector.broadcast %73 : i32 to vector<1x286xi32>
    %75 = arith.remsi %71, %74 : vector<1x286xi32>
    %c0_i32_31 = arith.constant 0 : i32
    %76 = vector.broadcast %c0_i32_31 : i32 to vector<1x286xi32>
    %77 = arith.cmpi ne, %75, %76 : vector<1x286xi32>
    %c0_i32_32 = arith.constant 0 : i32
    %78 = vector.broadcast %c0_i32_32 : i32 to vector<1x286xi32>
    %79 = arith.cmpi slt, %75, %78 : vector<1x286xi32>
    %c0_i32_33 = arith.constant 0 : i32
    %80 = arith.cmpi slt, %73, %c0_i32_33 : i32
    %81 = vector.broadcast %80 : i1 to vector<1x286xi1>
    %82 = vector.broadcast %81 : vector<1x286xi1> to vector<1x286xi1>
    %83 = arith.xori %79, %82 : vector<1x286xi1>
    %84 = arith.andi %83, %77 : vector<1x286xi1>
    %85 = vector.broadcast %73 : i32 to vector<1x286xi32>
    %86 = arith.addi %75, %85 : vector<1x286xi32>
    %87 = arith.select %84, %86, %75 : vector<1x286xi1>, vector<1x286xi32>
    %c16_i32_34 = arith.constant 16 : i32
    %88 = vector.broadcast %c16_i32_34 : i32 to vector<1x286xi32>
    %89 = arith.cmpi slt, %87, %88 : vector<1x286xi32>
    %cst_35 = arith.constant 0.000000e+00 : f32
    %90 = vector.shape_cast %89 : vector<1x286xi1> to vector<1x286xi1>
    %91 = vector.broadcast %90 : vector<1x286xi1> to vector<16x286xi1>
    %92 = vector.broadcast %cst_35 : f32 to vector<16x286xf32>
    %93 = arith.select %91, %70, %92 : vector<16x286xi1>, vector<16x286xf32>
    %cst_36 = arith.constant 0.000000e+00 : bf16
    %94 = vector.broadcast %cst_36 : bf16 to vector<16x19xbf16>
    %95 = arith.truncf %93 : vector<16x286xf32> to vector<16x286xbf16>
    %96 = tpu.concatenate %94, %95, %94 in 1 : vector<16x19xbf16>, vector<16x286xbf16>, vector<16x19xbf16> -> vector<16x324xbf16>
    %97 = vector.extract_strided_slice %96 {offsets = [0, 0], sizes = [16, 286], strides = [1, 1]} : vector<16x324xbf16> to vector<16x286xbf16>
    %98 = vector.extract_strided_slice %96 {offsets = [0, 1], sizes = [16, 286], strides = [1, 1]} : vector<16x324xbf16> to vector<16x286xbf16>
    %99 = vector.extract_strided_slice %96 {offsets = [0, 2], sizes = [16, 286], strides = [1, 1]} : vector<16x324xbf16> to vector<16x286xbf16>
    %100 = vector.extract_strided_slice %96 {offsets = [0, 18], sizes = [16, 286], strides = [1, 1]} : vector<16x324xbf16> to vector<16x286xbf16>
    %101 = vector.extract_strided_slice %96 {offsets = [0, 19], sizes = [16, 286], strides = [1, 1]} : vector<16x324xbf16> to vector<16x286xbf16>
    %102 = vector.extract_strided_slice %96 {offsets = [0, 20], sizes = [16, 286], strides = [1, 1]} : vector<16x324xbf16> to vector<16x286xbf16>
    %103 = vector.extract_strided_slice %96 {offsets = [0, 36], sizes = [16, 286], strides = [1, 1]} : vector<16x324xbf16> to vector<16x286xbf16>
    %104 = vector.extract_strided_slice %96 {offsets = [0, 37], sizes = [16, 286], strides = [1, 1]} : vector<16x324xbf16> to vector<16x286xbf16>
    %105 = vector.extract_strided_slice %96 {offsets = [0, 38], sizes = [16, 286], strides = [1, 1]} : vector<16x324xbf16> to vector<16x286xbf16>
    %106 = tpu.concatenate %97, %98, %99, %100, %101, %102, %103, %104, %105 in 0 : vector<16x286xbf16>, vector<16x286xbf16>, vector<16x286xbf16>, vector<16x286xbf16>, vector<16x286xbf16>, vector<16x286xbf16>, vector<16x286xbf16>, vector<16x286xbf16>, vector<16x286xbf16> -> vector<144x286xbf16>
    %cst_37 = arith.constant dense<0.000000e+00> : vector<16x286xf32>
    %107 = tpu.matmul %51, %106, %cst_37 {dimension_numbers = #tpu.dot_dimension_numbers<[1], [0], [0], [1], [0, 0, 1, 1], [], []>} : vector<16x144xbf16>, vector<144x286xbf16>, vector<16x286xf32> -> vector<16x286xf32>
    %108 = vector.extract_strided_slice %47 {offsets = [0, 19], sizes = [16, 286], strides = [1, 1]} : vector<16x324xbf16> to vector<16x286xbf16>
    %109 = arith.extf %108 : vector<16x286xbf16> to vector<16x286xf32>
    %110 = vector.broadcast %52 : vector<16x1xf32> to vector<16x286xf32>
    %111 = arith.mulf %107, %110 : vector<16x286xf32>
    %112 = vector.broadcast %53 : vector<16x1xf32> to vector<16x286xf32>
    %113 = arith.addf %111, %112 : vector<16x286xf32>
    %114 = arith.addf %113, %109 : vector<16x286xf32>
    %cst_38 = arith.constant 0.000000e+00 : f32
    %115 = vector.broadcast %cst_38 : f32 to vector<16x286xf32>
    %116 = arith.maximumf %114, %115 : vector<16x286xf32>
    %117 = tpu.iota {dimensions = array<i32: 1>} : vector<1x286xi32>
    %c18_i32_39 = arith.constant 18 : i32
    %c0_i32_40 = arith.constant 0 : i32
    %118 = arith.cmpi eq, %c18_i32_39, %c0_i32_40 : i32
    %c1_i32_41 = arith.constant 1 : i32
    %119 = arith.select %118, %c1_i32_41, %c18_i32_39 : i32
    %120 = vector.broadcast %119 : i32 to vector<1x286xi32>
    %121 = arith.remsi %117, %120 : vector<1x286xi32>
    %c0_i32_42 = arith.constant 0 : i32
    %122 = vector.broadcast %c0_i32_42 : i32 to vector<1x286xi32>
    %123 = arith.cmpi ne, %121, %122 : vector<1x286xi32>
    %c0_i32_43 = arith.constant 0 : i32
    %124 = vector.broadcast %c0_i32_43 : i32 to vector<1x286xi32>
    %125 = arith.cmpi slt, %121, %124 : vector<1x286xi32>
    %c0_i32_44 = arith.constant 0 : i32
    %126 = arith.cmpi slt, %119, %c0_i32_44 : i32
    %127 = vector.broadcast %126 : i1 to vector<1x286xi1>
    %128 = vector.broadcast %127 : vector<1x286xi1> to vector<1x286xi1>
    %129 = arith.xori %125, %128 : vector<1x286xi1>
    %130 = arith.andi %129, %123 : vector<1x286xi1>
    %131 = vector.broadcast %119 : i32 to vector<1x286xi32>
    %132 = arith.addi %121, %131 : vector<1x286xi32>
    %133 = arith.select %130, %132, %121 : vector<1x286xi1>, vector<1x286xi32>
    %c16_i32_45 = arith.constant 16 : i32
    %134 = vector.broadcast %c16_i32_45 : i32 to vector<1x286xi32>
    %135 = arith.cmpi slt, %133, %134 : vector<1x286xi32>
    %cst_46 = arith.constant 0.000000e+00 : f32
    %136 = vector.shape_cast %135 : vector<1x286xi1> to vector<1x286xi1>
    %137 = vector.broadcast %136 : vector<1x286xi1> to vector<16x286xi1>
    %138 = vector.broadcast %cst_46 : f32 to vector<16x286xf32>
    %139 = arith.select %137, %116, %138 : vector<16x286xi1>, vector<16x286xf32>
    %cst_47 = arith.constant 0.000000e+00 : bf16
    %140 = vector.broadcast %cst_47 : bf16 to vector<16x19xbf16>
    %141 = arith.truncf %139 : vector<16x286xf32> to vector<16x286xbf16>
    %142 = tpu.concatenate %140, %141, %140 in 1 : vector<16x19xbf16>, vector<16x286xbf16>, vector<16x19xbf16> -> vector<16x324xbf16>
    %c0_48 = arith.constant 0 : index
    %c0_49 = arith.constant 0 : index
    %143 = vector.load %arg11[%c0_48, %c0_49] : memref<32x144xbf16, #tpu.memory_space<vmem>>, vector<32x144xbf16>
    %c0_50 = arith.constant 0 : index
    %c0_51 = arith.constant 0 : index
    %144 = vector.load %arg12[%c0_50, %c0_51] : memref<32x1xf32, #tpu.memory_space<vmem>>, vector<32x1xf32>
    %c0_52 = arith.constant 0 : index
    %c0_53 = arith.constant 0 : index
    %145 = vector.load %arg13[%c0_52, %c0_53] : memref<32x1xf32, #tpu.memory_space<vmem>>, vector<32x1xf32>
    %c0_54 = arith.constant 0 : index
    %c0_55 = arith.constant 0 : index
    %146 = vector.load %arg14[%c0_54, %c0_55] : memref<32x288xbf16, #tpu.memory_space<vmem>>, vector<32x288xbf16>
    %c0_56 = arith.constant 0 : index
    %c0_57 = arith.constant 0 : index
    %147 = vector.load %arg15[%c0_56, %c0_57] : memref<32x1xf32, #tpu.memory_space<vmem>>, vector<32x1xf32>
    %c0_58 = arith.constant 0 : index
    %c0_59 = arith.constant 0 : index
    %148 = vector.load %arg16[%c0_58, %c0_59] : memref<32x1xf32, #tpu.memory_space<vmem>>, vector<32x1xf32>
    %c0_60 = arith.constant 0 : index
    %c0_61 = arith.constant 0 : index
    %149 = vector.load %arg17[%c0_60, %c0_61] : memref<32x16xbf16, #tpu.memory_space<vmem>>, vector<32x16xbf16>
    %c0_62 = arith.constant 0 : index
    %c0_63 = arith.constant 0 : index
    %150 = vector.load %arg18[%c0_62, %c0_63] : memref<32x1xf32, #tpu.memory_space<vmem>>, vector<32x1xf32>
    %c0_64 = arith.constant 0 : index
    %c0_65 = arith.constant 0 : index
    %151 = vector.load %arg19[%c0_64, %c0_65] : memref<32x1xf32, #tpu.memory_space<vmem>>, vector<32x1xf32>
    %c0_66 = arith.constant 0 : index
    %c0_67 = arith.constant 0 : index
    %152 = vector.load %arg20[%c0_66, %c0_67] : memref<286x78xbf16, #tpu.memory_space<vmem>>, vector<286x78xbf16>
    %153 = vector.extract_strided_slice %142 {offsets = [0, 0], sizes = [16, 286], strides = [1, 1]} : vector<16x324xbf16> to vector<16x286xbf16>
    %154 = vector.extract_strided_slice %142 {offsets = [0, 1], sizes = [16, 286], strides = [1, 1]} : vector<16x324xbf16> to vector<16x286xbf16>
    %155 = vector.extract_strided_slice %142 {offsets = [0, 2], sizes = [16, 286], strides = [1, 1]} : vector<16x324xbf16> to vector<16x286xbf16>
    %156 = vector.extract_strided_slice %142 {offsets = [0, 18], sizes = [16, 286], strides = [1, 1]} : vector<16x324xbf16> to vector<16x286xbf16>
    %157 = vector.extract_strided_slice %142 {offsets = [0, 19], sizes = [16, 286], strides = [1, 1]} : vector<16x324xbf16> to vector<16x286xbf16>
    %158 = vector.extract_strided_slice %142 {offsets = [0, 20], sizes = [16, 286], strides = [1, 1]} : vector<16x324xbf16> to vector<16x286xbf16>
    %159 = vector.extract_strided_slice %142 {offsets = [0, 36], sizes = [16, 286], strides = [1, 1]} : vector<16x324xbf16> to vector<16x286xbf16>
    %160 = vector.extract_strided_slice %142 {offsets = [0, 37], sizes = [16, 286], strides = [1, 1]} : vector<16x324xbf16> to vector<16x286xbf16>
    %161 = vector.extract_strided_slice %142 {offsets = [0, 38], sizes = [16, 286], strides = [1, 1]} : vector<16x324xbf16> to vector<16x286xbf16>
    %162 = tpu.concatenate %153, %154, %155, %156, %157, %158, %159, %160, %161 in 0 : vector<16x286xbf16>, vector<16x286xbf16>, vector<16x286xbf16>, vector<16x286xbf16>, vector<16x286xbf16>, vector<16x286xbf16>, vector<16x286xbf16>, vector<16x286xbf16>, vector<16x286xbf16> -> vector<144x286xbf16>
    %cst_68 = arith.constant dense<0.000000e+00> : vector<32x286xf32>
    %163 = tpu.matmul %143, %162, %cst_68 {dimension_numbers = #tpu.dot_dimension_numbers<[1], [0], [0], [1], [0, 0, 1, 1], [], []>} : vector<32x144xbf16>, vector<144x286xbf16>, vector<32x286xf32> -> vector<32x286xf32>
    %164 = arith.truncf %163 : vector<32x286xf32> to vector<32x286xbf16>
    %cst_69 = arith.constant dense<0.000000e+00> : vector<32x78xf32>
    %165 = tpu.matmul %164, %152, %cst_69 {dimension_numbers = #tpu.dot_dimension_numbers<[1], [0], [0], [1], [0, 0, 1, 1], [], []>} : vector<32x286xbf16>, vector<286x78xbf16>, vector<32x78xf32> -> vector<32x78xf32>
    %166 = vector.broadcast %144 : vector<32x1xf32> to vector<32x78xf32>
    %167 = arith.mulf %165, %166 : vector<32x78xf32>
    %168 = vector.broadcast %145 : vector<32x1xf32> to vector<32x78xf32>
    %169 = arith.addf %167, %168 : vector<32x78xf32>
    %cst_70 = arith.constant 0.000000e+00 : f32
    %170 = vector.broadcast %cst_70 : f32 to vector<32x78xf32>
    %171 = arith.maximumf %169, %170 : vector<32x78xf32>
    %172 = tpu.iota {dimensions = array<i32: 1>} : vector<1x78xi32>
    %c10_i32 = arith.constant 10 : i32
    %c0_i32_71 = arith.constant 0 : i32
    %173 = arith.cmpi eq, %c10_i32, %c0_i32_71 : i32
    %c1_i32_72 = arith.constant 1 : i32
    %174 = arith.select %173, %c1_i32_72, %c10_i32 : i32
    %175 = vector.broadcast %174 : i32 to vector<1x78xi32>
    %176 = arith.remsi %172, %175 : vector<1x78xi32>
    %c0_i32_73 = arith.constant 0 : i32
    %177 = vector.broadcast %c0_i32_73 : i32 to vector<1x78xi32>
    %178 = arith.cmpi ne, %176, %177 : vector<1x78xi32>
    %c0_i32_74 = arith.constant 0 : i32
    %179 = vector.broadcast %c0_i32_74 : i32 to vector<1x78xi32>
    %180 = arith.cmpi slt, %176, %179 : vector<1x78xi32>
    %c0_i32_75 = arith.constant 0 : i32
    %181 = arith.cmpi slt, %174, %c0_i32_75 : i32
    %182 = vector.broadcast %181 : i1 to vector<1x78xi1>
    %183 = vector.broadcast %182 : vector<1x78xi1> to vector<1x78xi1>
    %184 = arith.xori %180, %183 : vector<1x78xi1>
    %185 = arith.andi %184, %178 : vector<1x78xi1>
    %186 = vector.broadcast %174 : i32 to vector<1x78xi32>
    %187 = arith.addi %176, %186 : vector<1x78xi32>
    %188 = arith.select %185, %187, %176 : vector<1x78xi1>, vector<1x78xi32>
    %c8_i32 = arith.constant 8 : i32
    %189 = vector.broadcast %c8_i32 : i32 to vector<1x78xi32>
    %190 = arith.cmpi slt, %188, %189 : vector<1x78xi32>
    %cst_76 = arith.constant 0.000000e+00 : f32
    %191 = vector.shape_cast %190 : vector<1x78xi1> to vector<1x78xi1>
    %192 = vector.broadcast %191 : vector<1x78xi1> to vector<32x78xi1>
    %193 = vector.broadcast %cst_76 : f32 to vector<32x78xf32>
    %194 = arith.select %192, %171, %193 : vector<32x78xi1>, vector<32x78xf32>
    %cst_77 = arith.constant 0.000000e+00 : bf16
    %195 = vector.broadcast %cst_77 : bf16 to vector<32x11xbf16>
    %196 = arith.truncf %194 : vector<32x78xf32> to vector<32x78xbf16>
    %197 = tpu.concatenate %195, %196, %195 in 1 : vector<32x11xbf16>, vector<32x78xbf16>, vector<32x11xbf16> -> vector<32x100xbf16>
    %198 = vector.extract_strided_slice %197 {offsets = [0, 0], sizes = [32, 78], strides = [1, 1]} : vector<32x100xbf16> to vector<32x78xbf16>
    %199 = vector.extract_strided_slice %197 {offsets = [0, 1], sizes = [32, 78], strides = [1, 1]} : vector<32x100xbf16> to vector<32x78xbf16>
    %200 = vector.extract_strided_slice %197 {offsets = [0, 2], sizes = [32, 78], strides = [1, 1]} : vector<32x100xbf16> to vector<32x78xbf16>
    %201 = vector.extract_strided_slice %197 {offsets = [0, 10], sizes = [32, 78], strides = [1, 1]} : vector<32x100xbf16> to vector<32x78xbf16>
    %202 = vector.extract_strided_slice %197 {offsets = [0, 11], sizes = [32, 78], strides = [1, 1]} : vector<32x100xbf16> to vector<32x78xbf16>
    %203 = vector.extract_strided_slice %197 {offsets = [0, 12], sizes = [32, 78], strides = [1, 1]} : vector<32x100xbf16> to vector<32x78xbf16>
    %204 = vector.extract_strided_slice %197 {offsets = [0, 20], sizes = [32, 78], strides = [1, 1]} : vector<32x100xbf16> to vector<32x78xbf16>
    %205 = vector.extract_strided_slice %197 {offsets = [0, 21], sizes = [32, 78], strides = [1, 1]} : vector<32x100xbf16> to vector<32x78xbf16>
    %206 = vector.extract_strided_slice %197 {offsets = [0, 22], sizes = [32, 78], strides = [1, 1]} : vector<32x100xbf16> to vector<32x78xbf16>
    %207 = tpu.concatenate %198, %199, %200, %201, %202, %203, %204, %205, %206 in 0 : vector<32x78xbf16>, vector<32x78xbf16>, vector<32x78xbf16>, vector<32x78xbf16>, vector<32x78xbf16>, vector<32x78xbf16>, vector<32x78xbf16>, vector<32x78xbf16>, vector<32x78xbf16> -> vector<288x78xbf16>
    %cst_78 = arith.constant dense<0.000000e+00> : vector<32x78xf32>
    %208 = tpu.matmul %146, %207, %cst_78 {dimension_numbers = #tpu.dot_dimension_numbers<[1], [0], [0], [1], [0, 0, 1, 1], [], []>} : vector<32x288xbf16>, vector<288x78xbf16>, vector<32x78xf32> -> vector<32x78xf32>
    %209 = vector.extract_strided_slice %142 {offsets = [0, 19], sizes = [16, 286], strides = [1, 1]} : vector<16x324xbf16> to vector<16x286xbf16>
    %cst_79 = arith.constant dense<0.000000e+00> : vector<16x78xf32>
    %210 = tpu.matmul %209, %152, %cst_79 {dimension_numbers = #tpu.dot_dimension_numbers<[1], [0], [0], [1], [0, 0, 1, 1], [], []>} : vector<16x286xbf16>, vector<286x78xbf16>, vector<16x78xf32> -> vector<16x78xf32>
    %211 = arith.truncf %210 : vector<16x78xf32> to vector<16x78xbf16>
    %cst_80 = arith.constant dense<0.000000e+00> : vector<32x78xf32>
    %212 = tpu.matmul %149, %211, %cst_80 {dimension_numbers = #tpu.dot_dimension_numbers<[1], [0], [0], [1], [0, 0, 1, 1], [], []>} : vector<32x16xbf16>, vector<16x78xbf16>, vector<32x78xf32> -> vector<32x78xf32>
    %213 = vector.broadcast %150 : vector<32x1xf32> to vector<32x78xf32>
    %214 = arith.mulf %212, %213 : vector<32x78xf32>
    %215 = vector.broadcast %151 : vector<32x1xf32> to vector<32x78xf32>
    %216 = arith.addf %214, %215 : vector<32x78xf32>
    %217 = vector.broadcast %147 : vector<32x1xf32> to vector<32x78xf32>
    %218 = arith.mulf %208, %217 : vector<32x78xf32>
    %219 = vector.broadcast %148 : vector<32x1xf32> to vector<32x78xf32>
    %220 = arith.addf %218, %219 : vector<32x78xf32>
    %221 = arith.addf %220, %216 : vector<32x78xf32>
    %cst_81 = arith.constant 0.000000e+00 : f32
    %222 = vector.broadcast %cst_81 : f32 to vector<32x78xf32>
    %223 = arith.maximumf %221, %222 : vector<32x78xf32>
    %224 = tpu.iota {dimensions = array<i32: 1>} : vector<1x78xi32>
    %c10_i32_82 = arith.constant 10 : i32
    %c0_i32_83 = arith.constant 0 : i32
    %225 = arith.cmpi eq, %c10_i32_82, %c0_i32_83 : i32
    %c1_i32_84 = arith.constant 1 : i32
    %226 = arith.select %225, %c1_i32_84, %c10_i32_82 : i32
    %227 = vector.broadcast %226 : i32 to vector<1x78xi32>
    %228 = arith.remsi %224, %227 : vector<1x78xi32>
    %c0_i32_85 = arith.constant 0 : i32
    %229 = vector.broadcast %c0_i32_85 : i32 to vector<1x78xi32>
    %230 = arith.cmpi ne, %228, %229 : vector<1x78xi32>
    %c0_i32_86 = arith.constant 0 : i32
    %231 = vector.broadcast %c0_i32_86 : i32 to vector<1x78xi32>
    %232 = arith.cmpi slt, %228, %231 : vector<1x78xi32>
    %c0_i32_87 = arith.constant 0 : i32
    %233 = arith.cmpi slt, %226, %c0_i32_87 : i32
    %234 = vector.broadcast %233 : i1 to vector<1x78xi1>
    %235 = vector.broadcast %234 : vector<1x78xi1> to vector<1x78xi1>
    %236 = arith.xori %232, %235 : vector<1x78xi1>
    %237 = arith.andi %236, %230 : vector<1x78xi1>
    %238 = vector.broadcast %226 : i32 to vector<1x78xi32>
    %239 = arith.addi %228, %238 : vector<1x78xi32>
    %240 = arith.select %237, %239, %228 : vector<1x78xi1>, vector<1x78xi32>
    %c8_i32_88 = arith.constant 8 : i32
    %241 = vector.broadcast %c8_i32_88 : i32 to vector<1x78xi32>
    %242 = arith.cmpi slt, %240, %241 : vector<1x78xi32>
    %cst_89 = arith.constant 0.000000e+00 : f32
    %243 = vector.shape_cast %242 : vector<1x78xi1> to vector<1x78xi1>
    %244 = vector.broadcast %243 : vector<1x78xi1> to vector<32x78xi1>
    %245 = vector.broadcast %cst_89 : f32 to vector<32x78xf32>
    %246 = arith.select %244, %223, %245 : vector<32x78xi1>, vector<32x78xf32>
    %cst_90 = arith.constant 0.000000e+00 : bf16
    %247 = vector.broadcast %cst_90 : bf16 to vector<32x11xbf16>
    %248 = arith.truncf %246 : vector<32x78xf32> to vector<32x78xbf16>
    %249 = tpu.concatenate %247, %248, %247 in 1 : vector<32x11xbf16>, vector<32x78xbf16>, vector<32x11xbf16> -> vector<32x100xbf16>
    %c0_91 = arith.constant 0 : index
    %c0_92 = arith.constant 0 : index
    %250 = vector.load %arg21[%c0_91, %c0_92] : memref<64x288xbf16, #tpu.memory_space<vmem>>, vector<64x288xbf16>
    %c0_93 = arith.constant 0 : index
    %c0_94 = arith.constant 0 : index
    %251 = vector.load %arg22[%c0_93, %c0_94] : memref<64x1xf32, #tpu.memory_space<vmem>>, vector<64x1xf32>
    %c0_95 = arith.constant 0 : index
    %c0_96 = arith.constant 0 : index
    %252 = vector.load %arg23[%c0_95, %c0_96] : memref<64x1xf32, #tpu.memory_space<vmem>>, vector<64x1xf32>
    %c0_97 = arith.constant 0 : index
    %c0_98 = arith.constant 0 : index
    %253 = vector.load %arg24[%c0_97, %c0_98] : memref<64x576xbf16, #tpu.memory_space<vmem>>, vector<64x576xbf16>
    %c0_99 = arith.constant 0 : index
    %c0_100 = arith.constant 0 : index
    %254 = vector.load %arg25[%c0_99, %c0_100] : memref<64x1xf32, #tpu.memory_space<vmem>>, vector<64x1xf32>
    %c0_101 = arith.constant 0 : index
    %c0_102 = arith.constant 0 : index
    %255 = vector.load %arg26[%c0_101, %c0_102] : memref<64x1xf32, #tpu.memory_space<vmem>>, vector<64x1xf32>
    %c0_103 = arith.constant 0 : index
    %c0_104 = arith.constant 0 : index
    %256 = vector.load %arg27[%c0_103, %c0_104] : memref<64x32xbf16, #tpu.memory_space<vmem>>, vector<64x32xbf16>
    %c0_105 = arith.constant 0 : index
    %c0_106 = arith.constant 0 : index
    %257 = vector.load %arg28[%c0_105, %c0_106] : memref<64x1xf32, #tpu.memory_space<vmem>>, vector<64x1xf32>
    %c0_107 = arith.constant 0 : index
    %c0_108 = arith.constant 0 : index
    %258 = vector.load %arg29[%c0_107, %c0_108] : memref<64x1xf32, #tpu.memory_space<vmem>>, vector<64x1xf32>
    %c0_109 = arith.constant 0 : index
    %c0_110 = arith.constant 0 : index
    %259 = vector.load %arg30[%c0_109, %c0_110] : memref<78x22xbf16, #tpu.memory_space<vmem>>, vector<78x22xbf16>
    %260 = vector.extract_strided_slice %249 {offsets = [0, 0], sizes = [32, 78], strides = [1, 1]} : vector<32x100xbf16> to vector<32x78xbf16>
    %261 = vector.extract_strided_slice %249 {offsets = [0, 1], sizes = [32, 78], strides = [1, 1]} : vector<32x100xbf16> to vector<32x78xbf16>
    %262 = vector.extract_strided_slice %249 {offsets = [0, 2], sizes = [32, 78], strides = [1, 1]} : vector<32x100xbf16> to vector<32x78xbf16>
    %263 = vector.extract_strided_slice %249 {offsets = [0, 10], sizes = [32, 78], strides = [1, 1]} : vector<32x100xbf16> to vector<32x78xbf16>
    %264 = vector.extract_strided_slice %249 {offsets = [0, 11], sizes = [32, 78], strides = [1, 1]} : vector<32x100xbf16> to vector<32x78xbf16>
    %265 = vector.extract_strided_slice %249 {offsets = [0, 12], sizes = [32, 78], strides = [1, 1]} : vector<32x100xbf16> to vector<32x78xbf16>
    %266 = vector.extract_strided_slice %249 {offsets = [0, 20], sizes = [32, 78], strides = [1, 1]} : vector<32x100xbf16> to vector<32x78xbf16>
    %267 = vector.extract_strided_slice %249 {offsets = [0, 21], sizes = [32, 78], strides = [1, 1]} : vector<32x100xbf16> to vector<32x78xbf16>
    %268 = vector.extract_strided_slice %249 {offsets = [0, 22], sizes = [32, 78], strides = [1, 1]} : vector<32x100xbf16> to vector<32x78xbf16>
    %269 = tpu.concatenate %260, %261, %262, %263, %264, %265, %266, %267, %268 in 0 : vector<32x78xbf16>, vector<32x78xbf16>, vector<32x78xbf16>, vector<32x78xbf16>, vector<32x78xbf16>, vector<32x78xbf16>, vector<32x78xbf16>, vector<32x78xbf16>, vector<32x78xbf16> -> vector<288x78xbf16>
    %cst_111 = arith.constant dense<0.000000e+00> : vector<64x78xf32>
    %270 = tpu.matmul %250, %269, %cst_111 {dimension_numbers = #tpu.dot_dimension_numbers<[1], [0], [0], [1], [0, 0, 1, 1], [], []>} : vector<64x288xbf16>, vector<288x78xbf16>, vector<64x78xf32> -> vector<64x78xf32>
    %271 = arith.truncf %270 : vector<64x78xf32> to vector<64x78xbf16>
    %cst_112 = arith.constant dense<0.000000e+00> : vector<64x22xf32>
    %272 = tpu.matmul %271, %259, %cst_112 {dimension_numbers = #tpu.dot_dimension_numbers<[1], [0], [0], [1], [0, 0, 1, 1], [], []>} : vector<64x78xbf16>, vector<78x22xbf16>, vector<64x22xf32> -> vector<64x22xf32>
    %273 = vector.broadcast %251 : vector<64x1xf32> to vector<64x22xf32>
    %274 = arith.mulf %272, %273 : vector<64x22xf32>
    %275 = vector.broadcast %252 : vector<64x1xf32> to vector<64x22xf32>
    %276 = arith.addf %274, %275 : vector<64x22xf32>
    %cst_113 = arith.constant 0.000000e+00 : f32
    %277 = vector.broadcast %cst_113 : f32 to vector<64x22xf32>
    %278 = arith.maximumf %276, %277 : vector<64x22xf32>
    %279 = tpu.iota {dimensions = array<i32: 1>} : vector<1x22xi32>
    %c6_i32 = arith.constant 6 : i32
    %c0_i32_114 = arith.constant 0 : i32
    %280 = arith.cmpi eq, %c6_i32, %c0_i32_114 : i32
    %c1_i32_115 = arith.constant 1 : i32
    %281 = arith.select %280, %c1_i32_115, %c6_i32 : i32
    %282 = vector.broadcast %281 : i32 to vector<1x22xi32>
    %283 = arith.remsi %279, %282 : vector<1x22xi32>
    %c0_i32_116 = arith.constant 0 : i32
    %284 = vector.broadcast %c0_i32_116 : i32 to vector<1x22xi32>
    %285 = arith.cmpi ne, %283, %284 : vector<1x22xi32>
    %c0_i32_117 = arith.constant 0 : i32
    %286 = vector.broadcast %c0_i32_117 : i32 to vector<1x22xi32>
    %287 = arith.cmpi slt, %283, %286 : vector<1x22xi32>
    %c0_i32_118 = arith.constant 0 : i32
    %288 = arith.cmpi slt, %281, %c0_i32_118 : i32
    %289 = vector.broadcast %288 : i1 to vector<1x22xi1>
    %290 = vector.broadcast %289 : vector<1x22xi1> to vector<1x22xi1>
    %291 = arith.xori %287, %290 : vector<1x22xi1>
    %292 = arith.andi %291, %285 : vector<1x22xi1>
    %293 = vector.broadcast %281 : i32 to vector<1x22xi32>
    %294 = arith.addi %283, %293 : vector<1x22xi32>
    %295 = arith.select %292, %294, %283 : vector<1x22xi1>, vector<1x22xi32>
    %c4_i32 = arith.constant 4 : i32
    %296 = vector.broadcast %c4_i32 : i32 to vector<1x22xi32>
    %297 = arith.cmpi slt, %295, %296 : vector<1x22xi32>
    %cst_119 = arith.constant 0.000000e+00 : f32
    %298 = vector.shape_cast %297 : vector<1x22xi1> to vector<1x22xi1>
    %299 = vector.broadcast %298 : vector<1x22xi1> to vector<64x22xi1>
    %300 = vector.broadcast %cst_119 : f32 to vector<64x22xf32>
    %301 = arith.select %299, %278, %300 : vector<64x22xi1>, vector<64x22xf32>
    %cst_120 = arith.constant 0.000000e+00 : bf16
    %302 = vector.broadcast %cst_120 : bf16 to vector<64x7xbf16>
    %303 = arith.truncf %301 : vector<64x22xf32> to vector<64x22xbf16>
    %304 = tpu.concatenate %302, %303, %302 in 1 : vector<64x7xbf16>, vector<64x22xbf16>, vector<64x7xbf16> -> vector<64x36xbf16>
    %305 = vector.extract_strided_slice %304 {offsets = [0, 0], sizes = [64, 22], strides = [1, 1]} : vector<64x36xbf16> to vector<64x22xbf16>
    %306 = vector.extract_strided_slice %304 {offsets = [0, 1], sizes = [64, 22], strides = [1, 1]} : vector<64x36xbf16> to vector<64x22xbf16>
    %307 = vector.extract_strided_slice %304 {offsets = [0, 2], sizes = [64, 22], strides = [1, 1]} : vector<64x36xbf16> to vector<64x22xbf16>
    %308 = vector.extract_strided_slice %304 {offsets = [0, 6], sizes = [64, 22], strides = [1, 1]} : vector<64x36xbf16> to vector<64x22xbf16>
    %309 = vector.extract_strided_slice %304 {offsets = [0, 7], sizes = [64, 22], strides = [1, 1]} : vector<64x36xbf16> to vector<64x22xbf16>
    %310 = vector.extract_strided_slice %304 {offsets = [0, 8], sizes = [64, 22], strides = [1, 1]} : vector<64x36xbf16> to vector<64x22xbf16>
    %311 = vector.extract_strided_slice %304 {offsets = [0, 12], sizes = [64, 22], strides = [1, 1]} : vector<64x36xbf16> to vector<64x22xbf16>
    %312 = vector.extract_strided_slice %304 {offsets = [0, 13], sizes = [64, 22], strides = [1, 1]} : vector<64x36xbf16> to vector<64x22xbf16>
    %313 = vector.extract_strided_slice %304 {offsets = [0, 14], sizes = [64, 22], strides = [1, 1]} : vector<64x36xbf16> to vector<64x22xbf16>
    %314 = tpu.concatenate %305, %306, %307, %308, %309, %310, %311, %312, %313 in 0 : vector<64x22xbf16>, vector<64x22xbf16>, vector<64x22xbf16>, vector<64x22xbf16>, vector<64x22xbf16>, vector<64x22xbf16>, vector<64x22xbf16>, vector<64x22xbf16>, vector<64x22xbf16> -> vector<576x22xbf16>
    %cst_121 = arith.constant dense<0.000000e+00> : vector<64x22xf32>
    %315 = tpu.matmul %253, %314, %cst_121 {dimension_numbers = #tpu.dot_dimension_numbers<[1], [0], [0], [1], [0, 0, 1, 1], [], []>} : vector<64x576xbf16>, vector<576x22xbf16>, vector<64x22xf32> -> vector<64x22xf32>
    %316 = vector.extract_strided_slice %249 {offsets = [0, 11], sizes = [32, 78], strides = [1, 1]} : vector<32x100xbf16> to vector<32x78xbf16>
    %cst_122 = arith.constant dense<0.000000e+00> : vector<32x22xf32>
    %317 = tpu.matmul %316, %259, %cst_122 {dimension_numbers = #tpu.dot_dimension_numbers<[1], [0], [0], [1], [0, 0, 1, 1], [], []>} : vector<32x78xbf16>, vector<78x22xbf16>, vector<32x22xf32> -> vector<32x22xf32>
    %318 = arith.truncf %317 : vector<32x22xf32> to vector<32x22xbf16>
    %cst_123 = arith.constant dense<0.000000e+00> : vector<64x22xf32>
    %319 = tpu.matmul %256, %318, %cst_123 {dimension_numbers = #tpu.dot_dimension_numbers<[1], [0], [0], [1], [0, 0, 1, 1], [], []>} : vector<64x32xbf16>, vector<32x22xbf16>, vector<64x22xf32> -> vector<64x22xf32>
    %320 = vector.broadcast %257 : vector<64x1xf32> to vector<64x22xf32>
    %321 = arith.mulf %319, %320 : vector<64x22xf32>
    %322 = vector.broadcast %258 : vector<64x1xf32> to vector<64x22xf32>
    %323 = arith.addf %321, %322 : vector<64x22xf32>
    %324 = vector.broadcast %254 : vector<64x1xf32> to vector<64x22xf32>
    %325 = arith.mulf %315, %324 : vector<64x22xf32>
    %326 = vector.broadcast %255 : vector<64x1xf32> to vector<64x22xf32>
    %327 = arith.addf %325, %326 : vector<64x22xf32>
    %328 = arith.addf %327, %323 : vector<64x22xf32>
    %cst_124 = arith.constant 0.000000e+00 : f32
    %329 = vector.broadcast %cst_124 : f32 to vector<64x22xf32>
    %330 = arith.maximumf %328, %329 : vector<64x22xf32>
    %331 = tpu.iota {dimensions = array<i32: 1>} : vector<1x22xi32>
    %c6_i32_125 = arith.constant 6 : i32
    %c0_i32_126 = arith.constant 0 : i32
    %332 = arith.cmpi eq, %c6_i32_125, %c0_i32_126 : i32
    %c1_i32_127 = arith.constant 1 : i32
    %333 = arith.select %332, %c1_i32_127, %c6_i32_125 : i32
    %334 = vector.broadcast %333 : i32 to vector<1x22xi32>
    %335 = arith.remsi %331, %334 : vector<1x22xi32>
    %c0_i32_128 = arith.constant 0 : i32
    %336 = vector.broadcast %c0_i32_128 : i32 to vector<1x22xi32>
    %337 = arith.cmpi ne, %335, %336 : vector<1x22xi32>
    %c0_i32_129 = arith.constant 0 : i32
    %338 = vector.broadcast %c0_i32_129 : i32 to vector<1x22xi32>
    %339 = arith.cmpi slt, %335, %338 : vector<1x22xi32>
    %c0_i32_130 = arith.constant 0 : i32
    %340 = arith.cmpi slt, %333, %c0_i32_130 : i32
    %341 = vector.broadcast %340 : i1 to vector<1x22xi1>
    %342 = vector.broadcast %341 : vector<1x22xi1> to vector<1x22xi1>
    %343 = arith.xori %339, %342 : vector<1x22xi1>
    %344 = arith.andi %343, %337 : vector<1x22xi1>
    %345 = vector.broadcast %333 : i32 to vector<1x22xi32>
    %346 = arith.addi %335, %345 : vector<1x22xi32>
    %347 = arith.select %344, %346, %335 : vector<1x22xi1>, vector<1x22xi32>
    %c4_i32_131 = arith.constant 4 : i32
    %348 = vector.broadcast %c4_i32_131 : i32 to vector<1x22xi32>
    %349 = arith.cmpi slt, %347, %348 : vector<1x22xi32>
    %cst_132 = arith.constant 0.000000e+00 : f32
    %350 = vector.shape_cast %349 : vector<1x22xi1> to vector<1x22xi1>
    %351 = vector.broadcast %350 : vector<1x22xi1> to vector<64x22xi1>
    %352 = vector.broadcast %cst_132 : f32 to vector<64x22xf32>
    %353 = arith.select %351, %330, %352 : vector<64x22xi1>, vector<64x22xf32>
    %cst_133 = arith.constant 0.000000e+00 : bf16
    %354 = vector.broadcast %cst_133 : bf16 to vector<64x7xbf16>
    %355 = arith.truncf %353 : vector<64x22xf32> to vector<64x22xbf16>
    %356 = tpu.concatenate %354, %355, %354 in 1 : vector<64x7xbf16>, vector<64x22xbf16>, vector<64x7xbf16> -> vector<64x36xbf16>
    %c0_134 = arith.constant 0 : index
    %c0_135 = arith.constant 0 : index
    %357 = vector.load %arg31[%c0_134, %c0_135] : memref<128x576xbf16, #tpu.memory_space<vmem>>, vector<128x576xbf16>
    %c0_136 = arith.constant 0 : index
    %c0_137 = arith.constant 0 : index
    %358 = vector.load %arg32[%c0_136, %c0_137] : memref<128x1xf32, #tpu.memory_space<vmem>>, vector<128x1xf32>
    %c0_138 = arith.constant 0 : index
    %c0_139 = arith.constant 0 : index
    %359 = vector.load %arg33[%c0_138, %c0_139] : memref<128x1xf32, #tpu.memory_space<vmem>>, vector<128x1xf32>
    %c0_140 = arith.constant 0 : index
    %c0_141 = arith.constant 0 : index
    %360 = vector.load %arg34[%c0_140, %c0_141] : memref<128x1152xbf16, #tpu.memory_space<vmem>>, vector<128x1152xbf16>
    %c0_142 = arith.constant 0 : index
    %c0_143 = arith.constant 0 : index
    %361 = vector.load %arg35[%c0_142, %c0_143] : memref<128x1xf32, #tpu.memory_space<vmem>>, vector<128x1xf32>
    %c0_144 = arith.constant 0 : index
    %c0_145 = arith.constant 0 : index
    %362 = vector.load %arg36[%c0_144, %c0_145] : memref<128x1xf32, #tpu.memory_space<vmem>>, vector<128x1xf32>
    %c0_146 = arith.constant 0 : index
    %c0_147 = arith.constant 0 : index
    %363 = vector.load %arg37[%c0_146, %c0_147] : memref<128x64xbf16, #tpu.memory_space<vmem>>, vector<128x64xbf16>
    %c0_148 = arith.constant 0 : index
    %c0_149 = arith.constant 0 : index
    %364 = vector.load %arg38[%c0_148, %c0_149] : memref<128x1xf32, #tpu.memory_space<vmem>>, vector<128x1xf32>
    %c0_150 = arith.constant 0 : index
    %c0_151 = arith.constant 0 : index
    %365 = vector.load %arg39[%c0_150, %c0_151] : memref<128x1xf32, #tpu.memory_space<vmem>>, vector<128x1xf32>
    %c0_152 = arith.constant 0 : index
    %c0_153 = arith.constant 0 : index
    %366 = vector.load %arg40[%c0_152, %c0_153] : memref<22x6xbf16, #tpu.memory_space<vmem>>, vector<22x6xbf16>
    %367 = vector.extract_strided_slice %356 {offsets = [0, 0], sizes = [64, 22], strides = [1, 1]} : vector<64x36xbf16> to vector<64x22xbf16>
    %368 = vector.extract_strided_slice %356 {offsets = [0, 1], sizes = [64, 22], strides = [1, 1]} : vector<64x36xbf16> to vector<64x22xbf16>
    %369 = vector.extract_strided_slice %356 {offsets = [0, 2], sizes = [64, 22], strides = [1, 1]} : vector<64x36xbf16> to vector<64x22xbf16>
    %370 = vector.extract_strided_slice %356 {offsets = [0, 6], sizes = [64, 22], strides = [1, 1]} : vector<64x36xbf16> to vector<64x22xbf16>
    %371 = vector.extract_strided_slice %356 {offsets = [0, 7], sizes = [64, 22], strides = [1, 1]} : vector<64x36xbf16> to vector<64x22xbf16>
    %372 = vector.extract_strided_slice %356 {offsets = [0, 8], sizes = [64, 22], strides = [1, 1]} : vector<64x36xbf16> to vector<64x22xbf16>
    %373 = vector.extract_strided_slice %356 {offsets = [0, 12], sizes = [64, 22], strides = [1, 1]} : vector<64x36xbf16> to vector<64x22xbf16>
    %374 = vector.extract_strided_slice %356 {offsets = [0, 13], sizes = [64, 22], strides = [1, 1]} : vector<64x36xbf16> to vector<64x22xbf16>
    %375 = vector.extract_strided_slice %356 {offsets = [0, 14], sizes = [64, 22], strides = [1, 1]} : vector<64x36xbf16> to vector<64x22xbf16>
    %376 = tpu.concatenate %367, %368, %369, %370, %371, %372, %373, %374, %375 in 0 : vector<64x22xbf16>, vector<64x22xbf16>, vector<64x22xbf16>, vector<64x22xbf16>, vector<64x22xbf16>, vector<64x22xbf16>, vector<64x22xbf16>, vector<64x22xbf16>, vector<64x22xbf16> -> vector<576x22xbf16>
    %cst_154 = arith.constant dense<0.000000e+00> : vector<128x22xf32>
    %377 = tpu.matmul %357, %376, %cst_154 {dimension_numbers = #tpu.dot_dimension_numbers<[1], [0], [0], [1], [0, 0, 1, 1], [], []>} : vector<128x576xbf16>, vector<576x22xbf16>, vector<128x22xf32> -> vector<128x22xf32>
    %378 = arith.truncf %377 : vector<128x22xf32> to vector<128x22xbf16>
    %cst_155 = arith.constant dense<0.000000e+00> : vector<128x6xf32>
    %379 = tpu.matmul %378, %366, %cst_155 {dimension_numbers = #tpu.dot_dimension_numbers<[1], [0], [0], [1], [0, 0, 1, 1], [], []>} : vector<128x22xbf16>, vector<22x6xbf16>, vector<128x6xf32> -> vector<128x6xf32>
    %380 = vector.broadcast %358 : vector<128x1xf32> to vector<128x6xf32>
    %381 = arith.mulf %379, %380 : vector<128x6xf32>
    %382 = vector.broadcast %359 : vector<128x1xf32> to vector<128x6xf32>
    %383 = arith.addf %381, %382 : vector<128x6xf32>
    %cst_156 = arith.constant 0.000000e+00 : f32
    %384 = vector.broadcast %cst_156 : f32 to vector<128x6xf32>
    %385 = arith.maximumf %383, %384 : vector<128x6xf32>
    %386 = tpu.iota {dimensions = array<i32: 1>} : vector<1x6xi32>
    %c4_i32_157 = arith.constant 4 : i32
    %c0_i32_158 = arith.constant 0 : i32
    %387 = arith.cmpi eq, %c4_i32_157, %c0_i32_158 : i32
    %c1_i32_159 = arith.constant 1 : i32
    %388 = arith.select %387, %c1_i32_159, %c4_i32_157 : i32
    %389 = vector.broadcast %388 : i32 to vector<1x6xi32>
    %390 = arith.remsi %386, %389 : vector<1x6xi32>
    %c0_i32_160 = arith.constant 0 : i32
    %391 = vector.broadcast %c0_i32_160 : i32 to vector<1x6xi32>
    %392 = arith.cmpi ne, %390, %391 : vector<1x6xi32>
    %c0_i32_161 = arith.constant 0 : i32
    %393 = vector.broadcast %c0_i32_161 : i32 to vector<1x6xi32>
    %394 = arith.cmpi slt, %390, %393 : vector<1x6xi32>
    %c0_i32_162 = arith.constant 0 : i32
    %395 = arith.cmpi slt, %388, %c0_i32_162 : i32
    %396 = vector.broadcast %395 : i1 to vector<1x6xi1>
    %397 = vector.broadcast %396 : vector<1x6xi1> to vector<1x6xi1>
    %398 = arith.xori %394, %397 : vector<1x6xi1>
    %399 = arith.andi %398, %392 : vector<1x6xi1>
    %400 = vector.broadcast %388 : i32 to vector<1x6xi32>
    %401 = arith.addi %390, %400 : vector<1x6xi32>
    %402 = arith.select %399, %401, %390 : vector<1x6xi1>, vector<1x6xi32>
    %c2_i32 = arith.constant 2 : i32
    %403 = vector.broadcast %c2_i32 : i32 to vector<1x6xi32>
    %404 = arith.cmpi slt, %402, %403 : vector<1x6xi32>
    %cst_163 = arith.constant 0.000000e+00 : f32
    %405 = vector.shape_cast %404 : vector<1x6xi1> to vector<1x6xi1>
    %406 = vector.broadcast %405 : vector<1x6xi1> to vector<128x6xi1>
    %407 = vector.broadcast %cst_163 : f32 to vector<128x6xf32>
    %408 = arith.select %406, %385, %407 : vector<128x6xi1>, vector<128x6xf32>
    %cst_164 = arith.constant 0.000000e+00 : bf16
    %409 = vector.broadcast %cst_164 : bf16 to vector<128x5xbf16>
    %410 = arith.truncf %408 : vector<128x6xf32> to vector<128x6xbf16>
    %411 = tpu.concatenate %409, %410, %409 in 1 : vector<128x5xbf16>, vector<128x6xbf16>, vector<128x5xbf16> -> vector<128x16xbf16>
    %412 = vector.extract_strided_slice %411 {offsets = [0, 0], sizes = [128, 6], strides = [1, 1]} : vector<128x16xbf16> to vector<128x6xbf16>
    %413 = vector.extract_strided_slice %411 {offsets = [0, 1], sizes = [128, 6], strides = [1, 1]} : vector<128x16xbf16> to vector<128x6xbf16>
    %414 = vector.extract_strided_slice %411 {offsets = [0, 2], sizes = [128, 6], strides = [1, 1]} : vector<128x16xbf16> to vector<128x6xbf16>
    %415 = vector.extract_strided_slice %411 {offsets = [0, 4], sizes = [128, 6], strides = [1, 1]} : vector<128x16xbf16> to vector<128x6xbf16>
    %416 = vector.extract_strided_slice %411 {offsets = [0, 5], sizes = [128, 6], strides = [1, 1]} : vector<128x16xbf16> to vector<128x6xbf16>
    %417 = vector.extract_strided_slice %411 {offsets = [0, 6], sizes = [128, 6], strides = [1, 1]} : vector<128x16xbf16> to vector<128x6xbf16>
    %418 = vector.extract_strided_slice %411 {offsets = [0, 8], sizes = [128, 6], strides = [1, 1]} : vector<128x16xbf16> to vector<128x6xbf16>
    %419 = vector.extract_strided_slice %411 {offsets = [0, 9], sizes = [128, 6], strides = [1, 1]} : vector<128x16xbf16> to vector<128x6xbf16>
    %420 = vector.extract_strided_slice %411 {offsets = [0, 10], sizes = [128, 6], strides = [1, 1]} : vector<128x16xbf16> to vector<128x6xbf16>
    %421 = tpu.concatenate %412, %413, %414, %415, %416, %417, %418, %419, %420 in 0 : vector<128x6xbf16>, vector<128x6xbf16>, vector<128x6xbf16>, vector<128x6xbf16>, vector<128x6xbf16>, vector<128x6xbf16>, vector<128x6xbf16>, vector<128x6xbf16>, vector<128x6xbf16> -> vector<1152x6xbf16>
    %cst_165 = arith.constant dense<0.000000e+00> : vector<128x6xf32>
    %422 = tpu.matmul %360, %421, %cst_165 {dimension_numbers = #tpu.dot_dimension_numbers<[1], [0], [0], [1], [0, 0, 1, 1], [], []>} : vector<128x1152xbf16>, vector<1152x6xbf16>, vector<128x6xf32> -> vector<128x6xf32>
    %423 = vector.extract_strided_slice %356 {offsets = [0, 7], sizes = [64, 22], strides = [1, 1]} : vector<64x36xbf16> to vector<64x22xbf16>
    %cst_166 = arith.constant dense<0.000000e+00> : vector<64x6xf32>
    %424 = tpu.matmul %423, %366, %cst_166 {dimension_numbers = #tpu.dot_dimension_numbers<[1], [0], [0], [1], [0, 0, 1, 1], [], []>} : vector<64x22xbf16>, vector<22x6xbf16>, vector<64x6xf32> -> vector<64x6xf32>
    %425 = arith.truncf %424 : vector<64x6xf32> to vector<64x6xbf16>
    %cst_167 = arith.constant dense<0.000000e+00> : vector<128x6xf32>
    %426 = tpu.matmul %363, %425, %cst_167 {dimension_numbers = #tpu.dot_dimension_numbers<[1], [0], [0], [1], [0, 0, 1, 1], [], []>} : vector<128x64xbf16>, vector<64x6xbf16>, vector<128x6xf32> -> vector<128x6xf32>
    %427 = vector.broadcast %364 : vector<128x1xf32> to vector<128x6xf32>
    %428 = arith.mulf %426, %427 : vector<128x6xf32>
    %429 = vector.broadcast %365 : vector<128x1xf32> to vector<128x6xf32>
    %430 = arith.addf %428, %429 : vector<128x6xf32>
    %431 = vector.broadcast %361 : vector<128x1xf32> to vector<128x6xf32>
    %432 = arith.mulf %422, %431 : vector<128x6xf32>
    %433 = vector.broadcast %362 : vector<128x1xf32> to vector<128x6xf32>
    %434 = arith.addf %432, %433 : vector<128x6xf32>
    %435 = arith.addf %434, %430 : vector<128x6xf32>
    %cst_168 = arith.constant 0.000000e+00 : f32
    %436 = vector.broadcast %cst_168 : f32 to vector<128x6xf32>
    %437 = arith.maximumf %435, %436 : vector<128x6xf32>
    %438 = tpu.iota {dimensions = array<i32: 1>} : vector<1x6xi32>
    %c4_i32_169 = arith.constant 4 : i32
    %c0_i32_170 = arith.constant 0 : i32
    %439 = arith.cmpi eq, %c4_i32_169, %c0_i32_170 : i32
    %c1_i32_171 = arith.constant 1 : i32
    %440 = arith.select %439, %c1_i32_171, %c4_i32_169 : i32
    %441 = vector.broadcast %440 : i32 to vector<1x6xi32>
    %442 = arith.remsi %438, %441 : vector<1x6xi32>
    %c0_i32_172 = arith.constant 0 : i32
    %443 = vector.broadcast %c0_i32_172 : i32 to vector<1x6xi32>
    %444 = arith.cmpi ne, %442, %443 : vector<1x6xi32>
    %c0_i32_173 = arith.constant 0 : i32
    %445 = vector.broadcast %c0_i32_173 : i32 to vector<1x6xi32>
    %446 = arith.cmpi slt, %442, %445 : vector<1x6xi32>
    %c0_i32_174 = arith.constant 0 : i32
    %447 = arith.cmpi slt, %440, %c0_i32_174 : i32
    %448 = vector.broadcast %447 : i1 to vector<1x6xi1>
    %449 = vector.broadcast %448 : vector<1x6xi1> to vector<1x6xi1>
    %450 = arith.xori %446, %449 : vector<1x6xi1>
    %451 = arith.andi %450, %444 : vector<1x6xi1>
    %452 = vector.broadcast %440 : i32 to vector<1x6xi32>
    %453 = arith.addi %442, %452 : vector<1x6xi32>
    %454 = arith.select %451, %453, %442 : vector<1x6xi1>, vector<1x6xi32>
    %c2_i32_175 = arith.constant 2 : i32
    %455 = vector.broadcast %c2_i32_175 : i32 to vector<1x6xi32>
    %456 = arith.cmpi slt, %454, %455 : vector<1x6xi32>
    %cst_176 = arith.constant 0.000000e+00 : f32
    %457 = vector.shape_cast %456 : vector<1x6xi1> to vector<1x6xi1>
    %458 = vector.broadcast %457 : vector<1x6xi1> to vector<128x6xi1>
    %459 = vector.broadcast %cst_176 : f32 to vector<128x6xf32>
    %460 = arith.select %458, %437, %459 : vector<128x6xi1>, vector<128x6xf32>
    %c0_177 = arith.constant 0 : index
    %c0_178 = arith.constant 0 : index
    %461 = vector.load %arg41[%c0_177, %c0_178] : memref<10x128xbf16, #tpu.memory_space<vmem>>, vector<10x128xbf16>
    %c0_179 = arith.constant 0 : index
    %c0_180 = arith.constant 0 : index
    %462 = vector.load %arg42[%c0_179, %c0_180] : memref<10x1xf32, #tpu.memory_space<vmem>>, vector<10x1xf32>
    %cst_181 = arith.constant dense<0.000000e+00> : vector<128xf32>
    %463 = vector.multi_reduction <add>, %460, %cst_181 [1] : vector<128x6xf32> to vector<128xf32>
    %464 = vector.shape_cast %463 : vector<128xf32> to vector<128x1xf32>
    %cst_182 = arith.constant 2.500000e-01 : f32
    %465 = vector.broadcast %cst_182 : f32 to vector<128x1xf32>
    %466 = arith.mulf %464, %465 : vector<128x1xf32>
    %467 = arith.truncf %466 : vector<128x1xf32> to vector<128x1xbf16>
    %cst_183 = arith.constant dense<0.000000e+00> : vector<10x1xf32>
    %468 = tpu.matmul %461, %467, %cst_183 {dimension_numbers = #tpu.dot_dimension_numbers<[1], [0], [0], [1], [0, 0, 1, 1], [], []>} : vector<10x128xbf16>, vector<128x1xbf16>, vector<10x1xf32> -> vector<10x1xf32>
    %469 = arith.addf %468, %462 : vector<10x1xf32>
    %470 = vector.shape_cast %469 : vector<10x1xf32> to vector<1x10x1xf32>
    %c0_184 = arith.constant 0 : index
    %c0_185 = arith.constant 0 : index
    %c0_186 = arith.constant 0 : index
    %471 = vector.load %arg43[%c0_184, %c0_185, %c0_186] : memref<1x10x1xf32, #tpu.memory_space<vmem>>, vector<1x10x1xf32>
    tpu.vector_store %arg43[%c0_184, %c0_185, %c0_186], %470 {strides = array<i32>} : memref<1x10x1xf32, #tpu.memory_space<vmem>>, vector<1x10x1xf32>,
    return
  }
  func.func @transform_0(%arg0: i32) -> (i32, i32, i32) {
    %c0_i32 = arith.constant 0 : i32
    %c0_i32_0 = arith.constant 0 : i32
    %c0_i32_1 = arith.constant 0 : i32
    return %arg0, %c0_i32, %c0_i32_0 : i32, i32, i32
  }
  func.func @transform_1(%arg0: i32) -> (i32, i32) {
    %c0_i32 = arith.constant 0 : i32
    %c0_i32_0 = arith.constant 0 : i32
    %c0_i32_1 = arith.constant 0 : i32
    return %c0_i32, %c0_i32_0 : i32, i32
  }
  func.func @transform_2(%arg0: i32) -> (i32, i32) {
    %c0_i32 = arith.constant 0 : i32
    %c0_i32_0 = arith.constant 0 : i32
    %c0_i32_1 = arith.constant 0 : i32
    return %c0_i32, %c0_i32_0 : i32, i32
  }
  func.func @transform_3(%arg0: i32) -> (i32, i32) {
    %c0_i32 = arith.constant 0 : i32
    %c0_i32_0 = arith.constant 0 : i32
    %c0_i32_1 = arith.constant 0 : i32
    return %c0_i32, %c0_i32_0 : i32, i32
  }
  func.func @transform_4(%arg0: i32) -> (i32, i32) {
    %c0_i32 = arith.constant 0 : i32
    %c0_i32_0 = arith.constant 0 : i32
    %c0_i32_1 = arith.constant 0 : i32
    return %c0_i32, %c0_i32_0 : i32, i32
  }
  func.func @transform_5(%arg0: i32) -> (i32, i32) {
    %c0_i32 = arith.constant 0 : i32
    %c0_i32_0 = arith.constant 0 : i32
    %c0_i32_1 = arith.constant 0 : i32
    return %c0_i32, %c0_i32_0 : i32, i32
  }
  func.func @transform_6(%arg0: i32) -> (i32, i32) {
    %c0_i32 = arith.constant 0 : i32
    %c0_i32_0 = arith.constant 0 : i32
    %c0_i32_1 = arith.constant 0 : i32
    return %c0_i32, %c0_i32_0 : i32, i32
  }
  func.func @transform_7(%arg0: i32) -> (i32, i32) {
    %c0_i32 = arith.constant 0 : i32
    %c0_i32_0 = arith.constant 0 : i32
    %c0_i32_1 = arith.constant 0 : i32
    return %c0_i32, %c0_i32_0 : i32, i32
  }
  func.func @transform_8(%arg0: i32) -> (i32, i32) {
    %c0_i32 = arith.constant 0 : i32
    %c0_i32_0 = arith.constant 0 : i32
    %c0_i32_1 = arith.constant 0 : i32
    return %c0_i32, %c0_i32_0 : i32, i32
  }
  func.func @transform_9(%arg0: i32) -> (i32, i32) {
    %c0_i32 = arith.constant 0 : i32
    %c0_i32_0 = arith.constant 0 : i32
    %c0_i32_1 = arith.constant 0 : i32
    return %c0_i32, %c0_i32_0 : i32, i32
  }
  func.func @transform_10(%arg0: i32) -> (i32, i32) {
    %c0_i32 = arith.constant 0 : i32
    %c0_i32_0 = arith.constant 0 : i32
    %c0_i32_1 = arith.constant 0 : i32
    return %c0_i32, %c0_i32_0 : i32, i32
  }
  func.func @transform_11(%arg0: i32) -> (i32, i32) {
    %c0_i32 = arith.constant 0 : i32
    %c0_i32_0 = arith.constant 0 : i32
    %c0_i32_1 = arith.constant 0 : i32
    return %c0_i32, %c0_i32_0 : i32, i32
  }
  func.func @transform_12(%arg0: i32) -> (i32, i32) {
    %c0_i32 = arith.constant 0 : i32
    %c0_i32_0 = arith.constant 0 : i32
    %c0_i32_1 = arith.constant 0 : i32
    return %c0_i32, %c0_i32_0 : i32, i32
  }
  func.func @transform_13(%arg0: i32) -> (i32, i32) {
    %c0_i32 = arith.constant 0 : i32
    %c0_i32_0 = arith.constant 0 : i32
    %c0_i32_1 = arith.constant 0 : i32
    return %c0_i32, %c0_i32_0 : i32, i32
  }
  func.func @transform_14(%arg0: i32) -> (i32, i32) {
    %c0_i32 = arith.constant 0 : i32
    %c0_i32_0 = arith.constant 0 : i32
    %c0_i32_1 = arith.constant 0 : i32
    return %c0_i32, %c0_i32_0 : i32, i32
  }
  func.func @transform_15(%arg0: i32) -> (i32, i32) {
    %c0_i32 = arith.constant 0 : i32
    %c0_i32_0 = arith.constant 0 : i32
    %c0_i32_1 = arith.constant 0 : i32
    return %c0_i32, %c0_i32_0 : i32, i32
  }
  func.func @transform_16(%arg0: i32) -> (i32, i32) {
    %c0_i32 = arith.constant 0 : i32
    %c0_i32_0 = arith.constant 0 : i32
    %c0_i32_1 = arith.constant 0 : i32
    return %c0_i32, %c0_i32_0 : i32, i32
  }
  func.func @transform_17(%arg0: i32) -> (i32, i32) {
    %c0_i32 = arith.constant 0 : i32
    %c0_i32_0 = arith.constant 0 : i32
    %c0_i32_1 = arith.constant 0 : i32
    return %c0_i32, %c0_i32_0 : i32, i32
  }
  func.func @transform_18(%arg0: i32) -> (i32, i32) {
    %c0_i32 = arith.constant 0 : i32
    %c0_i32_0 = arith.constant 0 : i32
    %c0_i32_1 = arith.constant 0 : i32
    return %c0_i32, %c0_i32_0 : i32, i32
  }
  func.func @transform_19(%arg0: i32) -> (i32, i32) {
    %c0_i32 = arith.constant 0 : i32
    %c0_i32_0 = arith.constant 0 : i32
    %c0_i32_1 = arith.constant 0 : i32
    return %c0_i32, %c0_i32_0 : i32, i32
  }
  func.func @transform_20(%arg0: i32) -> (i32, i32) {
    %c0_i32 = arith.constant 0 : i32
    %c0_i32_0 = arith.constant 0 : i32
    %c0_i32_1 = arith.constant 0 : i32
    return %c0_i32, %c0_i32_0 : i32, i32
  }
  func.func @transform_21(%arg0: i32) -> (i32, i32) {
    %c0_i32 = arith.constant 0 : i32
    %c0_i32_0 = arith.constant 0 : i32
    %c0_i32_1 = arith.constant 0 : i32
    return %c0_i32, %c0_i32_0 : i32, i32
  }
  func.func @transform_22(%arg0: i32) -> (i32, i32) {
    %c0_i32 = arith.constant 0 : i32
    %c0_i32_0 = arith.constant 0 : i32
    %c0_i32_1 = arith.constant 0 : i32
    return %c0_i32, %c0_i32_0 : i32, i32
  }
  func.func @transform_23(%arg0: i32) -> (i32, i32) {
    %c0_i32 = arith.constant 0 : i32
    %c0_i32_0 = arith.constant 0 : i32
    %c0_i32_1 = arith.constant 0 : i32
    return %c0_i32, %c0_i32_0 : i32, i32
  }
  func.func @transform_24(%arg0: i32) -> (i32, i32) {
    %c0_i32 = arith.constant 0 : i32
    %c0_i32_0 = arith.constant 0 : i32
    %c0_i32_1 = arith.constant 0 : i32
    return %c0_i32, %c0_i32_0 : i32, i32
  }
  func.func @transform_25(%arg0: i32) -> (i32, i32) {
    %c0_i32 = arith.constant 0 : i32
    %c0_i32_0 = arith.constant 0 : i32
    %c0_i32_1 = arith.constant 0 : i32
    return %c0_i32, %c0_i32_0 : i32, i32
  }
  func.func @transform_26(%arg0: i32) -> (i32, i32) {
    %c0_i32 = arith.constant 0 : i32
    %c0_i32_0 = arith.constant 0 : i32
    %c0_i32_1 = arith.constant 0 : i32
    return %c0_i32, %c0_i32_0 : i32, i32
  }
  func.func @transform_27(%arg0: i32) -> (i32, i32) {
    %c0_i32 = arith.constant 0 : i32
    %c0_i32_0 = arith.constant 0 : i32
    %c0_i32_1 = arith.constant 0 : i32
    return %c0_i32, %c0_i32_0 : i32, i32
  }
  func.func @transform_28(%arg0: i32) -> (i32, i32) {
    %c0_i32 = arith.constant 0 : i32
    %c0_i32_0 = arith.constant 0 : i32
    %c0_i32_1 = arith.constant 0 : i32
    return %c0_i32, %c0_i32_0 : i32, i32
  }
  func.func @transform_29(%arg0: i32) -> (i32, i32) {
    %c0_i32 = arith.constant 0 : i32
    %c0_i32_0 = arith.constant 0 : i32
    %c0_i32_1 = arith.constant 0 : i32
    return %c0_i32, %c0_i32_0 : i32, i32
  }
  func.func @transform_30(%arg0: i32) -> (i32, i32) {
    %c0_i32 = arith.constant 0 : i32
    %c0_i32_0 = arith.constant 0 : i32
    %c0_i32_1 = arith.constant 0 : i32
    return %c0_i32, %c0_i32_0 : i32, i32
  }
  func.func @transform_31(%arg0: i32) -> (i32, i32) {
    %c0_i32 = arith.constant 0 : i32
    %c0_i32_0 = arith.constant 0 : i32
    %c0_i32_1 = arith.constant 0 : i32
    return %c0_i32, %c0_i32_0 : i32, i32
  }
  func.func @transform_32(%arg0: i32) -> (i32, i32) {
    %c0_i32 = arith.constant 0 : i32
    %c0_i32_0 = arith.constant 0 : i32
    %c0_i32_1 = arith.constant 0 : i32
    return %c0_i32, %c0_i32_0 : i32, i32
  }
  func.func @transform_33(%arg0: i32) -> (i32, i32) {
    %c0_i32 = arith.constant 0 : i32
    %c0_i32_0 = arith.constant 0 : i32
    %c0_i32_1 = arith.constant 0 : i32
    return %c0_i32, %c0_i32_0 : i32, i32
  }
  func.func @transform_34(%arg0: i32) -> (i32, i32) {
    %c0_i32 = arith.constant 0 : i32
    %c0_i32_0 = arith.constant 0 : i32
    %c0_i32_1 = arith.constant 0 : i32
    return %c0_i32, %c0_i32_0 : i32, i32
  }
  func.func @transform_35(%arg0: i32) -> (i32, i32) {
    %c0_i32 = arith.constant 0 : i32
    %c0_i32_0 = arith.constant 0 : i32
    %c0_i32_1 = arith.constant 0 : i32
    return %c0_i32, %c0_i32_0 : i32, i32
  }
  func.func @transform_36(%arg0: i32) -> (i32, i32) {
    %c0_i32 = arith.constant 0 : i32
    %c0_i32_0 = arith.constant 0 : i32
    %c0_i32_1 = arith.constant 0 : i32
    return %c0_i32, %c0_i32_0 : i32, i32
  }
  func.func @transform_37(%arg0: i32) -> (i32, i32) {
    %c0_i32 = arith.constant 0 : i32
    %c0_i32_0 = arith.constant 0 : i32
    %c0_i32_1 = arith.constant 0 : i32
    return %c0_i32, %c0_i32_0 : i32, i32
  }
  func.func @transform_38(%arg0: i32) -> (i32, i32) {
    %c0_i32 = arith.constant 0 : i32
    %c0_i32_0 = arith.constant 0 : i32
    %c0_i32_1 = arith.constant 0 : i32
    return %c0_i32, %c0_i32_0 : i32, i32
  }
  func.func @transform_39(%arg0: i32) -> (i32, i32) {
    %c0_i32 = arith.constant 0 : i32
    %c0_i32_0 = arith.constant 0 : i32
    %c0_i32_1 = arith.constant 0 : i32
    return %c0_i32, %c0_i32_0 : i32, i32
  }
  func.func @transform_40(%arg0: i32) -> (i32, i32) {
    %c0_i32 = arith.constant 0 : i32
    %c0_i32_0 = arith.constant 0 : i32
    %c0_i32_1 = arith.constant 0 : i32
    return %c0_i32, %c0_i32_0 : i32, i32
  }
  func.func @transform_41(%arg0: i32) -> (i32, i32) {
    %c0_i32 = arith.constant 0 : i32
    %c0_i32_0 = arith.constant 0 : i32
    %c0_i32_1 = arith.constant 0 : i32
    return %c0_i32, %c0_i32_0 : i32, i32
  }
  func.func @transform_42(%arg0: i32) -> (i32, i32, i32) {
    %c0_i32 = arith.constant 0 : i32
    %c0_i32_0 = arith.constant 0 : i32
    %c0_i32_1 = arith.constant 0 : i32
    return %arg0, %c0_i32, %c0_i32_0 : i32, i32, i32
  }
}

</mosaic_0001>

<bundles_post_ra>
// kernel: _lambda_.1
= control target key start
LH: loop header
LB: loop body
LE: loop exit
PB: predicated region body
PF: predicated region fallthrough
CT: control target
= control target key end

     0   :  { %s11266_s6 = smov 1   ;;  %s11267_s10 = smov 2   ;;  %s14326_s0 = inlined_call_operand.smem [shape: u32[43], index: -1, kind: input, shape index: {}] }
   0x1   :  { %s11388_s5 = sld [smem:[%s14326_s0]]   ;;  %s11268_s14 = smov 3  }
   0x2   :  { %s11393_s9 = sld [smem:[%s14326_s0 + %s11266_s6]]   ;;  %s11269_s18 = smov 4  }
   0x3   :  { %s11398_s13 = sld [smem:[%s14326_s0 + %s11267_s10]]   ;;  %s11270_s22 = smov 5  }
   0x4   :  { %s11403_s17 = sld [smem:[%s14326_s0 + %s11268_s14]]   ;;  %s11271_s26 = smov 6  }
   0x5   :  { %s11408_s21 = sld [smem:[%s14326_s0 + %s11269_s18]]   ;;  %s11272_s30 = smov 7  }
   0x6   :  { %s11413_s25 = sld [smem:[%s14326_s0 + %s11270_s22]]   ;;  %s11273_s4 = smov 8  }
   0x7   :  { %14388 = sst [smem:[#allocation80_spill]] %s11388_s5  ;;  %s11274_s10 = smov 9  }
   0x8   :  { %14389 = sst [smem:[#allocation81_spill]] %s11393_s9  ;;  %s11275_s15 = smov 10  }
   0x9   :  { %14390 = sst [smem:[#allocation82_spill]] %s11398_s13  ;;  %s11276_s20 = smov 11  }
   0xa   :  { %14391 = sst [smem:[#allocation83_spill]] %s11403_s17  ;;  %s11278_s1 = smov 13  }
   0xb   :  { %s11418_s29 = sld [smem:[%s14326_s0 + %s11271_s26]]   ;;  %s11277_s26 = smov 12  }
   0xc   :  { %14392 = sst [smem:[#allocation84_spill]] %s11413_s25  ;;  %s11279_s7 = smov 14  }
   0xd   :  { %s11423_s3 = sld [smem:[%s14326_s0 + %s11272_s30]]   ;;  %s11281_s22 = smov 16  }
   0xe   :  { %s11428_s8 = sld [smem:[%s14326_s0 + %s11273_s4]]   ;;  %s11282_s28 = smov 17  }
   0xf   :  { %s11433_s14 = sld [smem:[%s14326_s0 + %s11274_s10]]  }
  0x10   :  { %s11438_s19 = sld [smem:[%s14326_s0 + %s11275_s15]]   ;;  %s11280_s15 = smov 15  }
  0x11   :  { %s11443_s24 = sld [smem:[%s14326_s0 + %s11276_s20]]  }
  0x12   :  { %s11448_s30 = sld [smem:[%s14326_s0 + %s11277_s26]]  }
  0x13   :  { %14393 = sst [smem:[#allocation85_spill]] %s11423_s3 }
  0x14   :  { %14394 = sst [smem:[#allocation86_spill]] %s11428_s8 }
  0x15   :  { %14395 = sst [smem:[#allocation87_spill]] %s11433_s14 }
  0x16   :  { %14396 = sst [smem:[#allocation88_spill]] %s11438_s19 }
  0x17   :  { %14397 = sst [smem:[#allocation89_spill]] %s11443_s24 }
  0x18   :  { %s11453_s6 = sld [smem:[%s14326_s0 + %s11278_s1]]  }
  0x19   :  { %s11458_s12 = sld [smem:[%s14326_s0 + %s11279_s7]]   ;;  %s11283_s7 = smov 18  }
  0x1a   :  { %s11463_s20 = sld [smem:[%s14326_s0 + %s11280_s15]]   ;;  %s11284_s15 = smov 19  }
  0x1b   :  { %s11468_s27 = sld [smem:[%s14326_s0 + %s11281_s22]]   ;;  %s11285_s22 = smov 20  }
  0x1c   :  { %s11473_s4 = sld [smem:[%s14326_s0 + %s11282_s28]]   ;;  %s11286_s28 = smov 21  }
  0x1d   :  { %s11478_s5 = sld [smem:[%s14326_s0 + %s11283_s7]]   ;;  %s11287_s7 = smov 22  }
  0x1e   :  { %14398 = sst [smem:[#allocation90_spill]] %s11453_s6 }
  0x1f   :  { %14399 = sst [smem:[#allocation91_spill]] %s11458_s12 }
  0x20   :  { %14400 = sst [smem:[#allocation92_spill]] %s11463_s20 }
  0x21   :  { %s11483_s20 = sld [smem:[%s14326_s0 + %s11284_s15]]   ;;  %s11288_s15 = smov 23  }
  0x22   :  { %14401 = sst [smem:[#allocation93_spill]] %s11473_s4 }
  0x23   :  { %14402 = sst [smem:[#allocation94_spill]] %s11478_s5 }
  0x24   :  { %s11488_s6 = sld [smem:[%s14326_s0 + %s11285_s22]]   ;;  %s11289_s22 = smov 24  }
  0x25   :  { %s11493_s4 = sld [smem:[%s14326_s0 + %s11286_s28]]   ;;  %s11290_s28 = smov 25  }
  0x26   :  { %s11498_s24 = sld [smem:[%s14326_s0 + %s11287_s7]]   ;;  %s11291_s7 = smov 26  }
  0x27   :  { %14403 = sst [smem:[#allocation95_spill]] %s11483_s20 }
  0x28   :  { %s11503_s20 = sld [smem:[%s14326_s0 + %s11288_s15]]   ;;  %s11292_s15 = smov 27  }
  0x29   :  { %s11513_s14 = sld [smem:[%s14326_s0 + %s11290_s28]]   ;;  %s11294_s28 = smov 29  }
  0x2a   :  { %14404 = sst [smem:[#allocation96_spill]] %s11488_s6 }
  0x2b   :  { %14405 = sst [smem:[#allocation97_spill]] %s11493_s4 }
  0x2c   :  { %14406 = sst [smem:[#allocation98_spill]] %s11498_s24 }
  0x2d   :  { %s11508_s6 = sld [smem:[%s14326_s0 + %s11289_s22]]   ;;  %s11293_s22 = smov 28  }
  0x2e   :  { %14407 = sst [smem:[#allocation99_spill]] %s11503_s20 }
  0x2f   :  { %14409 = sst [smem:[#allocation101_spill]] %s11513_s14 }
  0x30   :  { %s11518_s24 = sld [smem:[%s14326_s0 + %s11291_s7]]   ;;  %s11295_s7 = smov 30  }
  0x31   :  { %s11523_s3 = sld [smem:[%s14326_s0 + %s11292_s15]]   ;;  %s11296_s15 = smov 31  }
  0x32   :  { %s11533_s25 = sld [smem:[%s14326_s0 + %s11294_s28]]   ;;  %s11298_s28 = smov 33  }
  0x33   :  { %14408 = sst [smem:[#allocation100_spill]] %s11508_s6 }
  0x34   :  { %s11528_s6 = sld [smem:[%s14326_s0 + %s11293_s22]]   ;;  %s11297_s22 = smov 32  }
  0x35   :  { %s11543_s17 = sld [smem:[%s14326_s0 + %s11296_s15]]   ;;  %s11300_s15 = smov 35  }
  0x36   :  { %14410 = sst [smem:[#allocation102_spill]] %s11518_s24 }
  0x37   :  { %14411 = sst [smem:[#allocation103_spill]] %s11523_s3 }
  0x38   :  { %s11538_s24 = sld [smem:[%s14326_s0 + %s11295_s7]]   ;;  %s11299_s7 = smov 34  }
  0x39   :  { %s11553_s9 = sld [smem:[%s14326_s0 + %s11298_s28]]   ;;  %s11302_s28 = smov 37  }
  0x3a   :  { %14412 = sst [smem:[#allocation104_spill]] %s11528_s6 }
  0x3b   :  { %14414 = sst [smem:[#allocation106_spill]] %s11543_s17 }
  0x3c   :  { %s11548_s6 = sld [smem:[%s14326_s0 + %s11297_s22]]   ;;  %s11301_s22 = smov 36  }
  0x3d   :  { %s11563_s17 = sld [smem:[%s14326_s0 + %s11300_s15]]   ;;  %s11304_s15 = smov 39  }
  0x3e   :  { %14413 = sst [smem:[#allocation105_spill]] %s11538_s24 }
  0x3f   :  { %14416 = sst [smem:[#allocation108_spill]] %s11553_s9 }
  0x40   :  { %s11558_s24 = sld [smem:[%s14326_s0 + %s11299_s7]]   ;;  %s11303_s7 = smov 38  }
  0x41   :  { %s11573_s9 = sld [smem:[%s14326_s0 + %s11302_s28]]   ;;  %s11306_s28 = smov 41  }
  0x42   :  { %14415 = sst [smem:[#allocation107_spill]] %s11548_s6 }
  0x43   :  { %14418 = sst [smem:[#allocation110_spill]] %s11563_s17 }
  0x44   :  { %s11568_s6 = sld [smem:[%s14326_s0 + %s11301_s22]]   ;;  %s11305_s22 = smov 40  }
  0x45   :  { %s11583_s17 = sld [smem:[%s14326_s0 + %s11304_s15]]  }
  0x46   :  { %14417 = sst [smem:[#allocation109_spill]] %s11558_s24 }
  0x47   :  { %14420 = sst [smem:[#allocation112_spill]] %s11573_s9 }
  0x48   :  { %s11578_s24 = sld [smem:[%s14326_s0 + %s11303_s7]]   ;;  %s11307_s7 = smov 42  }
  0x49   :  { %s11593_s9 = sld [smem:[%s14326_s0 + %s11306_s28]]  }
  0x4a   :  { %14419 = sst [smem:[#allocation111_spill]] %s11568_s6 }
  0x4b   :  { %14422 = sst [smem:[#allocation114_spill]] %s11583_s17 }
  0x4c   :  { %s11588_s6 = sld [smem:[%s14326_s0 + %s11305_s22]]  }
  0x4e   :  { %14421 = sst [smem:[#allocation113_spill]] %s11578_s24 }
  0x4f   :  { %s11598_s24 = sld [smem:[%s14326_s0 + %s11307_s7]]  }
  0x50   :  { %90 = vsyncpa [#allocation3], 0 }
  0x51   :  { %91 = vsyncpa [#allocation5], 0 }
  0x52   :  { %92 = vsyncpa [#allocation8], 0 }
  0x53   :  { %93 = vsyncpa [#allocation11], 0 }
  0x54   :  { %94 = vsyncpa [#allocation14], 0 }
  0x55   :  { %95 = vsyncpa [#allocation17], 0 }
  0x56   :  { %96 = vsyncpa [#allocation20], 0 }
  0x57   :  { %97 = vsyncpa [#allocation23], 0 }
  0x58   :  { %98 = vsyncpa [#allocation26], 0 }
  0x59   :  { %99 = vsyncpa [#allocation29], 0 }
  0x5a   :  { %100 = vsyncpa [#allocation32], 0 }
  0x5b   :  { %101 = vsyncpa [#allocation35], 0 }
  0x5c   :  { %102 = vsyncpa [#allocation38], 0 }
  0x5d   :  { %103 = vsyncpa [#allocation41], 0 }
  0x5e   :  { %104 = vsyncpa [#allocation44], 0 }
  0x5f   :  { %105 = vsyncpa [#allocation47], 0 }
  0x60   :  { %106 = vsyncpa [#allocation50], 0 }
  0x61   :  { %107 = vsyncpa [#allocation53], 0 }
  0x62   :  { %108 = vsyncpa [#allocation56], 0 }
  0x63   :  { %109 = vsyncpa [#allocation59], 0  ;;  %s11600_s0 = smov 0  }
  0x64 LB: > { %s14423_s20 = sld [smem:[#allocation99_spill]]  ;;  %s11606_s15 = sadd.s32 4294967295, %s11264_s0   ;;  %s11264_s0 = sphi %s11600_s0, %s115_s0  }
  0x65   : > { %s14424_s19 = sld [smem:[#allocation88_spill]]  ;;  %p8576_p0 = scmp.ge.s32.totalorder %s11264_s0, 1 }
  0x66   : > { %s14425_s17 = sld [smem:[#allocation114_spill]]  ;;  %p1033_p1 = scmp.lt.s32.totalorder %s11264_s0, 3 }
  0x67   : > { %s14426_s14 = sld [smem:[#allocation101_spill]] }
  0x68   : > { %s14427_s12 = sld [smem:[#allocation91_spill]]  ;;  %p11610_p2 = pnand %p8576_p0, %p1033_p1 }
  0x69   : > { %s14428_s5 = sld [smem:[#allocation94_spill]]  ;;  %p9898_p3 = scmp.eq.s32.totalorder (!%p11610_p2), %s11606_s15, 0 }
  0x6a   : > { %s14429_s4 = sld [smem:[#allocation97_spill]]  ;;  %1037 = sbr.rel (%p11610_p2) target bundleno = 615 (0x267), region = 12 }
  0x6b   : > { %s14430_s3 = sld [smem:[#allocation103_spill]]  ;;  %s11308_s22 = smov (!%p11610_p2), [#allocation4]  }
  0x6c   : > { %s14431_s8 = sld [smem:[#allocation86_spill]]  ;;  %s1060_s23 = sshll.u32 (!%p11610_p2), %s11308_s22, 4  ;;  %s1061_s23 = int_to_ptr.vmem [resolvable:$true] %s1060_s23 }
  0x6d   : > { %s14432_s13 = sld [smem:[#allocation82_spill]]  ;;  %s1086_s26 = sshll.u32 (!%p11610_p2), %s11408_s21, 4  ;;  %s11619_s26 = int_to_ptr.hbm [resolvable:$true] %s1086_s26 }
  0x73   : > { %s1058_s18 = sshll.u32 %s14432_s13, 4  ;;  %s10120_s2 = scalar_lea.hbm %s14432_s13, 16  ;;  %s1059_s18 = int_to_ptr.hbm [resolvable:$true] %s1058_s18 }
  0x74   : > { %s10114_s28 = sshra.s32 %s1059_s18, 4  ;;  %s10115_s28 = int_to_ptr.hbm [resolvable:$true] %s10114_s28 }
  0x75   : > { %s10116_s1 = scalar_lea.hbm %s10115_s28, 16  ;;  %p10121_p7 = scmp.lt.s32.totalorder %s10115_s28, %s14432_s13 }
  0x76   : > { %p10117_p4 = scmp.ne.s32.totalorder %s10115_s28, %s10116_s1  ;;  %p10122_p8 = scmp.lt.s32.totalorder %s10120_s2, %s10116_s1 }
  0x78   : > { %p10118_p5 = pnand %p10117_p4, %p9898_p3  ;;  %p10123_p9 = por %p10122_p8, %p10121_p7 }
  0x7a   : > { %p10119_p6 = pneg %p10118_p5 }
  0x7c   : > { %p10124_p10 = pnand %p10123_p9, %p10119_p6 }
  0x7e   : > { %10127 = shalt.err (!%p10124_p10)
}
  0x7f   : > { %s14353_s7 = smov 128   ;;  %s14359_s10 = smov 8  }
  0x80   : > { %9749 = dma.hbm_to_vmem [thread:$0]  (%p9898_p3), %s1059_s18, 256, %s1061_s23, [#allocation5], %s14353_s7, %s14353_s7, %s14359_s10  }
  0x81   : > { %s1114_s11 = sshll.u32 %s11418_s29, 4  ;;  %s11311_s22 = smov [#allocation7]   ;;  %s11631_s11 = int_to_ptr.hbm [resolvable:$true] %s1114_s11 }
  0x82   : > { %s1088_s28 = sshll.u32 %s11311_s22, 4  ;;  %s10142_s1 = sshra.s32 %s11619_s26, 4  ;;  %s1089_s28 = int_to_ptr.vmem [resolvable:$true] %s1088_s28  ;;  %s10143_s1 = int_to_ptr.hbm [resolvable:$true] %s10142_s1 }
  0x83   : > { %s10144_s2 = scalar_lea.hbm %s10143_s1, 16  ;;  %s10148_s13 = scalar_lea.hbm %s11408_s21, 16 }
  0x84   : > { %p10145_p11 = scmp.ne.s32.totalorder %s10143_s1, %s10144_s2  ;;  %p10149_p0 = scmp.lt.s32.totalorder %s10143_s1, %s11408_s21 }
  0x85   : > { %p10150_p1 = scmp.lt.s32.totalorder %s10148_s13, %s10144_s2 }
  0x86   : > { %p10146_p12 = pnand %p10145_p11, %p9898_p3 }
  0x87   : > { %p10151_p4 = por %p10150_p1, %p10149_p0 }
  0x88   : > { %p10147_p13 = pneg %p10146_p12 }
  0x8a   : > { %p10152_p5 = pnand %p10151_p4, %p10147_p13 }
  0x8c   : > { %10155 = shalt.err (!%p10152_p5)
}
  0x8d   : > { %9753 = dma.hbm_to_vmem [thread:$0]  (%p9898_p3), %s11619_s26, 256, %s1089_s28, [#allocation8], %s14353_s7, %s14353_s7, %s14359_s10  }
  0x8e   : > { %s11312_s18 = smov [#allocation10]   ;;  %s1142_s22 = sshll.u32 %s14431_s8, 4  ;;  %s11645_s22 = int_to_ptr.hbm [resolvable:$true] %s1142_s22 }
  0x8f   : > { %s1116_s23 = sshll.u32 %s11312_s18, 4  ;;  %s10170_s13 = sshra.s32 %s11631_s11, 4  ;;  %s1117_s23 = int_to_ptr.vmem [resolvable:$true] %s1116_s23  ;;  %s10171_s13 = int_to_ptr.hbm [resolvable:$true] %s10170_s13 }
  0x90   : > { %s10172_s1 = scalar_lea.hbm %s10171_s13, 16  ;;  %s10176_s2 = scalar_lea.hbm %s11418_s29, 16 }
  0x91   : > { %p10173_p6 = scmp.ne.s32.totalorder %s10171_s13, %s10172_s1  ;;  %p10177_p9 = scmp.lt.s32.totalorder %s10171_s13, %s11418_s29 }
  0x92   : > { %p10178_p10 = scmp.lt.s32.totalorder %s10176_s2, %s10172_s1 }
  0x93   : > { %p10174_p7 = pnand %p10173_p6, %p9898_p3 }
  0x94   : > { %p10179_p11 = por %p10178_p10, %p10177_p9 }
  0x95   : > { %p10175_p8 = pneg %p10174_p7 }
  0x97   : > { %p10180_p12 = pnand %p10179_p11, %p10175_p8 }
  0x99   : > { %10183 = shalt.err (!%p10180_p12)
}
  0x9a   : > { %9757 = dma.hbm_to_vmem [thread:$0]  (%p9898_p3), %s11631_s11, 256, %s1117_s23, [#allocation11], %s14353_s7, %s14353_s7, %s14359_s10  }
  0x9b   : > { %s1170_s26 = sshll.u32 %s14424_s19, 4  ;;  %s11313_s28 = smov [#allocation13]   ;;  %s11659_s26 = int_to_ptr.hbm [resolvable:$true] %s1170_s26 }
  0x9c   : > { %s1144_s18 = sshll.u32 %s11313_s28, 4  ;;  %s10198_s13 = sshra.s32 %s11645_s22, 4  ;;  %s1145_s18 = int_to_ptr.vmem [resolvable:$true] %s1144_s18  ;;  %s10199_s13 = int_to_ptr.hbm [resolvable:$true] %s10198_s13 }
  0x9d   : > { %s10200_s1 = scalar_lea.hbm %s10199_s13, 16  ;;  %s10204_s2 = scalar_lea.hbm %s14431_s8, 16 }
  0x9e   : > { %p10201_p13 = scmp.ne.s32.totalorder %s10199_s13, %s10200_s1  ;;  %p10205_p4 = scmp.lt.s32.totalorder %s10199_s13, %s14431_s8 }
  0x9f   : > { %p10206_p5 = scmp.lt.s32.totalorder %s10204_s2, %s10200_s1 }
  0xa0   : > { %p10202_p0 = pnand %p10201_p13, %p9898_p3 }
  0xa1   : > { %p10207_p6 = por %p10206_p5, %p10205_p4 }
  0xa2   : > { %p10203_p1 = pneg %p10202_p0 }
  0xa4   : > { %p10208_p7 = pnand %p10207_p6, %p10203_p1 }
  0xa6   : > { %10211 = shalt.err (!%p10208_p7)
}
  0xa7   : > { %9761 = dma.hbm_to_vmem [thread:$0]  (%p9898_p3), %s11645_s22, 256, %s1145_s18, [#allocation14], %s14353_s7, %s14353_s7, %s14359_s10  }
  0xa8   : > { %s11314_s11 = smov [#allocation16]   ;;  %s1198_s28 = sshll.u32 %s11448_s30, 4  ;;  %s11673_s28 = int_to_ptr.hbm [resolvable:$true] %s1198_s28 }
  0xa9   : > { %s1172_s23 = sshll.u32 %s11314_s11, 4  ;;  %s10226_s13 = sshra.s32 %s11659_s26, 4  ;;  %s1173_s23 = int_to_ptr.vmem [resolvable:$true] %s1172_s23  ;;  %s10227_s13 = int_to_ptr.hbm [resolvable:$true] %s10226_s13 }
  0xaa   : > { %s10228_s1 = scalar_lea.hbm %s10227_s13, 32  ;;  %s10232_s2 = scalar_lea.hbm %s14424_s19, 32 }
  0xab   : > { %p10229_p8 = scmp.ne.s32.totalorder %s10227_s13, %s10228_s1  ;;  %p10233_p11 = scmp.lt.s32.totalorder %s10227_s13, %s14424_s19 }
  0xac   : > { %p10234_p12 = scmp.lt.s32.totalorder %s10232_s2, %s10228_s1 }
  0xad   : > { %p10230_p9 = pnand %p10229_p8, %p9898_p3 }
  0xae   : > { %p10235_p13 = por %p10234_p12, %p10233_p11 }
  0xaf   : > { %p10231_p10 = pneg %p10230_p9 }
  0xb1   : > { %p10236_p0 = pnand %p10235_p13, %p10231_p10 }
  0xb3   : > { %10239 = shalt.err (!%p10236_p0)
}
  0xb4   : > { %9765 = dma.hbm_to_vmem [thread:$0]  (%p9898_p3), %s11659_s26, 512, %s1173_s23, [#allocation17], %s14353_s7, %s14353_s7, %s14359_s10  }
  0xb5   : > { %s1226_s22 = sshll.u32 %s14427_s12, 4  ;;  %s11315_s18 = smov [#allocation19]   ;;  %s11687_s22 = int_to_ptr.hbm [resolvable:$true] %s1226_s22 }
  0xb6   : > { %s1200_s11 = sshll.u32 %s11315_s18, 4  ;;  %s10254_s13 = sshra.s32 %s11673_s28, 4  ;;  %s1201_s11 = int_to_ptr.vmem [resolvable:$true] %s1200_s11  ;;  %s10255_s13 = int_to_ptr.hbm [resolvable:$true] %s10254_s13 }
  0xb7   : > { %s10256_s1 = scalar_lea.hbm %s10255_s13, 32  ;;  %s10260_s2 = scalar_lea.hbm %s11448_s30, 32 }
  0xb8   : > { %p10257_p1 = scmp.ne.s32.totalorder %s10255_s13, %s10256_s1  ;;  %p10261_p6 = scmp.lt.s32.totalorder %s10255_s13, %s11448_s30 }
  0xb9   : > { %p10262_p7 = scmp.lt.s32.totalorder %s10260_s2, %s10256_s1 }
  0xba   : > { %p10258_p4 = pnand %p10257_p1, %p9898_p3 }
  0xbb   : > { %p10263_p8 = por %p10262_p7, %p10261_p6 }
  0xbc   : > { %p10259_p5 = pneg %p10258_p4 }
  0xbe   : > { %p10264_p9 = pnand %p10263_p8, %p10259_p5 }
  0xc0   : > { %10267 = shalt.err (!%p10264_p9)
}
  0xc1   : > { %9769 = dma.hbm_to_vmem [thread:$0]  (%p9898_p3), %s11673_s28, 512, %s1201_s11, [#allocation20], %s14353_s7, %s14353_s7, %s14359_s10  }
  0xc2   : > { %s11316_s26 = smov [#allocation22]   ;;  %s1254_s18 = sshll.u32 %s11468_s27, 4  ;;  %s11701_s18 = int_to_ptr.hbm [resolvable:$true] %s1254_s18 }
  0xc3   : > { %s1228_s23 = sshll.u32 %s11316_s26, 4  ;;  %s10282_s13 = sshra.s32 %s11687_s22, 4  ;;  %s1229_s23 = int_to_ptr.vmem [resolvable:$true] %s1228_s23  ;;  %s10283_s13 = int_to_ptr.hbm [resolvable:$true] %s10282_s13 }
  0xc4   : > { %s10284_s1 = scalar_lea.hbm %s10283_s13, 32  ;;  %s10288_s2 = scalar_lea.hbm %s14427_s12, 32 }
  0xc5   : > { %p10285_p10 = scmp.ne.s32.totalorder %s10283_s13, %s10284_s1  ;;  %p10289_p13 = scmp.lt.s32.totalorder %s10283_s13, %s14427_s12 }
  0xc6   : > { %p10290_p0 = scmp.lt.s32.totalorder %s10288_s2, %s10284_s1 }
  0xc7   : > { %p10286_p11 = pnand %p10285_p10, %p9898_p3 }
  0xc8   : > { %p10291_p1 = por %p10290_p0, %p10289_p13 }
  0xc9   : > { %p10287_p12 = pneg %p10286_p11 }
  0xcb   : > { %p10292_p4 = pnand %p10291_p1, %p10287_p12 }
  0xcd   : > { %10295 = shalt.err (!%p10292_p4)
}
  0xce   : > { %9773 = dma.hbm_to_vmem [thread:$0]  (%p9898_p3), %s11687_s22, 512, %s1229_s23, [#allocation23], %s14353_s7, %s14353_s7, %s14359_s10  }
  0xcf   : > { %s11317_s28 = smov [#allocation25]   ;;  %s1282_s26 = sshll.u32 %s14428_s5, 4  ;;  %s1283_s26 = int_to_ptr.hbm [resolvable:$true] %s1282_s26 }
  0xd0   : > { %s1256_s11 = sshll.u32 %s11317_s28, 4  ;;  %s10310_s13 = sshra.s32 %s11701_s18, 4  ;;  %s1257_s11 = int_to_ptr.vmem [resolvable:$true] %s1256_s11  ;;  %s10311_s13 = int_to_ptr.hbm [resolvable:$true] %s10310_s13 }
  0xd1   : > { %s10312_s1 = scalar_lea.hbm %s10311_s13, 16  ;;  %s10316_s2 = scalar_lea.hbm %s11468_s27, 16 }
  0xd2   : > { %p10313_p5 = scmp.ne.s32.totalorder %s10311_s13, %s10312_s1  ;;  %p10317_p8 = scmp.lt.s32.totalorder %s10311_s13, %s11468_s27 }
  0xd3   : > { %p10318_p9 = scmp.lt.s32.totalorder %s10316_s2, %s10312_s1 }
  0xd4   : > { %p10314_p6 = pnand %p10313_p5, %p9898_p3 }
  0xd5   : > { %p10319_p10 = por %p10318_p9, %p10317_p8 }
  0xd6   : > { %p10315_p7 = pneg %p10314_p6 }
  0xd8   : > { %p10320_p11 = pnand %p10319_p10, %p10315_p7 }
  0xda   : > { %10323 = shalt.err (!%p10320_p11)
}
  0xdb   : > { %s14355_s8 = smov 64   ;;  %s14357_s22 = smov 4  }
  0xdc   : > { %9777 = dma.hbm_to_vmem [thread:$0]  (%p9898_p3), %s11701_s18, 256, %s1257_s11, [#allocation26], %s14355_s8, %s14355_s8, %s14357_s22  }
  0xdd   : > { %s11320_s23 = smov [#allocation28]   ;;  %s1313_s13 = sshll.u32 %s14429_s4, 4  ;;  %s11727_s13 = int_to_ptr.hbm [resolvable:$true] %s1313_s13 }
  0xde   : > { %s1284_s28 = sshll.u32 %s11320_s23, 4  ;;  %s10338_s1 = sshra.s32 %s1283_s26, 4  ;;  %s1285_s28 = int_to_ptr.vmem [resolvable:$true] %s1284_s28  ;;  %s10339_s1 = int_to_ptr.hbm [resolvable:$true] %s10338_s1 }
  0xdf   : > { %s10340_s2 = scalar_lea.hbm %s10339_s1, 32  ;;  %s10344_s7 = scalar_lea.hbm %s14428_s5, 32 }
  0xe0   : > { %p10341_p12 = scmp.ne.s32.totalorder %s10339_s1, %s10340_s2  ;;  %p10345_p1 = scmp.lt.s32.totalorder %s10339_s1, %s14428_s5 }
  0xe1   : > { %p10346_p4 = scmp.lt.s32.totalorder %s10344_s7, %s10340_s2 }
  0xe2   : > { %p10342_p13 = pnand %p10341_p12, %p9898_p3 }
  0xe3   : > { %p10347_p5 = por %p10346_p4, %p10345_p1 }
  0xe4   : > { %p10343_p0 = pneg %p10342_p13 }
  0xe6   : > { %p10348_p6 = pnand %p10347_p5, %p10343_p0 }
  0xe8   : > { %10351 = shalt.err (!%p10348_p6)
}
  0xe9   : > { %s14434_s18 = smov 128   ;;  %s1341_s11 = sshll.u32 %s14423_s20, 4  ;;  %s11739_s11 = int_to_ptr.hbm [resolvable:$true] %s1341_s11 }
  0xea   : > { %9781 = dma.hbm_to_vmem [thread:$0]  (%p9898_p3), %s1283_s26, 512, %s1285_s28, [#allocation29], %s14434_s18, %s14434_s18, %s14359_s10  }
  0xeb   : > { %s11321_s23 = smov [#allocation31]   ;;  %s10366_s7 = sshra.s32 %s11727_s13, 4  ;;  %s10367_s7 = int_to_ptr.hbm [resolvable:$true] %s10366_s7 }
  0xec   : > { %s1315_s8 = sshll.u32 %s11321_s23, 4  ;;  %s10368_s1 = scalar_lea.hbm %s10367_s7, 64  ;;  %s1316_s8 = int_to_ptr.vmem [resolvable:$true] %s1315_s8 }
  0xed   : > { %p10369_p7 = scmp.ne.s32.totalorder %s10367_s7, %s10368_s1  ;;  %s10372_s2 = scalar_lea.hbm %s14429_s4, 64 }
  0xee   : > { %p10373_p10 = scmp.lt.s32.totalorder %s10367_s7, %s14429_s4  ;;  %p10374_p11 = scmp.lt.s32.totalorder %s10372_s2, %s10368_s1 }
  0xef   : > { %p10370_p8 = pnand %p10369_p7, %p9898_p3 }
  0xf0   : > { %p10375_p12 = por %p10374_p11, %p10373_p10 }
  0xf1   : > { %p10371_p9 = pneg %p10370_p8 }
  0xf3   : > { %p10376_p13 = pnand %p10375_p12, %p10371_p9 }
  0xf5   : > { %10379 = shalt.err (!%p10376_p13)
}
  0xf6   : > { %9785 = dma.hbm_to_vmem [thread:$0]  (%p9898_p3), %s11727_s13, 1024, %s1316_s8, [#allocation32], %s14434_s18, %s14434_s18, %s14359_s10  }
  0xf7   : > { %s11322_s26 = smov [#allocation34]   ;;  %s10394_s23 = sshra.s32 %s11739_s11, 4  ;;  %s10395_s23 = int_to_ptr.hbm [resolvable:$true] %s10394_s23 }
  0xf8   : > { %s1343_s28 = sshll.u32 %s11322_s26, 4  ;;  %s10396_s7 = scalar_lea.hbm %s10395_s23, 160  ;;  %s1344_s28 = int_to_ptr.vmem [resolvable:$true] %s1343_s28 }
  0xf9   : > { %p10397_p0 = scmp.ne.s32.totalorder %s10395_s23, %s10396_s7  ;;  %s10400_s1 = scalar_lea.hbm %s14423_s20, 160 }
  0xfa   : > { %p10401_p5 = scmp.lt.s32.totalorder %s10395_s23, %s14423_s20  ;;  %p10402_p6 = scmp.lt.s32.totalorder %s10400_s1, %s10396_s7 }
  0xfb   : > { %p10398_p1 = pnand %p10397_p0, %p9898_p3 }
  0xfc   : > { %p10403_p7 = por %p10402_p6, %p10401_p5 }
  0xfd   : > { %p10399_p4 = pneg %p10398_p1 }
  0xff   : > { %p10404_p8 = pnand %p10403_p7, %p10399_p4 }
 0x101   : > { %10407 = shalt.err (!%p10404_p8)
}
 0x102   : > { %s11323_s2 = smov 320   ;;  %s11324_s8 = smov 20  }
 0x103   : > { %9789 = dma.hbm_to_vmem [thread:$0]  (%p9898_p3), %s11739_s11, 2560, %s1344_s28, [#allocation35], %s11323_s2, %s11323_s2, %s11324_s8  }
 0x104   : > { %s1369_s13 = sshll.u32 %s14426_s14, 4  ;;  %s11325_s26 = smov [#allocation37]   ;;  %s1370_s13 = int_to_ptr.hbm [resolvable:$true] %s1369_s13 }
 0x105   : > { %s1371_s22 = sshll.u32 %s11325_s26, 4  ;;  %s1397_s23 = sshll.u32 %s14430_s3, 4  ;;  %s1372_s22 = int_to_ptr.vmem [resolvable:$true] %s1371_s22  ;;  %s1398_s23 = int_to_ptr.hbm [resolvable:$true] %s1397_s23 }
 0x106   : > { %s10422_s7 = sshra.s32 %s1370_s13, 4  ;;  %s10428_s10 = scalar_lea.hbm %s14426_s14, 64  ;;  %s10423_s7 = int_to_ptr.hbm [resolvable:$true] %s10422_s7 }
 0x107   : > { %s10424_s1 = scalar_lea.hbm %s10423_s7, 64  ;;  %p10429_p12 = scmp.lt.s32.totalorder %s10423_s7, %s14426_s14 }
 0x108   : > { %p10425_p9 = scmp.ne.s32.totalorder %s10423_s7, %s10424_s1  ;;  %p10430_p13 = scmp.lt.s32.totalorder %s10428_s10, %s10424_s1 }
 0x10a   : > { %p10426_p10 = pnand %p10425_p9, %p9898_p3  ;;  %p10431_p0 = por %p10430_p13, %p10429_p12 }
 0x10c   : > { %p10427_p11 = pneg %p10426_p10 }
 0x10e   : > { %p10432_p1 = pnand %p10431_p0, %p10427_p11 }
 0x110   : > { %10435 = shalt.err (!%p10432_p1)
}
 0x111   : > { %s14435_s11 = smov 8   ;;  %s11326_s28 = smov [#allocation40]  }
 0x112   : > { %9793 = dma.hbm_to_vmem [thread:$0]  (%p9898_p3), %s1370_s13, 1024, %s1372_s22, [#allocation38], %s14434_s18, %s14434_s18, %s14435_s11  }
 0x113   : > { %s1399_s2 = sshll.u32 %s11326_s28, 4  ;;  %s1425_s8 = sshll.u32 %s11533_s25, 4  ;;  %s1400_s2 = int_to_ptr.vmem [resolvable:$true] %s1399_s2  ;;  %s11772_s8 = int_to_ptr.hbm [resolvable:$true] %s1425_s8 }
 0x114   : > { %s10450_s10 = sshra.s32 %s1398_s23, 4  ;;  %s10456_s7 = scalar_lea.hbm %s14430_s3, 64  ;;  %s10451_s10 = int_to_ptr.hbm [resolvable:$true] %s10450_s10 }
 0x115   : > { %s10452_s26 = scalar_lea.hbm %s10451_s10, 64  ;;  %p10457_p7 = scmp.lt.s32.totalorder %s10451_s10, %s14430_s3 }
 0x116   : > { %p10453_p4 = scmp.ne.s32.totalorder %s10451_s10, %s10452_s26  ;;  %p10458_p8 = scmp.lt.s32.totalorder %s10456_s7, %s10452_s26 }
 0x118   : > { %p10454_p5 = pnand %p10453_p4, %p9898_p3  ;;  %p10459_p9 = por %p10458_p8, %p10457_p7 }
 0x11a   : > { %p10455_p6 = pneg %p10454_p5 }
 0x11c   : > { %p10460_p10 = pnand %p10459_p9, %p10455_p6 }
 0x11e   : > { %10463 = shalt.err (!%p10460_p10)
}
 0x11f   : > { %s14436_s22 = sld [smem:[#allocation107_spill]]  ;;  %s11327_s1 = smov [#allocation43]  }
 0x120   : > { %9797 = dma.hbm_to_vmem [thread:$0]  (%p9898_p3), %s1398_s23, 1024, %s1400_s2, [#allocation41], %s14434_s18, %s14434_s18, %s14435_s11  }
 0x121   : > { %s1427_s28 = sshll.u32 %s11327_s1, 4  ;;  %s10478_s10 = sshra.s32 %s11772_s8, 4  ;;  %s1428_s28 = int_to_ptr.vmem [resolvable:$true] %s1427_s28  ;;  %s10479_s10 = int_to_ptr.hbm [resolvable:$true] %s10478_s10 }
 0x122   : > { %s10480_s26 = scalar_lea.hbm %s10479_s10, 40  ;;  %s10484_s7 = scalar_lea.hbm %s11533_s25, 40 }
 0x123   : > { %p10481_p11 = scmp.ne.s32.totalorder %s10479_s10, %s10480_s26  ;;  %p10485_p0 = scmp.lt.s32.totalorder %s10479_s10, %s11533_s25 }
 0x124   : > { %p10486_p1 = scmp.lt.s32.totalorder %s10484_s7, %s10480_s26 }
 0x125   : > { %s1456_s13 = sshll.u32 %s14436_s22, 4  ;;  %p10482_p12 = pnand %p10481_p11, %p9898_p3  ;;  %s11784_s13 = int_to_ptr.hbm [resolvable:$true] %s1456_s13 }
 0x126   : > { %p10487_p4 = por %p10486_p1, %p10485_p0 }
 0x127   : > { %p10483_p13 = pneg %p10482_p12 }
 0x129   : > { %p10488_p5 = pnand %p10487_p4, %p10483_p13 }
 0x12b   : > { %10491 = shalt.err (!%p10488_p5)
}
 0x12c   : > { %s14437_s23 = smov 4   ;;  %s14438_s2 = smov 64  }
 0x12d   : > { %s14439_s1 = sld [smem:[#allocation110_spill]]  ;;  %s11328_s3 = smov [#allocation46]  }
 0x12e   : > { %9801 = dma.hbm_to_vmem [thread:$0]  (%p9898_p3), %s11772_s8, 640, %s1428_s28, [#allocation44], %s14438_s2, %s14438_s2, %s14437_s23  }
 0x12f   : > { %s1458_s4 = sshll.u32 %s11328_s3, 4  ;;  %s10506_s10 = sshra.s32 %s11784_s13, 4  ;;  %s1459_s4 = int_to_ptr.vmem [resolvable:$true] %s1458_s4  ;;  %s10507_s10 = int_to_ptr.hbm [resolvable:$true] %s10506_s10 }
 0x130   : > { %s10508_s26 = scalar_lea.hbm %s10507_s10, 128  ;;  %s10512_s7 = scalar_lea.hbm %s14436_s22, 128 }
 0x131   : > { %p10509_p6 = scmp.ne.s32.totalorder %s10507_s10, %s10508_s26  ;;  %p10513_p9 = scmp.lt.s32.totalorder %s10507_s10, %s14436_s22 }
 0x132   : > { %p10514_p10 = scmp.lt.s32.totalorder %s10512_s7, %s10508_s26 }
 0x133   : > { %s1487_s5 = sshll.u32 %s14439_s1, 4  ;;  %p10510_p7 = pnand %p10509_p6, %p9898_p3  ;;  %s11798_s5 = int_to_ptr.hbm [resolvable:$true] %s1487_s5 }
 0x134   : > { %p10515_p11 = por %p10514_p10, %p10513_p9 }
 0x135   : > { %p10511_p8 = pneg %p10510_p7 }
 0x137   : > { %p10516_p12 = pnand %p10515_p11, %p10511_p8 }
 0x139   : > { %10519 = shalt.err (!%p10516_p12)
}
 0x13a   : > { %s14440_s3 = sld [smem:[#allocation112_spill]]  ;;  %s11329_s28 = smov [#allocation49]  }
 0x13b   : > { %9805 = dma.hbm_to_vmem [thread:$0]  (%p9898_p3), %s11784_s13, 2048, %s1459_s4, [#allocation47], %s14434_s18, %s14434_s18, %s14435_s11  }
 0x13c   : > { %s1489_s12 = sshll.u32 %s11329_s28, 4  ;;  %s10534_s10 = sshra.s32 %s11798_s5, 4  ;;  %s1490_s12 = int_to_ptr.vmem [resolvable:$true] %s1489_s12  ;;  %s10535_s10 = int_to_ptr.hbm [resolvable:$true] %s10534_s10 }
 0x13d   : > { %s10536_s26 = scalar_lea.hbm %s10535_s10, 128  ;;  %s10540_s7 = scalar_lea.hbm %s14439_s1, 128 }
 0x13e   : > { %p10537_p13 = scmp.ne.s32.totalorder %s10535_s10, %s10536_s26  ;;  %p10541_p4 = scmp.lt.s32.totalorder %s10535_s10, %s14439_s1 }
 0x13f   : > { %p10542_p5 = scmp.lt.s32.totalorder %s10540_s7, %s10536_s26 }
 0x140   : > { %s1515_s8 = sshll.u32 %s14440_s3, 4  ;;  %p10538_p0 = pnand %p10537_p13, %p9898_p3  ;;  %s11812_s8 = int_to_ptr.hbm [resolvable:$true] %s1515_s8 }
 0x141   : > { %p10543_p6 = por %p10542_p5, %p10541_p4 }
 0x142   : > { %p10539_p1 = pneg %p10538_p0 }
 0x144   : > { %p10544_p7 = pnand %p10543_p6, %p10539_p1 }
 0x146   : > { %10547 = shalt.err (!%p10544_p7)
}
 0x147   : > { %9809 = dma.hbm_to_vmem [thread:$0]  (%p9898_p3), %s11798_s5, 2048, %s1490_s12, [#allocation50], %s14434_s18, %s14434_s18, %s14435_s11  }
 0x148   : > { %s11330_s4 = smov [#allocation52]   ;;  %s1543_s28 = sshll.u32 %s14425_s17, 4  ;;  %s11826_s28 = int_to_ptr.hbm [resolvable:$true] %s1543_s28 }
 0x149   : > { %s1517_s13 = sshll.u32 %s11330_s4, 4  ;;  %s10562_s10 = sshra.s32 %s11812_s8, 4  ;;  %s1518_s13 = int_to_ptr.vmem [resolvable:$true] %s1517_s13  ;;  %s10563_s10 = int_to_ptr.hbm [resolvable:$true] %s10562_s10 }
 0x14a   : > { %s10564_s26 = scalar_lea.hbm %s10563_s10, 128  ;;  %s10568_s7 = scalar_lea.hbm %s14440_s3, 128 }
 0x14b   : > { %p10565_p8 = scmp.ne.s32.totalorder %s10563_s10, %s10564_s26  ;;  %p10569_p11 = scmp.lt.s32.totalorder %s10563_s10, %s14440_s3 }
 0x14c   : > { %p10570_p12 = scmp.lt.s32.totalorder %s10568_s7, %s10564_s26 }
 0x14d   : > { %p10566_p9 = pnand %p10565_p8, %p9898_p3 }
 0x14e   : > { %p10571_p13 = por %p10570_p12, %p10569_p11 }
 0x14f   : > { %p10567_p10 = pneg %p10566_p9 }
 0x151   : > { %p10572_p0 = pnand %p10571_p13, %p10567_p10 }
 0x153   : > { %10575 = shalt.err (!%p10572_p0)
}
 0x154   : > { %s14441_s5 = sld [smem:[#allocation81_spill]]  ;;  %s11331_s12 = smov [#allocation55]  }
 0x155   : > { %9813 = dma.hbm_to_vmem [thread:$0]  (%p9898_p3), %s11812_s8, 2048, %s1518_s13, [#allocation53], %s14434_s18, %s14434_s18, %s14435_s11  }
 0x156   : > { %s1545_s4 = sshll.u32 %s11331_s12, 4  ;;  %s10590_s10 = sshra.s32 %s11826_s28, 4  ;;  %s1546_s4 = int_to_ptr.vmem [resolvable:$true] %s1545_s4  ;;  %s10591_s10 = int_to_ptr.hbm [resolvable:$true] %s10590_s10 }
 0x157   : > { %s10592_s26 = scalar_lea.hbm %s10591_s10, 12  ;;  %s10596_s7 = scalar_lea.hbm %s14425_s17, 12 }
 0x158   : > { %p10593_p1 = scmp.ne.s32.totalorder %s10591_s10, %s10592_s26  ;;  %p10597_p6 = scmp.lt.s32.totalorder %s10591_s10, %s14425_s17 }
 0x159   : > { %p10598_p7 = scmp.lt.s32.totalorder %s10596_s7, %s10592_s26 }
 0x15a   : > { %s1044_s1 = sshll.u32 %s14441_s5, 4  ;;  %p10594_p4 = pnand %p10593_p1, %p9898_p3  ;;  %s11840_s1 = int_to_ptr.hbm [resolvable:$true] %s1044_s1 }
 0x15b   : > { %p10599_p8 = por %p10598_p7, %p10597_p6 }
 0x15c   : > { %p10595_p5 = pneg %p10594_p4 }
 0x15e   : > { %p10600_p9 = pnand %p10599_p8, %p10595_p5 }
 0x160   : > { %10603 = shalt.err (!%p10600_p9)
}
 0x161   : > { %s14442_s8 = sld [smem:[#allocation83_spill]]  ;;  %s11332_s12 = smov [#allocation2]  }
 0x162   : > { %9817 = dma.hbm_to_vmem [thread:$0]  (%p9898_p3), %s11826_s28, 192, %s1546_s4, [#allocation56], %s14438_s2, %s14438_s2, %s14437_s23  }
 0x163   : > { %s1046_s3 = sshll.u32 %s11332_s12, 4  ;;  %s10618_s10 = sshra.s32 %s11840_s1, 4  ;;  %s1047_s3 = int_to_ptr.vmem [resolvable:$true] %s1046_s3  ;;  %s10619_s10 = int_to_ptr.hbm [resolvable:$true] %s10618_s10 }
 0x164   : > { %s10620_s26 = scalar_lea.hbm %s10619_s10, 16  ;;  %s10624_s7 = scalar_lea.hbm %s14441_s5, 16 }
 0x165   : > { %p10621_p10 = scmp.ne.s32.totalorder %s10619_s10, %s10620_s26  ;;  %p10625_p13 = scmp.lt.s32.totalorder %s10619_s10, %s14441_s5 }
 0x166   : > { %p10626_p0 = scmp.lt.s32.totalorder %s10624_s7, %s10620_s26 }
 0x167   : > { %s1072_s13 = sshll.u32 %s14442_s8, 4  ;;  %p10622_p11 = pnand %p10621_p10, %p9898_p3  ;;  %s11854_s13 = int_to_ptr.hbm [resolvable:$true] %s1072_s13 }
 0x168   : > { %p10627_p1 = por %p10626_p0, %p10625_p13 }
 0x169   : > { %p10623_p12 = pneg %p10622_p11 }
 0x16b   : > { %p10628_p4 = pnand %p10627_p1, %p10623_p12 }
 0x16d   : > { %10631 = shalt.err (!%p10628_p4)
}
 0x16e   : > { %s14443_s28 = sld [smem:[#allocation84_spill]]  ;;  %s11333_s4 = smov [#allocation6]  }
 0x16f   : > { %9747 = dma.hbm_to_vmem [thread:$0]  (%p9898_p3), %s11840_s1, 256, %s1047_s3, [#allocation3], %s14434_s18, %s14434_s18, %s14435_s11  }
 0x170   : > { %s1074_s12 = sshll.u32 %s11333_s4, 4  ;;  %s10646_s10 = sshra.s32 %s11854_s13, 4  ;;  %s1075_s12 = int_to_ptr.vmem [resolvable:$true] %s1074_s12  ;;  %s10647_s10 = int_to_ptr.hbm [resolvable:$true] %s10646_s10 }
 0x171   : > { %s10648_s26 = scalar_lea.hbm %s10647_s10, 16  ;;  %s10652_s7 = scalar_lea.hbm %s14442_s8, 16 }
 0x172   : > { %p10649_p5 = scmp.ne.s32.totalorder %s10647_s10, %s10648_s26  ;;  %p10653_p8 = scmp.lt.s32.totalorder %s10647_s10, %s14442_s8 }
 0x173   : > { %p10654_p9 = scmp.lt.s32.totalorder %s10652_s7, %s10648_s26 }
 0x174   : > { %s1100_s14 = sshll.u32 %s14443_s28, 4  ;;  %p10650_p6 = pnand %p10649_p5, %p9898_p3  ;;  %s11868_s14 = int_to_ptr.hbm [resolvable:$true] %s1100_s14 }
 0x175   : > { %p10655_p10 = por %p10654_p9, %p10653_p8 }
 0x176   : > { %p10651_p7 = pneg %p10650_p6 }
 0x178   : > { %p10656_p11 = pnand %p10655_p10, %p10651_p7 }
 0x17a   : > { %10659 = shalt.err (!%p10656_p11)
}
 0x17b   : > { %s14444_s1 = sld [smem:[#allocation85_spill]]  ;;  %s11334_s4 = smov [#allocation9]  }
 0x17c   : > { %9751 = dma.hbm_to_vmem [thread:$0]  (%p9898_p3), %s11854_s13, 256, %s1075_s12, [#allocation5], %s14434_s18, %s14434_s18, %s14435_s11  }
 0x17d   : > { %s1102_s5 = sshll.u32 %s11334_s4, 4  ;;  %s10674_s10 = sshra.s32 %s11868_s14, 4  ;;  %s1103_s5 = int_to_ptr.vmem [resolvable:$true] %s1102_s5  ;;  %s10675_s10 = int_to_ptr.hbm [resolvable:$true] %s10674_s10 }
 0x17e   : > { %s10676_s26 = scalar_lea.hbm %s10675_s10, 16  ;;  %s10680_s7 = scalar_lea.hbm %s14443_s28, 16 }
 0x17f   : > { %p10677_p12 = scmp.ne.s32.totalorder %s10675_s10, %s10676_s26  ;;  %p10681_p1 = scmp.lt.s32.totalorder %s10675_s10, %s14443_s28 }
 0x180   : > { %p10682_p4 = scmp.lt.s32.totalorder %s10680_s7, %s10676_s26 }
 0x181   : > { %s1128_s3 = sshll.u32 %s14444_s1, 4  ;;  %p10678_p13 = pnand %p10677_p12, %p9898_p3  ;;  %s11882_s3 = int_to_ptr.hbm [resolvable:$true] %s1128_s3 }
 0x182   : > { %p10683_p5 = por %p10682_p4, %p10681_p1 }
 0x183   : > { %p10679_p0 = pneg %p10678_p13 }
 0x185   : > { %p10684_p6 = pnand %p10683_p5, %p10679_p0 }
 0x187   : > { %10687 = shalt.err (!%p10684_p6)
}
 0x188   : > { %s14445_s13 = sld [smem:[#allocation87_spill]]  ;;  %s11335_s12 = smov [#allocation12]  }
 0x189   : > { %9755 = dma.hbm_to_vmem [thread:$0]  (%p9898_p3), %s11868_s14, 256, %s1103_s5, [#allocation8], %s14434_s18, %s14434_s18, %s14435_s11  }
 0x18a   : > { %s1130_s4 = sshll.u32 %s11335_s12, 4  ;;  %s10702_s10 = sshra.s32 %s11882_s3, 4  ;;  %s1131_s4 = int_to_ptr.vmem [resolvable:$true] %s1130_s4  ;;  %s10703_s10 = int_to_ptr.hbm [resolvable:$true] %s10702_s10 }
 0x18b   : > { %s10704_s26 = scalar_lea.hbm %s10703_s10, 16  ;;  %s10708_s7 = scalar_lea.hbm %s14444_s1, 16 }
 0x18c   : > { %p10705_p7 = scmp.ne.s32.totalorder %s10703_s10, %s10704_s26  ;;  %p10709_p10 = scmp.lt.s32.totalorder %s10703_s10, %s14444_s1 }
 0x18d   : > { %p10710_p11 = scmp.lt.s32.totalorder %s10708_s7, %s10704_s26 }
 0x18e   : > { %s1156_s8 = sshll.u32 %s14445_s13, 4  ;;  %p10706_p8 = pnand %p10705_p7, %p9898_p3  ;;  %s11896_s8 = int_to_ptr.hbm [resolvable:$true] %s1156_s8 }
 0x18f   : > { %p10711_p12 = por %p10710_p11, %p10709_p10 }
 0x190   : > { %p10707_p9 = pneg %p10706_p8 }
 0x192   : > { %p10712_p13 = pnand %p10711_p12, %p10707_p9 }
 0x194   : > { %10715 = shalt.err (!%p10712_p13)
}
 0x195   : > { %s14446_s14 = sld [smem:[#allocation89_spill]]  ;;  %s11336_s12 = smov [#allocation15]  }
 0x196   : > { %9759 = dma.hbm_to_vmem [thread:$0]  (%p9898_p3), %s11882_s3, 256, %s1131_s4, [#allocation11], %s14434_s18, %s14434_s18, %s14435_s11  }
 0x197   : > { %s1158_s17 = sshll.u32 %s11336_s12, 4  ;;  %s10730_s10 = sshra.s32 %s11896_s8, 4  ;;  %s1159_s17 = int_to_ptr.vmem [resolvable:$true] %s1158_s17  ;;  %s10731_s10 = int_to_ptr.hbm [resolvable:$true] %s10730_s10 }
 0x198   : > { %s10732_s26 = scalar_lea.hbm %s10731_s10, 16  ;;  %s10736_s7 = scalar_lea.hbm %s14445_s13, 16 }
 0x199   : > { %p10733_p0 = scmp.ne.s32.totalorder %s10731_s10, %s10732_s26  ;;  %p10737_p5 = scmp.lt.s32.totalorder %s10731_s10, %s14445_s13 }
 0x19a   : > { %p10738_p6 = scmp.lt.s32.totalorder %s10736_s7, %s10732_s26 }
 0x19b   : > { %s1184_s5 = sshll.u32 %s14446_s14, 4  ;;  %p10734_p1 = pnand %p10733_p0, %p9898_p3  ;;  %s11910_s5 = int_to_ptr.hbm [resolvable:$true] %s1184_s5 }
 0x19c   : > { %p10739_p7 = por %p10738_p6, %p10737_p5 }
 0x19d   : > { %p10735_p4 = pneg %p10734_p1 }
 0x19f   : > { %p10740_p8 = pnand %p10739_p7, %p10735_p4 }
 0x1a1   : > { %10743 = shalt.err (!%p10740_p8)
}
 0x1a2   : > { %s14447_s3 = sld [smem:[#allocation90_spill]]  ;;  %s11337_s4 = smov [#allocation18]  }
 0x1a3   : > { %9763 = dma.hbm_to_vmem [thread:$0]  (%p9898_p3), %s11896_s8, 256, %s1159_s17, [#allocation14], %s14434_s18, %s14434_s18, %s14435_s11  }
 0x1a4   : > { %s1186_s12 = sshll.u32 %s11337_s4, 4  ;;  %s10758_s10 = sshra.s32 %s11910_s5, 4  ;;  %s1187_s12 = int_to_ptr.vmem [resolvable:$true] %s1186_s12  ;;  %s10759_s10 = int_to_ptr.hbm [resolvable:$true] %s10758_s10 }
 0x1a5   : > { %s10760_s26 = scalar_lea.hbm %s10759_s10, 32  ;;  %s10764_s7 = scalar_lea.hbm %s14446_s14, 32 }
 0x1a6   : > { %p10761_p9 = scmp.ne.s32.totalorder %s10759_s10, %s10760_s26  ;;  %p10765_p12 = scmp.lt.s32.totalorder %s10759_s10, %s14446_s14 }
 0x1a7   : > { %p10766_p13 = scmp.lt.s32.totalorder %s10764_s7, %s10760_s26 }
 0x1a8   : > { %s1212_s1 = sshll.u32 %s14447_s3, 4  ;;  %p10762_p10 = pnand %p10761_p9, %p9898_p3  ;;  %s11924_s1 = int_to_ptr.hbm [resolvable:$true] %s1212_s1 }
 0x1a9   : > { %p10767_p0 = por %p10766_p13, %p10765_p12 }
 0x1aa   : > { %p10763_p11 = pneg %p10762_p10 }
 0x1ac   : > { %p10768_p1 = pnand %p10767_p0, %p10763_p11 }
 0x1ae   : > { %10771 = shalt.err (!%p10768_p1)
}
 0x1af   : > { %s14448_s17 = sld [smem:[#allocation92_spill]]  ;;  %s11338_s8 = smov [#allocation21]  }
 0x1b0   : > { %9767 = dma.hbm_to_vmem [thread:$0]  (%p9898_p3), %s11910_s5, 512, %s1187_s12, [#allocation17], %s14434_s18, %s14434_s18, %s14435_s11  }
 0x1b1   : > { %s1214_s4 = sshll.u32 %s11338_s8, 4  ;;  %s10786_s26 = sshra.s32 %s11924_s1, 4  ;;  %s1215_s4 = int_to_ptr.vmem [resolvable:$true] %s1214_s4  ;;  %s10787_s26 = int_to_ptr.hbm [resolvable:$true] %s10786_s26 }
 0x1b2   : > { %s10788_s7 = scalar_lea.hbm %s10787_s26, 48  ;;  %s10792_s13 = scalar_lea.hbm %s14447_s3, 48 }
 0x1b3   : > { %p10789_p4 = scmp.ne.s32.totalorder %s10787_s26, %s10788_s7  ;;  %p10793_p7 = scmp.lt.s32.totalorder %s10787_s26, %s14447_s3 }
 0x1b4   : > { %p10794_p8 = scmp.lt.s32.totalorder %s10792_s13, %s10788_s7 }
 0x1b5   : > { %s1240_s10 = sshll.u32 %s14448_s17, 4  ;;  %p10790_p5 = pnand %p10789_p4, %p9898_p3  ;;  %s1241_s10 = int_to_ptr.hbm [resolvable:$true] %s1240_s10 }
 0x1b6   : > { %p10795_p9 = por %p10794_p8, %p10793_p7 }
 0x1b7   : > { %p10791_p6 = pneg %p10790_p5 }
 0x1b9   : > { %p10796_p10 = pnand %p10795_p9, %p10791_p6 }
 0x1bb   : > { %10799 = shalt.err (!%p10796_p10)
}
 0x1bc   : > { %s14376_s14 = smov 192   ;;  %s14449_s5 = sld [smem:[#allocation93_spill]] }
 0x1bd   : > { %s14377_s12 = smov 12   ;;  %s11341_s8 = smov [#allocation24]  }
 0x1be   : > { %9771 = dma.hbm_to_vmem [thread:$0]  (%p9898_p3), %s11924_s1, 768, %s1215_s4, [#allocation20], %s14376_s14, %s14376_s14, %s14377_s12  }
 0x1bf   : > { %s1242_s26 = sshll.u32 %s11341_s8, 4  ;;  %s10814_s7 = sshra.s32 %s1241_s10, 4  ;;  %s1243_s26 = int_to_ptr.vmem [resolvable:$true] %s1242_s26  ;;  %s10815_s7 = int_to_ptr.hbm [resolvable:$true] %s10814_s7 }
 0x1c0   : > { %s10816_s3 = scalar_lea.hbm %s10815_s7, 32  ;;  %s10820_s19 = scalar_lea.hbm %s14448_s17, 32 }
 0x1c1   : > { %p10817_p11 = scmp.ne.s32.totalorder %s10815_s7, %s10816_s3  ;;  %p10821_p0 = scmp.lt.s32.totalorder %s10815_s7, %s14448_s17 }
 0x1c2   : > { %s1268_s13 = sshll.u32 %s14449_s5, 4  ;;  %p10822_p1 = scmp.lt.s32.totalorder %s10820_s19, %s10816_s3  ;;  %s11950_s13 = int_to_ptr.hbm [resolvable:$true] %s1268_s13 }
 0x1c3   : > { %p10818_p12 = pnand %p10817_p11, %p9898_p3 }
 0x1c4   : > { %p10823_p4 = por %p10822_p1, %p10821_p0 }
 0x1c5   : > { %p10819_p13 = pneg %p10818_p12 }
 0x1c7   : > { %p10824_p5 = pnand %p10823_p4, %p10819_p13 }
 0x1c9   : > { %10827 = shalt.err (!%p10824_p5)
}
 0x1ca   : > { %s14450_s1 = sld [smem:[#allocation96_spill]]  ;;  %s11342_s8 = smov [#allocation27]  }
 0x1cb   : > { %9775 = dma.hbm_to_vmem [thread:$0]  (%p9898_p3), %s1241_s10, 512, %s1243_s26, [#allocation23], %s14434_s18, %s14434_s18, %s14435_s11  }
 0x1cc   : > { %s1270_s14 = sshll.u32 %s11342_s8, 4  ;;  %s10842_s19 = sshra.s32 %s11950_s13, 4  ;;  %s1271_s14 = int_to_ptr.vmem [resolvable:$true] %s1270_s14  ;;  %s10843_s19 = int_to_ptr.hbm [resolvable:$true] %s10842_s19 }
 0x1cd   : > { %s10844_s3 = scalar_lea.hbm %s10843_s19, 32  ;;  %s10848_s7 = scalar_lea.hbm %s14449_s5, 32 }
 0x1ce   : > { %p10845_p6 = scmp.ne.s32.totalorder %s10843_s19, %s10844_s3  ;;  %p10849_p9 = scmp.lt.s32.totalorder %s10843_s19, %s14449_s5 }
 0x1cf   : > { %p10850_p10 = scmp.lt.s32.totalorder %s10848_s7, %s10844_s3 }
 0x1d0   : > { %s1299_s4 = sshll.u32 %s14450_s1, 4  ;;  %p10846_p7 = pnand %p10845_p6, %p9898_p3  ;;  %s11962_s4 = int_to_ptr.hbm [resolvable:$true] %s1299_s4 }
 0x1d1   : > { %p10851_p11 = por %p10850_p10, %p10849_p9 }
 0x1d2   : > { %p10847_p8 = pneg %p10846_p7 }
 0x1d4   : > { %p10852_p12 = pnand %p10851_p11, %p10847_p8 }
 0x1d6   : > { %10855 = shalt.err (!%p10852_p12)
}
 0x1d7   : > { %s14451_s10 = sld [smem:[#allocation98_spill]]  ;;  %s11343_s26 = smov [#allocation30]  }
 0x1d8   : > { %9779 = dma.hbm_to_vmem [thread:$0]  (%p9898_p3), %s11950_s13, 512, %s1271_s14, [#allocation26], %s14434_s18, %s14434_s18, %s14435_s11  }
 0x1d9   : > { %s1301_s8 = sshll.u32 %s11343_s26, 4  ;;  %s10870_s19 = sshra.s32 %s11962_s4, 4  ;;  %s1302_s8 = int_to_ptr.vmem [resolvable:$true] %s1301_s8  ;;  %s10871_s19 = int_to_ptr.hbm [resolvable:$true] %s10870_s19 }
 0x1da   : > { %s10872_s3 = scalar_lea.hbm %s10871_s19, 96  ;;  %s10876_s7 = scalar_lea.hbm %s14450_s1, 96 }
 0x1db   : > { %p10873_p13 = scmp.ne.s32.totalorder %s10871_s19, %s10872_s3  ;;  %p10877_p4 = scmp.lt.s32.totalorder %s10871_s19, %s14450_s1 }
 0x1dc   : > { %p10878_p5 = scmp.lt.s32.totalorder %s10876_s7, %s10872_s3 }
 0x1dd   : > { %s1327_s12 = sshll.u32 %s14451_s10, 4  ;;  %p10874_p0 = pnand %p10873_p13, %p9898_p3  ;;  %s11976_s12 = int_to_ptr.hbm [resolvable:$true] %s1327_s12 }
 0x1de   : > { %p10879_p6 = por %p10878_p5, %p10877_p4 }
 0x1df   : > { %p10875_p1 = pneg %p10874_p0 }
 0x1e1   : > { %p10880_p7 = pnand %p10879_p6, %p10875_p1 }
 0x1e3   : > { %10883 = shalt.err (!%p10880_p7)
}
 0x1e4   : > { %s14452_s14 = smov 12   ;;  %s14453_s13 = smov 192  }
 0x1e5   : > { %s14454_s26 = sld [smem:[#allocation100_spill]]  ;;  %s11344_s17 = smov [#allocation33]  }
 0x1e6   : > { %9783 = dma.hbm_to_vmem [thread:$0]  (%p9898_p3), %s11962_s4, 1536, %s1302_s8, [#allocation29], %s14453_s13, %s14453_s13, %s14452_s14  }
 0x1e7   : > { %s1329_s20 = sshll.u32 %s11344_s17, 4  ;;  %s10898_s19 = sshra.s32 %s11976_s12, 4  ;;  %s1330_s20 = int_to_ptr.vmem [resolvable:$true] %s1329_s20  ;;  %s10899_s19 = int_to_ptr.hbm [resolvable:$true] %s10898_s19 }
 0x1e8   : > { %s10900_s3 = scalar_lea.hbm %s10899_s19, 64  ;;  %s10904_s7 = scalar_lea.hbm %s14451_s10, 64 }
 0x1e9   : > { %p10901_p8 = scmp.ne.s32.totalorder %s10899_s19, %s10900_s3  ;;  %p10905_p11 = scmp.lt.s32.totalorder %s10899_s19, %s14451_s10 }
 0x1ea   : > { %p10906_p12 = scmp.lt.s32.totalorder %s10904_s7, %s10900_s3 }
 0x1eb   : > { %s1355_s5 = sshll.u32 %s14454_s26, 4  ;;  %p10902_p9 = pnand %p10901_p8, %p9898_p3  ;;  %s11990_s5 = int_to_ptr.hbm [resolvable:$true] %s1355_s5 }
 0x1ec   : > { %p10907_p13 = por %p10906_p12, %p10905_p11 }
 0x1ed   : > { %p10903_p10 = pneg %p10902_p9 }
 0x1ef   : > { %p10908_p0 = pnand %p10907_p13, %p10903_p10 }
 0x1f1   : > { %10911 = shalt.err (!%p10908_p0)
}
 0x1f2   : > { %s14455_s17 = sld [smem:[#allocation102_spill]]  ;;  %s11345_s4 = smov [#allocation36]  }
 0x1f3   : > { %9787 = dma.hbm_to_vmem [thread:$0]  (%p9898_p3), %s11976_s12, 1024, %s1330_s20, [#allocation32], %s14434_s18, %s14434_s18, %s14435_s11  }
 0x1f4   : > { %s1357_s8 = sshll.u32 %s11345_s4, 4  ;;  %s10926_s13 = sshra.s32 %s11990_s5, 4  ;;  %s1358_s8 = int_to_ptr.vmem [resolvable:$true] %s1357_s8  ;;  %s10927_s13 = int_to_ptr.hbm [resolvable:$true] %s10926_s13 }
 0x1f5   : > { %s10928_s19 = scalar_lea.hbm %s10927_s13, 64  ;;  %s10932_s3 = scalar_lea.hbm %s14454_s26, 64 }
 0x1f6   : > { %p10929_p1 = scmp.ne.s32.totalorder %s10927_s13, %s10928_s19  ;;  %p10933_p6 = scmp.lt.s32.totalorder %s10927_s13, %s14454_s26 }
 0x1f7   : > { %p10934_p7 = scmp.lt.s32.totalorder %s10932_s3, %s10928_s19 }
 0x1f8   : > { %s1383_s14 = sshll.u32 %s14455_s17, 4  ;;  %p10930_p4 = pnand %p10929_p1, %p9898_p3  ;;  %s12004_s14 = int_to_ptr.hbm [resolvable:$true] %s1383_s14 }
 0x1f9   : > { %p10935_p8 = por %p10934_p7, %p10933_p6 }
 0x1fa   : > { %p10931_p5 = pneg %p10930_p4 }
 0x1fc   : > { %p10936_p9 = pnand %p10935_p8, %p10931_p5 }
 0x1fe   : > { %10939 = shalt.err (!%p10936_p9)
}
 0x1ff   : > { %s14456_s20 = sld [smem:[#allocation104_spill]]  ;;  %s11346_s7 = smov [#allocation39]  }
 0x200   : > { %9791 = dma.hbm_to_vmem [thread:$0]  (%p9898_p3), %s11990_s5, 1024, %s1358_s8, [#allocation35], %s14434_s18, %s14434_s18, %s14435_s11  }
 0x201   : > { %s1385_s4 = sshll.u32 %s11346_s7, 4  ;;  %s10954_s13 = sshra.s32 %s12004_s14, 4  ;;  %s1386_s4 = int_to_ptr.vmem [resolvable:$true] %s1385_s4  ;;  %s10955_s13 = int_to_ptr.hbm [resolvable:$true] %s10954_s13 }
 0x202   : > { %s10956_s19 = scalar_lea.hbm %s10955_s13, 32  ;;  %s10960_s3 = scalar_lea.hbm %s14455_s17, 32 }
 0x203   : > { %p10957_p10 = scmp.ne.s32.totalorder %s10955_s13, %s10956_s19  ;;  %p10961_p13 = scmp.lt.s32.totalorder %s10955_s13, %s14455_s17 }
 0x204   : > { %p10962_p0 = scmp.lt.s32.totalorder %s10960_s3, %s10956_s19 }
 0x205   : > { %s1411_s12 = sshll.u32 %s14456_s20, 4  ;;  %p10958_p11 = pnand %p10957_p10, %p9898_p3  ;;  %s12018_s12 = int_to_ptr.hbm [resolvable:$true] %s1411_s12 }
 0x206   : > { %p10963_p1 = por %p10962_p0, %p10961_p13 }
 0x207   : > { %p10959_p12 = pneg %p10958_p11 }
 0x209   : > { %p10964_p4 = pnand %p10963_p1, %p10959_p12 }
 0x20b   : > { %10967 = shalt.err (!%p10964_p4)
}
 0x20c   : > { %s14457_s5 = sld [smem:[#allocation106_spill]]  ;;  %s11347_s8 = smov [#allocation42]  }
 0x20d   : > { %9795 = dma.hbm_to_vmem [thread:$0]  (%p9898_p3), %s12004_s14, 512, %s1386_s4, [#allocation38], %s14438_s2, %s14438_s2, %s14437_s23  }
 0x20e   : > { %s1413_s7 = sshll.u32 %s11347_s8, 4  ;;  %s10982_s13 = sshra.s32 %s12018_s12, 4  ;;  %s1414_s7 = int_to_ptr.vmem [resolvable:$true] %s1413_s7  ;;  %s10983_s13 = int_to_ptr.hbm [resolvable:$true] %s10982_s13 }
 0x20f   : > { %s10984_s19 = scalar_lea.hbm %s10983_s13, 64  ;;  %s10988_s3 = scalar_lea.hbm %s14456_s20, 64 }
 0x210   : > { %p10985_p5 = scmp.ne.s32.totalorder %s10983_s13, %s10984_s19  ;;  %p10989_p8 = scmp.lt.s32.totalorder %s10983_s13, %s14456_s20 }
 0x211   : > { %p10990_p9 = scmp.lt.s32.totalorder %s10988_s3, %s10984_s19 }
 0x212   : > { %s1442_s1 = sshll.u32 %s14457_s5, 4  ;;  %p10986_p6 = pnand %p10985_p5, %p9898_p3  ;;  %s12032_s1 = int_to_ptr.hbm [resolvable:$true] %s1442_s1 }
 0x213   : > { %p10991_p10 = por %p10990_p9, %p10989_p8 }
 0x214   : > { %p10987_p7 = pneg %p10986_p6 }
 0x216   : > { %p10992_p11 = pnand %p10991_p10, %p10987_p7 }
 0x218   : > { %10995 = shalt.err (!%p10992_p11)
}
 0x219   : > { %s14458_s14 = sld [smem:[#allocation109_spill]]  ;;  %s11348_s8 = smov [#allocation45]  }
 0x21a   : > { %9799 = dma.hbm_to_vmem [thread:$0]  (%p9898_p3), %s12018_s12, 1024, %s1414_s7, [#allocation41], %s14434_s18, %s14434_s18, %s14435_s11  }
 0x21b   : > { %s1444_s10 = sshll.u32 %s11348_s8, 4  ;;  %s11010_s13 = sshra.s32 %s12032_s1, 4  ;;  %s1445_s10 = int_to_ptr.vmem [resolvable:$true] %s1444_s10  ;;  %s11011_s13 = int_to_ptr.hbm [resolvable:$true] %s11010_s13 }
 0x21c   : > { %s11012_s19 = scalar_lea.hbm %s11011_s13, 128  ;;  %s11016_s3 = scalar_lea.hbm %s14457_s5, 128 }
 0x21d   : > { %p11013_p12 = scmp.ne.s32.totalorder %s11011_s13, %s11012_s19  ;;  %p11017_p1 = scmp.lt.s32.totalorder %s11011_s13, %s14457_s5 }
 0x21e   : > { %p11018_p4 = scmp.lt.s32.totalorder %s11016_s3, %s11012_s19 }
 0x21f   : > { %s1473_s4 = sshll.u32 %s14458_s14, 4  ;;  %p11014_p13 = pnand %p11013_p12, %p9898_p3  ;;  %s12046_s4 = int_to_ptr.hbm [resolvable:$true] %s1473_s4 }
 0x220   : > { %p11019_p5 = por %p11018_p4, %p11017_p1 }
 0x221   : > { %p11015_p0 = pneg %p11014_p13 }
 0x223   : > { %p11020_p6 = pnand %p11019_p5, %p11015_p0 }
 0x225   : > { %11023 = shalt.err (!%p11020_p6)
}
 0x226   : > { %s14459_s12 = sld [smem:[#allocation111_spill]]  ;;  %s11349_s7 = smov [#allocation48]  }
 0x227   : > { %9803 = dma.hbm_to_vmem [thread:$0]  (%p9898_p3), %s12032_s1, 2048, %s1445_s10, [#allocation44], %s14434_s18, %s14434_s18, %s14435_s11  }
 0x228   : > { %s1475_s8 = sshll.u32 %s11349_s7, 4  ;;  %s11038_s13 = sshra.s32 %s12046_s4, 4  ;;  %s1476_s8 = int_to_ptr.vmem [resolvable:$true] %s1475_s8  ;;  %s11039_s13 = int_to_ptr.hbm [resolvable:$true] %s11038_s13 }
 0x229   : > { %s11040_s19 = scalar_lea.hbm %s11039_s13, 128  ;;  %s11044_s3 = scalar_lea.hbm %s14458_s14, 128 }
 0x22a   : > { %p11041_p7 = scmp.ne.s32.totalorder %s11039_s13, %s11040_s19  ;;  %p11045_p10 = scmp.lt.s32.totalorder %s11039_s13, %s14458_s14 }
 0x22b   : > { %p11046_p11 = scmp.lt.s32.totalorder %s11044_s3, %s11040_s19 }
 0x22c   : > { %s1501_s17 = sshll.u32 %s14459_s12, 4  ;;  %p11042_p8 = pnand %p11041_p7, %p9898_p3  ;;  %s12060_s17 = int_to_ptr.hbm [resolvable:$true] %s1501_s17 }
 0x22d   : > { %p11047_p12 = por %p11046_p11, %p11045_p10 }
 0x22e   : > { %p11043_p9 = pneg %p11042_p8 }
 0x230   : > { %p11048_p13 = pnand %p11047_p12, %p11043_p9 }
 0x232   : > { %11051 = shalt.err (!%p11048_p13)
}
 0x233   : > { %s14460_s1 = sld [smem:[#allocation113_spill]]  ;;  %s11350_s7 = smov [#allocation51]  }
 0x234   : > { %9807 = dma.hbm_to_vmem [thread:$0]  (%p9898_p3), %s12046_s4, 2048, %s1476_s8, [#allocation47], %s14434_s18, %s14434_s18, %s14435_s11  }
 0x235   : > { %s1503_s5 = sshll.u32 %s11350_s7, 4  ;;  %s11066_s13 = sshra.s32 %s12060_s17, 4  ;;  %s1504_s5 = int_to_ptr.vmem [resolvable:$true] %s1503_s5  ;;  %s11067_s13 = int_to_ptr.hbm [resolvable:$true] %s11066_s13 }
 0x236   : > { %s11068_s19 = scalar_lea.hbm %s11067_s13, 64  ;;  %s11072_s3 = scalar_lea.hbm %s14459_s12, 64 }
 0x237   : > { %p11069_p0 = scmp.ne.s32.totalorder %s11067_s13, %s11068_s19  ;;  %p11073_p5 = scmp.lt.s32.totalorder %s11067_s13, %s14459_s12 }
 0x238   : > { %p11074_p6 = scmp.lt.s32.totalorder %s11072_s3, %s11068_s19 }
 0x239   : > { %s1529_s10 = sshll.u32 %s14460_s1, 4  ;;  %p11070_p1 = pnand %p11069_p0, %p9898_p3  ;;  %s12074_s10 = int_to_ptr.hbm [resolvable:$true] %s1529_s10 }
 0x23a   : > { %p11075_p7 = por %p11074_p6, %p11073_p5 }
 0x23b   : > { %p11071_p4 = pneg %p11070_p1 }
 0x23d   : > { %p11076_p8 = pnand %p11075_p7, %p11071_p4 }
 0x23f   : > { %11079 = shalt.err (!%p11076_p8)
}
 0x240   : > { %9811 = dma.hbm_to_vmem [thread:$0]  (%p9898_p3), %s12060_s17, 1024, %s1504_s5, [#allocation50], %s14438_s2, %s14438_s2, %s14437_s23  }
 0x241   : > { %s11351_s4 = smov [#allocation54]   ;;  %s1557_s7 = sshll.u32 %s11588_s6, 4  ;;  %s12088_s7 = int_to_ptr.hbm [resolvable:$true] %s1557_s7 }
 0x242   : > { %s1531_s8 = sshll.u32 %s11351_s4, 4  ;;  %s11094_s13 = sshra.s32 %s12074_s10, 4  ;;  %s1532_s8 = int_to_ptr.vmem [resolvable:$true] %s1531_s8  ;;  %s11095_s13 = int_to_ptr.hbm [resolvable:$true] %s11094_s13 }
 0x243   : > { %s11096_s19 = scalar_lea.hbm %s11095_s13, 128  ;;  %s11100_s3 = scalar_lea.hbm %s14460_s1, 128 }
 0x244   : > { %p11097_p9 = scmp.ne.s32.totalorder %s11095_s13, %s11096_s19  ;;  %p11101_p12 = scmp.lt.s32.totalorder %s11095_s13, %s14460_s1 }
 0x245   : > { %p11102_p13 = scmp.lt.s32.totalorder %s11100_s3, %s11096_s19 }
 0x246   : > { %p11098_p10 = pnand %p11097_p9, %p9898_p3 }
 0x247   : > { %p11103_p0 = por %p11102_p13, %p11101_p12 }
 0x248   : > { %p11099_p11 = pneg %p11098_p10 }
 0x24a   : > { %p11104_p1 = pnand %p11103_p0, %p11099_p11 }
 0x24c   : > { %11107 = shalt.err (!%p11104_p1)
}
 0x24d   : > { %9815 = dma.hbm_to_vmem [thread:$0]  (%p9898_p3), %s12074_s10, 2048, %s1532_s8, [#allocation53], %s14434_s18, %s14434_s18, %s14435_s11  }
 0x24e   : > { %s1571_s17 = sshll.u32 %s11593_s9, 4  ;;  %s11352_s5 = smov [#allocation57]   ;;  %s12102_s17 = int_to_ptr.hbm [resolvable:$true] %s1571_s17 }
 0x24f   : > { %s1559_s4 = sshll.u32 %s11352_s5, 4  ;;  %s11122_s13 = sshra.s32 %s12088_s7, 4  ;;  %s1560_s4 = int_to_ptr.vmem [resolvable:$true] %s1559_s4  ;;  %s11123_s13 = int_to_ptr.hbm [resolvable:$true] %s11122_s13 }
 0x250   : > { %s11124_s19 = scalar_lea.hbm %s11123_s13, 8  ;;  %s11128_s3 = scalar_lea.hbm %s11588_s6, 8 }
 0x251   : > { %p11125_p4 = scmp.ne.s32.totalorder %s11123_s13, %s11124_s19  ;;  %p11129_p7 = scmp.lt.s32.totalorder %s11123_s13, %s11588_s6 }
 0x252   : > { %p11130_p8 = scmp.lt.s32.totalorder %s11128_s3, %s11124_s19 }
 0x253   : > { %p11126_p5 = pnand %p11125_p4, %p9898_p3 }
 0x254   : > { %p11131_p9 = por %p11130_p8, %p11129_p7 }
 0x255   : > { %p11127_p6 = pneg %p11126_p5 }
 0x257   : > { %p11132_p10 = pnand %p11131_p9, %p11127_p6 }
 0x259   : > { %11135 = shalt.err (!%p11132_p10)
}
 0x25a   : > { %9819 = dma.hbm_to_vmem [thread:$0]  (%p9898_p3), %s12088_s7, 128, %s1560_s4, [#allocation56], %s14438_s2, %s14438_s2, %s14437_s23  }
 0x25b   : > { %s11353_s10 = smov [#allocation58]   ;;  %s11150_s5 = sshra.s32 %s12102_s17, 4  ;;  %s11151_s5 = int_to_ptr.hbm [resolvable:$true] %s11150_s5 }
 0x25c   : > { %s1573_s8 = sshll.u32 %s11353_s10, 4  ;;  %s11152_s13 = scalar_lea.hbm %s11151_s5, 16  ;;  %s1574_s8 = int_to_ptr.vmem [resolvable:$true] %s1573_s8 }
 0x25d   : > { %p11153_p11 = scmp.ne.s32.totalorder %s11151_s5, %s11152_s13  ;;  %s11156_s19 = scalar_lea.hbm %s11593_s9, 16 }
 0x25e   : > { %p11157_p0 = scmp.lt.s32.totalorder %s11151_s5, %s11593_s9  ;;  %p11158_p1 = scmp.lt.s32.totalorder %s11156_s19, %s11152_s13 }
 0x25f   : > { %p11154_p12 = pnand %p11153_p11, %p9898_p3 }
 0x260   : > { %p11159_p4 = por %p11158_p1, %p11157_p0 }
 0x261   : > { %p11155_p13 = pneg %p11154_p12 }
 0x263   : > { %p11160_p5 = pnand %p11159_p4, %p11155_p13 }
 0x265   : > { %11163 = shalt.err (!%p11160_p5)
}
 0x266   : > { %9821 = dma.hbm_to_vmem [thread:$0]  (%p9898_p3), %s12102_s17, 256, %s1574_s8, [#allocation59], %s14434_s18, %s14434_s18, %s14435_s11  }
 0x267 PF: > { %1597 = sbr.rel (%p11610_p2) target bundleno = 6436 (0x1924), region = 188 }
 0x26c   : > { %p9936_p6 = scmp.eq.s32.totalorder %s11606_s15, 0 }
 0x26e   : > { %11183 = dma.done.wait (%p9936_p6), [#allocation3], 256  }
 0x26f   : > { %11185 = vsyncadd (%p9936_p6), [#allocation3], 4294967040 }
 0x270   : > { %11187 = dma.done.wait (%p9936_p6), [#allocation5], 512  }
 0x271   : > { %11189 = vsyncadd (%p9936_p6), [#allocation5], 4294966784 }
 0x272   : > { %11191 = dma.done.wait (%p9936_p6), [#allocation8], 512  }
 0x273   : > { %11193 = vsyncadd (%p9936_p6), [#allocation8], 4294966784 }
 0x274   : > { %11195 = dma.done.wait (%p9936_p6), [#allocation11], 512  }
 0x275   : > { %11197 = vsyncadd (%p9936_p6), [#allocation11], 4294966784 }
 0x276   : > { %11199 = dma.done.wait (%p9936_p6), [#allocation14], 512  }
 0x277   : > { %11201 = vsyncadd (%p9936_p6), [#allocation14], 4294966784 }
 0x278   : > { %11203 = dma.done.wait (%p9936_p6), [#allocation17], 1024  }
 0x279   : > { %11205 = vsyncadd (%p9936_p6), [#allocation17], 4294966272 }
 0x27a   : > { %11207 = dma.done.wait (%p9936_p6), [#allocation20], 1280  }
 0x27b   : > { %11209 = vsyncadd (%p9936_p6), [#allocation20], 4294966016 }
 0x27c   : > { %11211 = dma.done.wait (%p9936_p6), [#allocation23], 1024  }
 0x27d   : > { %11213 = vsyncadd (%p9936_p6), [#allocation23], 4294966272 }
 0x27e   : > { %11215 = dma.done.wait (%p9936_p6), [#allocation26], 768  }
 0x27f   : > { %11217 = vsyncadd (%p9936_p6), [#allocation26], 4294966528 }
 0x280   : > { %11219 = dma.done.wait (%p9936_p6), [#allocation29], 2048  }
 0x281   : > { %11221 = vsyncadd (%p9936_p6), [#allocation29], 4294965248 }
 0x282   : > { %11223 = dma.done.wait (%p9936_p6), [#allocation32], 2048  }
 0x283   : > { %11225 = vsyncadd (%p9936_p6), [#allocation32], 4294965248 }
 0x284   : > { %11227 = dma.done.wait (%p9936_p6), [#allocation35], 3584  }
 0x285   : > { %11229 = vsyncadd (%p9936_p6), [#allocation35], 4294963712 }
 0x286   : > { %11231 = dma.done.wait (%p9936_p6), [#allocation38], 1536  }
 0x287   : > { %11233 = vsyncadd (%p9936_p6), [#allocation38], 4294965760 }
 0x288   : > { %11235 = dma.done.wait (%p9936_p6), [#allocation41], 2048  }
 0x289   : > { %11237 = vsyncadd (%p9936_p6), [#allocation41], 4294965248 }
 0x28a   : > { %11239 = dma.done.wait (%p9936_p6), [#allocation44], 2688  }
 0x28b   : > { %11241 = vsyncadd (%p9936_p6), [#allocation44], 4294964608 }
 0x28c   : > { %11243 = dma.done.wait (%p9936_p6), [#allocation47], 4096  }
 0x28d   : > { %11245 = vsyncadd (%p9936_p6), [#allocation47], 4294963200 }
 0x28e   : > { %11247 = dma.done.wait (%p9936_p6), [#allocation50], 3072  }
 0x28f   : > { %11249 = vsyncadd (%p9936_p6), [#allocation50], 4294964224 }
 0x290   : > { %11251 = dma.done.wait (%p9936_p6), [#allocation53], 4096  }
 0x291   : > { %11253 = vsyncadd (%p9936_p6), [#allocation53], 4294963200 }
 0x292   : > { %11255 = dma.done.wait (%p9936_p6), [#allocation56], 320  }
 0x293   : > { %11257 = vsyncadd (%p9936_p6), [#allocation56], 4294966976 }
 0x294   : > { %11259 = dma.done.wait (%p9936_p6), [#allocation59], 256  }
 0x295   : > { %11261 = vsyncadd (%p9936_p6), [#allocation59], 4294967040  ;;  %s14461_s16 = sld [smem:[#allocation80_spill]]  ;;  %p1885_p2 = scmp.lt.s32.totalorder %s11606_s15, 1  ;;  %vm2000_vm0 = vcmask 744448   ;;  %vm1988_vm1 = vcmask 752640   ;;  %v2153_v60 = vlaneseq }
 0x296   : > { %s11354_s23 = smov 92   ;;  %s11355_s2 = smov 91   ;;  %vm1976_vm2 = vcmask 883712   ;;  %vm1964_vm3 = vcmask 891904   ;;  %vm14386_vm4 = vcmask 736256   ;;  %vm14385_vm5 = vcmask 130048  }
 0x297   : > { %s14571_s15 = smov (!%p1885_p2, %s11606_s15), 1  ;;  %s11356_s7 = smov 108   ;;  %v9546_v24 = vld [vmem:[#allocation2 + $0x4] sm:$0xf]  ;;  %v8674_v25 = vld [vmem:[#allocation2 + $0x8] sm:$0xf0] }
 0x298   : > { %s9745_s18 = smul.u32 24, %s14571_s15  ;;  %s11357_s17 = smov 109   ;;  %v8677_v30 = vor.u32 %v9546_v24, %v8674_v25  ;;  %vm1952_vm6 = vcmask 900096   ;;  %v1903_v41 = vld [vmem:[#allocation4 + $0x8] sm:$0xff]  ;;  %v11362_v42 = vmov 0   ;;  %v1902_v43 = vld [vmem:[#allocation4] sm:$0xff] }
 0x299   : > { %s11358_s4 = smov 90   ;;  %s11359_s3 = smov 110   ;;  %10097 = vset.pattern.permute.xlu1 %v11362_v42  ;;  %10096 = vset.pattern.permute.xlu0 %v11362_v42  ;;  %v1904_v44 = vld [vmem:[#allocation6] sm:$0xff]  ;;  %vm1940_vm7 = vcmask 1031168   ;;  %v1905_v50 = vld [vmem:[#allocation6 + $0x8] sm:$0xff]  ;;  %vm1928_vm8 = vcmask 1039360  }
 0x29a   : > { %s11360_s10 = smov 126   ;;  %s11361_s8 = smov 127   ;;  %10098 = vset.pattern.permute.xlu2 %v11362_v42  ;;  %v8672_v56 = vld [vmem:[#allocation2] sm:$0xf]  ;;  %v9547_v57 = vld [vmem:[#allocation2 + $0x4] sm:$0xf0] }
 0x29b   : > { %s1889_s11 = scalar_lea.vmem %s14461_s16, %s9745_s18  ;;  %v8673_v59 = vor.u32 %v9547_v57, %v8672_v56  ;;  %v12294_v61 = vand.u32 127, %v2153_v60  ;;  %s11363_s5 = smov 19  }
 0x29c   : > { %v9543_v0 = vld [vmem:[%s1889_s11 + $0x4] sm:$0xf]  ;;  %v8662_v1 = vld [vmem:[%s1889_s11 + $0xc] sm:$0xf0]  ;;  %v8660_v3 = vld [vmem:[%s1889_s11] sm:$0xf] }
 0x29d   : > { %v12215_v2 = vor.u32 %v9543_v0, %v8662_v1  ;;  %v9544_v4 = vld [vmem:[%s1889_s11 + $0x8] sm:$0xf0]  ;;  %v8668_v6 = vld [vmem:[%s1889_s11 + $0x8] sm:$0xf]  ;;  %v9545_v7 = vld [vmem:[%s1889_s11 + $0x10] sm:$0xf0] }
 0x29e   : > { %v12217_v5 = vor.u32 %v9544_v4, %v8660_v3  ;;  %v12225_v8 = vor.u32 %v9545_v7, %v8668_v6  ;;  %14462 = vst [vmem:[#allocation115_spill] sm:$0xff] %v12294_v61  ;;  %v12297_v62 = vadd.s32 128, %v12294_v61  ;;  %v12301_v0 = vand.u32 65535, %v12294_v61  ;;  %s14484_s13 = sld [smem:[#allocation95_spill]]  ;;  %s11364_s19 = smov 11  }
 0x29f   : > { %1984 = vrot.lane.b32.xlu1 %v12215_v2, %s11354_s23  ;;  %1996 = vrot.lane.b32.xlu0 %v12215_v2, %s11355_s2  ;;  %v12305_v3 = vadd.s32 256, %v12294_v61  ;;  %s11365_s16 = smov 118   ;;  %s11366_s18 = smov 107  }
 0x2a0   : > { %1994 = vrot.lane.b32.xlu2 %v12217_v5, %s11355_s2  ;;  %v2189_v63 = vand.u32 65535, %v12297_v62  ;;  %v2190_v1 = vshrl.u32 %v12297_v62, 16  ;;  %v2164_v6 = vmul.u32 58254, %v12301_v0  ;;  %s11367_s11 = smov 116  }
 0x2a1   : > { %v2218_v4 = vand.u32 65535, %v12305_v3 }
 0x2a2   : > { %v2192_v7 = vmul.u32 14564, %v2189_v63 }
 0x2a7   : > { %1986 = vrot.lane.b32.xlu1 %v12225_v8, %s11354_s23  ;;  %1998 = vrot.lane.b32.xlu0 %v12225_v8, %s11355_s2 }
 0x2a8   : > { %1972 = vrot.lane.b32.xlu2 %v12215_v2, %s11356_s7 }
 0x2af   : > { %1982 = vrot.lane.b32.xlu1 %v12217_v5, %s11354_s23  ;;  %1974 = vrot.lane.b32.xlu0 %v12225_v8, %s11356_s7 }
 0x2b0   : > { %1960 = vrot.lane.b32.xlu2 %v12215_v2, %s11357_s17 }
 0x2b7   : > { %2008 = vrot.lane.b32.xlu1 %v12215_v2, %s11358_s4  ;;  %1962 = vrot.lane.b32.xlu0 %v12225_v8, %s11357_s17 }
 0x2b8   : > { %2010 = vrot.lane.b32.xlu2 %v12225_v8, %s11358_s4 }
 0x2bf   : > { %1948 = vrot.lane.b32.xlu1 %v12215_v2, %s11359_s3  ;;  %1970 = vrot.lane.b32.xlu0 %v12217_v5, %s11356_s7 }
 0x2c0   : > { %1950 = vrot.lane.b32.xlu2 %v12225_v8, %s11359_s3 }
 0x2c7   : > { %2006 = vrot.lane.b32.xlu1 %v12217_v5, %s11358_s4  ;;  %1958 = vrot.lane.b32.xlu0 %v12217_v5, %s11357_s17 }
 0x2c8   : > { %1936 = vrot.lane.b32.xlu2 %v12215_v2, %s11360_s10 }
 0x2cf   : > { %1946 = vrot.lane.b32.xlu1 %v12217_v5, %s11359_s3  ;;  %1938 = vrot.lane.b32.xlu0 %v12225_v8, %s11360_s10 }
 0x2d0   : > { %1924 = vrot.lane.b32.xlu2 %v12215_v2, %s11361_s8 }
 0x2d7   : > { %1934 = vrot.lane.b32.xlu1 %v12217_v5, %s11360_s10  ;;  %1926 = vrot.lane.b32.xlu0 %v12225_v8, %s11361_s8 }
 0x2d8   : > { %1922 = vrot.lane.b32.xlu2 %v12217_v5, %s11361_s8 }
 0x2df   : > { %2122 = vperm.xlu1 %10097, %v1903_v41   ;;  %2117 = vperm.xlu0 %10096, %v1902_v43  }
 0x2e0   : > { %2133 = vperm.xlu2 %10098, %v1904_v44  }
 0x2e7   : > { %2138 = vperm.xlu1 %10097, %v1905_v50  }
 0x2fa   : > { %v1995_v9 = vpop.permute.xlu2 %1994 }
 0x302   : > { %v1973_v10 = vpop.permute.xlu2 %1972 }
 0x30a   : > { %v1961_v14 = vpop.permute.xlu2 %1960 }
 0x311   : > { %v1985_v11 = vpop.permute.xlu1 %1984  ;;  %v1997_v12 = vpop.permute.xlu0 %1996 }
 0x312   : > { %v2001_v13 = vsel %vm2000_vm0, %v1995_v9, %v1997_v12  ;;  %v2011_v23 = vpop.permute.xlu2 %2010 }
 0x313   : > { %2031 = vmatpush.bf16.msra.mxu0 %v2001_v13 }
 0x319   : > { %v1987_v15 = vpop.permute.xlu1 %1986  ;;  %v1999_v16 = vpop.permute.xlu0 %1998 }
 0x31a   : > { %v2002_v17 = vsel %vm2000_vm0, %v1997_v12, %v1999_v16  ;;  %v1990_v18 = vsel %vm1988_vm1, %v1985_v11, %v1987_v15  ;;  %v1951_v31 = vpop.permute.xlu2 %1950  ;;  %v2163_v12 = vmul.u32 14564, %v12301_v0 }
 0x31b   : > { %2059 = vmatpush.bf16.msra.mxu2 %v2002_v17  ;;  %v2221_v17 = vmul.u32 14564, %v2218_v4 }
 0x31f   : > { %2060 = vmatpush.bf16.msra.mxu2 %v1990_v18 }
 0x321   : > { %v1983_v19 = vpop.permute.xlu1 %1982  ;;  %v1975_v20 = vpop.permute.xlu0 %1974 }
 0x322   : > { %v1989_v21 = vsel %vm1988_vm1, %v1983_v19, %v1985_v11  ;;  %v1978_v22 = vsel %vm1976_vm2, %v1973_v10, %v1975_v20  ;;  %v1937_v36 = vpop.permute.xlu2 %1936  ;;  %v2222_v11 = vmul.u32 58254, %v2218_v4 }
 0x323   : > { %2032 = vmatpush.bf16.msra.mxu0 %v1989_v21  ;;  %2061 = vmatpush.bf16.msra.mxu2 %v1978_v22  ;;  %v2195_v22 = vmul.u32 58254, %v2190_v1 }
 0x324   : > { %v2225_v19 = vshll.u32 %v2222_v11, 16  ;;  %v2226_v43 = vshrl.u32 %v2222_v11, 16 }
 0x326   : > { %vm2229_vm12 = vc.u32 %v2221_v17, %v2225_v19 }
 0x329   : > { %v2009_v26 = vpop.permute.xlu1 %2008  ;;  %v1963_v27 = vpop.permute.xlu0 %1962 }
 0x32a   : > { %v1966_v28 = vsel %vm1964_vm3, %v1961_v14, %v1963_v27  ;;  %v2014_v29 = vsel %vm14386_vm4, %v2009_v26, %v2011_v23  ;;  %v1925_v45 = vpop.permute.xlu2 %1924 }
 0x32b   : > { %2062 = vmatpush.bf16.msra.mxu2 %v1966_v28  ;;  %2080 = vmatpush.bf16.msra.mxu3 %v2014_v29 }
 0x32e   : > { %8679 = vmatmul.msk.bf16.vlgmr.msra.gmra.mxu3 %vm14385_vm5, %v8677_v30 }
 0x32f   : > { %2108 = vmatpush.bf16.msrb.mxu3 %v2011_v23 }
 0x331   : > { %v1949_v32 = vpop.permute.xlu1 %1948  ;;  %v1971_v33 = vpop.permute.xlu0 %1970 }
 0x332   : > { %v1977_v34 = vsel %vm1976_vm2, %v1971_v33, %v1973_v10  ;;  %v1954_v35 = vsel %vm1952_vm6, %v1949_v32, %v1951_v31  ;;  %v1923_v55 = vpop.permute.xlu2 %1922  ;;  %v2219_v10 = vshrl.u32 %v12305_v3, 16 }
 0x333   : > { %2033 = vmatpush.bf16.msra.mxu0 %v1977_v34  ;;  %2063 = vmatpush.bf16.msra.mxu2 %v1954_v35  ;;  %v1929_v58 = vsel %vm1928_vm8, %v1923_v55, %v1925_v45 }
 0x334   : > { %v2223_v18 = vmul.u32 14564, %v2219_v10  ;;  %v2224_v29 = vmul.u32 58254, %v2219_v10 }
 0x336   : > { %v2227_v25 = vshll.u32 %v2223_v18, 16 }
 0x339   : > { %v2007_v37 = vpop.permute.xlu1 %2006  ;;  %v1959_v38 = vpop.permute.xlu0 %1958 }
 0x33a   : > { %v1965_v39 = vsel %vm1964_vm3, %v1959_v38, %v1961_v14  ;;  %v2013_v40 = vsel %vm14386_vm4, %v2007_v37, %v2009_v26  ;;  %v2167_v14 = vshll.u32 %v2164_v6, 16  ;;  %v2231_v26 = vadd.s32 %v2225_v19, %v2221_v17 }
 0x33b   : > { %2034 = vmatpush.bf16.msra.mxu0 %v1965_v39  ;;  %2052 = vmatpush.bf16.msra.mxu1 %v2013_v40  ;;  %v2168_v38 = vshrl.u32 %v2164_v6, 16 }
 0x33c   : > { %vm2171_vm10 = vc.u32 %v2163_v12, %v2167_v14  ;;  %v2173_v21 = vadd.s32 %v2167_v14, %v2163_v12  ;;  %vm2233_vm14 = vc.u32 %v2231_v26, %v2227_v25 }
 0x33d   : > { %v2234_v37 = vsel %vm2233_vm14, 1, %v11362_v42 }
 0x33e   : > { %8678 = vmatmul.msk.bf16.vlgmr.msra.gmra.mxu1 %vm14385_vm5, %v8677_v30  ;;  %8680 = vmatmul.msk.bf16.vlgmr.msrb.gmra.mxu3 %vm14385_vm5, %v8677_v30 }
 0x33f   : > { %2087 = vmatpush.bf16.msrb.mxu1 %v1999_v16 }
 0x341   : > { %v1947_v46 = vpop.permute.xlu1 %1946  ;;  %v1939_v47 = vpop.permute.xlu0 %1938 }
 0x342   : > { %v1953_v48 = vsel %vm1952_vm6, %v1947_v46, %v1949_v32  ;;  %v1942_v49 = vsel %vm1940_vm7, %v1937_v36, %v1939_v47 }
 0x343   : > { %2088 = vmatpush.bf16.msrb.mxu1 %v1987_v15  ;;  %2035 = vmatpush.bf16.msra.mxu0 %v1953_v48 }
 0x344   : > { %2064 = vmatpush.bf16.msra.mxu2 %v1942_v49  ;;  %v2228_v49 = vshrl.u32 %v2223_v18, 16 }
 0x347   : > { %2089 = vmatpush.bf16.msrb.mxu1 %v1975_v20 }
 0x349   : > { %v1935_v51 = vpop.permute.xlu1 %1934  ;;  %v1927_v52 = vpop.permute.xlu0 %1926 }
 0x34a   : > { %v1941_v53 = vsel %vm1940_vm7, %v1935_v51, %v1937_v36  ;;  %v1930_v54 = vsel %vm1928_vm8, %v1925_v45, %v1927_v52 }
 0x34b   : > { %2090 = vmatpush.bf16.msrb.mxu1 %v1963_v27  ;;  %2036 = vmatpush.bf16.msra.mxu0 %v1941_v53  ;;  %v2172_v27 = vsel %vm2171_vm10, 1, %v11362_v42 }
 0x34c   : > { %2065 = vmatpush.bf16.msra.mxu2 %v1930_v54 }
 0x34f   : > { %2091 = vmatpush.bf16.msrb.mxu1 %v1951_v31  ;;  %2037 = vmatpush.bf16.msra.mxu0 %v1929_v58  ;;  %v2230_v31 = vsel %vm2229_vm12, 1, %v11362_v42 }
 0x350   : > { %2066 = vmatpush.bf16.msra.mxu2 %v12215_v2  ;;  %v2193_v2 = vmul.u32 58254, %v2189_v63  ;;  %v2232_v36 = vadd.s32 %v2230_v31, %v2224_v29 }
 0x352   : > { %v2196_v9 = vshll.u32 %v2193_v2, 16  ;;  %v2197_v34 = vshrl.u32 %v2193_v2, 16  ;;  %v2236_v44 = vadd.s32 %v2234_v37, %v2232_v36 }
 0x353   : > { %2092 = vmatpush.bf16.msrb.mxu1 %v1939_v47  ;;  %2067 = vmatmul.bf16.vlgmr.msra.gmra.mxu2 %v8673_v59 }
 0x354   : > { %2038 = vmatpush.bf16.msra.mxu0 %v12217_v5  ;;  %v12309_v5 = vshrl.u32 %v12294_v61, 16  ;;  %vm2200_vm9 = vc.u32 %v2192_v7, %v2196_v9  ;;  %v2202_v16 = vadd.s32 %v2196_v9, %v2192_v7  ;;  %v2237_v50 = vadd.s32 %v2236_v44, %v2226_v43  ;;  %v2118_v7 = vpop.permute.xlu0 %2117 }
 0x355   : > { %v2201_v24 = vsel %vm2200_vm9, 1, %v11362_v42 }
 0x356   : > { %v2165_v13 = vmul.u32 14564, %v12309_v5  ;;  %v2166_v23 = vmul.u32 58254, %v12309_v5  ;;  %v2203_v28 = vadd.s32 %v2201_v24, %v2195_v22  ;;  %v2238_v54 = vadd.s32 %v2237_v50, %v2228_v49 }
 0x357   : > { %2093 = vmatpush.bf16.msrb.mxu1 %v1927_v52  ;;  %2039 = vmatmul.bf16.vlgmr.msra.gmra.mxu0 %v8673_v59 }
 0x358   : > { %v2169_v20 = vshll.u32 %v2165_v13, 16  ;;  %v2174_v32 = vadd.s32 %v2172_v27, %v2166_v23  ;;  %v2170_v46 = vshrl.u32 %v2165_v13, 16  ;;  %v2239_v58 = vshrl.u32 %v2238_v54, 4 }
 0x35a   : > { %vm2175_vm13 = vc.u32 %v2173_v21, %v2169_v20  ;;  %v2313_v20 = vld [vmem:[#allocation9 + $0x8] sm:$0xff] }
 0x35b   : > { %2094 = vmatpush.bf16.msrb.mxu1 %v12225_v8  ;;  %v2194_v8 = vmul.u32 14564, %v2190_v1  ;;  %v2176_v33 = vsel %vm2175_vm13, 1, %v11362_v42  ;;  %v2240_v1 = vmul.u32 18, %v2239_v58 }
 0x35c   : > { %v2178_v39 = vadd.s32 %v2176_v33, %v2174_v32 }
 0x35d   : > { %v2198_v15 = vshll.u32 %v2194_v8, 16  ;;  %v2199_v40 = vshrl.u32 %v2194_v8, 16  ;;  %v2123_v8 = vpop.permute.xlu1 %2122  ;;  %v2241_v10 = vsub.s32 %v12305_v3, %v2240_v1 }
 0x35e   : > { %2095 = vmatmul.bf16.vlgmr.msrb.gmra.mxu1 %v8673_v59  ;;  %v2179_v47 = vadd.s32 %v2178_v39, %v2168_v38 }
 0x35f   : > { %vm2204_vm11 = vc.u32 %v2202_v16, %v2198_v15  ;;  %v2134_v16 = vpop.permute.xlu2 %2133  ;;  %vm2246_vm13 = vcmp.ne.s32.totalorder %v2241_v10, 0  ;;  %vm2249_vm14 = vcmp.lt.s32.totalorder %v2241_v10, 0  ;;  %v2255_v25 = vadd.s32 18, %v2241_v10 }
 0x360   : > { %v2205_v30 = vsel %vm2204_vm11, 1, %v11362_v42  ;;  %v2180_v52 = vadd.s32 %v2179_v47, %v2170_v46 }
 0x361   : > { %v2207_v35 = vadd.s32 %v2205_v30, %v2203_v28 }
 0x362   : > { %v2181_v55 = vshrl.u32 %v2180_v52, 4 }
 0x363   : > { %v2208_v41 = vadd.s32 %v2207_v35, %v2197_v34 }
 0x364   : > { %v2182_v59 = vmul.u32 18, %v2181_v55 }
 0x365   : > { %v2209_v48 = vadd.s32 %v2208_v41, %v2199_v40  ;;  %v2139_v36 = vpop.permute.xlu1 %2138 }
 0x366   : > { %v2183_v4 = vsub.s32 %v12294_v61, %v2182_v59 }
 0x367   : > { %v2210_v53 = vshrl.u32 %v2209_v48, 4 }
 0x368   : > { %vm2244_vm10 = vcmp.ne.s32.totalorder %v2183_v4, 0  ;;  %vm2247_vm11 = vcmp.lt.s32.totalorder %v2183_v4, 0  ;;  %v2253_v18 = vadd.s32 18, %v2183_v4 }
 0x369   : > { %v2211_v57 = vmul.u32 18, %v2210_v53  ;;  %vm12329_vm5 = vmand %vm2247_vm11, %vm2244_vm10  ;;  %vm2297_vm11 = vcmask 154624  }
 0x36a   : > { %v2256_v28 = vsel %vm12329_vm5, %v2253_v18, %v2183_v4 }
 0x36b   : > { %v2212_v63 = vsub.s32 %v12297_v62, %v2211_v57  ;;  %vm12347_vm10 = vcmp.lt.s32.totalorder %v2256_v28, 16 }
 0x36d   : > { %vm2245_vm15 = vcmp.ne.s32.totalorder %v2212_v63, 0  ;;  %vm2248_vm9 = vcmp.lt.s32.totalorder %v2212_v63, 0  ;;  %v2254_v14 = vadd.s32 18, %v2212_v63 }
 0x36e   : > { %vm12325_vm12 = vmand %vm2248_vm9, %vm2245_vm15 }
 0x36f   : > { %v2257_v21 = vsel %vm12325_vm12, %v2254_v14, %v2212_v63  ;;  %vm12335_vm15 = vmand %vm2249_vm14, %vm2246_vm13  ;;  %vm2306_vm12 = vcmask 400384   ;;  %vm14475_vm13 = vcmask 130048  }
 0x370   : > { %vm12341_vm9 = vcmp.lt.s32.totalorder %v2257_v21, 16  ;;  %v2258_v37 = vsel %vm12335_vm15, %v2255_v25, %v2241_v10  ;;  %v2315_v21 = vld [vmem:[#allocation10 + $0x8] sm:$0xff]  ;;  %vm12448_vm14 = vmneg %vm2297_vm11 }
 0x371   : > { %vm12353_vm5 = vcmp.lt.s32.totalorder %v2258_v37, 16  ;;  %vm14478_vm15 = vmmov %vm14475_vm13 }
 0x3b1   : > { %v2082_v45 = vpop.f32.mrf.mxu3 }
 0x3b9   : > { %v2084_v56 = vpop.f32.mrf.mxu3 }
 0x3bb   : > { %v2054_v51 = vpop.f32.mrf.mxu1 }
 0x3c1   : > { %v2110_v11 = vpop.f32.mrf.mxu3 }
 0x3c3   : > { %v2056_v60 = vpop.f32.mrf.mxu1 }
 0x3c9   : > { %v2112_v40 = vpop.f32.mrf.mxu3 }
 0x3d4   : > { %v2040_v2 = vpop.f32.mrf.mxu0 }
 0x3d5   : > { %v2055_v6 = vadd.f32 %v2054_v51, %v2040_v2 }
 0x3d6   : > { %v2068_v9 = vpop.f32.mrf.mxu2 }
 0x3d7   : > { %v2083_v12 = vadd.f32 %v2082_v45, %v2068_v9  ;;  %v2125_v13 = vmul.f32 %v2118_v7, %v2055_v6 }
 0x3d9   : > { %v2126_v15 = vmul.f32 %v2118_v7, %v2083_v12  ;;  %v2141_v22 = vadd.f32 %v2134_v16, %v2125_v13 }
 0x3db   : > { %v2096_v17 = vpop.f32.mrf.mxu1  ;;  %v2142_v3 = vadd.f32 %v2134_v16, %v2126_v15  ;;  %v2147_v35 = vmax.f32 %v2141_v22, 0.0 }
 0x3dc   : > { %v2111_v19 = vadd.f32 %v2110_v11, %v2096_v17  ;;  %v2042_v24 = vpop.f32.mrf.mxu0 }
 0x3dd   : > { %v2057_v26 = vadd.f32 %v2056_v60, %v2042_v24  ;;  %v2148_v29 = vmax.f32 %v2142_v3, 0.0  ;;  %v2268_v50 = vsel %vm12347_vm10, %v2147_v35, 0.0  ;;  %v2314_v3 = vld [vmem:[#allocation10] sm:$0xff] }
 0x3de   : > { %v2127_v23 = vmul.f32 %v2118_v7, %v2111_v19  ;;  %v2070_v31 = vpop.f32.mrf.mxu2  ;;  %v2312_v19 = vld [vmem:[#allocation9] sm:$0xff] }
 0x3df   : > { %v2128_v33 = vmul.f32 %v2123_v8, %v2057_v26  ;;  %v2085_v34 = vadd.f32 %v2084_v56, %v2070_v31  ;;  %v2269_v44 = vsel %vm12341_vm9, %v2148_v29, 0.0 }
 0x3e0   : > { %v2143_v30 = vadd.f32 %v2134_v16, %v2127_v23  ;;  %v2274_v53 = vpack.c.bf16 %v2269_v44, %v2268_v50 }
 0x3e1   : > { %v2144_v39 = vadd.f32 %v2139_v36, %v2128_v33  ;;  %v2129_v41 = vmul.f32 %v2123_v8, %v2085_v34 }
 0x3e2   : > { %v2149_v45 = vmax.f32 %v2143_v30, 0.0  ;;  %v2283_v60 = vunpack.c.h.b16 %v2274_v53  ;;  %v2282_v2 = vunpack.c.l.b16 %v2274_v53 }
 0x3e3   : > { %v2098_v43 = vpop.f32.mrf.mxu1  ;;  %v2150_v47 = vmax.f32 %v2144_v39, 0.0  ;;  %v2145_v48 = vadd.f32 %v2139_v36, %v2129_v41 }
 0x3e4   : > { %v2113_v46 = vadd.f32 %v2112_v40, %v2098_v43  ;;  %v2270_v55 = vsel %vm12353_vm5, %v2149_v45, 0.0 }
 0x3e5   : > { %v2151_v52 = vmax.f32 %v2145_v48, 0.0  ;;  %v2271_v56 = vsel %vm12347_vm10, %v2150_v47, 0.0  ;;  %v2275_v63 = vpack.c.bf16 %v2270_v55, %v2270_v55 }
 0x3e6   : > { %v2130_v51 = vmul.f32 %v2123_v8, %v2113_v46 }
 0x3e7   : > { %v2272_v57 = vsel %vm12341_vm9, %v2151_v52, 0.0  ;;  %v2284_v10 = vunpack.c.l.b16 %v2275_v63 }
 0x3e8   : > { %v2146_v54 = vadd.f32 %v2139_v36, %v2130_v51  ;;  %v2276_v59 = vpack.c.bf16 %v2272_v57, %v2271_v56  ;;  %v9548_v57 = vld [vmem:[#allocation7 + $0x4] sm:$0xf] }
 0x3ea   : > { %v2152_v58 = vmax.f32 %v2146_v54, 0.0  ;;  %v2286_v1 = vunpack.c.h.b16 %v2276_v59  ;;  %v2285_v4 = vunpack.c.l.b16 %v2276_v59 }
 0x3ec   : > { %v2273_v6 = vsel %vm12353_vm5, %v2152_v58, 0.0  ;;  %v2289_v8 = vpack.c.b16 %v2286_v1, %v2283_v60  ;;  %v2288_v9 = vpack.c.b16 %v2285_v4, %v2282_v2  ;;  %v8685_v58 = vld [vmem:[#allocation7 + $0x8] sm:$0xf0] }
 0x3ed   : > { %v2277_v7 = vpack.c.bf16 %v2273_v6, %v2273_v6  ;;  %v8688_v63 = vor.u32 %v9548_v57, %v8685_v58  ;;  %v8683_v6 = vld [vmem:[#allocation7] sm:$0xf] }
 0x3ee   : > { %2293 = vrot.lane.b32.xlu2 %v2289_v8, %s11363_s5  ;;  %2291 = vrot.lane.b32.xlu1 %v2288_v9, %s11363_s5 }
 0x3ef   : > { %v2287_v11 = vunpack.c.l.b16 %v2277_v7  ;;  %v9549_v7 = vld [vmem:[#allocation7 + $0x4] sm:$0xf0] }
 0x3f1   : > { %v2290_v12 = vpack.c.b16 %v2287_v11, %v2284_v10  ;;  %v8684_v11 = vor.u32 %v9549_v7, %v8683_v6 }
 0x3f3   : > { %2295 = vrot.lane.b32.xlu0 %v2290_v12, %s11363_s5 }
 0x448   : > { %v2294_v13 = vpop.permute.xlu2 %2293 }
 0x460   : > { %v12370_v14 = vpop.permute.xlu1 %2291 }
 0x461   : > { %v12374_v15 = vsel %vm2297_vm11, %v12370_v14, %v2294_v13  ;;  %v12378_v62 = vsel %vm2297_vm11, 0, %v12370_v14 }
 0x462   : > { %2390 = vrot.lane.b32.xlu2 %v12378_v62, %s11355_s2  ;;  %2392 = vrot.lane.b32.xlu0 %v12374_v15, %s11355_s2 }
 0x465   : > { %v2296_v16 = vpop.permute.xlu0 %2295 }
 0x466   : > { %v2299_v17 = vsel %vm2297_vm11, %v2294_v13, %v2296_v16 }
 0x467   : > { %v12386_v18 = vsel %vm2306_vm12, %v2299_v17, 0 }
 0x468   : > { %2394 = vrot.lane.b32.xlu1 %v12386_v18, %s11355_s2 }
 0x46a   : > { %2379 = vrot.lane.b32.xlu2 %v12378_v62, %s11354_s23  ;;  %2381 = vrot.lane.b32.xlu0 %v12374_v15, %s11354_s23 }
 0x470   : > { %2383 = vrot.lane.b32.xlu1 %v12386_v18, %s11354_s23 }
 0x472   : > { %2368 = vrot.lane.b32.xlu2 %v12378_v62, %s11356_s7  ;;  %2370 = vrot.lane.b32.xlu0 %v12374_v15, %s11356_s7 }
 0x478   : > { %2372 = vrot.lane.b32.xlu1 %v12386_v18, %s11356_s7 }
 0x47a   : > { %2357 = vrot.lane.b32.xlu2 %v12378_v62, %s11357_s17  ;;  %2359 = vrot.lane.b32.xlu0 %v12374_v15, %s11357_s17 }
 0x480   : > { %2361 = vrot.lane.b32.xlu1 %v12386_v18, %s11357_s17 }
 0x482   : > { %2346 = vrot.lane.b32.xlu2 %v12378_v62, %s11359_s3  ;;  %2348 = vrot.lane.b32.xlu0 %v12374_v15, %s11359_s3 }
 0x488   : > { %2350 = vrot.lane.b32.xlu1 %v12386_v18, %s11359_s3 }
 0x48a   : > { %2335 = vrot.lane.b32.xlu2 %v12378_v62, %s11360_s10  ;;  %2337 = vrot.lane.b32.xlu0 %v12374_v15, %s11360_s10 }
 0x490   : > { %2339 = vrot.lane.b32.xlu1 %v12386_v18, %s11360_s10 }
 0x492   : > { %2403 = vrot.lane.b32.xlu2 %v12374_v15, %s11358_s4  ;;  %2405 = vrot.lane.b32.xlu0 %v12386_v18, %s11358_s4 }
 0x498   : > { %2324 = vrot.lane.b32.xlu1 %v12378_v62, %s11361_s8 }
 0x49a   : > { %2326 = vrot.lane.b32.xlu2 %v12374_v15, %s11361_s8  ;;  %2328 = vrot.lane.b32.xlu0 %v12386_v18, %s11361_s8 }
 0x4a0   : > { %2401 = vrot.lane.b32.xlu1 %v12378_v62, %s11358_s4 }
 0x4a2   : > { %2510 = vperm.xlu2 %10098, %v2312_v19   ;;  %2515 = vperm.xlu0 %10096, %v2313_v20  }
 0x4a8   : > { %2526 = vperm.xlu1 %10097, %v2314_v3  }
 0x4aa   : > { %2531 = vperm.xlu2 %10098, %v2315_v21  }
 0x4bc   : > { %v2391_v22 = vpop.permute.xlu2 %2390 }
 0x4c4   : > { %v2380_v23 = vpop.permute.xlu2 %2379 }
 0x4cc   : > { %v2369_v26 = vpop.permute.xlu2 %2368 }
 0x4d4   : > { %v2393_v24 = vpop.permute.xlu0 %2392  ;;  %v2358_v31 = vpop.permute.xlu2 %2357 }
 0x4d5   : > { %v2396_v25 = vsel %vm2000_vm0, %v2391_v22, %v2393_v24 }
 0x4d6   : > { %2424 = vmatpush.bf16.msra.mxu3 %v2396_v25 }
 0x4da   : > { %v2395_v27 = vpop.permute.xlu1 %2394 }
 0x4db   : > { %v2397_v28 = vsel %vm2000_vm0, %v2393_v24, %v2395_v27 }
 0x4dc   : > { %2452 = vmatpush.bf16.msrb.mxu2 %v2397_v28  ;;  %v2382_v29 = vpop.permute.xlu0 %2381  ;;  %v2347_v40 = vpop.permute.xlu2 %2346 }
 0x4dd   : > { %v2385_v30 = vsel %vm1988_vm1, %v2380_v23, %v2382_v29 }
 0x4de   : > { %2425 = vmatpush.bf16.msra.mxu3 %v2385_v30 }
 0x4e2   : > { %v2384_v33 = vpop.permute.xlu1 %2383 }
 0x4e3   : > { %v2386_v34 = vsel %vm1988_vm1, %v2382_v29, %v2384_v33 }
 0x4e4   : > { %2453 = vmatpush.bf16.msrb.mxu2 %v2386_v34  ;;  %v2371_v35 = vpop.permute.xlu0 %2370  ;;  %v2336_v46 = vpop.permute.xlu2 %2335 }
 0x4e5   : > { %v2374_v36 = vsel %vm1976_vm2, %v2369_v26, %v2371_v35 }
 0x4e6   : > { %2426 = vmatpush.bf16.msra.mxu3 %v2374_v36 }
 0x4ea   : > { %v2373_v37 = vpop.permute.xlu1 %2372 }
 0x4eb   : > { %v2375_v39 = vsel %vm1976_vm2, %v2371_v35, %v2373_v37 }
 0x4ec   : > { %2454 = vmatpush.bf16.msrb.mxu2 %v2375_v39  ;;  %v2360_v41 = vpop.permute.xlu0 %2359  ;;  %v2404_v54 = vpop.permute.xlu2 %2403 }
 0x4ed   : > { %v2363_v43 = vsel %vm1964_vm3, %v2358_v31, %v2360_v41 }
 0x4ee   : > { %2427 = vmatpush.bf16.msra.mxu3 %v2363_v43 }
 0x4f2   : > { %v2362_v44 = vpop.permute.xlu1 %2361 }
 0x4f3   : > { %v2364_v45 = vsel %vm1964_vm3, %v2360_v41, %v2362_v44 }
 0x4f4   : > { %2455 = vmatpush.bf16.msrb.mxu2 %v2364_v45  ;;  %v2349_v47 = vpop.permute.xlu0 %2348  ;;  %v2327_v1 = vpop.permute.xlu2 %2326 }
 0x4f5   : > { %v2352_v48 = vsel %vm1952_vm6, %v2347_v40, %v2349_v47 }
 0x4f6   : > { %2428 = vmatpush.bf16.msra.mxu3 %v2352_v48 }
 0x4fa   : > { %v2351_v50 = vpop.permute.xlu1 %2350 }
 0x4fb   : > { %v2353_v51 = vsel %vm1952_vm6, %v2349_v47, %v2351_v50 }
 0x4fc   : > { %2456 = vmatpush.bf16.msrb.mxu2 %v2353_v51  ;;  %v2338_v52 = vpop.permute.xlu0 %2337  ;;  %v2511_v19 = vpop.permute.xlu2 %2510 }
 0x4fd   : > { %v2341_v53 = vsel %vm1940_vm7, %v2336_v46, %v2338_v52 }
 0x4fe   : > { %2429 = vmatpush.bf16.msra.mxu3 %v2341_v53 }
 0x502   : > { %v2340_v55 = vpop.permute.xlu1 %2339 }
 0x503   : > { %v2342_v56 = vsel %vm1940_vm7, %v2338_v52, %v2340_v55 }
 0x504   : > { %2457 = vmatpush.bf16.msrb.mxu2 %v2342_v56  ;;  %v2406_v59 = vpop.permute.xlu0 %2405  ;;  %v2532_v34 = vpop.permute.xlu2 %2531 }
 0x505   : > { %v2408_v60 = vsel %vm14386_vm4, %v2404_v54, %v2406_v59 }
 0x506   : > { %2473 = vmatpush.bf16.msra.mxu1 %v2408_v60 }
 0x509   : > { %8692 = vmatmul.msk.bf16.vlgmr.msra.gmra.mxu1 %vm14475_vm13, %v8688_v63 }
 0x50a   : > { %2480 = vmatpush.bf16.msrb.mxu1 %v2395_v27  ;;  %v2325_v2 = vpop.permute.xlu1 %2324 }
 0x50b   : > { %v2330_v4 = vsel %vm1928_vm8, %v2325_v2, %v2327_v1 }
 0x50c   : > { %2430 = vmatpush.bf16.msra.mxu3 %v2330_v4  ;;  %v2329_v9 = vpop.permute.xlu0 %2328 }
 0x50d   : > { %v2331_v10 = vsel %vm1928_vm8, %v2327_v1, %v2329_v9 }
 0x50e   : > { %2481 = vmatpush.bf16.msrb.mxu1 %v2384_v33  ;;  %2458 = vmatpush.bf16.msrb.mxu2 %v2331_v10 }
 0x510   : > { %8690 = vmatpush.bf16.msk.msra.mxu3 %vm12448_vm14, %v12370_v14 }
 0x512   : > { %2482 = vmatpush.bf16.msrb.mxu1 %v2373_v37  ;;  %v2402_v12 = vpop.permute.xlu1 %2401  ;;  %2459 = vmatpush.bf16.msrb.mxu2 %v12374_v15 }
 0x513   : > { %2432 = vmatmul.bf16.vlgmr.msra.gmra.mxu3 %v8684_v11  ;;  %v2407_v13 = vsel %vm14386_vm4, %v2402_v12, %v2404_v54 }
 0x514   : > { %2445 = vmatpush.bf16.msrb.mxu0 %v2407_v13  ;;  %v2516_v30 = vpop.permute.xlu0 %2515 }
 0x515   : > { %2460 = vmatmul.bf16.vlgmr.msrb.gmra.mxu2 %v8684_v11 }
 0x516   : > { %2483 = vmatpush.bf16.msrb.mxu1 %v2362_v44 }
 0x517   : > { %8691 = vmatmul.msk.bf16.vlgmr.msrb.gmra.mxu0 %vm14478_vm15, %v8688_v63  ;;  %vm14479_vm15 = vmmov %vm14475_vm13 }
 0x51a   : > { %2484 = vmatpush.bf16.msrb.mxu1 %v2351_v50  ;;  %v2527_v22 = vpop.permute.xlu1 %2526 }
 0x51e   : > { %2485 = vmatpush.bf16.msrb.mxu1 %v2340_v55 }
 0x522   : > { %2486 = vmatpush.bf16.msrb.mxu1 %v2329_v9 }
 0x526   : > { %2487 = vmatpush.bf16.msrb.mxu1 %v12386_v18 }
 0x529   : > { %2488 = vmatmul.bf16.vlgmr.msrb.gmra.mxu1 %v8684_v11 }
 0x52a   : > { %2501 = vmatpush.bf16.msra.mxu1 %v2406_v59 }
 0x539   : > { %8693 = vmatmul.msk.bf16.vlgmr.msra.gmra.mxu1 %vm14475_vm13, %v8688_v63 }
 0x586   : > { %v2475_v14 = vpop.f32.mrf.mxu1 }
 0x58e   : > { %v2477_v25 = vpop.f32.mrf.mxu1 }
 0x594   : > { %v2447_v16 = vpop.f32.mrf.mxu0 }
 0x596   : > { %v2433_v17 = vpop.f32.mrf.mxu3 }
 0x597   : > { %v2448_v20 = vadd.f32 %v2447_v16, %v2433_v17 }
 0x598   : > { %v2461_v3 = vpop.f32.mrf.mxu2 }
 0x599   : > { %v2476_v21 = vadd.f32 %v2475_v14, %v2461_v3  ;;  %v2518_v23 = vmul.f32 %v2511_v19, %v2448_v20 }
 0x59b   : > { %v2519_v24 = vmul.f32 %v2511_v19, %v2476_v21  ;;  %v2534_v31 = vadd.f32 %v2527_v22, %v2518_v23 }
 0x59c   : > { %v2449_v26 = vpop.f32.mrf.mxu0 }
 0x59d   : > { %v2535_v28 = vadd.f32 %v2527_v22, %v2519_v24  ;;  %v2540_v40 = vmax.f32 %v2534_v31, 0.0  ;;  %v2772_v31 = vunpack.c.l.bf16 %v12386_v18 }
 0x59e   : > { %v2435_v27 = vpop.f32.mrf.mxu3 }
 0x59f   : > { %v2450_v29 = vadd.f32 %v2449_v26, %v2435_v27  ;;  %v2541_v36 = vmax.f32 %v2535_v28, 0.0  ;;  %v2546_v47 = vsel %vm12347_vm10, %v2540_v40, 0.0  ;;  %v2320_v28 = vld [vmem:[#allocation15] sm:$0xff]  ;;  %v2775_v40 = vunpack.c.h.bf16 %v12386_v18 }
 0x5a0   : > { %v2463_v35 = vpop.f32.mrf.mxu2 }
 0x5a1   : > { %v2521_v33 = vmul.f32 %v2516_v30, %v2450_v29  ;;  %v2478_v39 = vadd.f32 %v2477_v25, %v2463_v35  ;;  %v2547_v44 = vsel %vm12341_vm9, %v2541_v36, 0.0  ;;  %v2318_v29 = vld [vmem:[#allocation13] sm:$0xff]  ;;  %v2773_v35 = vunpack.c.h.bf16 %v12378_v62  ;;  %v2321_v36 = vld [vmem:[#allocation15 + $0x8] sm:$0xff] }
 0x5a2   : > { %v2552_v50 = vpack.c.bf16 %v2547_v44, %v2546_v47 }
 0x5a3   : > { %v2537_v37 = vadd.f32 %v2532_v34, %v2521_v33  ;;  %v2522_v41 = vmul.f32 %v2516_v30, %v2478_v39  ;;  %v2770_v33 = vunpack.c.l.bf16 %v12378_v62 }
 0x5a4   : > { %v2561_v55 = vunpack.c.h.b16 %v2552_v50  ;;  %v2560_v57 = vunpack.c.l.b16 %v2552_v50 }
 0x5a5   : > { %v2543_v45 = vmax.f32 %v2537_v37, 0.0  ;;  %v2538_v46 = vadd.f32 %v2532_v34, %v2522_v41  ;;  %v10104_v37 = vpack.i.bf16 %v2773_v35, %v2772_v31  ;;  %v2774_v41 = vunpack.c.h.bf16 %v12374_v15 }
 0x5a6   : > { %v2489_v43 = vpop.f32.mrf.mxu1 }
 0x5a7   : > { %v2544_v48 = vmax.f32 %v2538_v46, 0.0  ;;  %v2549_v51 = vsel %vm12347_vm10, %v2543_v45, 0.0 }
 0x5a9   : > { %v2550_v52 = vsel %vm12341_vm9, %v2544_v48, 0.0 }
 0x5aa   : > { %v2554_v53 = vpack.c.bf16 %v2550_v52, %v2549_v51 }
 0x5ac   : > { %v2564_v56 = vunpack.c.h.b16 %v2554_v53  ;;  %v2563_v58 = vunpack.c.l.b16 %v2554_v53 }
 0x5ae   : > { %v2491_v54 = vpop.f32.mrf.mxu1  ;;  %v2567_v59 = vpack.c.b16 %v2564_v56, %v2561_v55  ;;  %v2566_v60 = vpack.c.b16 %v2563_v58, %v2560_v57 }
 0x5b0   : > { %2571 = vrot.lane.b32.xlu1 %v2567_v59, %s11363_s5  ;;  %2569 = vrot.lane.b32.xlu0 %v2566_v60, %s11363_s5 }
 0x5b6   : > { %v2503_v63 = vpop.f32.mrf.mxu1 }
 0x5b7   : > { %v2504_v1 = vadd.f32 %v2503_v63, %v2489_v43  ;;  %v10109_v43 = vpack.i.bf16 %v2775_v40, %v2774_v41 }
 0x5b9   : > { %v2520_v2 = vmul.f32 %v2511_v19, %v2504_v1 }
 0x5bb   : > { %v2536_v4 = vadd.f32 %v2527_v22, %v2520_v2 }
 0x5bd   : > { %v2542_v7 = vmax.f32 %v2536_v4, 0.0 }
 0x5be   : > { %v2505_v6 = vpop.f32.mrf.mxu1 }
 0x5bf   : > { %v2506_v9 = vadd.f32 %v2505_v6, %v2491_v54  ;;  %v2548_v12 = vsel %vm12353_vm5, %v2542_v7, 0.0  ;;  %v8696_v6 = vld [vmem:[#allocation12] sm:$0xf]  ;;  %v9551_v7 = vld [vmem:[#allocation12 + $0x4] sm:$0xf0] }
 0x5c0   : > { %v2553_v14 = vpack.c.bf16 %v2548_v12, %v2548_v12 }
 0x5c1   : > { %v2523_v10 = vmul.f32 %v2516_v30, %v2506_v9  ;;  %v2319_v30 = vld [vmem:[#allocation13 + $0x8] sm:$0xff] }
 0x5c2   : > { %v2562_v20 = vunpack.c.l.b16 %v2553_v14 }
 0x5c3   : > { %v2539_v11 = vadd.f32 %v2532_v34, %v2523_v10  ;;  %v2771_v34 = vunpack.c.l.bf16 %v12374_v15  ;;  %v8697_v10 = vor.u32 %v9551_v7, %v8696_v6 }
 0x5c5   : > { %v2545_v13 = vmax.f32 %v2539_v11, 0.0  ;;  %v10099_v39 = vpack.i.bf16 %v2771_v34, %v2770_v33 }
 0x5c7   : > { %v2551_v16 = vsel %vm12353_vm5, %v2545_v13, 0.0 }
 0x5c8   : > { %v2555_v17 = vpack.c.bf16 %v2551_v16, %v2551_v16 }
 0x5ca   : > { %v2565_v3 = vunpack.c.l.b16 %v2555_v17 }
 0x5cc   : > { %v2568_v21 = vpack.c.b16 %v2565_v3, %v2562_v20 }
 0x5ce   : > { %2573 = vrot.lane.b32.xlu2 %v2568_v21, %s11363_s5 }
 0x622   : > { %v2572_v19 = vpop.permute.xlu1 %2571  ;;  %v12476_v22 = vpop.permute.xlu0 %2569 }
 0x623   : > { %v12480_v23 = vsel %vm2297_vm11, %v12476_v22, %v2572_v19  ;;  %v2579_v24 = vsel %vm2297_vm11, 0, %v12476_v22 }
 0x624   : > { %2641 = vrot.lane.b32.xlu2 %v2579_v24, %s11354_s23  ;;  %2652 = vrot.lane.b32.xlu0 %v2579_v24, %s11355_s2 }
 0x625   : > { %2654 = vrot.lane.b32.xlu1 %v12480_v23, %s11355_s2 }
 0x628   : > { %v2574_v25 = vpop.permute.xlu2 %2573 }
 0x629   : > { %v2576_v26 = vsel %vm2297_vm11, %v2572_v19, %v2574_v25  ;;  %v9550_v19 = vld [vmem:[#allocation12 + $0x4] sm:$0xf] }
 0x62a   : > { %v12504_v27 = vsel %vm2306_vm12, %v2576_v26, 0 }
 0x62c   : > { %2632 = vrot.lane.b32.xlu2 %v12480_v23, %s11356_s7  ;;  %2643 = vrot.lane.b32.xlu0 %v12480_v23, %s11354_s23 }
 0x62d   : > { %2630 = vrot.lane.b32.xlu1 %v2579_v24, %s11356_s7 }
 0x634   : > { %2608 = vrot.lane.b32.xlu2 %v2579_v24, %s11359_s3  ;;  %2619 = vrot.lane.b32.xlu0 %v2579_v24, %s11357_s17 }
 0x635   : > { %2621 = vrot.lane.b32.xlu1 %v12480_v23, %s11357_s17 }
 0x63c   : > { %2599 = vrot.lane.b32.xlu2 %v12480_v23, %s11360_s10  ;;  %2610 = vrot.lane.b32.xlu0 %v12480_v23, %s11359_s3 }
 0x63d   : > { %2597 = vrot.lane.b32.xlu1 %v2579_v24, %s11360_s10 }
 0x644   : > { %2588 = vrot.lane.b32.xlu2 %v12480_v23, %s11361_s8  ;;  %2656 = vrot.lane.b32.xlu0 %v12504_v27, %s11355_s2 }
 0x645   : > { %2586 = vrot.lane.b32.xlu1 %v2579_v24, %s11361_s8 }
 0x64c   : > { %2623 = vrot.lane.b32.xlu2 %v12504_v27, %s11357_s17  ;;  %2645 = vrot.lane.b32.xlu0 %v12504_v27, %s11354_s23 }
 0x64d   : > { %2634 = vrot.lane.b32.xlu1 %v12504_v27, %s11356_s7 }
 0x654   : > { %2663 = vrot.lane.b32.xlu2 %v2579_v24, %s11358_s4  ;;  %2612 = vrot.lane.b32.xlu0 %v12504_v27, %s11359_s3 }
 0x655   : > { %2601 = vrot.lane.b32.xlu1 %v12504_v27, %s11360_s10 }
 0x65c   : > { %2667 = vrot.lane.b32.xlu2 %v12504_v27, %s11358_s4  ;;  %2665 = vrot.lane.b32.xlu0 %v12480_v23, %s11358_s4 }
 0x65d   : > { %2590 = vrot.lane.b32.xlu1 %v12504_v27, %s11361_s8 }
 0x664   : > { %2794 = vperm.xlu2 %10098, %v2320_v28   ;;  %2778 = vperm.xlu0 %10096, %v2318_v29  }
 0x665   : > { %2783 = vperm.xlu1 %10097, %v2319_v30  }
 0x66c   : > { %10105 = vrot.lane.b32.xlu2 %v10104_v37, %s11357_s17  ;;  %2799 = vperm.xlu0 %10096, %v2321_v36  }
 0x66d   : > { %10100 = vrot.lane.b32.xlu1 %v10099_v39, %s11357_s17 }
 0x674   : > { %10110 = vrot.lane.b32.xlu0 %v10109_v43, %s11357_s17 }
 0x67e   : > { %v2642_v44 = vpop.permute.xlu2 %2641 }
 0x686   : > { %v2633_v45 = vpop.permute.xlu2 %2632 }
 0x68e   : > { %v2609_v48 = vpop.permute.xlu2 %2608 }
 0x696   : > { %v2653_v46 = vpop.permute.xlu0 %2652  ;;  %v2600_v15 = vpop.permute.xlu2 %2599 }
 0x697   : > { %v2655_v47 = vpop.permute.xlu1 %2654 }
 0x698   : > { %v2658_v62 = vsel %vm2000_vm0, %v2653_v46, %v2655_v47 }
 0x699   : > { %2686 = vmatpush.bf16.msrb.mxu3 %v2658_v62 }
 0x69e   : > { %v2644_v50 = vpop.permute.xlu0 %2643  ;;  %v2589_v59 = vpop.permute.xlu2 %2588 }
 0x69f   : > { %v2631_v51 = vpop.permute.xlu1 %2630  ;;  %v2647_v52 = vsel %vm1988_vm1, %v2642_v44, %v2644_v50 }
 0x6a0   : > { %2687 = vmatpush.bf16.msrb.mxu3 %v2647_v52  ;;  %v2636_v18 = vsel %vm1976_vm2, %v2631_v51, %v2633_v45 }
 0x6a4   : > { %2688 = vmatpush.bf16.msrb.mxu3 %v2636_v18 }
 0x6a6   : > { %v2620_v53 = vpop.permute.xlu0 %2619  ;;  %v2624_v9 = vpop.permute.xlu2 %2623 }
 0x6a7   : > { %v2622_v54 = vpop.permute.xlu1 %2621 }
 0x6a8   : > { %v2625_v55 = vsel %vm1964_vm3, %v2620_v53, %v2622_v54  ;;  %v2626_v3 = vsel %vm1964_vm3, %v2622_v54, %v2624_v9 }
 0x6a9   : > { %2689 = vmatpush.bf16.msrb.mxu3 %v2625_v55 }
 0x6ae   : > { %v2611_v56 = vpop.permute.xlu0 %2610  ;;  %v2664_v16 = vpop.permute.xlu2 %2663 }
 0x6af   : > { %v2598_v57 = vpop.permute.xlu1 %2597  ;;  %v2614_v58 = vsel %vm1952_vm6, %v2609_v48, %v2611_v56 }
 0x6b0   : > { %2690 = vmatpush.bf16.msrb.mxu3 %v2614_v58  ;;  %v2603_v60 = vsel %vm1940_vm7, %v2598_v57, %v2600_v15 }
 0x6b4   : > { %2691 = vmatpush.bf16.msrb.mxu3 %v2603_v60 }
 0x6b6   : > { %v2657_v63 = vpop.permute.xlu0 %2656  ;;  %v2668_v24 = vpop.permute.xlu2 %2667 }
 0x6b7   : > { %v2587_v1 = vpop.permute.xlu1 %2586  ;;  %2742 = vmatpush.bf16.msra.mxu2 %v2657_v63  ;;  %v2659_v2 = vsel %vm2000_vm0, %v2655_v47, %v2657_v63 }
 0x6b8   : > { %v2592_v4 = vsel %vm1928_vm8, %v2587_v1, %v2589_v59  ;;  %2714 = vmatpush.bf16.msrb.mxu1 %v2659_v2 }
 0x6b9   : > { %2692 = vmatpush.bf16.msrb.mxu3 %v2592_v4 }
 0x6bd   : > { %8703 = vmatpush.bf16.msk.msrb.mxu3 %vm12448_vm14, %v12476_v22  ;;  %v8698_v22 = vld [vmem:[#allocation12 + $0x8] sm:$0xf0] }
 0x6be   : > { %v2646_v11 = vpop.permute.xlu0 %2645  ;;  %v8701_v30 = vor.u32 %v9550_v19, %v8698_v22  ;;  %v2795_v39 = vpop.permute.xlu2 %2794 }
 0x6bf   : > { %v2635_v12 = vpop.permute.xlu1 %2634  ;;  %2743 = vmatpush.bf16.msra.mxu2 %v2646_v11  ;;  %v2648_v13 = vsel %vm1988_vm1, %v2644_v50, %v2646_v11 }
 0x6c0   : > { %2694 = vmatmul.bf16.vlgmr.msrb.gmra.mxu3 %v8697_v10  ;;  %2715 = vmatpush.bf16.msrb.mxu1 %v2648_v13  ;;  %v2637_v14 = vsel %vm1976_vm2, %v2633_v45, %v2635_v12 }
 0x6c3   : > { %2744 = vmatpush.bf16.msra.mxu2 %v2635_v12 }
 0x6c4   : > { %2716 = vmatpush.bf16.msrb.mxu1 %v2637_v14 }
 0x6c6   : > { %v2613_v17 = vpop.permute.xlu0 %2612 }
 0x6c7   : > { %v2602_v20 = vpop.permute.xlu1 %2601  ;;  %2745 = vmatpush.bf16.msra.mxu2 %v2624_v9  ;;  %v2615_v21 = vsel %vm1952_vm6, %v2611_v56, %v2613_v17 }
 0x6c8   : > { %2717 = vmatpush.bf16.msrb.mxu1 %v2626_v3  ;;  %v2604_v28 = vsel %vm1940_vm7, %v2600_v15, %v2602_v20 }
 0x6cb   : > { %2746 = vmatpush.bf16.msra.mxu2 %v2613_v17 }
 0x6cc   : > { %2718 = vmatpush.bf16.msrb.mxu1 %v2615_v21 }
 0x6ce   : > { %v2666_v25 = vpop.permute.xlu0 %2665 }
 0x6cf   : > { %2747 = vmatpush.bf16.msra.mxu2 %v2602_v20  ;;  %v2669_v26 = vsel %vm14386_vm4, %v2664_v16, %v2666_v25  ;;  %v2670_v29 = vsel %vm14386_vm4, %v2666_v25, %v2668_v24  ;;  %v2591_v31 = vpop.permute.xlu1 %2590  ;;  %vm14480_vm4 = vmmov %vm14475_vm13 }
 0x6d0   : > { %2707 = vmatpush.bf16.msra.mxu3 %v2669_v26  ;;  %2719 = vmatpush.bf16.msrb.mxu1 %v2604_v28  ;;  %v2593_v33 = vsel %vm1928_vm8, %v2589_v59, %v2591_v31 }
 0x6d1   : > { %2735 = vmatpush.bf16.msra.mxu0 %v2670_v29 }
 0x6d3   : > { %8704 = vmatmul.msk.bf16.vlgmr.msra.gmra.mxu3 %vm14479_vm15, %v8701_v30  ;;  %2748 = vmatpush.bf16.msra.mxu2 %v2591_v31 }
 0x6d4   : > { %2763 = vmatpush.bf16.msrb.mxu3 %v2668_v24  ;;  %8705 = vmatmul.msk.bf16.vlgmr.msra.gmra.mxu0 %vm14475_vm13, %v8701_v30 }
 0x6d5   : > { %2720 = vmatpush.bf16.msrb.mxu1 %v2593_v33 }
 0x6d6   : > { %v2779_v35 = vpop.permute.xlu0 %2778 }
 0x6d7   : > { %2749 = vmatpush.bf16.msra.mxu2 %v12504_v27  ;;  %v12561_v36 = vpop.permute.xlu1 %2783  ;;  %v10106_v27 = vpop.permute.xlu2 %10105 }
 0x6d8   : > { %v10107_v50 = vunpack.i.l.bf16 %v10106_v27  ;;  %v10108_v4 = vunpack.i.h.bf16 %v10106_v27 }
 0x6d9   : > { %2721 = vmatpush.bf16.msrb.mxu1 %v12480_v23 }
 0x6da   : > { %2750 = vmatmul.bf16.vlgmr.msra.gmra.mxu2 %v8697_v10 }
 0x6dc   : > { %2722 = vmatmul.bf16.vlgmr.msrb.gmra.mxu1 %v8697_v10 }
 0x6de   : > { %v12563_v40 = vpop.permute.xlu0 %2799 }
 0x6df   : > { %v10101_v44 = vpop.permute.xlu1 %10100 }
 0x6e0   : > { %v10103_v62 = vunpack.i.h.bf16 %v10101_v44  ;;  %v10102_v51 = vunpack.i.l.bf16 %v10101_v44 }
 0x6e2   : > { %v2828_v53 = vsel %vm1964_vm3, %v10103_v62, %v10107_v50  ;;  %v2827_v58 = vsel %vm1964_vm3, %v10102_v51, %v10103_v62 }
 0x6e3   : > { %8706 = vmatmul.msk.bf16.vlgmr.msrb.gmra.mxu3 %vm14480_vm4, %v8701_v30 }
 0x6e6   : > { %v10111_v52 = vpop.permute.xlu0 %10110 }
 0x6e7   : > { %v10112_v57 = vunpack.i.l.bf16 %v10111_v52  ;;  %v10113_v6 = vunpack.i.h.bf16 %v10111_v52 }
 0x6e9   : > { %v2829_v12 = vsel %vm1964_vm3, %v10108_v4, %v10112_v57  ;;  %v2830_v17 = vsel %vm1964_vm3, %v10112_v57, %v10113_v6  ;;  %v2895_v4 = vld [vmem:[#allocation19] sm:$0xff] }
 0x743   : > { %v2695_v34 = vpop.f32.mrf.mxu3 }
 0x74b   : > { %v2697_v37 = vpop.f32.mrf.mxu3 }
 0x751   : > { %v2737_v41 = vpop.f32.mrf.mxu0 }
 0x756   : > { %v2709_v43 = vpop.f32.mrf.mxu3 }
 0x757   : > { %v2710_v45 = vadd.f32 %v2709_v43, %v2695_v34 }
 0x759   : > { %v2723_v46 = vpop.f32.mrf.mxu1  ;;  %v2786_v47 = vmul.f32 %v2779_v35, %v2710_v45  ;;  %v2739_v59 = vpop.f32.mrf.mxu0 }
 0x75a   : > { %v2738_v23 = vadd.f32 %v2737_v41, %v2723_v46 }
 0x75b   : > { %v2802_v18 = vadd.f32 %v2795_v39, %v2786_v47 }
 0x75c   : > { %v2787_v48 = vmul.f32 %v2779_v35, %v2738_v23 }
 0x75d   : > { %v2837_v63 = vadd.f32 %v2827_v58, %v2802_v18  ;;  %v2751_v7 = vpop.f32.mrf.mxu2  ;;  %v2897_v58 = vld [vmem:[#allocation19 + $0x10] sm:$0xff] }
 0x75e   : > { %v2803_v15 = vadd.f32 %v2795_v39, %v2787_v48  ;;  %v2711_v54 = vpop.f32.mrf.mxu3 }
 0x75f   : > { %v2712_v56 = vadd.f32 %v2711_v54, %v2697_v37  ;;  %v2843_v13 = vmax.f32 %v2837_v63, 0.0  ;;  %v2892_v63 = vld [vmem:[#allocation18 + $0x8] sm:$0xff] }
 0x760   : > { %v2838_v55 = vadd.f32 %v2828_v53, %v2803_v15 }
 0x761   : > { %v2725_v60 = vpop.f32.mrf.mxu1  ;;  %v2789_v1 = vmul.f32 %v12561_v36, %v2712_v56  ;;  %v2849_v26 = vsel %vm12347_vm10, %v2843_v13, 0.0 }
 0x762   : > { %v2740_v2 = vadd.f32 %v2739_v59, %v2725_v60  ;;  %v2844_v9 = vmax.f32 %v2838_v55, 0.0  ;;  %v2893_v59 = vld [vmem:[#allocation18 + $0x10] sm:$0xff]  ;;  %v2894_v60 = vld [vmem:[#allocation18 + $0x18] sm:$0xff] }
 0x763   : > { %v2805_v10 = vadd.f32 %v12563_v40, %v2789_v1  ;;  %v2898_v1 = vld [vmem:[#allocation19 + $0x18] sm:$0xff] }
 0x764   : > { %v2790_v11 = vmul.f32 %v12561_v36, %v2740_v2  ;;  %v2850_v22 = vsel %vm12341_vm9, %v2844_v9, 0.0  ;;  %v2891_v2 = vld [vmem:[#allocation18] sm:$0xff] }
 0x765   : > { %v2840_v14 = vadd.f32 %v2829_v12, %v2805_v10  ;;  %v2855_v28 = vpack.c.bf16 %v2850_v22, %v2849_v26  ;;  %v2753_v33 = vpop.f32.mrf.mxu2 }
 0x766   : > { %v2806_v16 = vadd.f32 %v12563_v40, %v2790_v11  ;;  %v2765_v20 = vpop.f32.mrf.mxu3 }
 0x767   : > { %v2846_v3 = vmax.f32 %v2840_v14, 0.0  ;;  %v2766_v19 = vadd.f32 %v2765_v20, %v2751_v7  ;;  %v2864_v43 = vunpack.c.h.b16 %v2855_v28  ;;  %v2863_v45 = vunpack.c.l.b16 %v2855_v28 }
 0x768   : > { %v2841_v21 = vadd.f32 %v2830_v17, %v2806_v16 }
 0x769   : > { %v2788_v25 = vmul.f32 %v2779_v35, %v2766_v19  ;;  %v2852_v30 = vsel %vm12347_vm10, %v2846_v3, 0.0  ;;  %vm3304_vm10 = vcmask 244736  }
 0x76a   : > { %v2847_v24 = vmax.f32 %v2841_v21, 0.0 }
 0x76b   : > { %v2804_v29 = vadd.f32 %v2795_v39, %v2788_v25 }
 0x76c   : > { %v2853_v31 = vsel %vm12341_vm9, %v2847_v24, 0.0  ;;  %vm3311_vm9 = vcmask 1046528  }
 0x76d   : > { %v2857_v34 = vpack.c.bf16 %v2853_v31, %v2852_v30  ;;  %v2839_v37 = vadd.f32 %v10107_v50, %v2804_v29 }
 0x76e   : > { %v2767_v41 = vpop.f32.mrf.mxu3 }
 0x76f   : > { %v2867_v44 = vunpack.c.h.b16 %v2857_v34  ;;  %v2866_v46 = vunpack.c.l.b16 %v2857_v34  ;;  %v2768_v35 = vadd.f32 %v2767_v41, %v2753_v33  ;;  %v2845_v23 = vmax.f32 %v2839_v37, 0.0  ;;  %v8709_v37 = vld [vmem:[#allocation16] sm:$0xf]  ;;  %v9553_v41 = vld [vmem:[#allocation16 + $0x4] sm:$0xf0] }
 0x771   : > { %v2870_v27 = vpack.c.b16 %v2867_v44, %v2864_v43  ;;  %v2869_v47 = vpack.c.b16 %v2866_v46, %v2863_v45  ;;  %v2791_v39 = vmul.f32 %v12561_v36, %v2768_v35  ;;  %v2851_v62 = vsel %vm12353_vm5, %v2845_v23, 0.0  ;;  %v9552_v23 = vld [vmem:[#allocation16 + $0x4] sm:$0xf] }
 0x772   : > { %v2856_v50 = vpack.c.bf16 %v2851_v62, %v2851_v62  ;;  %v8710_v44 = vor.u32 %v9553_v41, %v8709_v37 }
 0x773   : > { %2874 = vrot.lane.b32.xlu2 %v2870_v27, %s11363_s5  ;;  %2872 = vrot.lane.b32.xlu1 %v2869_v47, %s11363_s5  ;;  %v2807_v32 = vadd.f32 %v12563_v40, %v2791_v39  ;;  %v8711_v39 = vld [vmem:[#allocation16 + $0x8] sm:$0xf0] }
 0x774   : > { %v2865_v18 = vunpack.c.l.b16 %v2856_v50  ;;  %v8717_v50 = vld [vmem:[#allocation16 + $0x10] sm:$0xf] }
 0x775   : > { %v2842_v38 = vadd.f32 %v10113_v6, %v2807_v32  ;;  %v2896_v6 = vld [vmem:[#allocation19 + $0x8] sm:$0xff] }
 0x777   : > { %v2848_v48 = vmax.f32 %v2842_v38, 0.0 }
 0x779   : > { %v2854_v51 = vsel %vm12353_vm5, %v2848_v48, 0.0  ;;  %v8714_v48 = vor.u32 %v9552_v23, %v8711_v39 }
 0x77a   : > { %v2858_v52 = vpack.c.bf16 %v2854_v51, %v2854_v51  ;;  %v9555_v51 = vld [vmem:[#allocation16 + $0x14] sm:$0xf0] }
 0x77c   : > { %v2868_v15 = vunpack.c.l.b16 %v2858_v52 }
 0x77e   : > { %v2871_v53 = vpack.c.b16 %v2868_v15, %v2865_v18  ;;  %v8718_v18 = vor.u32 %v9555_v51, %v8717_v50 }
 0x780   : > { %2876 = vrot.lane.b32.xlu0 %v2871_v53, %s11363_s5  ;;  %s11374_s5 = smov 115  }
 0x7cd   : > { %v2875_v36 = vpop.permute.xlu2 %2874 }
 0x7e5   : > { %v12590_v54 = vpop.permute.xlu1 %2872 }
 0x7e6   : > { %v12594_v40 = vsel %vm2297_vm11, %v12590_v54, %v2875_v36  ;;  %v2882_v55 = vsel %vm2297_vm11, 0, %v12590_v54 }
 0x7e7   : > { %3020 = vrot.lane.b32.xlu0 %v2882_v55, %s11354_s23  ;;  %3031 = vrot.lane.b32.xlu1 %v2882_v55, %s11355_s2 }
 0x7e8   : > { %3033 = vrot.lane.b32.xlu2 %v12594_v40, %s11355_s2 }
 0x7ef   : > { %3011 = vrot.lane.b32.xlu0 %v12594_v40, %s11356_s7  ;;  %3022 = vrot.lane.b32.xlu1 %v12594_v40, %s11354_s23 }
 0x7f0   : > { %3009 = vrot.lane.b32.xlu2 %v2882_v55, %s11356_s7 }
 0x7f2   : > { %v2877_v49 = vpop.permute.xlu0 %2876 }
 0x7f3   : > { %v2879_v56 = vsel %vm2297_vm11, %v2875_v36, %v2877_v49 }
 0x7f4   : > { %v12618_v57 = vsel %vm2306_vm12, %v2879_v56, 0  ;;  %v9554_v56 = vld [vmem:[#allocation16 + $0x14] sm:$0xf] }
 0x7f7   : > { %2987 = vrot.lane.b32.xlu0 %v2882_v55, %s11359_s3  ;;  %2998 = vrot.lane.b32.xlu1 %v2882_v55, %s11357_s17 }
 0x7f8   : > { %3000 = vrot.lane.b32.xlu2 %v12594_v40, %s11357_s17 }
 0x7ff   : > { %2978 = vrot.lane.b32.xlu0 %v12594_v40, %s11360_s10  ;;  %2989 = vrot.lane.b32.xlu1 %v12594_v40, %s11359_s3 }
 0x800   : > { %2976 = vrot.lane.b32.xlu2 %v2882_v55, %s11360_s10 }
 0x807   : > { %3035 = vrot.lane.b32.xlu0 %v12618_v57, %s11355_s2  ;;  %2965 = vrot.lane.b32.xlu1 %v2882_v55, %s11361_s8  ;;  %s11369_s2 = smov 106  }
 0x808   : > { %2967 = vrot.lane.b32.xlu2 %v12594_v40, %s11361_s8 }
 0x80f   : > { %3042 = vrot.lane.b32.xlu0 %v2882_v55, %s11358_s4  ;;  %3024 = vrot.lane.b32.xlu1 %v12618_v57, %s11354_s23  ;;  %s11368_s23 = smov 117  }
 0x810   : > { %3013 = vrot.lane.b32.xlu2 %v12618_v57, %s11356_s7 }
 0x817   : > { %2991 = vrot.lane.b32.xlu0 %v12618_v57, %s11359_s3  ;;  %3044 = vrot.lane.b32.xlu1 %v12594_v40, %s11358_s4  ;;  %s11373_s3 = smov 121  }
 0x818   : > { %3002 = vrot.lane.b32.xlu2 %v12618_v57, %s11357_s17  ;;  %s11371_s17 = smov 122  }
 0x81f   : > { %3046 = vrot.lane.b32.xlu0 %v12618_v57, %s11358_s4  ;;  %2980 = vrot.lane.b32.xlu1 %v12618_v57, %s11360_s10  ;;  %s11372_s4 = smov 120  }
 0x820   : > { %2969 = vrot.lane.b32.xlu2 %v12618_v57, %s11361_s8 }
 0x827   : > { %3408 = vperm.xlu0 %10096, %v2897_v58   ;;  %3384 = vperm.xlu1 %10097, %v2893_v59   ;;  %v8719_v58 = vld [vmem:[#allocation16 + $0x18] sm:$0xf0] }
 0x828   : > { %3389 = vperm.xlu2 %10098, %v2894_v60   ;;  %v8722_v59 = vor.u32 %v9554_v56, %v8719_v58  ;;  %v9571_v60 = vld [vmem:[%s14484_s13 + $0x38] sm:$0xff] }
 0x82f   : > { %3379 = vperm.xlu0 %10096, %v2892_v63   ;;  %3413 = vperm.xlu1 %10097, %v2898_v1   ;;  %v9570_v63 = vld [vmem:[%s14484_s13 + $0x30] sm:$0xff]  ;;  %v9569_v1 = vld [vmem:[%s14484_s13 + $0x28] sm:$0xff] }
 0x830   : > { %3374 = vperm.xlu2 %10098, %v2891_v2   ;;  %v9567_v2 = vld [vmem:[%s14484_s13 + $0x18] sm:$0xff] }
 0x837   : > { %3398 = vperm.xlu1 %10097, %v2895_v4   ;;  %v9566_v4 = vld [vmem:[%s14484_s13 + $0x10] sm:$0xff] }
 0x838   : > { %3403 = vperm.xlu2 %10098, %v2896_v6   ;;  %v9565_v6 = vld [vmem:[%s14484_s13 + $0x8] sm:$0xff] }
 0x842   : > { %v3034_v7 = vpop.permute.xlu2 %3033 }
 0x84a   : > { %v3010_v9 = vpop.permute.xlu2 %3009 }
 0x852   : > { %v3001_v13 = vpop.permute.xlu2 %3000 }
 0x859   : > { %v3021_v10 = vpop.permute.xlu0 %3020  ;;  %v3032_v11 = vpop.permute.xlu1 %3031 }
 0x85a   : > { %v3037_v12 = vsel %vm2000_vm0, %v3032_v11, %v3034_v7  ;;  %v2977_v3 = vpop.permute.xlu2 %2976  ;;  %v12700_v11 = vld [vmem:[%s14484_s13 + $0x60] sm:$0xff] }
 0x85b   : > { %3077 = vmatpush.bf16.msrb.mxu2 %v3037_v12  ;;  %v12704_v12 = vld [vmem:[%s14484_s13 + $0x58] sm:$0xff] }
 0x861   : > { %v3012_v14 = vpop.permute.xlu0 %3011  ;;  %v3023_v16 = vpop.permute.xlu1 %3022 }
 0x862   : > { %v3026_v17 = vsel %vm1988_vm1, %v3021_v10, %v3023_v16  ;;  %v3015_v20 = vsel %vm1976_vm2, %v3010_v9, %v3012_v14  ;;  %v2968_v28 = vpop.permute.xlu2 %2967  ;;  %v12692_v9 = vld [vmem:[%s14484_s13 + $0x70] sm:$0xff]  ;;  %v12696_v10 = vld [vmem:[%s14484_s13 + $0x68] sm:$0xff] }
 0x863   : > { %3078 = vmatpush.bf16.msrb.mxu2 %v3026_v17 }
 0x867   : > { %3079 = vmatpush.bf16.msrb.mxu2 %v3015_v20 }
 0x869   : > { %v2988_v21 = vpop.permute.xlu0 %2987  ;;  %v2999_v19 = vpop.permute.xlu1 %2998 }
 0x86a   : > { %v12646_v22 = vsel %vm1964_vm3, %v2999_v19, %v3001_v13  ;;  %v3014_v43 = vpop.permute.xlu2 %3013  ;;  %v9581_v19 = vld [vmem:[%s14484_s13 + $0x88] sm:$0x70] }
 0x86b   : > { %3080 = vmatpush.bf16.msrb.mxu2 %v12646_v22  ;;  %v3016_v27 = vsel %vm1976_vm2, %v3012_v14, %v3014_v43  ;;  %v12708_v14 = vld [vmem:[%s14484_s13 + $0x50] sm:$0xff] }
 0x871   : > { %v2979_v24 = vpop.permute.xlu0 %2978  ;;  %v2990_v25 = vpop.permute.xlu1 %2989 }
 0x872   : > { %v2993_v26 = vsel %vm1952_vm6, %v2988_v21, %v2990_v25  ;;  %v2982_v29 = vsel %vm1940_vm7, %v2977_v3, %v2979_v24  ;;  %v12658_v47 = vpop.permute.xlu2 %3002  ;;  %v12716_v3 = vld [vmem:[%s14484_s13 + $0x40] sm:$0xff]  ;;  %v8801_v21 = vld [vmem:[%s14484_s13 + $0x88] sm:$0xf] }
 0x873   : > { %3081 = vmatpush.bf16.msrb.mxu2 %v2993_v26  ;;  %v12663_v8 = vsel %vm1964_vm3, %v3001_v13, %v12658_v47 }
 0x877   : > { %3082 = vmatpush.bf16.msrb.mxu2 %v2982_v29 }
 0x879   : > { %v3036_v30 = vpop.permute.xlu0 %3035  ;;  %v2966_v31 = vpop.permute.xlu1 %2965 }
 0x87a   : > { %v2971_v33 = vsel %vm1928_vm8, %v2966_v31, %v2968_v28  ;;  %v3038_v34 = vsel %vm2000_vm0, %v3034_v7, %v3036_v30  ;;  %vm14481_vm0 = vcmask 736256   ;;  %v2970_v55 = vpop.permute.xlu2 %2969  ;;  %v9564_v7 = vld [vmem:[%s14484_s13] sm:$0xff] }
 0x87b   : > { %3083 = vmatpush.bf16.msrb.mxu2 %v2971_v33  ;;  %3115 = vmatpush.bf16.msra.mxu3 %v3038_v34  ;;  %vm14483_vm2 = vmmov %vm14481_vm0  ;;  %v2972_v49 = vsel %vm1928_vm8, %v2968_v28, %v2970_v55 }
 0x87f   : > { %8724 = vmatpush.bf16.msk.msrb.mxu2 %vm12448_vm14, %v12590_v54 }
 0x881   : > { %v3043_v45 = vpop.permute.xlu0 %3042  ;;  %v3025_v46 = vpop.permute.xlu1 %3024 }
 0x882   : > { %3085 = vmatmul.bf16.vlgmr.msrb.gmra.mxu2 %v8710_v44  ;;  %v3027_v35 = vsel %vm1988_vm1, %v3023_v16, %v3025_v46  ;;  %vm14482_vm1 = vmmov %vm14480_vm4  ;;  %v12712_v16 = vld [vmem:[%s14484_s13 + $0x48] sm:$0xff] }
 0x883   : > { %3116 = vmatpush.bf16.msra.mxu3 %v3027_v35  ;;  %vm14485_vm3 = vmmov %vm14482_vm1 }
 0x884   : > { %vm14486_vm4 = vmmov %vm14482_vm1 }
 0x885   : > { %vm14489_vm8 = vmmov %vm14482_vm1 }
 0x887   : > { %3117 = vmatpush.bf16.msra.mxu3 %v3016_v27 }
 0x889   : > { %v2992_v32 = vpop.permute.xlu0 %2991  ;;  %v3045_v38 = vpop.permute.xlu1 %3044 }
 0x88a   : > { %v3048_v62 = vsel %vm14481_vm0, %v3043_v45, %v3045_v38  ;;  %v2994_v52 = vsel %vm1952_vm6, %v2990_v25, %v2992_v32  ;;  %vm14487_vm6 = vmmov %vm14482_vm1  ;;  %vm3483_vm0 = vcmask 89088  }
 0x88b   : > { %3103 = vmatpush.bf16.msra.mxu1 %v3048_v62  ;;  %3118 = vmatpush.bf16.msra.mxu3 %v12663_v8 }
 0x88e   : > { %8725 = vmatmul.msk.bf16.vlgmr.msra.gmra.mxu1 %vm14482_vm1, %v8714_v48 }
 0x88f   : > { %3153 = vmatpush.bf16.msrb.mxu1 %v3036_v30  ;;  %3119 = vmatpush.bf16.msra.mxu3 %v2994_v52  ;;  %v12726_v30 = vld [vmem:[%s14484_s13 + $0x80] sm:$0xff] }
 0x891   : > { %v3047_v15 = vpop.permute.xlu0 %3046  ;;  %v2981_v53 = vpop.permute.xlu1 %2980 }
 0x892   : > { %3090 = vmatmul.bf16.gmra.mxu2 %v8718_v18  ;;  %3179 = vmatpush.bf16.msrb.mxu0 %v3047_v15  ;;  %v2983_v36 = vsel %vm1940_vm7, %v2979_v24, %v2981_v53  ;;  %v3049_v54 = vsel %vm14483_vm2, %v3045_v38, %v3047_v15  ;;  %vm14488_vm7 = vmmov %vm14482_vm1  ;;  %v8802_v24 = vor.u32 %v9581_v19, %v8801_v21  ;;  %v3433_v19 = vmul.u32 52428, %v12309_v5 }
 0x893   : > { %3154 = vmatpush.bf16.msrb.mxu1 %v3025_v46  ;;  %3120 = vmatpush.bf16.msra.mxu3 %v2983_v36  ;;  %vm3488_vm1 = vcmask 728064   ;;  %vm3573_vm2 = vcmask 261120  }
 0x894   : > { %3141 = vmatpush.bf16.msra.mxu2 %v3049_v54  ;;  %v12722_v25 = vsel %vm3311_vm9, %v8802_v24, 0 }
 0x895   : > { %8729 = vmatmul.msk.bf16.vlgmr.msrb.gmra.mxu0 %vm14485_vm3, %v8714_v48 }
 0x897   : > { %3155 = vmatpush.bf16.msrb.mxu1 %v3014_v43  ;;  %3121 = vmatpush.bf16.msra.mxu3 %v2972_v49 }
 0x898   : > { %3315 = vmatpush.bf16.msrb.mxu2 %v9571_v60 }
 0x89b   : > { %3156 = vmatpush.bf16.msrb.mxu1 %v12658_v47  ;;  %3122 = vmatpush.bf16.msra.mxu3 %v12594_v40  ;;  %v9568_v40 = vld [vmem:[%s14484_s13 + $0x20] sm:$0xff] }
 0x89c   : > { %3316 = vmatpush.bf16.msrb.mxu2 %v9570_v63 }
 0x89e   : > { %8726 = vmatmul.msk.bf16.gmra.mxu1 %vm14486_vm4, %v8722_v59  ;;  %3123 = vmatmul.bf16.vlgmr.msra.gmra.mxu3 %v8710_v44  ;;  %vm14492_vm4 = vmmov %vm14485_vm3 }
 0x89f   : > { %3157 = vmatpush.bf16.msrb.mxu1 %v2992_v32 }
 0x8a0   : > { %3317 = vmatpush.bf16.msrb.mxu2 %v9569_v1 }
 0x8a2   : > { %8727 = vmatmul.msk.bf16.vlgmr.msra.gmra.mxu2 %vm14487_vm6, %v8714_v48  ;;  %vm4200_vm6 = vcmask 637952  }
 0x8a3   : > { %3158 = vmatpush.bf16.msrb.mxu1 %v2981_v53 }
 0x8a4   : > { %3318 = vmatpush.bf16.msrb.mxu2 %v9568_v40 }
 0x8a5   : > { %8730 = vmatmul.msk.bf16.gmra.mxu0 %vm14488_vm7, %v8722_v59 }
 0x8a7   : > { %3159 = vmatpush.bf16.msrb.mxu1 %v2970_v55 }
 0x8a8   : > { %3319 = vmatpush.bf16.msrb.mxu2 %v9567_v2 }
 0x8ab   : > { %3160 = vmatpush.bf16.msrb.mxu1 %v12618_v57  ;;  %v12687_v57 = vld [vmem:[%s14484_s13 + $0x78] sm:$0xff] }
 0x8ac   : > { %3320 = vmatpush.bf16.msrb.mxu2 %v9566_v4  ;;  %3334 = vmatpush.bf16.msrb.mxu3 %v12687_v57 }
 0x8ae   : > { %3128 = vmatmul.bf16.gmra.mxu3 %v8718_v18  ;;  %3161 = vmatmul.bf16.vlgmr.msrb.gmra.mxu1 %v8710_v44 }
 0x8af   : > { %3359 = vmatpush.bf16.msra.mxu1 %v12722_v25 }
 0x8b0   : > { %3321 = vmatpush.bf16.msrb.mxu2 %v9565_v6  ;;  %3335 = vmatpush.bf16.msrb.mxu3 %v12692_v9 }
 0x8b2   : > { %8728 = vmatmul.msk.bf16.gmra.mxu2 %vm14489_vm8, %v8722_v59 }
 0x8b3   : > { %3360 = vmatpush.bf16.msra.mxu1 %v12726_v30 }
 0x8b4   : > { %3322 = vmatpush.bf16.msrb.mxu2 %v9564_v7  ;;  %3336 = vmatpush.bf16.msrb.mxu3 %v12696_v10 }
 0x8b7   : > { %3640 = vmatpush.bf16.msrb.mxu1 %v9571_v60 }
 0x8b8   : > { %3337 = vmatpush.bf16.msrb.mxu3 %v12700_v11 }
 0x8bb   : > { %3641 = vmatpush.bf16.msrb.mxu1 %v9570_v63 }
 0x8bc   : > { %3338 = vmatpush.bf16.msrb.mxu3 %v12704_v12 }
 0x8be   : > { %3166 = vmatmul.bf16.gmra.mxu1 %v8718_v18 }
 0x8bf   : > { %3642 = vmatpush.bf16.msrb.mxu1 %v9569_v1 }
 0x8c0   : > { %3339 = vmatpush.bf16.msrb.mxu3 %v12708_v14 }
 0x8c3   : > { %3643 = vmatpush.bf16.msrb.mxu1 %v9568_v40 }
 0x8c4   : > { %3340 = vmatpush.bf16.msrb.mxu3 %v12712_v16 }
 0x8c7   : > { %3644 = vmatpush.bf16.msrb.mxu1 %v9567_v2 }
 0x8c8   : > { %3341 = vmatpush.bf16.msrb.mxu3 %v12716_v3 }
 0x8cb   : > { %3645 = vmatpush.bf16.msrb.mxu1 %v9566_v4 }
 0x8cf   : > { %3646 = vmatpush.bf16.msrb.mxu1 %v9565_v6  ;;  %v3431_v6 = vmul.u32 52428, %v12301_v0 }
 0x8d3   : > { %3647 = vmatpush.bf16.msrb.mxu1 %v9564_v7  ;;  %v3430_v7 = vmul.u32 52429, %v12301_v0 }
 0x905   : > { %v3086_v13 = vpop.f32.mrf.mxu2 }
 0x90b   : > { %v3105_v17 = vpop.f32.mrf.mxu1 }
 0x90c   : > { %v3106_v28 = vadd.f32 %v3105_v17, %v3086_v13  ;;  %v3432_v13 = vmul.u32 52429, %v12309_v5  ;;  %v3434_v17 = vshll.u32 %v3431_v6, 16 }
 0x90d   : > { %v3088_v20 = vpop.f32.mrf.mxu2 }
 0x90e   : > { %vm3438_vm5 = vc.u32 %v3430_v7, %v3434_v17  ;;  %v3440_v21 = vadd.s32 %v3434_v17, %v3430_v7 }
 0x90f   : > { %v3439_v24 = vsel %vm3438_vm5, 1, %v11362_v42 }
 0x912   : > { %v3181_v35 = vpop.f32.mrf.mxu0 }
 0x913   : > { %v3107_v26 = vpop.f32.mrf.mxu1 }
 0x914   : > { %v3108_v29 = vadd.f32 %v3107_v26, %v3088_v20  ;;  %v3436_v20 = vshll.u32 %v3432_v13, 16  ;;  %v3441_v26 = vadd.s32 %v3439_v24, %v3433_v19 }
 0x915   : > { %v3091_v31 = vpop.f32.mrf.mxu2 }
 0x916   : > { %v3191_v33 = vpack.c.bf16 %v3108_v29, %v3106_v28  ;;  %vm3442_vm11 = vc.u32 %v3440_v21, %v3436_v20  ;;  %v3435_v29 = vshrl.u32 %v3431_v6, 16 }
 0x917   : > { %v3443_v28 = vsel %vm3442_vm11, 1, %v11362_v42 }
 0x918   : > { %3323 = vmatmul.bf16.vlgmr.msrb.gmra.mxu2 %v3191_v33 }
 0x91a   : > { %v3183_v48 = vpop.f32.mrf.mxu0 }
 0x91b   : > { %v3110_v34 = vpop.f32.mrf.mxu1 }
 0x91c   : > { %v3111_v44 = vadd.f32 %v3110_v34, %v3091_v31  ;;  %v3437_v31 = vshrl.u32 %v3432_v13, 16  ;;  %v3385_v34 = vpop.permute.xlu1 %3384 }
 0x91d   : > { %v3093_v37 = vpop.f32.mrf.mxu2 }
 0x921   : > { %v3124_v41 = vpop.f32.mrf.mxu3 }
 0x922   : > { %v3186_v54 = vpop.f32.mrf.mxu0 }
 0x923   : > { %v3112_v43 = vpop.f32.mrf.mxu1 }
 0x924   : > { %v3113_v45 = vadd.f32 %v3112_v43, %v3093_v37  ;;  %v3390_v43 = vpop.permute.xlu2 %3389 }
 0x925   : > { %v3143_v46 = vpop.f32.mrf.mxu2 }
 0x926   : > { %v3194_v27 = vpack.c.bf16 %v3113_v45, %v3111_v44  ;;  %v3144_v38 = vadd.f32 %v3143_v46, %v3124_v41  ;;  %v3414_v46 = vpop.permute.xlu1 %3413 }
 0x928   : > { %3328 = vmatmul.bf16.gmra.mxu2 %v3194_v27 }
 0x929   : > { %v3126_v23 = vpop.f32.mrf.mxu3 }
 0x92a   : > { %v3188_v63 = vpop.f32.mrf.mxu0 }
 0x92b   : > { %v3162_v39 = vpop.f32.mrf.mxu1 }
 0x92c   : > { %v3182_v18 = vadd.f32 %v3181_v35, %v3162_v39 }
 0x92d   : > { %v3145_v32 = vpop.f32.mrf.mxu2 }
 0x92e   : > { %v3146_v62 = vadd.f32 %v3145_v32, %v3126_v23  ;;  %v3409_v32 = vpop.permute.xlu0 %3408 }
 0x930   : > { %v3192_v50 = vpack.c.bf16 %v3146_v62, %v3144_v38  ;;  %v3375_v62 = vpop.permute.xlu2 %3374 }
 0x931   : > { %v3129_v51 = vpop.f32.mrf.mxu3 }
 0x932   : > { %3342 = vmatmul.bf16.vlgmr.msrb.gmra.mxu3 %v3192_v50 }
 0x933   : > { %v3164_v52 = vpop.f32.mrf.mxu1 }
 0x934   : > { %v3184_v15 = vadd.f32 %v3183_v48, %v3164_v52  ;;  %v3399_v52 = vpop.permute.xlu1 %3398 }
 0x935   : > { %v3148_v53 = vpop.f32.mrf.mxu2 }
 0x936   : > { %v3193_v36 = vpack.c.bf16 %v3184_v15, %v3182_v18  ;;  %v3149_v58 = vadd.f32 %v3148_v53, %v3129_v51 }
 0x938   : > { %8803 = vmatmul.msk.bf16.vlgmr.msra.gmra.mxu1 %vm3304_vm10, %v3193_v36 }
 0x939   : > { %v3131_v49 = vpop.f32.mrf.mxu3 }
 0x93b   : > { %v3167_v55 = vpop.f32.mrf.mxu1 }
 0x93c   : > { %v3187_v40 = vadd.f32 %v3186_v54, %v3167_v55 }
 0x93d   : > { %v3150_v56 = vpop.f32.mrf.mxu2 }
 0x93e   : > { %v3151_v59 = vadd.f32 %v3150_v56, %v3131_v49  ;;  %v3380_v56 = vpop.permute.xlu0 %3379 }
 0x940   : > { %v3195_v60 = vpack.c.bf16 %v3151_v59, %v3149_v58 }
 0x942   : > { %3347 = vmatmul.bf16.gmra.mxu3 %v3195_v60  ;;  %v3404_v60 = vpop.permute.xlu2 %3403 }
 0x943   : > { %v3169_v1 = vpop.f32.mrf.mxu1 }
 0x944   : > { %v3189_v2 = vadd.f32 %v3188_v63, %v3169_v1 }
 0x946   : > { %v3196_v4 = vpack.c.bf16 %v3189_v2, %v3187_v40 }
 0x948   : > { %8804 = vmatmul.msk.bf16.gmra.mxu1 %vm3304_vm10, %v3196_v4 }
 0x958   : > { %3648 = vmatmul.bf16.vlgmr.msrb.gmra.mxu1 %v12646_v22  ;;  %v3445_v22 = vadd.s32 %v3443_v28, %v3441_v26 }
 0x95a   : > { %v3446_v33 = vadd.s32 %v3445_v22, %v3435_v29 }
 0x95c   : > { %v3447_v37 = vadd.s32 %v3446_v33, %v3437_v31 }
 0x95e   : > { %v3448_v41 = vshrl.u32 %v3447_v37, 3 }
 0x960   : > { %v3449_v45 = vmul.u32 10, %v3448_v41 }
 0x962   : > { %v3450_v35 = vsub.s32 %v12294_v61, %v3449_v45 }
 0x964   : > { %vm3453_vm12 = vcmp.ne.s32.totalorder %v3450_v35, 0  ;;  %vm3454_vm14 = vcmp.lt.s32.totalorder %v3450_v35, 0  ;;  %v3456_v51 = vadd.s32 10, %v3450_v35 }
 0x965   : > { %vm3455_vm15 = vmand %vm3454_vm14, %vm3453_vm12  ;;  %vm4430_vm12 = vcmask 56320   ;;  %vm4439_vm14 = vcmask 236544  }
 0x966   : > { %v3457_v54 = vsel %vm3455_vm15, %v3456_v51, %v3450_v35  ;;  %vm4648_vm15 = vcmask 523264  }
 0x967   : > { %vm12739_vm13 = vcmp.lt.s32.totalorder %v3457_v54, 8  ;;  %v2925_v54 = vld [vmem:[#allocation28 + $0x10] sm:$0xff] }
 0x99b   : > { %v3324_v44 = vpop.f32.mrf.mxu2 }
 0x9a3   : > { %v3326_v48 = vpop.f32.mrf.mxu2 }
 0x9ab   : > { %v3329_v63 = vpop.f32.mrf.mxu2 }
 0x9b3   : > { %v3331_v29 = vpop.f32.mrf.mxu2 }
 0x9b5   : > { %v3343_v27 = vpop.f32.mrf.mxu3  ;;  %v3362_v23 = vpop.f32.mrf.mxu1 }
 0x9b6   : > { %v3344_v39 = vadd.f32 %v3343_v27, %v3324_v44 }
 0x9b8   : > { %v3363_v38 = vadd.f32 %v3362_v23, %v3344_v39 }
 0x9ba   : > { %v3392_v50 = vmul.f32 %v3375_v62, %v3363_v38 }
 0x9bc   : > { %v3416_v18 = vadd.f32 %v3399_v52, %v3392_v50 }
 0x9bd   : > { %v3345_v15 = vpop.f32.mrf.mxu3  ;;  %v3364_v53 = vpop.f32.mrf.mxu1 }
 0x9be   : > { %v3346_v36 = vadd.f32 %v3345_v15, %v3326_v48  ;;  %v3420_v55 = vmax.f32 %v3416_v18, 0.0  ;;  %v2922_v15 = vld [vmem:[#allocation27 + $0x18] sm:$0xff] }
 0x9c0   : > { %v3365_v49 = vadd.f32 %v3364_v53, %v3346_v36  ;;  %v3461_v40 = vsel %vm12739_vm13, %v3420_v55, 0.0  ;;  %v2921_v53 = vld [vmem:[#allocation27 + $0x10] sm:$0xff]  ;;  %v2909_v36 = vld [vmem:[#allocation22 + $0x10] sm:$0xff]  ;;  %v2910_v55 = vld [vmem:[#allocation22 + $0x18] sm:$0xff] }
 0x9c1   : > { %v3465_v13 = vpack.c.bf16 %v3461_v40, %v3461_v40  ;;  %v2908_v40 = vld [vmem:[#allocation22 + $0x8] sm:$0xff] }
 0x9c2   : > { %v3393_v59 = vmul.f32 %v3380_v56, %v3365_v49  ;;  %v2926_v49 = vld [vmem:[#allocation28 + $0x18] sm:$0xff]  ;;  %v2914_v56 = vld [vmem:[#allocation24 + $0x18] sm:$0xff] }
 0x9c3   : > { %v3473_v24 = vunpack.c.l.b16 %v3465_v13 }
 0x9c4   : > { %v3417_v1 = vadd.f32 %v3404_v60, %v3393_v59  ;;  %v2913_v59 = vld [vmem:[#allocation24 + $0x10] sm:$0xff] }
 0x9c5   : > { %v3348_v2 = vpop.f32.mrf.mxu3  ;;  %v3367_v4 = vpop.f32.mrf.mxu1  ;;  %v2919_v60 = vld [vmem:[#allocation27] sm:$0xff] }
 0x9c6   : > { %v3421_v6 = vmax.f32 %v3417_v1, 0.0  ;;  %v3349_v7 = vadd.f32 %v3348_v2, %v3329_v63  ;;  %v2907_v63 = vld [vmem:[#allocation22] sm:$0xff]  ;;  %v2920_v1 = vld [vmem:[#allocation27 + $0x8] sm:$0xff] }
 0x9c7   : > { %v2924_v2 = vld [vmem:[#allocation28 + $0x8] sm:$0xff] }
 0x9c8   : > { %v3368_v17 = vadd.f32 %v3367_v4, %v3349_v7  ;;  %v3462_v20 = vsel %vm12739_vm13, %v3421_v6, 0.0  ;;  %v2923_v4 = vld [vmem:[#allocation28] sm:$0xff]  ;;  %v2911_v6 = vld [vmem:[#allocation24] sm:$0xff]  ;;  %v2912_v7 = vld [vmem:[#allocation24 + $0x8] sm:$0xff] }
 0x9c9   : > { %v3466_v21 = vpack.c.bf16 %v3462_v20, %v3462_v20 }
 0x9ca   : > { %v3394_v19 = vmul.f32 %v3385_v34, %v3368_v17 }
 0x9cb   : > { %v3474_v26 = vunpack.c.l.b16 %v3466_v21 }
 0x9cc   : > { %v3418_v28 = vadd.f32 %v3409_v32, %v3394_v19 }
 0x9cd   : > { %v3350_v22 = vpop.f32.mrf.mxu3  ;;  %v3477_v31 = vpack.c.b16 %v3474_v26, %v3473_v24  ;;  %v3369_v37 = vpop.f32.mrf.mxu1 }
 0x9ce   : > { %v3351_v33 = vadd.f32 %v3350_v22, %v3331_v29  ;;  %v3422_v41 = vmax.f32 %v3418_v28, 0.0 }
 0x9cf   : > { %3479 = vrot.lane.b32.xlu1 %v3477_v31, %s11364_s19 }
 0x9d0   : > { %v3370_v44 = vadd.f32 %v3369_v37, %v3351_v33  ;;  %v3463_v27 = vsel %vm12739_vm13, %v3422_v41, 0.0 }
 0x9d1   : > { %v3467_v34 = vpack.c.bf16 %v3463_v27, %v3463_v27 }
 0x9d2   : > { %v3395_v45 = vmul.f32 %v3390_v43, %v3370_v44  ;;  %v8815_v44 = vld [vmem:[#allocation21 + $0x8] sm:$0xf] }
 0x9d3   : > { %v3475_v38 = vunpack.c.l.b16 %v3467_v34  ;;  %v9556_v34 = vld [vmem:[#allocation21 + $0x4] sm:$0xf] }
 0x9d4   : > { %v3419_v35 = vadd.f32 %v3414_v46, %v3395_v45  ;;  %v9558_v45 = vld [vmem:[#allocation21 + $0x10] sm:$0xf0] }
 0x9d6   : > { %v3423_v23 = vmax.f32 %v3419_v35, 0.0  ;;  %v8807_v35 = vld [vmem:[#allocation21] sm:$0xf] }
 0x9d8   : > { %v3464_v39 = vsel %vm12739_vm13, %v3423_v23, 0.0  ;;  %v9557_v23 = vld [vmem:[#allocation21 + $0x8] sm:$0xf0] }
 0x9d9   : > { %v3468_v32 = vpack.c.bf16 %v3464_v39, %v3464_v39  ;;  %v8809_v39 = vld [vmem:[#allocation21 + $0xc] sm:$0xf0] }
 0x9db   : > { %v3476_v62 = vunpack.c.l.b16 %v3468_v32  ;;  %v8816_v32 = vor.u32 %v9558_v45, %v8815_v44 }
 0x9dd   : > { %v3478_v48 = vpack.c.b16 %v3476_v62, %v3475_v38  ;;  %v8808_v62 = vor.u32 %v9557_v23, %v8807_v35 }
 0x9df   : > { %3481 = vrot.lane.b32.xlu0 %v3478_v48, %s11364_s19  ;;  %v8812_v48 = vor.u32 %v9556_v34, %v8809_v39 }
 0xa41   : > { %v3480_v50 = vpop.permute.xlu1 %3479 }
 0xa42   : > { %v3485_v43 = vsel %vm3483_vm0, 0, %v3480_v50  ;;  %v8827_v50 = vld [vmem:[#allocation21 + $0x20] sm:$0xf] }
 0xa43   : > { %v12755_v46 = vsel %vm3488_vm1, %v3485_v43, 0  ;;  %v9561_v43 = vld [vmem:[#allocation21 + $0x28] sm:$0xf0] }
 0xa44   : > { %3507 = vrot.lane.b32.xlu2 %v12755_v46, %s11365_s16  ;;  %3531 = vrot.lane.b32.xlu1 %v12755_v46, %s11366_s18 }
 0xa51   : > { %v3482_v51 = vpop.permute.xlu0 %3481 }
 0xa52   : > { %v3487_v52 = vsel %vm3483_vm0, 0, %v3482_v51  ;;  %v8819_v51 = vld [vmem:[#allocation21 + $0x18] sm:$0xf] }
 0xa53   : > { %v12763_v18 = vsel %vm3488_vm1, %v3487_v52, 0  ;;  %v9560_v52 = vld [vmem:[#allocation21 + $0x20] sm:$0xf0] }
 0xa54   : > { %3509 = vrot.lane.b32.xlu0 %v12763_v18, %s11365_s16  ;;  %3533 = vrot.lane.b32.xlu2 %v12763_v18, %s11366_s18 }
 0xa55   : > { %3503 = vrot.lane.b32.xlu1 %v12763_v18, %s11360_s10 }
 0xa5c   : > { %3527 = vrot.lane.b32.xlu0 %v12763_v18, %s11356_s7  ;;  %3525 = vrot.lane.b32.xlu2 %v12755_v46, %s11356_s7 }
 0xa5d   : > { %3521 = vrot.lane.b32.xlu1 %v12763_v18, %s11367_s11 }
 0xa64   : > { %3501 = vrot.lane.b32.xlu0 %v12755_v46, %s11360_s10  ;;  %3497 = vrot.lane.b32.xlu2 %v12763_v18, %s11361_s8 }
 0xa65   : > { %3495 = vrot.lane.b32.xlu1 %v12755_v46, %s11361_s8 }
 0xa6c   : > { %3519 = vrot.lane.b32.xlu0 %v12755_v46, %s11367_s11  ;;  %3515 = vrot.lane.b32.xlu2 %v12763_v18, %s11368_s23 }
 0xa6d   : > { %3539 = vrot.lane.b32.xlu1 %v12763_v18, %s11369_s2 }
 0xa74   : > { %3513 = vrot.lane.b32.xlu0 %v12755_v46, %s11368_s23  ;;  %3537 = vrot.lane.b32.xlu2 %v12755_v46, %s11369_s2 }
 0xa75   : > { %3735 = vperm.xlu1 %10097, %v2922_v15   ;;  %v8820_v15 = vor.u32 %v9560_v52, %v8819_v51 }
 0xa7c   : > { %3730 = vperm.xlu0 %10096, %v2921_v53   ;;  %3778 = vperm.xlu2 %10098, %v2909_v36  }
 0xa7d   : > { %3754 = vperm.xlu1 %10097, %v2925_v54  }
 0xa84   : > { %3783 = vperm.xlu0 %10096, %v2910_v55   ;;  %3759 = vperm.xlu2 %10098, %v2926_v49  }
 0xa85   : > { %3807 = vperm.xlu1 %10097, %v2914_v56   ;;  %v3649_v56 = vpop.f32.mrf.mxu1 }
 0xa8c   : > { %3802 = vperm.xlu0 %10096, %v2913_v59   ;;  %3720 = vperm.xlu2 %10098, %v2919_v60  }
 0xa8d   : > { %3768 = vperm.xlu1 %10097, %v2907_v63  }
 0xa94   : > { %3725 = vperm.xlu0 %10096, %v2920_v1   ;;  %3773 = vperm.xlu2 %10098, %v2908_v40  }
 0xa95   : > { %3749 = vperm.xlu1 %10097, %v2924_v2   ;;  %v9562_v2 = vld [vmem:[#allocation25] sm:$0xff] }
 0xa9c   : > { %3744 = vperm.xlu0 %10096, %v2923_v4   ;;  %3792 = vperm.xlu2 %10098, %v2911_v6   ;;  %v9563_v4 = vld [vmem:[#allocation25 + $0x8] sm:$0xff] }
 0xa9e   : > { %v3508_v13 = vpop.permute.xlu2 %3507 }
 0xaa4   : > { %3797 = vperm.xlu0 %10096, %v2912_v7  }
 0xaae   : > { %v3534_v17 = vpop.permute.xlu2 %3533 }
 0xaaf   : > { %3599 = vmatpush.bf16.msra.mxu2 %v3534_v17 }
 0xab6   : > { %v3532_v20 = vpop.permute.xlu1 %3531  ;;  %v3526_v21 = vpop.permute.xlu2 %3525 }
 0xab7   : > { %3600 = vmatpush.bf16.msra.mxu2 %v3532_v20 }
 0xabe   : > { %v3498_v28 = vpop.permute.xlu2 %3497 }
 0xac6   : > { %v3510_v19 = vpop.permute.xlu0 %3509  ;;  %v3516_v33 = vpop.permute.xlu2 %3515 }
 0xac7   : > { %v3504_v24 = vpop.permute.xlu1 %3503  ;;  %3580 = vmatpush.bf16.msra.mxu0 %v3510_v19 }
 0xacb   : > { %3581 = vmatpush.bf16.msra.mxu0 %v3508_v13 }
 0xace   : > { %v3528_v26 = vpop.permute.xlu0 %3527  ;;  %v3538_v27 = vpop.permute.xlu2 %3537 }
 0xacf   : > { %v3522_v29 = vpop.permute.xlu1 %3521  ;;  %3582 = vmatpush.bf16.msra.mxu0 %v3504_v24  ;;  %3601 = vmatpush.bf16.msra.mxu2 %v3528_v26 }
 0xad3   : > { %3602 = vmatpush.bf16.msra.mxu2 %v3526_v21 }
 0xad6   : > { %v3502_v22 = vpop.permute.xlu0 %3501  ;;  %v3779_v7 = vpop.permute.xlu2 %3778 }
 0xad7   : > { %v3496_v31 = vpop.permute.xlu1 %3495  ;;  %3583 = vmatpush.bf16.msra.mxu0 %v3502_v22  ;;  %3603 = vmatpush.bf16.msra.mxu2 %v3522_v29 }
 0xadb   : > { %3584 = vmatpush.bf16.msra.mxu0 %v3498_v28 }
 0xade   : > { %v3520_v37 = vpop.permute.xlu0 %3519  ;;  %v3760_v20 = vpop.permute.xlu2 %3759 }
 0xadf   : > { %v3540_v41 = vpop.permute.xlu1 %3539  ;;  %3585 = vmatpush.bf16.msra.mxu0 %v3496_v31  ;;  %3604 = vmatpush.bf16.msra.mxu2 %v3520_v37 }
 0xae0   : > { %3624 = vmatpush.bf16.msra.mxu3 %v3540_v41 }
 0xae3   : > { %3586 = vmatpush.bf16.msra.mxu0 %v12763_v18  ;;  %3605 = vmatpush.bf16.msra.mxu2 %v3516_v33  ;;  %v8821_v18 = vld [vmem:[#allocation21 + $0x24] sm:$0xf0] }
 0xae4   : > { %3625 = vmatpush.bf16.msra.mxu3 %v3538_v27 }
 0xae6   : > { %v3514_v38 = vpop.permute.xlu0 %3513  ;;  %v3721_v24 = vpop.permute.xlu2 %3720 }
 0xae7   : > { %3587 = vmatpush.bf16.msra.mxu0 %v12755_v46  ;;  %3606 = vmatpush.bf16.msra.mxu2 %v3514_v38  ;;  %v9559_v46 = vld [vmem:[#allocation21 + $0x1c] sm:$0xf]  ;;  %v3736_v13 = vpop.permute.xlu1 %3735 }
 0xae8   : > { %8829 = vmatmul.msk.bf16.vlgmr.msra.gmra.mxu3 %vm3573_vm2, %v8816_v32  ;;  %v8824_v53 = vor.u32 %v9559_v46, %v8821_v18 }
 0xaea   : > { %3588 = vmatmul.bf16.vlgmr.msra.gmra.mxu0 %v8808_v62  ;;  %3607 = vmatmul.bf16.vlgmr.msra.gmra.mxu2 %v8812_v48 }
 0xaeb   : > { %3654 = vmatpush.bf16.msrb.mxu0 %v12687_v57  ;;  %3674 = vmatpush.bf16.msrb.mxu2 %v12722_v25  ;;  %v8828_v57 = vor.u32 %v9561_v43, %v8827_v50 }
 0xaee   : > { %v3731_v6 = vpop.permute.xlu0 %3730  ;;  %v3774_v22 = vpop.permute.xlu2 %3773 }
 0xaef   : > { %3655 = vmatpush.bf16.msrb.mxu0 %v12692_v9  ;;  %3675 = vmatpush.bf16.msrb.mxu2 %v12726_v30  ;;  %v3755_v21 = vpop.permute.xlu1 %3754 }
 0xaf3   : > { %3656 = vmatpush.bf16.msrb.mxu0 %v12696_v10 }
 0xaf6   : > { %v3784_v17 = vpop.permute.xlu0 %3783  ;;  %v3793_v23 = vpop.permute.xlu2 %3792 }
 0xaf7   : > { %3657 = vmatpush.bf16.msrb.mxu0 %v12700_v11  ;;  %v3808_v28 = vpop.permute.xlu1 %3807 }
 0xaf8   : > { %8830 = vmatmul.msk.bf16.gmra.mxu3 %vm3573_vm2, %v8828_v57 }
 0xafa   : > { %3593 = vmatmul.bf16.gmra.mxu0 %v8820_v15  ;;  %3612 = vmatmul.bf16.gmra.mxu2 %v8824_v53 }
 0xafb   : > { %3658 = vmatpush.bf16.msrb.mxu0 %v12704_v12 }
 0xafe   : > { %v3803_v19 = vpop.permute.xlu0 %3802 }
 0xaff   : > { %3659 = vmatpush.bf16.msrb.mxu0 %v12708_v14  ;;  %v3769_v37 = vpop.permute.xlu1 %3768 }
 0xb03   : > { %3660 = vmatpush.bf16.msrb.mxu0 %v12712_v16 }
 0xb06   : > { %v3726_v29 = vpop.permute.xlu0 %3725 }
 0xb07   : > { %3661 = vmatpush.bf16.msrb.mxu0 %v12716_v3  ;;  %v3651_v3 = vpop.f32.mrf.mxu1  ;;  %v3750_v52 = vpop.permute.xlu1 %3749 }
 0xb0a   : > { %3662 = vmatmul.bf16.vlgmr.msrb.gmra.mxu0 %v12663_v8  ;;  %8831 = vmatmul.msk.bf16.vlgmr.msrb.gmra.mxu2 %vm3304_vm10, %v12658_v47 }
 0xb0e   : > { %v3745_v45 = vpop.permute.xlu0 %3744 }
 0xb16   : > { %v3798_v46 = vpop.permute.xlu0 %3797 }
 0xb67   : > { %v3589_v9 = vpop.f32.mrf.mxu0 }
 0xb6b   : > { %v3627_v26 = vpop.f32.mrf.mxu3 }
 0xb6d   : > { %v3608_v10 = vpop.f32.mrf.mxu2 }
 0xb6e   : > { %v3609_v11 = vadd.f32 %v3608_v10, %v3589_v9 }
 0xb6f   : > { %v3591_v25 = vpop.f32.mrf.mxu0 }
 0xb70   : > { %v3628_v31 = vadd.f32 %v3627_v26, %v3609_v11 }
 0xb72   : > { %v3786_v41 = vmul.f32 %v3769_v37, %v3628_v31  ;;  %v3874_v37 = vld [vmem:[#allocation31 + $0x30] sm:$0xff] }
 0xb73   : > { %v3629_v33 = vpop.f32.mrf.mxu3 }
 0xb74   : > { %v3810_v34 = vadd.f32 %v3793_v23, %v3786_v41  ;;  %v3883_v41 = vld [vmem:[#allocation33 + $0x38] sm:$0xff]  ;;  %v3881_v23 = vld [vmem:[#allocation33 + $0x28] sm:$0xff] }
 0xb75   : > { %v3610_v12 = vpop.f32.mrf.mxu2 }
 0xb76   : > { %v3611_v44 = vadd.f32 %v3610_v12, %v3591_v25 }
 0xb77   : > { %v3594_v30 = vpop.f32.mrf.mxu0 }
 0xb78   : > { %v3630_v39 = vadd.f32 %v3629_v33, %v3611_v44  ;;  %v3875_v44 = vld [vmem:[#allocation31 + $0x38] sm:$0xff] }
 0xb7a   : > { %v3787_v48 = vmul.f32 %v3774_v22, %v3630_v39  ;;  %v3868_v39 = vld [vmem:[#allocation31] sm:$0xff] }
 0xb7b   : > { %v3632_v62 = vpop.f32.mrf.mxu3 }
 0xb7c   : > { %v3811_v18 = vadd.f32 %v3798_v46, %v3787_v48  ;;  %v3869_v48 = vld [vmem:[#allocation31 + $0x8] sm:$0xff] }
 0xb7d   : > { %v3613_v36 = vpop.f32.mrf.mxu2 }
 0xb7e   : > { %v3614_v54 = vadd.f32 %v3613_v36, %v3594_v30 }
 0xb7f   : > { %v3596_v55 = vpop.f32.mrf.mxu0 }
 0xb80   : > { %v3633_v57 = vadd.f32 %v3632_v62, %v3614_v54  ;;  %v3877_v62 = vld [vmem:[#allocation33 + $0x8] sm:$0xff] }
 0xb82   : > { %v3788_v10 = vmul.f32 %v3779_v7, %v3633_v57 }
 0xb83   : > { %v3634_v12 = vpop.f32.mrf.mxu3 }
 0xb85   : > { %v3615_v49 = vpop.f32.mrf.mxu2 }
 0xb86   : > { %v3616_v11 = vadd.f32 %v3615_v49, %v3596_v55 }
 0xb87   : > { %v3663_v14 = vpop.f32.mrf.mxu0 }
 0xb88   : > { %v3664_v60 = vadd.f32 %v3663_v14, %v3649_v56 }
 0xb8d   : > { %v3677_v16 = vpop.f32.mrf.mxu2 }
 0xb8e   : > { %v3678_v1 = vadd.f32 %v3677_v16, %v3664_v60 }
 0xb8f   : > { %v3665_v59 = vpop.f32.mrf.mxu0 }
 0xb90   : > { %v3666_v8 = vadd.f32 %v3665_v59, %v3651_v3  ;;  %v3812_v59 = vadd.f32 %v3803_v19, %v3788_v10  ;;  %v3635_v3 = vadd.f32 %v3634_v12, %v3616_v11 }
 0xb95   : > { %v3679_v63 = vpop.f32.mrf.mxu2 }
 0xb96   : > { %v3680_v47 = vadd.f32 %v3679_v63, %v3666_v8 }
 0xb98   : > { %v3682_v40 = vpack.c.bf16 %v3680_v47, %v3678_v1  ;;  %v3789_v47 = vmul.f32 %v3784_v17, %v3635_v3  ;;  %v8852_v3 = vld [vmem:[#allocation30 + $0x8] sm:$0xf] }
 0xb9a   : > { %3706 = vmatpush.bf16.msra.mxu1 %v3682_v40 }
 0xb9d   : > { %8840 = vmatmul.msk.bf16.vlgmr.msra.gmra.mxu1 %vm14485_vm3, %v9562_v2  ;;  %v3813_v2 = vadd.f32 %v3808_v28, %v3789_v47  ;;  %vm6380_vm3 = vcmask 39936  }
 0xbad   : > { %8841 = vmatmul.msk.bf16.gmra.mxu1 %vm14492_vm4, %v9563_v4  ;;  %vm8109_vm4 = vcmask 7168  }
 0xc1a   : > { %v3708_v35 = vpop.f32.mrf.mxu1 }
 0xc1b   : > { %v3738_v27 = vmul.f32 %v3721_v24, %v3708_v35  ;;  %v3872_v35 = vld [vmem:[#allocation31 + $0x20] sm:$0xff] }
 0xc1d   : > { %v3762_v32 = vadd.f32 %v3745_v45, %v3738_v27  ;;  %v3880_v45 = vld [vmem:[#allocation33 + $0x20] sm:$0xff]  ;;  %v3871_v27 = vld [vmem:[#allocation31 + $0x18] sm:$0xff] }
 0xc1f   : > { %v3814_v38 = vadd.f32 %v3810_v34, %v3762_v32  ;;  %v3882_v34 = vld [vmem:[#allocation33 + $0x30] sm:$0xff] }
 0xc20   : > { %v3878_v32 = vld [vmem:[#allocation33 + $0x10] sm:$0xff] }
 0xc21   : > { %v3818_v43 = vmax.f32 %v3814_v38, 0.0  ;;  %v3873_v38 = vld [vmem:[#allocation31 + $0x28] sm:$0xff] }
 0xc22   : > { %v3710_v50 = vpop.f32.mrf.mxu1 }
 0xc23   : > { %v3739_v51 = vmul.f32 %v3726_v29, %v3710_v50  ;;  %v3822_v53 = vsel %vm12739_vm13, %v3818_v43, 0.0  ;;  %v3870_v50 = vld [vmem:[#allocation31 + $0x10] sm:$0xff]  ;;  %v3879_v43 = vld [vmem:[#allocation33 + $0x18] sm:$0xff] }
 0xc24   : > { %v3826_v30 = vpack.c.bf16 %v3822_v53, %v3822_v53 }
 0xc25   : > { %v3763_v15 = vadd.f32 %v3750_v52, %v3739_v51  ;;  %v3876_v51 = vld [vmem:[#allocation33] sm:$0xff] }
 0xc26   : > { %v3834_v54 = vunpack.c.l.b16 %v3826_v30 }
 0xc27   : > { %v3815_v9 = vadd.f32 %v3811_v18, %v3763_v15 }
 0xc29   : > { %v3819_v25 = vmax.f32 %v3815_v9, 0.0 }
 0xc2a   : > { %v3713_v36 = vpop.f32.mrf.mxu1 }
 0xc2b   : > { %v3823_v14 = vsel %vm12739_vm13, %v3819_v25, 0.0  ;;  %v3740_v56 = vmul.f32 %v3731_v6, %v3713_v36  ;;  %v8844_v36 = vld [vmem:[#allocation30] sm:$0xf] }
 0xc2c   : > { %v3827_v16 = vpack.c.bf16 %v3823_v14, %v3823_v14  ;;  %v9583_v14 = vld [vmem:[#allocation30 + $0x8] sm:$0xf0] }
 0xc2d   : > { %v3764_v60 = vadd.f32 %v3755_v21, %v3740_v56 }
 0xc2e   : > { %v3835_v8 = vunpack.c.l.b16 %v3827_v16 }
 0xc2f   : > { %v3816_v63 = vadd.f32 %v3812_v59, %v3764_v60  ;;  %v8845_v59 = vor.u32 %v9583_v14, %v8844_v36  ;;  %v9584_v60 = vld [vmem:[#allocation30 + $0x10] sm:$0xf0] }
 0xc30   : > { %v3838_v1 = vpack.c.b16 %v3835_v8, %v3834_v54  ;;  %v8853_v8 = vor.u32 %v9584_v60, %v8852_v3 }
 0xc31   : > { %v3820_v55 = vmax.f32 %v3816_v63, 0.0  ;;  %v9582_v63 = vld [vmem:[#allocation30 + $0x4] sm:$0xf] }
 0xc32   : > { %v3715_v40 = vpop.f32.mrf.mxu1  ;;  %3840 = vrot.lane.b32.xlu2 %v3838_v1, %s11364_s19  ;;  %v8846_v1 = vld [vmem:[#allocation30 + $0xc] sm:$0xf0] }
 0xc33   : > { %v3741_v49 = vmul.f32 %v3736_v13, %v3715_v40  ;;  %v3824_v7 = vsel %vm12739_vm13, %v3820_v55, 0.0  ;;  %v8849_v40 = vor.u32 %v9582_v63, %v8846_v1  ;;  %v8856_v55 = vld [vmem:[#allocation30 + $0x18] sm:$0xf] }
 0xc34   : > { %v3828_v19 = vpack.c.bf16 %v3824_v7, %v3824_v7  ;;  %v9587_v7 = vld [vmem:[#allocation30 + $0x28] sm:$0xf0] }
 0xc35   : > { %v3765_v4 = vadd.f32 %v3760_v20, %v3741_v49  ;;  %v9586_v49 = vld [vmem:[#allocation30 + $0x20] sm:$0xf0] }
 0xc36   : > { %v3836_v29 = vunpack.c.l.b16 %v3828_v19  ;;  %v8858_v19 = vld [vmem:[#allocation30 + $0x24] sm:$0xf0] }
 0xc37   : > { %v3817_v6 = vadd.f32 %v3813_v2, %v3765_v4  ;;  %v8857_v2 = vor.u32 %v9586_v49, %v8856_v55  ;;  %v8864_v4 = vld [vmem:[#allocation30 + $0x20] sm:$0xf] }
 0xc39   : > { %v3821_v24 = vmax.f32 %v3817_v6, 0.0  ;;  %v8865_v6 = vor.u32 %v9587_v7, %v8864_v4 }
 0xc3b   : > { %v3825_v21 = vsel %vm12739_vm13, %v3821_v24, 0.0  ;;  %v9585_v24 = vld [vmem:[#allocation30 + $0x1c] sm:$0xf]  ;;  %vm6016_vm13 = vcmask 1042432  }
 0xc3c   : > { %v3829_v26 = vpack.c.bf16 %v3825_v21, %v3825_v21  ;;  %v8861_v21 = vor.u32 %v9585_v24, %v8858_v19 }
 0xc3e   : > { %v3837_v22 = vunpack.c.l.b16 %v3829_v26  ;;  %v8912_v26 = vld [vmem:[#allocation43 + $0x20] sm:$0xf] }
 0xc40   : > { %v3839_v17 = vpack.c.b16 %v3837_v22, %v3836_v29  ;;  %v9622_v29 = vld [vmem:[#allocation43 + $0x20] sm:$0x70]  ;;  %v8868_v22 = vld [vmem:[#allocation30 + $0x30] sm:$0xf] }
 0xc42   : > { %3842 = vrot.lane.b32.xlu1 %v3839_v17, %s11364_s19  ;;  %v9589_v17 = vld [vmem:[#allocation30 + $0x38] sm:$0xf0]  ;;  %s11375_s19 = smov 114  }
 0xc8c   : > { %v3841_v31 = vpop.permute.xlu2 %3840 }
 0xc8d   : > { %v3845_v13 = vsel %vm3483_vm0, 0, %v3841_v31  ;;  %v8913_v31 = vor.u32 %v9622_v29, %v8912_v26 }
 0xc8e   : > { %v12824_v20 = vsel %vm3488_vm1, %v3845_v13, 0 }
 0xc8f   : > { %3966 = vrot.lane.b32.xlu2 %v12824_v20, %s11360_s10  ;;  %3972 = vrot.lane.b32.xlu1 %v12824_v20, %s11365_s16  ;;  %v12873_v13 = vsel %vm3311_vm9, %v8913_v31, 0 }
 0xc90   : > { %4219 = vmatpush.bf16.msrb.mxu1 %v12873_v13 }
 0xc97   : > { %3996 = vrot.lane.b32.xlu1 %v12824_v20, %s11366_s18 }
 0xcb4   : > { %v3843_v58 = vpop.permute.xlu1 %3842 }
 0xcb5   : > { %v3847_v28 = vsel %vm3483_vm0, 0, %v3843_v58  ;;  %v8876_v58 = vld [vmem:[#allocation30 + $0x38] sm:$0xf] }
 0xcb6   : > { %v12834_v33 = vsel %vm3488_vm1, %v3847_v28, 0  ;;  %v9590_v28 = vld [vmem:[#allocation30 + $0x40] sm:$0xf0]  ;;  %vm5991_vm1 = vcmask 179200  }
 0xcb7   : > { %3962 = vrot.lane.b32.xlu1 %v12834_v33, %s11361_s8  ;;  %3998 = vrot.lane.b32.xlu2 %v12834_v33, %s11366_s18  ;;  %s14499_s18 = sld [smem:[#allocation105_spill]] }
 0xcb8   : > { %3974 = vrot.lane.b32.xlu0 %v12834_v33, %s11365_s16 }
 0xcbf   : > { %3986 = vrot.lane.b32.xlu1 %v12834_v33, %s11367_s11  ;;  %3990 = vrot.lane.b32.xlu2 %v12824_v20, %s11356_s7 }
 0xcc0   : > { %3968 = vrot.lane.b32.xlu0 %v12834_v33, %s11360_s10 }
 0xcc7   : > { %3980 = vrot.lane.b32.xlu1 %v12834_v33, %s11368_s23  ;;  %3984 = vrot.lane.b32.xlu2 %v12824_v20, %s11367_s11 }
 0xcc8   : > { %3992 = vrot.lane.b32.xlu0 %v12834_v33, %s11356_s7  ;;  %s11370_s7 = smov 7  }
 0xccf   : > { %4277 = vperm.xlu1 %10097, %v3874_v37   ;;  %4002 = vrot.lane.b32.xlu2 %v12824_v20, %s11369_s2  ;;  %v9588_v37 = vld [vmem:[#allocation30 + $0x34] sm:$0xf] }
 0xcd0   : > { %3960 = vrot.lane.b32.xlu0 %v12824_v20, %s11361_s8 }
 0xcd7   : > { %4330 = vperm.xlu1 %10097, %v3883_v41   ;;  %4282 = vperm.xlu2 %10098, %v3875_v44   ;;  %v8870_v41 = vld [vmem:[#allocation30 + $0x3c] sm:$0xf0] }
 0xcd8   : > { %4004 = vrot.lane.b32.xlu0 %v12834_v33, %s11369_s2  ;;  %v8873_v44 = vor.u32 %v9588_v37, %v8870_v41  ;;  %s11377_s2 = smov 123  }
 0xcdf   : > { %4315 = vperm.xlu1 %10097, %v3880_v45   ;;  %4267 = vperm.xlu2 %10098, %v3872_v35   ;;  %v8880_v45 = vld [vmem:[#allocation30 + $0x48] sm:$0xf]  ;;  %v9592_v35 = vld [vmem:[#allocation30 + $0x50] sm:$0xf0] }
 0xce0   : > { %3978 = vrot.lane.b32.xlu0 %v12824_v20, %s11368_s23  ;;  %s14503_s23 = sld [smem:[#allocation108_spill]] }
 0xce7   : > { %4262 = vperm.xlu1 %10097, %v3871_v27   ;;  %4320 = vperm.xlu2 %10098, %v3881_v23   ;;  %v8881_v27 = vor.u32 %v9592_v35, %v8880_v45  ;;  %v8888_v23 = vld [vmem:[#allocation30 + $0x50] sm:$0xf]  ;;  %v4356_v45 = vmul.u32 43690, %v12301_v0  ;;  %v4355_v35 = vmul.u32 43691, %v12301_v0 }
 0xce8   : > { %4325 = vperm.xlu0 %10096, %v3882_v34   ;;  %v9593_v34 = vld [vmem:[#allocation30 + $0x58] sm:$0xf0] }
 0xce9   : > { %v3967_v52 = vpop.permute.xlu2 %3966 }
 0xcef   : > { %4247 = vperm.xlu1 %10097, %v3868_v39   ;;  %4305 = vperm.xlu2 %10098, %v3878_v32   ;;  %v8889_v39 = vor.u32 %v9593_v34, %v8888_v23  ;;  %v9591_v32 = vld [vmem:[#allocation30 + $0x4c] sm:$0xf]  ;;  %v4359_v23 = vshll.u32 %v4356_v45, 16 }
 0xcf0   : > { %4272 = vperm.xlu0 %10096, %v3873_v38   ;;  %v8882_v38 = vld [vmem:[#allocation30 + $0x54] sm:$0xf0] }
 0xcf1   : > { %vm4363_vm7 = vc.u32 %v4355_v35, %v4359_v23 }
 0xcf7   : > { %4300 = vperm.xlu1 %10097, %v3877_v62   ;;  %4252 = vperm.xlu2 %10098, %v3869_v48   ;;  %v8885_v62 = vor.u32 %v9591_v32, %v8882_v38  ;;  %v12878_v48 = vld [vmem:[#allocation43 + $0x18] sm:$0xff]  ;;  %v4358_v32 = vmul.u32 43690, %v12309_v5  ;;  %v4364_v38 = vsel %vm4363_vm7, 1, %v11362_v42 }
 0xcf8   : > { %4257 = vperm.xlu0 %10096, %v3870_v50   ;;  %4220 = vmatpush.bf16.msrb.mxu1 %v12878_v48  ;;  %v12881_v50 = vld [vmem:[#allocation43 + $0x10] sm:$0xff] }
 0xcfc   : > { %4221 = vmatpush.bf16.msrb.mxu1 %v12881_v50 }
 0xd00   : > { %4310 = vperm.xlu0 %10096, %v3879_v43   ;;  %v12884_v43 = vld [vmem:[#allocation43 + $0x8] sm:$0xff] }
 0xd01   : > { %v3973_v46 = vpop.permute.xlu1 %3972  ;;  %4222 = vmatpush.bf16.msrb.mxu1 %v12884_v43 }
 0xd08   : > { %4295 = vperm.xlu0 %10096, %v3876_v51   ;;  %v12887_v51 = vld [vmem:[#allocation43] sm:$0xff] }
 0xd09   : > { %v3997_v57 = vpop.permute.xlu1 %3996  ;;  %4223 = vmatpush.bf16.msrb.mxu1 %v12887_v51 }
 0xd11   : > { %v3999_v18 = vpop.permute.xlu2 %3998 }
 0xd12   : > { %4109 = vmatpush.bf16.msra.mxu0 %v3999_v18 }
 0xd16   : > { %4110 = vmatpush.bf16.msra.mxu0 %v3997_v57 }
 0xd19   : > { %v3991_v11 = vpop.permute.xlu2 %3990 }
 0xd21   : > { %v3985_v30 = vpop.permute.xlu2 %3984 }
 0xd29   : > { %v3963_v9 = vpop.permute.xlu1 %3962  ;;  %v4003_v54 = vpop.permute.xlu2 %4002 }
 0xd2a   : > { %v3975_v15 = vpop.permute.xlu0 %3974 }
 0xd2b   : > { %4080 = vmatpush.bf16.msrb.mxu3 %v3975_v15 }
 0xd2f   : > { %4081 = vmatpush.bf16.msrb.mxu3 %v3973_v46 }
 0xd31   : > { %v3987_v25 = vpop.permute.xlu1 %3986 }
 0xd32   : > { %v3969_v53 = vpop.permute.xlu0 %3968 }
 0xd33   : > { %4082 = vmatpush.bf16.msrb.mxu3 %v3969_v53 }
 0xd37   : > { %4083 = vmatpush.bf16.msrb.mxu3 %v3967_v52 }
 0xd39   : > { %v12863_v56 = vpop.permute.xlu1 %3980 }
 0xd3a   : > { %v3993_v10 = vpop.permute.xlu0 %3992 }
 0xd3b   : > { %4084 = vmatpush.bf16.msrb.mxu3 %v3963_v9  ;;  %4111 = vmatpush.bf16.msra.mxu0 %v3993_v10 }
 0xd3f   : > { %4112 = vmatpush.bf16.msra.mxu0 %v3991_v11 }
 0xd42   : > { %v3961_v12 = vpop.permute.xlu0 %3960 }
 0xd43   : > { %4085 = vmatpush.bf16.msrb.mxu3 %v3961_v12  ;;  %4113 = vmatpush.bf16.msra.mxu0 %v3987_v25 }
 0xd47   : > { %4086 = vmatpush.bf16.msrb.mxu3 %v12834_v33  ;;  %4114 = vmatpush.bf16.msra.mxu0 %v3985_v30  ;;  %v8877_v33 = vor.u32 %v9590_v28, %v8876_v58 }
 0xd4a   : > { %v4005_v16 = vpop.permute.xlu0 %4004 }
 0xd4b   : > { %4087 = vmatpush.bf16.msrb.mxu3 %v12824_v20  ;;  %4115 = vmatpush.bf16.msra.mxu0 %v12863_v56  ;;  %v8869_v20 = vor.u32 %v9589_v17, %v8868_v22 }
 0xd4c   : > { %4144 = vmatpush.bf16.msra.mxu2 %v4005_v16 }
 0xd4e   : > { %4088 = vmatmul.bf16.vlgmr.msrb.gmra.mxu3 %v8845_v59 }
 0xd50   : > { %4145 = vmatpush.bf16.msra.mxu2 %v4003_v54 }
 0xd52   : > { %v12867_v47 = vpop.permute.xlu0 %3978 }
 0xd53   : > { %8890 = vmatmul.msk.bf16.vlgmr.msra.gmra.mxu2 %vm3573_vm2, %v8853_v8  ;;  %4116 = vmatpush.bf16.msra.mxu0 %v12867_v47 }
 0xd56   : > { %4117 = vmatmul.bf16.vlgmr.msra.gmra.mxu0 %v8849_v40 }
 0xd5a   : > { %v4326_v0 = vpop.permute.xlu0 %4325 }
 0xd5e   : > { %4093 = vmatmul.bf16.gmra.mxu3 %v8857_v2 }
 0xd63   : > { %8891 = vmatmul.msk.bf16.gmra.mxu2 %vm3573_vm2, %v8865_v6 }
 0xd66   : > { %4122 = vmatmul.bf16.gmra.mxu0 %v8861_v21 }
 0xd6e   : > { %4098 = vmatmul.bf16.gmra.mxu3 %v8869_v20 }
 0xd73   : > { %8892 = vmatmul.msk.bf16.gmra.mxu2 %vm3573_vm2, %v8877_v33 }
 0xd76   : > { %4127 = vmatmul.bf16.gmra.mxu0 %v8873_v44 }
 0xd7e   : > { %4103 = vmatmul.bf16.gmra.mxu3 %v8881_v27  ;;  %v4357_v27 = vmul.u32 43691, %v12309_v5 }
 0xd80   : > { %v4361_v34 = vshll.u32 %v4357_v27, 16 }
 0xd83   : > { %8893 = vmatmul.msk.bf16.gmra.mxu2 %vm3573_vm2, %v8889_v39  ;;  %v4365_v39 = vadd.s32 %v4359_v23, %v4355_v35 }
 0xd85   : > { %vm4367_vm8 = vc.u32 %v4365_v39, %v4361_v34 }
 0xd86   : > { %4132 = vmatmul.bf16.gmra.mxu0 %v8885_v62  ;;  %v12899_v62 = vpop.permute.xlu2 %4282 }
 0xdd1   : > { %v4089_v52 = vpop.f32.mrf.mxu3 }
 0xdd3   : > { %v4118_v46 = vpop.f32.mrf.mxu0 }
 0xdd4   : > { %v4119_v15 = vadd.f32 %v4118_v46, %v4089_v52  ;;  %v4366_v52 = vadd.s32 %v4364_v38, %v4358_v32  ;;  %v4368_v46 = vsel %vm4367_vm8, 1, %v11362_v42 }
 0xdd6   : > { %v4147_v18 = vpop.f32.mrf.mxu2 }
 0xdd7   : > { %v4148_v11 = vadd.f32 %v4147_v18, %v4119_v15  ;;  %v4360_v18 = vshrl.u32 %v4356_v45, 16  ;;  %v4278_v15 = vpop.permute.xlu1 %4277 }
 0xdd9   : > { %v4091_v57 = vpop.f32.mrf.mxu3 }
 0xddb   : > { %v4120_v53 = vpop.f32.mrf.mxu0 }
 0xddc   : > { %v4121_v9 = vadd.f32 %v4120_v53, %v4091_v57  ;;  %v4370_v57 = vadd.s32 %v4368_v46, %v4366_v52  ;;  %v4362_v53 = vshrl.u32 %v4357_v27, 16 }
 0xdde   : > { %v4149_v10 = vpop.f32.mrf.mxu2 }
 0xddf   : > { %v4150_v25 = vadd.f32 %v4149_v10, %v4121_v9  ;;  %v4371_v9 = vadd.s32 %v4370_v57, %v4360_v18  ;;  %v4268_v10 = vpop.permute.xlu2 %4267 }
 0xde1   : > { %v4167_v12 = vpack.c.bf16 %v4150_v25, %v4148_v11  ;;  %v4094_v30 = vpop.f32.mrf.mxu3  ;;  %v4372_v25 = vadd.s32 %v4371_v9, %v4362_v53 }
 0xde3   : > { %8914 = vmatmul.msk.bf16.vlgmr.msrb.gmra.mxu1 %vm4200_vm6, %v4167_v12  ;;  %v4123_v36 = vpop.f32.mrf.mxu0  ;;  %v12902_v12 = vpop.permute.xlu1 %4330  ;;  %v4373_v5 = vshrl.u32 %v4372_v25, 2 }
 0xde4   : > { %v4124_v59 = vadd.f32 %v4123_v36, %v4094_v30  ;;  %v4273_v30 = vpop.permute.xlu0 %4272 }
 0xde6   : > { %v4152_v14 = vpop.f32.mrf.mxu2 }
 0xde7   : > { %v4153_v8 = vadd.f32 %v4152_v14, %v4124_v59  ;;  %v4321_v36 = vpop.permute.xlu2 %4320 }
 0xde9   : > { %v4096_v16 = vpop.f32.mrf.mxu3 }
 0xdeb   : > { %v4125_v3 = vpop.f32.mrf.mxu0 }
 0xdec   : > { %v4126_v60 = vadd.f32 %v4125_v3, %v4096_v16  ;;  %v4374_v16 = vmul.u32 6, %v4373_v5  ;;  %v4316_v3 = vpop.permute.xlu1 %4315  ;;  %v4258_v42 = vpop.permute.xlu0 %4257 }
 0xdee   : > { %v4154_v54 = vpop.f32.mrf.mxu2  ;;  %v4375_v59 = vsub.s32 %v12294_v61, %v4374_v16 }
 0xdef   : > { %v4155_v63 = vadd.f32 %v4154_v54, %v4126_v60 }
 0xdf0   : > { %vm4378_vm9 = vcmp.ne.s32.totalorder %v4375_v59, 0  ;;  %vm4379_vm10 = vcmp.lt.s32.totalorder %v4375_v59, 0 }
 0xdf1   : > { %v4168_v1 = vpack.c.bf16 %v4155_v63, %v4153_v8  ;;  %v4099_v40 = vpop.f32.mrf.mxu3  ;;  %v4306_v8 = vpop.permute.xlu2 %4305  ;;  %v4381_v63 = vadd.s32 6, %v4375_v59  ;;  %vm4380_vm5 = vmand %vm4379_vm10, %vm4378_vm9 }
 0xdf3   : > { %8915 = vmatmul.msk.bf16.gmra.mxu1 %vm4200_vm6, %v4168_v1  ;;  %v4128_v55 = vpop.f32.mrf.mxu0 }
 0xdf4   : > { %v4129_v4 = vadd.f32 %v4128_v55, %v4099_v40  ;;  %v4382_v40 = vsel %vm4380_vm5, %v4381_v63, %v4375_v59 }
 0xdf5   : > { %vm12905_vm11 = vcmp.lt.s32.totalorder %v4382_v40, 4 }
 0xdf6   : > { %v4157_v49 = vpop.f32.mrf.mxu2 }
 0xdf7   : > { %v4158_v19 = vadd.f32 %v4157_v49, %v4129_v4  ;;  %v4263_v49 = vpop.permute.xlu1 %4262 }
 0xdf9   : > { %v4101_v2 = vpop.f32.mrf.mxu3  ;;  %v4253_v53 = vpop.permute.xlu2 %4252 }
 0xdfb   : > { %v4130_v7 = vpop.f32.mrf.mxu0 }
 0xdfc   : > { %v4131_v6 = vadd.f32 %v4130_v7, %v4101_v2  ;;  %v4311_v7 = vpop.permute.xlu0 %4310 }
 0xdfe   : > { %v4159_v24 = vpop.f32.mrf.mxu2 }
 0xdff   : > { %v4160_v21 = vadd.f32 %v4159_v24, %v4131_v6  ;;  %v4248_v23 = vpop.permute.xlu1 %4247 }
 0xe01   : > { %v4169_v26 = vpack.c.bf16 %v4160_v21, %v4158_v19  ;;  %v4104_v29 = vpop.f32.mrf.mxu3 }
 0xe03   : > { %8916 = vmatmul.msk.bf16.gmra.mxu1 %vm4200_vm6, %v4169_v26  ;;  %v4133_v22 = vpop.f32.mrf.mxu0 }
 0xe04   : > { %v4134_v31 = vadd.f32 %v4133_v22, %v4104_v29 }
 0xe06   : > { %v4162_v17 = vpop.f32.mrf.mxu2 }
 0xe07   : > { %v4163_v37 = vadd.f32 %v4162_v17, %v4134_v31 }
 0xe09   : > { %v4106_v20 = vpop.f32.mrf.mxu3 }
 0xe0b   : > { %v4135_v58 = vpop.f32.mrf.mxu0 }
 0xe0c   : > { %v4136_v28 = vadd.f32 %v4135_v58, %v4106_v20 }
 0xe0e   : > { %v4164_v33 = vpop.f32.mrf.mxu2 }
 0xe0f   : > { %v4165_v41 = vadd.f32 %v4164_v33, %v4136_v28 }
 0xe11   : > { %v4170_v44 = vpack.c.bf16 %v4165_v41, %v4163_v37 }
 0xe13   : > { %8917 = vmatmul.msk.bf16.gmra.mxu1 %vm4200_vm6, %v4170_v44 }
 0xe60   : > { %v4225_v11 = vpop.f32.mrf.mxu1 }
 0xe61   : > { %v4285_v25 = vmul.f32 %v4248_v23, %v4225_v11  ;;  %v3946_v23 = vld [vmem:[#allocation42 + $0x30] sm:$0xff] }
 0xe68   : > { %v4227_v14 = vpop.f32.mrf.mxu1 }
 0xe70   : > { %v4230_v60 = vpop.f32.mrf.mxu1 }
 0xe71   : > { %v4287_v54 = vmul.f32 %v4258_v42, %v4230_v60 }
 0xe73   : > { %v4335_v1 = vadd.f32 %v4306_v8, %v4287_v54 }
 0xe75   : > { %v4343_v55 = vmax.f32 %v4335_v1, 0.0 }
 0xe77   : > { %v4388_v24 = vsel %vm12905_vm11, %v4343_v55, 0.0 }
 0xe78   : > { %v4232_v2 = vpop.f32.mrf.mxu1  ;;  %v4396_v26 = vpack.c.bf16 %v4388_v24, %v4388_v24 }
 0xe79   : > { %v4288_v4 = vmul.f32 %v4263_v49, %v4232_v2 }
 0xe7a   : > { %v4412_v20 = vunpack.c.l.b16 %v4396_v26 }
 0xe7b   : > { %v4336_v19 = vadd.f32 %v4311_v7, %v4288_v4 }
 0xe7d   : > { %v4344_v21 = vmax.f32 %v4336_v19, 0.0 }
 0xe7f   : > { %v4389_v29 = vsel %vm12905_vm11, %v4344_v21, 0.0 }
 0xe80   : > { %v4397_v22 = vpack.c.bf16 %v4389_v29, %v4389_v29  ;;  %v4235_v17 = vpop.f32.mrf.mxu1 }
 0xe81   : > { %v4289_v31 = vmul.f32 %v4268_v10, %v4235_v17  ;;  %v4286_v10 = vmul.f32 %v4253_v53, %v4227_v14  ;;  %v3944_v53 = vld [vmem:[#allocation42 + $0x20] sm:$0xff] }
 0xe82   : > { %v4413_v58 = vunpack.c.l.b16 %v4397_v22 }
 0xe83   : > { %v4337_v28 = vadd.f32 %v4316_v3, %v4289_v31  ;;  %v4296_v3 = vpop.permute.xlu0 %4295 }
 0xe84   : > { %v4419_v33 = vpack.c.b16 %v4413_v58, %v4412_v20  ;;  %v4333_v42 = vadd.f32 %v4296_v3, %v4285_v25  ;;  %v3913_v25 = vld [vmem:[#allocation36 + $0x28] sm:$0xff]  ;;  %v3920_v3 = vld [vmem:[#allocation37 + $0x20] sm:$0xff] }
 0xe85   : > { %v4345_v37 = vmax.f32 %v4337_v28, 0.0 }
 0xe86   : > { %4424 = vrot.lane.b32.xlu1 %v4419_v33, %s11370_s7  ;;  %v4341_v14 = vmax.f32 %v4333_v42, 0.0  ;;  %v3934_v42 = vld [vmem:[#allocation40 + $0x10] sm:$0xff] }
 0xe87   : > { %v4390_v45 = vsel %vm12905_vm11, %v4345_v37, 0.0 }
 0xe88   : > { %v4237_v41 = vpop.f32.mrf.mxu1  ;;  %v4398_v34 = vpack.c.bf16 %v4390_v45, %v4390_v45  ;;  %v4386_v55 = vsel %vm12905_vm11, %v4341_v14, 0.0  ;;  %v3915_v45 = vld [vmem:[#allocation36 + $0x38] sm:$0xff] }
 0xe89   : > { %v4290_v44 = vmul.f32 %v4273_v30, %v4237_v41  ;;  %v4301_v30 = vpop.permute.xlu1 %4300  ;;  %v4394_v4 = vpack.c.bf16 %v4386_v55, %v4386_v55  ;;  %v3938_v41 = vld [vmem:[#allocation40 + $0x30] sm:$0xff]  ;;  %v3911_v14 = vld [vmem:[#allocation36 + $0x18] sm:$0xff] }
 0xe8a   : > { %v4414_v46 = vunpack.c.l.b16 %v4398_v34  ;;  %v4334_v16 = vadd.f32 %v4301_v30, %v4286_v10  ;;  %v3922_v34 = vld [vmem:[#allocation37 + $0x30] sm:$0xff]  ;;  %v3921_v30 = vld [vmem:[#allocation37 + $0x28] sm:$0xff] }
 0xe8b   : > { %v4338_v35 = vadd.f32 %v4321_v36, %v4290_v44  ;;  %v4410_v7 = vunpack.c.l.b16 %v4394_v4  ;;  %v3939_v44 = vld [vmem:[#allocation40 + $0x38] sm:$0xff]  ;;  %v3918_v55 = vld [vmem:[#allocation37 + $0x10] sm:$0xff] }
 0xe8c   : > { %v8922_v4 = vld [vmem:[#allocation34 + $0x14] sm:$0xf0] }
 0xe8d   : > { %v4346_v27 = vmax.f32 %v4338_v35, 0.0 }
 0xe8f   : > { %v4391_v39 = vsel %vm12905_vm11, %v4346_v27, 0.0  ;;  %v3914_v27 = vld [vmem:[#allocation36 + $0x30] sm:$0xff] }
 0xe90   : > { %v4399_v32 = vpack.c.bf16 %v4391_v39, %v4391_v39  ;;  %v4240_v38 = vpop.f32.mrf.mxu1 }
 0xe91   : > { %v4291_v52 = vmul.f32 %v4278_v15, %v4240_v38  ;;  %v3923_v38 = vld [vmem:[#allocation37 + $0x38] sm:$0xff] }
 0xe92   : > { %v4415_v18 = vunpack.c.l.b16 %v4399_v32  ;;  %v3947_v32 = vld [vmem:[#allocation42 + $0x38] sm:$0xff] }
 0xe93   : > { %v4339_v57 = vadd.f32 %v4326_v0, %v4291_v52  ;;  %v4342_v0 = vmax.f32 %v4334_v16, 0.0  ;;  %v3937_v52 = vld [vmem:[#allocation40 + $0x28] sm:$0xff] }
 0xe94   : > { %v4420_v9 = vpack.c.b16 %v4415_v18, %v4414_v46  ;;  %v3936_v18 = vld [vmem:[#allocation40 + $0x20] sm:$0xff] }
 0xe95   : > { %v4347_v5 = vmax.f32 %v4339_v57, 0.0  ;;  %v4387_v1 = vsel %vm12905_vm11, %v4342_v0, 0.0  ;;  %v3912_v57 = vld [vmem:[#allocation36 + $0x20] sm:$0xff] }
 0xe96   : > { %4426 = vrot.lane.b32.xlu0 %v4420_v9, %s11370_s7  ;;  %v4395_v49 = vpack.c.bf16 %v4387_v1, %v4387_v1 }
 0xe97   : > { %v4392_v15 = vsel %vm12905_vm11, %v4347_v5, 0.0  ;;  %v3945_v5 = vld [vmem:[#allocation42 + $0x28] sm:$0xff] }
 0xe98   : > { %v4242_v36 = vpop.f32.mrf.mxu1  ;;  %v4400_v8 = vpack.c.bf16 %v4392_v15, %v4392_v15  ;;  %v3910_v15 = vld [vmem:[#allocation36 + $0x10] sm:$0xff] }
 0xe99   : > { %v4292_v59 = vmul.f32 %v12899_v62, %v4242_v36 }
 0xe9a   : > { %v4416_v40 = vunpack.c.l.b16 %v4400_v8  ;;  %v3935_v8 = vld [vmem:[#allocation40 + $0x18] sm:$0xff] }
 0xe9b   : > { %v4340_v60 = vadd.f32 %v12902_v12, %v4292_v59  ;;  %v4411_v12 = vunpack.c.l.b16 %v4395_v49  ;;  %v3932_v49 = vld [vmem:[#allocation40] sm:$0xff] }
 0xe9d   : > { %v4348_v54 = vmax.f32 %v4340_v60, 0.0  ;;  %v4418_v24 = vpack.c.b16 %v4411_v12, %v4410_v7 }
 0xe9f   : > { %v4393_v11 = vsel %vm12905_vm11, %v4348_v54, 0.0 }
 0xea0   : > { %v4401_v63 = vpack.c.bf16 %v4393_v11, %v4393_v11  ;;  %v3943_v11 = vld [vmem:[#allocation42 + $0x18] sm:$0xff] }
 0xea2   : > { %v4417_v62 = vunpack.c.l.b16 %v4401_v63 }
 0xea4   : > { %v4421_v2 = vpack.c.b16 %v4417_v62, %v4416_v40  ;;  %v3942_v62 = vld [vmem:[#allocation42 + $0x10] sm:$0xff] }
 0xea6   : > { %4428 = vrot.lane.b32.xlu2 %v4421_v2, %s11370_s7  ;;  %v9594_v2 = vld [vmem:[#allocation34 + $0x4] sm:$0xf] }
 0xeae   : > { %4422 = vrot.lane.b32.xlu2 %v4418_v24, %s11370_s7  ;;  %v8925_v24 = vor.u32 %v9594_v2, %v8922_v4  ;;  %v9611_v2 = vld [vmem:[#allocation34 + $0x88] sm:$0xf0] }
 0xef8   : > { %v4425_v19 = vpop.permute.xlu1 %4424 }
 0xef9   : > { %v4434_v21 = vsel %vm4430_vm12, 0, %v4425_v19  ;;  %v3919_v19 = vld [vmem:[#allocation37 + $0x18] sm:$0xff] }
 0xefa   : > { %v12933_v26 = vsel %vm4439_vm14, %v4434_v21, 0  ;;  %v3933_v21 = vld [vmem:[#allocation40 + $0x8] sm:$0xff] }
 0xefb   : > { %4478 = vrot.lane.b32.xlu2 %v12933_v26, %s11371_s17 }
 0xf00   : > { %v4429_v29 = vpop.permute.xlu2 %4428 }
 0xf01   : > { %v4438_v22 = vsel %vm4430_vm12, 0, %v4429_v29  ;;  %v3909_v29 = vld [vmem:[#allocation36 + $0x8] sm:$0xff] }
 0xf02   : > { %v12939_v17 = vsel %vm4439_vm14, %v4438_v22, 0 }
 0xf03   : > { %4482 = vrot.lane.b32.xlu0 %v12939_v17, %s11371_s17 }
 0xf08   : > { %v4427_v31 = vpop.permute.xlu0 %4426  ;;  %v4423_v20 = vpop.permute.xlu2 %4422 }
 0xf09   : > { %v4436_v58 = vsel %vm4430_vm12, 0, %v4427_v31  ;;  %v4432_v28 = vsel %vm4430_vm12, 0, %v4423_v20  ;;  %v3908_v20 = vld [vmem:[#allocation36] sm:$0xff] }
 0xf0a   : > { %v12946_v33 = vsel %vm4439_vm14, %v4436_v58, 0  ;;  %v12949_v37 = vsel %vm4439_vm14, %v4432_v28, 0  ;;  %v3940_v58 = vld [vmem:[#allocation42] sm:$0xff]  ;;  %v9599_v28 = vld [vmem:[#allocation34 + $0x2c] sm:$0xf] }
 0xf0b   : > { %4480 = vrot.lane.b32.xlu1 %v12946_v33, %s11371_s17  ;;  %4476 = vrot.lane.b32.xlu0 %v12949_v37, %s11371_s17 }
 0xf0c   : > { %4468 = vrot.lane.b32.xlu2 %v12946_v33, %s11360_s10 }
 0xf13   : > { %4470 = vrot.lane.b32.xlu1 %v12939_v17, %s11360_s10  ;;  %4466 = vrot.lane.b32.xlu0 %v12933_v26, %s11360_s10 }
 0xf14   : > { %4458 = vrot.lane.b32.xlu2 %v12939_v17, %s11361_s8 }
 0xf1b   : > { %4464 = vrot.lane.b32.xlu1 %v12949_v37, %s11360_s10  ;;  %4456 = vrot.lane.b32.xlu0 %v12946_v33, %s11361_s8 }
 0xf1c   : > { %4506 = vrot.lane.b32.xlu2 %v12939_v17, %s11372_s4 }
 0xf23   : > { %4454 = vrot.lane.b32.xlu1 %v12933_v26, %s11361_s8  ;;  %4452 = vrot.lane.b32.xlu0 %v12949_v37, %s11361_s8 }
 0xf24   : > { %4502 = vrot.lane.b32.xlu2 %v12933_v26, %s11372_s4 }
 0xf2b   : > { %4504 = vrot.lane.b32.xlu1 %v12946_v33, %s11372_s4  ;;  %4500 = vrot.lane.b32.xlu0 %v12949_v37, %s11372_s4 }
 0xf2c   : > { %4492 = vrot.lane.b32.xlu2 %v12946_v33, %s11373_s3 }
 0xf33   : > { %4494 = vrot.lane.b32.xlu1 %v12939_v17, %s11373_s3  ;;  %4490 = vrot.lane.b32.xlu0 %v12933_v26, %s11373_s3 }
 0xf34   : > { %4530 = vrot.lane.b32.xlu2 %v12939_v17, %s11374_s5 }
 0xf3b   : > { %4488 = vrot.lane.b32.xlu1 %v12949_v37, %s11373_s3  ;;  %4528 = vrot.lane.b32.xlu0 %v12946_v33, %s11374_s5 }
 0xf3c   : > { %4524 = vrot.lane.b32.xlu2 %v12949_v37, %s11374_s5 }
 0xf43   : > { %4526 = vrot.lane.b32.xlu1 %v12933_v26, %s11374_s5  ;;  %4542 = vrot.lane.b32.xlu0 %v12939_v17, %s11375_s19 }
 0xf44   : > { %4540 = vrot.lane.b32.xlu2 %v12946_v33, %s11375_s19 }
 0xf4b   : > { %4518 = vrot.lane.b32.xlu1 %v12939_v17, %s11367_s11  ;;  %4516 = vrot.lane.b32.xlu0 %v12946_v33, %s11367_s11 }
 0xf4c   : > { %4514 = vrot.lane.b32.xlu2 %v12933_v26, %s11367_s11 }
 0xf53   : > { %4538 = vrot.lane.b32.xlu1 %v12933_v26, %s11375_s19  ;;  %4536 = vrot.lane.b32.xlu0 %v12949_v37, %s11375_s19 }
 0xf54   : > { %4926 = vperm.xlu2 %10098, %v3938_v41   ;;  %v8942_v41 = vld [vmem:[#allocation34 + $0x3c] sm:$0xf0] }
 0xf55   : > { %v4479_v35 = vpop.permute.xlu2 %4478 }
 0xf5b   : > { %4512 = vrot.lane.b32.xlu1 %v12949_v37, %s11367_s11  ;;  %4931 = vperm.xlu0 %10096, %v3939_v44  }
 0xf5c   : > { %5027 = vperm.xlu2 %10098, %v3915_v45   ;;  %v8945_v45 = vor.u32 %v9599_v28, %v8942_v41  ;;  %v8956_v28 = vld [vmem:[#allocation34 + $0x38] sm:$0xf]  ;;  %v9603_v41 = vld [vmem:[#allocation34 + $0x48] sm:$0xf0] }
 0xf63   : > { %5022 = vperm.xlu1 %10097, %v3914_v27   ;;  %4974 = vperm.xlu0 %10096, %v3946_v23   ;;  %v3917_v27 = vld [vmem:[#allocation37 + $0x8] sm:$0xff] }
 0xf64   : > { %5070 = vperm.xlu2 %10098, %v3922_v34   ;;  %v9604_v34 = vld [vmem:[#allocation34 + $0x54] sm:$0xf] }
 0xf66   : > { %v4469_v39 = vpop.permute.xlu2 %4468 }
 0xf6b   : > { %4979 = vperm.xlu1 %10097, %v3947_v32   ;;  %5075 = vperm.xlu0 %10096, %v3923_v38   ;;  %v8928_v32 = vld [vmem:[#allocation34 + $0x8] sm:$0xf]  ;;  %v9597_v38 = vld [vmem:[#allocation34 + $0x18] sm:$0xf0] }
 0xf6c   : > { %4921 = vperm.xlu2 %10098, %v3937_v52  }
 0xf6e   : > { %v4459_v46 = vpop.permute.xlu2 %4458 }
 0xf6f   : > { %4661 = vmatpush.bf16.msra.mxu3 %v4459_v46 }
 0xf73   : > { %4916 = vperm.xlu1 %10097, %v3936_v18   ;;  %5012 = vperm.xlu0 %10096, %v3912_v57   ;;  %v8929_v18 = vor.u32 %v9597_v38, %v8928_v32  ;;  %v9601_v57 = vld [vmem:[#allocation34 + $0x38] sm:$0xf0] }
 0xf74   : > { %4964 = vperm.xlu2 %10098, %v3944_v53  }
 0xf75   : > { %v4483_v9 = vpop.permute.xlu0 %4482 }
 0xf76   : > { %v4507_v10 = vpop.permute.xlu2 %4506  ;;  %4690 = vmatpush.bf16.msrb.mxu2 %v4483_v9 }
 0xf77   : > { %4719 = vmatpush.bf16.msrb.mxu0 %v4507_v10 }
 0xf7b   : > { %5017 = vperm.xlu1 %10097, %v3913_v25   ;;  %4969 = vperm.xlu0 %10096, %v3945_v5   ;;  %v9609_v5 = vld [vmem:[#allocation34 + $0x7c] sm:$0xf] }
 0xf7c   : > { %5065 = vperm.xlu2 %10098, %v3921_v30   ;;  %v8982_v30 = vld [vmem:[#allocation34 + $0x8c] sm:$0xf0] }
 0xf7d   : > { %v4477_v36 = vpop.permute.xlu0 %4476  ;;  %v4481_v16 = vpop.permute.xlu1 %4480 }
 0xf7e   : > { %v4503_v59 = vpop.permute.xlu2 %4502  ;;  %4691 = vmatpush.bf16.msrb.mxu2 %v4481_v16  ;;  %v9602_v16 = vld [vmem:[#allocation34 + $0x40] sm:$0xf0] }
 0xf82   : > { %4692 = vmatpush.bf16.msrb.mxu2 %v4479_v35  ;;  %v9596_v35 = vld [vmem:[#allocation34 + $0x10] sm:$0xf0] }
 0xf83   : > { %5060 = vperm.xlu1 %10097, %v3920_v3   ;;  %4906 = vperm.xlu0 %10096, %v3934_v42   ;;  %v8985_v42 = vor.u32 %v9609_v5, %v8982_v30 }
 0xf84   : > { %5002 = vperm.xlu2 %10098, %v3910_v15  }
 0xf85   : > { %v4467_v60 = vpop.permute.xlu0 %4466  ;;  %v4471_v0 = vpop.permute.xlu1 %4470 }
 0xf86   : > { %v13011_v54 = vpop.permute.xlu2 %4492  ;;  %4693 = vmatpush.bf16.msrb.mxu2 %v4477_v36  ;;  %v8948_v36 = vld [vmem:[#allocation34 + $0x30] sm:$0xf] }
 0xf87   : > { %v8949_v15 = vor.u32 %v9602_v16, %v8948_v36 }
 0xf8a   : > { %4694 = vmatpush.bf16.msrb.mxu2 %v4471_v0  ;;  %v9606_v0 = vld [vmem:[#allocation34 + $0x60] sm:$0xf0] }
 0xf8b   : > { %4911 = vperm.xlu1 %10097, %v3935_v8   ;;  %5007 = vperm.xlu0 %10096, %v3911_v14   ;;  %v9595_v14 = vld [vmem:[#allocation34 + $0xc] sm:$0xf] }
 0xf8c   : > { %4959 = vperm.xlu2 %10098, %v3943_v11   ;;  %v8930_v11 = vld [vmem:[#allocation34 + $0x1c] sm:$0xf0] }
 0xf8d   : > { %v4457_v63 = vpop.permute.xlu0 %4456  ;;  %v4465_v1 = vpop.permute.xlu1 %4464 }
 0xf8e   : > { %v4531_v40 = vpop.permute.xlu2 %4530  ;;  %4662 = vmatpush.bf16.msra.mxu3 %v4457_v63  ;;  %4695 = vmatpush.bf16.msrb.mxu2 %v4469_v39  ;;  %v8962_v39 = vld [vmem:[#allocation34 + $0x64] sm:$0xf0] }
 0xf8f   : > { %4748 = vmatpush.bf16.msra.mxu1 %v4531_v40  ;;  %v8965_v46 = vor.u32 %v9604_v34, %v8962_v39  ;;  %v8968_v40 = vld [vmem:[#allocation34 + $0x58] sm:$0xf] }
 0xf92   : > { %4696 = vmatpush.bf16.msrb.mxu2 %v4467_v60  ;;  %v8960_v60 = vld [vmem:[#allocation34 + $0x50] sm:$0xf] }
 0xf93   : > { %4954 = vperm.xlu1 %10097, %v3942_v62   ;;  %5050 = vperm.xlu0 %10096, %v3918_v55   ;;  %v8961_v8 = vor.u32 %v9606_v0, %v8960_v60  ;;  %v9607_v62 = vld [vmem:[#allocation34 + $0x68] sm:$0xf0] }
 0xf94   : > { %4896 = vperm.xlu2 %10098, %v3932_v49   ;;  %v8969_v55 = vor.u32 %v9607_v62, %v8968_v40  ;;  %v8980_v49 = vld [vmem:[#allocation34 + $0x78] sm:$0xf] }
 0xf95   : > { %v4453_v12 = vpop.permute.xlu0 %4452  ;;  %v4455_v7 = vpop.permute.xlu1 %4454  ;;  %v8981_v4 = vor.u32 %v9611_v2, %v8980_v49 }
 0xf96   : > { %4663 = vmatpush.bf16.msra.mxu3 %v4455_v7  ;;  %4697 = vmatpush.bf16.msrb.mxu2 %v4465_v1  ;;  %v8933_v1 = vor.u32 %v9595_v14, %v8930_v11  ;;  %v8950_v7 = vld [vmem:[#allocation34 + $0x44] sm:$0xf0] }
 0xf99   : > { %4698 = vmatmul.bf16.vlgmr.msrb.gmra.mxu2 %v8925_v24 }
 0xf9a   : > { %4815 = vmatpush.bf16.msra.mxu2 %v12873_v13  ;;  %4664 = vmatpush.bf16.msra.mxu3 %v4453_v12  ;;  %v3916_v13 = vld [vmem:[#allocation37] sm:$0xff]  ;;  %v9600_v12 = vld [vmem:[#allocation34 + $0x34] sm:$0xf] }
 0xf9b   : > { %5055 = vperm.xlu1 %10097, %v3919_v19   ;;  %4901 = vperm.xlu0 %10096, %v3933_v21   ;;  %v8953_v24 = vor.u32 %v9600_v12, %v8950_v7  ;;  %v8988_v19 = vld [vmem:[#allocation34 + $0x80] sm:$0xf]  ;;  %v9612_v21 = vld [vmem:[#allocation34 + $0x90] sm:$0xf0] }
 0xf9c   : > { %4997 = vperm.xlu2 %10098, %v3909_v29   ;;  %v8989_v29 = vor.u32 %v9612_v21, %v8988_v19  ;;  %v9614_v19 = vld [vmem:[#allocation39] sm:$0xff]  ;;  %v9615_v21 = vld [vmem:[#allocation39 + $0x8] sm:$0xff] }
 0xf9d   : > { %v4501_v22 = vpop.permute.xlu0 %4500  ;;  %v4505_v31 = vpop.permute.xlu1 %4504 }
 0xf9e   : > { %4816 = vmatpush.bf16.msra.mxu2 %v12878_v48  ;;  %4665 = vmatpush.bf16.msra.mxu3 %v12939_v17  ;;  %v8920_v17 = vld [vmem:[#allocation34] sm:$0xf] }
 0xf9f   : > { %4720 = vmatpush.bf16.msrb.mxu0 %v4505_v31  ;;  %v9598_v31 = vld [vmem:[#allocation34 + $0x20] sm:$0xf0] }
 0xfa2   : > { %4817 = vmatpush.bf16.msra.mxu2 %v12881_v50  ;;  %4666 = vmatpush.bf16.msra.mxu3 %v12946_v33  ;;  %v3941_v50 = vld [vmem:[#allocation42 + $0x8] sm:$0xff]  ;;  %v8921_v33 = vor.u32 %v9596_v35, %v8920_v17  ;;  %v8976_v35 = vld [vmem:[#allocation34 + $0x60] sm:$0xf] }
 0xfa3   : > { %4721 = vmatpush.bf16.msrb.mxu0 %v4503_v59  ;;  %4992 = vperm.xlu1 %10097, %v3908_v20  }
 0xfa4   : > { %4944 = vperm.xlu0 %10096, %v3940_v58   ;;  %5040 = vperm.xlu2 %10098, %v3916_v13   ;;  %v9605_v58 = vld [vmem:[#allocation34 + $0x5c] sm:$0xf]  ;;  %v8970_v13 = vld [vmem:[#allocation34 + $0x6c] sm:$0xf0] }
 0xfa5   : > { %v4491_v48 = vpop.permute.xlu0 %4490  ;;  %v4495_v44 = vpop.permute.xlu1 %4494 }
 0xfa6   : > { %4818 = vmatpush.bf16.msra.mxu2 %v12884_v43  ;;  %4667 = vmatpush.bf16.msra.mxu3 %v12933_v26  ;;  %v4525_v26 = vpop.permute.xlu2 %4524 }
 0xfa7   : > { %4722 = vmatpush.bf16.msrb.mxu0 %v4501_v22  ;;  %v8936_v22 = vld [vmem:[#allocation34 + $0x10] sm:$0xf] }
 0xfa8   : > { %v8937_v20 = vor.u32 %v9598_v31, %v8936_v22  ;;  %v9616_v22 = vld [vmem:[#allocation39 + $0x10] sm:$0xff] }
 0xfa9   : > { %4703 = vmatmul.bf16.gmra.mxu2 %v8945_v45  ;;  %v8990_v45 = vld [vmem:[#allocation34 + $0x94] sm:$0xf0] }
 0xfaa   : > { %4819 = vmatpush.bf16.msra.mxu2 %v12887_v51  ;;  %4668 = vmatpush.bf16.msra.mxu3 %v12949_v37  ;;  %v8940_v37 = vld [vmem:[#allocation34 + $0x28] sm:$0xf] }
 0xfab   : > { %4723 = vmatpush.bf16.msrb.mxu0 %v4495_v44  ;;  %4949 = vperm.xlu1 %10097, %v3941_v50   ;;  %v8941_v53 = vor.u32 %v9601_v57, %v8940_v37  ;;  %v9610_v44 = vld [vmem:[#allocation34 + $0x84] sm:$0xf]  ;;  %v9608_v50 = vld [vmem:[#allocation34 + $0x70] sm:$0xf0] }
 0xfac   : > { %5045 = vperm.xlu0 %10096, %v3917_v27   ;;  %v8993_v17 = vor.u32 %v9610_v44, %v8990_v45  ;;  %v8996_v27 = vld [vmem:[#allocation34 + $0x88] sm:$0xf] }
 0xfad   : > { %v4529_v43 = vpop.permute.xlu0 %4528  ;;  %4669 = vmatmul.bf16.vlgmr.msra.gmra.mxu3 %v8921_v33  ;;  %v4489_v23 = vpop.permute.xlu1 %4488  ;;  %v9613_v33 = vld [vmem:[#allocation34 + $0x98] sm:$0xf0] }
 0xfae   : > { %4749 = vmatpush.bf16.msra.mxu1 %v4529_v43  ;;  %v4541_v9 = vpop.permute.xlu2 %4540  ;;  %v8997_v43 = vor.u32 %v9613_v33, %v8996_v27 }
 0xfaf   : > { %4724 = vmatpush.bf16.msrb.mxu0 %v13011_v54 }
 0xfb3   : > { %4725 = vmatpush.bf16.msrb.mxu0 %v4491_v48  ;;  %v8957_v48 = vor.u32 %v9603_v41, %v8956_v28 }
 0xfb5   : > { %v4543_v51 = vpop.permute.xlu0 %4542  ;;  %v4527_v52 = vpop.permute.xlu1 %4526 }
 0xfb6   : > { %4750 = vmatpush.bf16.msra.mxu1 %v4527_v52  ;;  %4781 = vmatpush.bf16.msrb.mxu3 %v4543_v51  ;;  %v4515_v59 = vpop.permute.xlu2 %4514 }
 0xfb7   : > { %4726 = vmatpush.bf16.msrb.mxu0 %v4489_v23 }
 0xfb9   : > { %4708 = vmatmul.bf16.gmra.mxu2 %v8965_v46 }
 0xfba   : > { %4727 = vmatmul.bf16.vlgmr.msrb.gmra.mxu0 %v8929_v18  ;;  %4751 = vmatpush.bf16.msra.mxu1 %v4525_v26 }
 0xfbb   : > { %4782 = vmatpush.bf16.msrb.mxu3 %v4541_v9 }
 0xfbd   : > { %4674 = vmatmul.bf16.gmra.mxu3 %v8941_v53  ;;  %v4519_v10 = vpop.permute.xlu1 %4518  ;;  %v4517_v25 = vpop.permute.xlu0 %4516 }
 0xfbe   : > { %4752 = vmatpush.bf16.msra.mxu1 %v4519_v10 }
 0xfc2   : > { %4753 = vmatpush.bf16.msra.mxu1 %v4517_v25 }
 0xfc5   : > { %v4539_v3 = vpop.permute.xlu1 %4538  ;;  %v4537_v54 = vpop.permute.xlu0 %4536 }
 0xfc6   : > { %4754 = vmatpush.bf16.msra.mxu1 %v4515_v59  ;;  %4783 = vmatpush.bf16.msrb.mxu3 %v4539_v3 }
 0xfc9   : > { %4713 = vmatmul.bf16.gmra.mxu2 %v8985_v42 }
 0xfca   : > { %4732 = vmatmul.bf16.gmra.mxu0 %v8949_v15  ;;  %4784 = vmatpush.bf16.msrb.mxu3 %v4537_v54 }
 0xfcd   : > { %4679 = vmatmul.bf16.gmra.mxu3 %v8961_v8  ;;  %v4513_v63 = vpop.permute.xlu1 %4512 }
 0xfce   : > { %4755 = vmatpush.bf16.msra.mxu1 %v4513_v63 }
 0xfd1   : > { %4756 = vmatmul.bf16.vlgmr.msra.gmra.mxu1 %v8933_v1 }
 0xfd9   : > { %9002 = vmatmul.msk.bf16.vlgmr.msra.gmra.mxu2 %vm4200_vm6, %v12867_v47  ;;  %v8973_v47 = vor.u32 %v9605_v58, %v8970_v13  ;;  %v13068_v58 = vpop.permute.xlu1 %5022  ;;  %v9617_v13 = vld [vmem:[#allocation39 + $0x18] sm:$0xff] }
 0xfda   : > { %4737 = vmatmul.bf16.gmra.mxu0 %v8969_v55 }
 0xfdd   : > { %4684 = vmatmul.bf16.gmra.mxu3 %v8981_v4 }
 0xfe1   : > { %4761 = vmatmul.bf16.gmra.mxu1 %v8953_v24  ;;  %v13075_v41 = vpop.permute.xlu1 %4979 }
 0xfe2   : > { %14495 = vst [vmem:[#allocation116_spill] sm:$0xff] %v13075_v41 }
 0xfe9   : > { %9003 = vmatmul.msk.bf16.gmra.mxu2 %vm4200_vm6, %v12863_v56  ;;  %v8977_v56 = vor.u32 %v9608_v50, %v8976_v35  ;;  %v13081_v45 = vpop.permute.xlu1 %4916  ;;  %vm8111_vm6 = vcmask 1024  }
 0xfea   : > { %4742 = vmatmul.bf16.gmra.mxu0 %v8989_v29  ;;  %v13061_v29 = vpop.permute.xlu2 %4926 }
 0xfed   : > { %8998 = vmatmul.msk.bf16.vlgmr.msrb.gmra.mxu3 %vm4648_vm15, %v8937_v20  ;;  %v13066_v20 = vpop.permute.xlu0 %4931 }
 0xff1   : > { %4766 = vmatmul.bf16.gmra.mxu1 %v8973_v47  ;;  %v13085_v50 = vpop.permute.xlu1 %5017 }
 0xff2   : > { %v13064_v31 = vpop.permute.xlu2 %5027 }
 0xff5   : > { %v13072_v28 = vpop.permute.xlu0 %4974 }
 0xff9   : > { %v13091_v33 = vpop.permute.xlu1 %5060 }
 0xffa   : > { %v13070_v47 = vpop.permute.xlu2 %5070 }
 0xffd   : > { %8999 = vmatmul.msk.bf16.gmra.mxu3 %vm4648_vm15, %v8957_v48  ;;  %v13079_v44 = vpop.permute.xlu0 %5075 }
0x1001   : > { %4771 = vmatmul.bf16.gmra.mxu1 %v8993_v17 }
0x1002   : > { %v13077_v48 = vpop.permute.xlu2 %4921 }
0x1005   : > { %v5013_v35 = vpop.permute.xlu0 %5012 }
0x100a   : > { %v13083_v17 = vpop.permute.xlu2 %4964 }
0x100d   : > { %9000 = vmatmul.msk.bf16.gmra.mxu3 %vm4648_vm15, %v8977_v56  ;;  %v13089_v27 = vpop.permute.xlu0 %4969 }
0x1012   : > { %v13087_v56 = vpop.permute.xlu2 %5065 }
0x101c   : > { %v4699_v23 = vpop.f32.mrf.mxu2 }
0x101d   : > { %9001 = vmatmul.msk.bf16.gmra.mxu3 %vm4648_vm15, %v8997_v43  ;;  %v5003_v43 = vpop.permute.xlu2 %5002 }
0x1024   : > { %v13031_v26 = vpop.f32.mrf.mxu2 }
0x102c   : > { %v4704_v34 = vpop.f32.mrf.mxu2 }
0x1030   : > { %v4670_v39 = vpop.f32.mrf.mxu3 }
0x1031   : > { %v4700_v32 = vadd.f32 %v4699_v23, %v4670_v39  ;;  %v4907_v23 = vpop.permute.xlu0 %4906  ;;  %v4960_v39 = vpop.permute.xlu2 %4959 }
0x1034   : > { %v13033_v38 = vpop.f32.mrf.mxu2 }
0x1037   : > { %v4728_v51 = vpop.f32.mrf.mxu0 }
0x1038   : > { %v4729_v52 = vadd.f32 %v4728_v51, %v4700_v32  ;;  %v13035_v46 = vpop.f32.mrf.mxu3 }
0x1039   : > { %v5008_v32 = vpop.permute.xlu0 %5007 }
0x103c   : > { %v4709_v18 = vpop.f32.mrf.mxu2 }
0x103f   : > { %v13037_v37 = vpop.f32.mrf.mxu0 }
0x1040   : > { %v4675_v57 = vpop.f32.mrf.mxu3 }
0x1041   : > { %v4705_v53 = vadd.f32 %v4704_v34, %v4675_v57  ;;  %v4912_v34 = vpop.permute.xlu1 %4911 }
0x1044   : > { %v13039_v9 = vpop.f32.mrf.mxu2 }
0x1047   : > { %v4733_v10 = vpop.f32.mrf.mxu0 }
0x1048   : > { %v13041_v25 = vadd.f32 %v4733_v10, %v4705_v53  ;;  %v13043_v5 = vpop.f32.mrf.mxu3 }
0x1049   : > { %v4955_v51 = vpop.permute.xlu1 %4954 }
0x104c   : > { %v4714_v30 = vpop.f32.mrf.mxu2 }
0x104e   : > { %v4757_v16 = vpop.f32.mrf.mxu1 }
0x104f   : > { %v13045_v36 = vpop.f32.mrf.mxu0  ;;  %v4758_v59 = vadd.f32 %v4757_v16, %v4729_v52  ;;  %v4897_v52 = vpop.permute.xlu2 %4896 }
0x1050   : > { %v4680_v3 = vpop.f32.mrf.mxu3 }
0x1051   : > { %v4710_v42 = vadd.f32 %v4709_v18, %v4680_v3  ;;  %v5051_v18 = vpop.permute.xlu0 %5050  ;;  %v5056_v53 = vpop.permute.xlu1 %5055 }
0x1054   : > { %v13047_v15 = vpop.f32.mrf.mxu2 }
0x1056   : > { %v13093_v57 = vpop.f32.mrf.mxu1 }
0x1057   : > { %v4738_v60 = vpop.f32.mrf.mxu0 }
0x1058   : > { %v13049_v0 = vadd.f32 %v4738_v60, %v4710_v42  ;;  %v13051_v54 = vpop.f32.mrf.mxu3 }
0x1059   : > { %v13099_v16 = vpop.permute.xlu0 %4901  ;;  %v4993_v42 = vpop.permute.xlu1 %4992 }
0x105c   : > { %v4821_v8 = vpop.f32.mrf.mxu2 }
0x105e   : > { %v4762_v3 = vpop.f32.mrf.mxu1 }
0x105f   : > { %v13053_v14 = vpop.f32.mrf.mxu0 }
0x1060   : > { %v4685_v11 = vpop.f32.mrf.mxu3 }
0x1061   : > { %v4715_v63 = vadd.f32 %v4714_v30, %v4685_v11  ;;  %v13097_v30 = vpop.permute.xlu2 %4997 }
0x1064   : > { %v4823_v1 = vpop.f32.mrf.mxu2 }
0x1065   : > { %v4831_v24 = vpack.c.bf16 %v4823_v1, %v4821_v8 }
0x1067   : > { %v4743_v40 = vpop.f32.mrf.mxu0 }
0x1068   : > { %v13055_v62 = vadd.f32 %v4743_v40, %v4715_v63  ;;  %v13057_v55 = vpop.f32.mrf.mxu3  ;;  %v4945_v40 = vpop.permute.xlu0 %4944 }
0x1069   : > { %v5041_v1 = vpop.permute.xlu2 %5040 }
0x106c   : > { %v4826_v49 = vpop.f32.mrf.mxu2 }
0x1070   : > { %v4786_v2 = vpop.f32.mrf.mxu3 }
0x1071   : > { %v4787_v4 = vadd.f32 %v4786_v2, %v4758_v59  ;;  %v13101_v59 = vpop.f32.mrf.mxu0 }
0x1073   : > { %v5030_v8 = vmul.f32 %v4993_v42, %v4787_v4 }
0x1074   : > { %v4828_v12 = vpop.f32.mrf.mxu2 }
0x1075   : > { %v4832_v7 = vpack.c.bf16 %v4828_v12, %v4826_v49  ;;  %v5078_v49 = vadd.f32 %v5041_v1, %v5030_v8 }
0x1077   : > { %4871 = vmatpush.bf16.msra.mxu0 %v4832_v7  ;;  %v4764_v7 = vpop.f32.mrf.mxu1 }
0x1078   : > { %v13095_v10 = vpop.f32.mrf.mxu3 }
0x107b   : > { %4872 = vmatpush.bf16.msra.mxu0 %v4831_v24 }
0x107e   : > { %9020 = vmatmul.msk.bf16.vlgmr.msra.gmra.mxu0 %vm3573_vm2, %v9614_v19 }
0x1080   : > { %v4791_v60 = vpop.f32.mrf.mxu3 }
0x1088   : > { %v4793_v24 = vpop.f32.mrf.mxu3 }
0x108e   : > { %9021 = vmatmul.msk.bf16.gmra.mxu0 %vm3573_vm2, %v9615_v21  ;;  %v4763_v21 = vadd.f32 %v4762_v3, %v13041_v25 }
0x109e   : > { %9022 = vmatmul.msk.bf16.gmra.mxu0 %vm3573_vm2, %v9616_v22  ;;  %v4792_v22 = vadd.f32 %v4791_v60, %v4763_v21 }
0x10a0   : > { %v5032_v42 = vmul.f32 %v5003_v43, %v4792_v22 }
0x10a2   : > { %v5080_v1 = vadd.f32 %v5051_v18, %v5032_v42 }
0x10ae   : > { %9023 = vmatmul.msk.bf16.gmra.mxu0 %vm3573_vm2, %v9617_v13  ;;  %v4707_v13 = vadd.f32 %v13033_v38, %v13043_v5 }
0x10b0   : > { %v4736_v4 = vadd.f32 %v13045_v36, %v4707_v13 }
0x10b2   : > { %v4765_v61 = vadd.f32 %v4764_v7, %v4736_v4  ;;  %v4712_v7 = vadd.f32 %v13039_v9, %v13051_v54 }
0x10fb   : > { %v4874_v11 = vpop.f32.mrf.mxu0 }
0x10fc   : > { %v4934_v63 = vmul.f32 %v4897_v52, %v4874_v11  ;;  %v4767_v52 = vpop.f32.mrf.mxu1 }
0x10fd   : > { %v4768_v25 = vadd.f32 %v4767_v52, %v13049_v0 }
0x10fe   : > { %v4982_v2 = vadd.f32 %v4945_v40, %v4934_v63  ;;  %v4796_v63 = vpop.f32.mrf.mxu3  ;;  %v4794_v40 = vadd.f32 %v4793_v24, %v4765_v61 }
0x10ff   : > { %v4797_v5 = vadd.f32 %v4796_v63, %v4768_v25 }
0x1100   : > { %v13103_v12 = vadd.f32 %v5078_v49, %v4982_v2 }
0x1102   : > { %14496 = vst [vmem:[#allocation117_spill] sm:$0xff] %v13103_v12  ;;  %v5033_v12 = vmul.f32 %v5008_v32, %v4794_v40  ;;  %v5034_v32 = vmul.f32 %v5013_v35, %v4797_v5 }
0x1103   : > { %v13105_v19 = vpop.f32.mrf.mxu0 }
0x1104   : > { %v4769_v21 = vpop.f32.mrf.mxu1  ;;  %v5081_v38 = vadd.f32 %v5056_v53, %v5033_v12  ;;  %v5082_v53 = vadd.f32 %v13091_v33, %v5034_v32  ;;  %v4702_v33 = vadd.f32 %v13031_v26, %v13035_v46 }
0x1106   : > { %v4798_v43 = vpop.f32.mrf.mxu3 }
0x110b   : > { %v4879_v11 = vpop.f32.mrf.mxu0 }
0x110c   : > { %v4936_v8 = vmul.f32 %v4907_v23, %v4879_v11  ;;  %v4772_v12 = vpop.f32.mrf.mxu1 }
0x110e   : > { %v4984_v49 = vadd.f32 %v4955_v51, %v4936_v8  ;;  %v4741_v51 = vadd.f32 %v13053_v14, %v4712_v7  ;;  %v4801_v35 = vpop.f32.mrf.mxu3  ;;  %v4773_v8 = vadd.f32 %v4772_v12, %v13055_v62 }
0x1110   : > { %v5088_v2 = vadd.f32 %v5080_v1, %v4984_v49  ;;  %v4770_v22 = vadd.f32 %v4769_v21, %v4741_v51  ;;  %v4802_v1 = vadd.f32 %v4801_v35, %v4773_v8  ;;  %v4731_v49 = vadd.f32 %v13037_v37, %v4702_v33 }
0x1112   : > { %v5096_v3 = vmax.f32 %v5088_v2, 0.0  ;;  %v4799_v9 = vadd.f32 %v4798_v43, %v4770_v22  ;;  %v5036_v26 = vmul.f32 %v13068_v58, %v4802_v1 }
0x1113   : > { %v4881_v41 = vpop.f32.mrf.mxu0 }
0x1114   : > { %v4937_v60 = vmul.f32 %v4912_v34, %v4881_v41  ;;  %v5104_v23 = vsel %vm12905_vm11, %v5096_v3, 0.0  ;;  %v5035_v52 = vmul.f32 %v13085_v50, %v4799_v9  ;;  %v4717_v50 = vadd.f32 %v13047_v15, %v13057_v55  ;;  %v4774_v25 = vpop.f32.mrf.mxu1 }
0x1115   : > { %v5112_v24 = vpack.c.bf16 %v5104_v23, %v5104_v23  ;;  %v5084_v5 = vadd.f32 %v13070_v47, %v5036_v26  ;;  %v4950_v23 = vpop.permute.xlu1 %4949  ;;  %v5224_v26 = vld [vmem:[#allocation45 + $0x70] sm:$0xff] }
0x1116   : > { %v4985_v36 = vadd.f32 %v4960_v39, %v4937_v60  ;;  %v4746_v3 = vadd.f32 %v13101_v59, %v4717_v50  ;;  %v4935_v59 = vmul.f32 %v13099_v16, %v13105_v19 }
0x1117   : > { %v5128_v13 = vunpack.c.l.b16 %v5112_v24 }
0x1118   : > { %v5089_v61 = vadd.f32 %v5081_v38, %v4985_v36  ;;  %v4775_v21 = vadd.f32 %v4774_v25, %v4746_v3  ;;  %v4983_v32 = vadd.f32 %v4950_v23, %v4935_v59  ;;  %v5223_v3 = vld [vmem:[#allocation45 + $0x68] sm:$0xff] }
0x111a   : > { %v5097_v18 = vmax.f32 %v5089_v61, 0.0 }
0x111b   : > { %v4884_v0 = vpop.f32.mrf.mxu0 }
0x111c   : > { %v5105_v41 = vsel %vm12905_vm11, %v5097_v18, 0.0  ;;  %v4938_v34 = vmul.f32 %v13081_v45, %v4884_v0  ;;  %v14497_v0 = vld [vmem:[#allocation116_spill] sm:$0xff] }
0x111d   : > { %v5113_v39 = vpack.c.bf16 %v5105_v41, %v5105_v41 }
0x111e   : > { %v4986_v54 = vadd.f32 %v13083_v17, %v4938_v34  ;;  %v5083_v17 = vadd.f32 %v13087_v56, %v5035_v52  ;;  %v4803_v56 = vpop.f32.mrf.mxu3 }
0x111f   : > { %v5129_v4 = vunpack.c.l.b16 %v5113_v39 }
0x1120   : > { %v5090_v14 = vadd.f32 %v5082_v53, %v4986_v54  ;;  %v14498_v53 = vld [vmem:[#allocation117_spill] sm:$0xff] }
0x1121   : > { %v5135_v42 = vpack.c.b16 %v5129_v4, %v5128_v13  ;;  %v5094_v9 = vmax.f32 %v14498_v53, 0.0  ;;  %v5216_v53 = vld [vmem:[#allocation45 + $0x30] sm:$0xff] }
0x1122   : > { %v5098_v45 = vmax.f32 %v5090_v14, 0.0 }
0x1123   : > { %v4886_v11 = vpop.f32.mrf.mxu0  ;;  %5140 = vrot.lane.b32.xlu0 %v5135_v42, %s11370_s7  ;;  %v5102_v4 = vsel %vm12905_vm11, %v5094_v9, 0.0 }
0x1124   : > { %v4939_v63 = vmul.f32 %v13077_v48, %v4886_v11  ;;  %v5106_v2 = vsel %vm12905_vm11, %v5098_v45, 0.0  ;;  %v4760_v48 = vadd.f32 %v13093_v57, %v4731_v49  ;;  %v4804_v57 = vadd.f32 %v4803_v56, %v4775_v21  ;;  %v5241_v56 = vld [vmem:[#allocation46 + $0x78] sm:$0xff] }
0x1125   : > { %v5114_v60 = vpack.c.bf16 %v5106_v2, %v5106_v2  ;;  %v5110_v42 = vpack.c.bf16 %v5102_v4, %v5102_v4  ;;  %v5225_v21 = vld [vmem:[#allocation45 + $0x78] sm:$0xff]  ;;  %v5212_v4 = vld [vmem:[#allocation45 + $0x10] sm:$0xff] }
0x1126   : > { %v4987_v40 = vadd.f32 %v13089_v27, %v4939_v63  ;;  %v4789_v37 = vadd.f32 %v13095_v10, %v4760_v48  ;;  %v5037_v51 = vmul.f32 %v13064_v31, %v4804_v57  ;;  %v5240_v48 = vld [vmem:[#allocation46 + $0x70] sm:$0xff]  ;;  %v5222_v57 = vld [vmem:[#allocation45 + $0x60] sm:$0xff] }
0x1127   : > { %v5130_v36 = vunpack.c.l.b16 %v5114_v60  ;;  %v5126_v11 = vunpack.c.l.b16 %v5110_v42 }
0x1128   : > { %v5091_v62 = vadd.f32 %v5083_v17, %v4987_v40  ;;  %v5031_v7 = vmul.f32 %v13097_v30, %v4789_v37  ;;  %v5238_v37 = vld [vmem:[#allocation46 + $0x60] sm:$0xff] }
0x112a   : > { %v5099_v46 = vmax.f32 %v5091_v62, 0.0 }
0x112b   : > { %v4889_v27 = vpop.f32.mrf.mxu0 }
0x112c   : > { %v5107_v15 = vsel %vm12905_vm11, %v5099_v46, 0.0  ;;  %v4940_v55 = vmul.f32 %v13061_v29, %v4889_v27  ;;  %v5046_v29 = vpop.permute.xlu0 %5045  ;;  %v5220_v46 = vld [vmem:[#allocation45 + $0x50] sm:$0xff]  ;;  %v5237_v27 = vld [vmem:[#allocation46 + $0x58] sm:$0xff] }
0x112d   : > { %v5115_v38 = vpack.c.bf16 %v5107_v15, %v5107_v15  ;;  %v5079_v47 = vadd.f32 %v5046_v29, %v5031_v7  ;;  %v5239_v7 = vld [vmem:[#allocation46 + $0x68] sm:$0xff] }
0x112e   : > { %v4988_v58 = vadd.f32 %v13072_v28, %v4940_v55  ;;  %v5085_v28 = vadd.f32 %v13079_v44, %v5037_v51  ;;  %v5234_v55 = vld [vmem:[#allocation46 + $0x40] sm:$0xff]  ;;  %v5235_v51 = vld [vmem:[#allocation46 + $0x48] sm:$0xff] }
0x112f   : > { %v5131_v43 = vunpack.c.l.b16 %v5115_v38  ;;  %v5087_v19 = vadd.f32 %v5079_v47, %v4983_v32  ;;  %v5221_v38 = vld [vmem:[#allocation45 + $0x58] sm:$0xff]  ;;  %v5236_v32 = vld [vmem:[#allocation46 + $0x50] sm:$0xff] }
0x1130   : > { %v5092_v10 = vadd.f32 %v5084_v5, %v4988_v58 }
0x1131   : > { %v5136_v61 = vpack.c.b16 %v5131_v43, %v5130_v36  ;;  %v5095_v34 = vmax.f32 %v5087_v19, 0.0  ;;  %v5217_v36 = vld [vmem:[#allocation45 + $0x38] sm:$0xff]  ;;  %v5218_v43 = vld [vmem:[#allocation45 + $0x40] sm:$0xff]  ;;  %v5232_v19 = vld [vmem:[#allocation46 + $0x30] sm:$0xff] }
0x1132   : > { %v5100_v24 = vmax.f32 %v5092_v10, 0.0 }
0x1133   : > { %v4891_v18 = vpop.f32.mrf.mxu0  ;;  %5142 = vrot.lane.b32.xlu2 %v5136_v61, %s11370_s7  ;;  %v5214_v61 = vld [vmem:[#allocation45 + $0x20] sm:$0xff] }
0x1134   : > { %v4941_v16 = vmul.f32 %v13066_v20, %v4891_v18  ;;  %v5108_v30 = vsel %vm12905_vm11, %v5100_v24, 0.0  ;;  %v5103_v20 = vsel %vm12905_vm11, %v5095_v34, 0.0  ;;  %v9026_v24 = vld [vmem:[%s14499_s18] sm:$0xf] }
0x1135   : > { %v5116_v39 = vpack.c.bf16 %v5108_v30, %v5108_v30  ;;  %v5111_v14 = vpack.c.bf16 %v5103_v20, %v5103_v20  ;;  %v9046_v20 = vld [vmem:[%s14499_s18 + $0x28] sm:$0xf] }
0x1136   : > { %v4989_v22 = vadd.f32 %v14497_v0, %v4941_v16  ;;  %v9625_v16 = vld [vmem:[%s14499_s18 + $0x10] sm:$0xf0]  ;;  %v5219_v0 = vld [vmem:[#allocation45 + $0x48] sm:$0xff] }
0x1137   : > { %v5132_v44 = vunpack.c.l.b16 %v5116_v39  ;;  %v5127_v52 = vunpack.c.l.b16 %v5111_v14  ;;  %v5215_v39 = vld [vmem:[#allocation45 + $0x28] sm:$0xff]  ;;  %v5233_v14 = vld [vmem:[#allocation46 + $0x38] sm:$0xff] }
0x1138   : > { %v5093_v41 = vadd.f32 %v5085_v28, %v4989_v22  ;;  %v5231_v28 = vld [vmem:[#allocation46 + $0x28] sm:$0xff]  ;;  %v9027_v22 = vor.u32 %v9625_v16, %v9026_v24 }
0x1139   : > { %v5134_v8 = vpack.c.b16 %v5127_v52, %v5126_v11 }
0x113a   : > { %v5101_v31 = vmax.f32 %v5093_v41, 0.0 }
0x113c   : > { %v5109_v54 = vsel %vm12905_vm11, %v5101_v31, 0.0  ;;  %v5228_v31 = vld [vmem:[#allocation46 + $0x10] sm:$0xff] }
0x113d   : > { %v5117_v12 = vpack.c.bf16 %v5109_v54, %v5109_v54 }
0x113f   : > { %v5133_v13 = vunpack.c.l.b16 %v5117_v12 }
0x1141   : > { %v5137_v35 = vpack.c.b16 %v5133_v13, %v5132_v44  ;;  %v9630_v44 = vld [vmem:[%s14499_s18 + $0x38] sm:$0xf0]  ;;  %v5211_v13 = vld [vmem:[#allocation45 + $0x8] sm:$0xff] }
0x1143   : > { %5144 = vrot.lane.b32.xlu1 %v5137_v35, %s11370_s7  ;;  %v9047_v35 = vor.u32 %v9630_v44, %v9046_v20  ;;  %v9634_v44 = vld [vmem:[%s14499_s18 + $0x5c] sm:$0xf] }
0x114b   : > { %5138 = vrot.lane.b32.xlu1 %v5134_v8, %s11370_s7  ;;  %v5229_v8 = vld [vmem:[#allocation46 + $0x18] sm:$0xff]  ;;  %s11379_s7 = smov 119  }
0x118d   : > { %v5143_v45 = vpop.permute.xlu2 %5142 }
0x118e   : > { %v5151_v63 = vsel %vm4430_vm12, 0, %v5143_v45  ;;  %v5230_v45 = vld [vmem:[#allocation46 + $0x20] sm:$0xff] }
0x118f   : > { %v13165_v33 = vsel %vm4439_vm14, %v5151_v63, 0 }
0x1190   : > { %5413 = vrot.lane.b32.xlu0 %v13165_v33, %s11361_s8 }
0x1195   : > { %v5141_v6 = vpop.permute.xlu0 %5140 }
0x1196   : > { %v5149_v17 = vsel %vm4430_vm12, 0, %v5141_v6 }
0x1197   : > { %v13171_v1 = vsel %vm4439_vm14, %v5149_v17, 0  ;;  %v9066_v17 = vld [vmem:[%s14499_s18 + $0x50] sm:$0xf] }
0x1198   : > { %5461 = vrot.lane.b32.xlu0 %v13165_v33, %s11372_s4  ;;  %5411 = vrot.lane.b32.xlu1 %v13171_v1, %s11361_s8 }
0x11a0   : > { %5485 = vrot.lane.b32.xlu0 %v13165_v33, %s11374_s5  ;;  %5435 = vrot.lane.b32.xlu1 %v13171_v1, %s11371_s17 }
0x11a8   : > { %5483 = vrot.lane.b32.xlu0 %v13171_v1, %s11374_s5 }
0x11b5   : > { %v5145_v40 = vpop.permute.xlu1 %5144 }
0x11b6   : > { %v5153_v49 = vsel %vm4430_vm12, 0, %v5145_v40  ;;  %v5226_v40 = vld [vmem:[#allocation46] sm:$0xff] }
0x11b7   : > { %v13185_v50 = vsel %vm4439_vm14, %v5153_v49, 0  ;;  %v5213_v49 = vld [vmem:[#allocation45 + $0x18] sm:$0xff] }
0x11b8   : > { %5415 = vrot.lane.b32.xlu2 %v13185_v50, %s11361_s8 }
0x11bd   : > { %v5139_v2 = vpop.permute.xlu1 %5138 }
0x11be   : > { %v5147_v62 = vsel %vm4430_vm12, 0, %v5139_v2 }
0x11bf   : > { %v13191_v25 = vsel %vm4439_vm14, %v5147_v62, 0 }
0x11c0   : > { %5481 = vrot.lane.b32.xlu0 %v13191_v25, %s11374_s5  ;;  %5433 = vrot.lane.b32.xlu1 %v13191_v25, %s11371_s17 }
0x11c1   : > { %5409 = vrot.lane.b32.xlu2 %v13191_v25, %s11361_s8 }
0x11c8   : > { %5439 = vrot.lane.b32.xlu0 %v13185_v50, %s11371_s17  ;;  %5425 = vrot.lane.b32.xlu1 %v13165_v33, %s11360_s10 }
0x11c9   : > { %5437 = vrot.lane.b32.xlu2 %v13165_v33, %s11371_s17 }
0x11d0   : > { %5487 = vrot.lane.b32.xlu0 %v13185_v50, %s11374_s5  ;;  %5463 = vrot.lane.b32.xlu1 %v13185_v50, %s11372_s4 }
0x11d1   : > { %5459 = vrot.lane.b32.xlu2 %v13171_v1, %s11372_s4 }
0x11d8   : > { %5445 = vrot.lane.b32.xlu0 %v13191_v25, %s11373_s3  ;;  %5423 = vrot.lane.b32.xlu1 %v13171_v1, %s11360_s10 }
0x11d9   : > { %5457 = vrot.lane.b32.xlu2 %v13191_v25, %s11372_s4 }
0x11e0   : > { %5475 = vrot.lane.b32.xlu0 %v13185_v50, %s11367_s11  ;;  %5427 = vrot.lane.b32.xlu1 %v13185_v50, %s11360_s10 }
0x11e1   : > { %5449 = vrot.lane.b32.xlu2 %v13165_v33, %s11373_s3 }
0x11e8   : > { %5471 = vrot.lane.b32.xlu0 %v13171_v1, %s11367_s11  ;;  %5421 = vrot.lane.b32.xlu1 %v13191_v25, %s11360_s10 }
0x11e9   : > { %5447 = vrot.lane.b32.xlu2 %v13171_v1, %s11373_s3 }
0x11f0   : > { %5493 = vrot.lane.b32.xlu0 %v13191_v25, %s11375_s19  ;;  %5473 = vrot.lane.b32.xlu1 %v13165_v33, %s11367_s11 }
0x11f1   : > { %5451 = vrot.lane.b32.xlu2 %v13185_v50, %s11373_s3 }
0x11f8   : > { %6237 = vperm.xlu0 %10096, %v5240_v48   ;;  %5495 = vrot.lane.b32.xlu1 %v13171_v1, %s11375_s19  ;;  %v5210_v48 = vld [vmem:[#allocation45] sm:$0xff] }
0x11f9   : > { %5499 = vrot.lane.b32.xlu2 %v13185_v50, %s11375_s19 }
0x1200   : > { %6136 = vperm.xlu0 %10096, %v5223_v3   ;;  %6141 = vperm.xlu1 %10097, %v5224_v26   ;;  %v9086_v26 = vld [vmem:[%s14499_s18 + $0x78] sm:$0xf] }
0x1201   : > { %5497 = vrot.lane.b32.xlu2 %v13165_v33, %s11375_s19 }
0x1202   : > { %v5414_v60 = vpop.permute.xlu0 %5413 }
0x1208   : > { %6121 = vperm.xlu0 %10096, %v5220_v46   ;;  %6242 = vperm.xlu1 %10097, %v5241_v56   ;;  %v9640_v56 = vld [vmem:[%s14499_s18 + $0x88] sm:$0xf0] }
0x1209   : > { %5469 = vrot.lane.b32.xlu2 %v13191_v25, %s11367_s11  ;;  %s11376_s11 = smov 5  }
0x120a   : > { %v13243_v5 = vpop.permute.xlu0 %5461  ;;  %v5412_v59 = vpop.permute.xlu1 %5411 }
0x1210   : > { %6222 = vperm.xlu0 %10096, %v5237_v27   ;;  %6227 = vperm.xlu1 %10097, %v5238_v37   ;;  %v9028_v27 = vld [vmem:[%s14499_s18 + $0x14] sm:$0xf0]  ;;  %v9034_v37 = vld [vmem:[%s14499_s18 + $0x8] sm:$0xf] }
0x1211   : > { %6146 = vperm.xlu2 %10098, %v5225_v21   ;;  %v9626_v21 = vld [vmem:[%s14499_s18 + $0x18] sm:$0xf0] }
0x1212   : > { %v5416_v15 = vpop.permute.xlu2 %5415  ;;  %v5486_v10 = vpop.permute.xlu0 %5485 }
0x1213   : > { %5729 = vmatpush.bf16.msrb.mxu1 %v5416_v15  ;;  %v5436_v29 = vpop.permute.xlu1 %5435  ;;  %v5227_v15 = vld [vmem:[#allocation46 + $0x8] sm:$0xff] }
0x1217   : > { %5730 = vmatpush.bf16.msrb.mxu1 %v5414_v60  ;;  %v9623_v60 = vld [vmem:[%s14499_s18 + $0x4] sm:$0xf] }
0x1218   : > { %6207 = vperm.xlu0 %10096, %v5234_v55   ;;  %6126 = vperm.xlu1 %10097, %v5221_v38   ;;  %v9087_v55 = vor.u32 %v9640_v56, %v9086_v26  ;;  %v9031_v38 = vor.u32 %v9623_v60, %v9028_v27  ;;  %v9646_v26 = vld [vmem:[%s14499_s18 + $0xb8] sm:$0xf0]  ;;  %v9644_v27 = vld [vmem:[%s14499_s18 + $0xac] sm:$0xf] }
0x1219   : > { %6131 = vperm.xlu2 %10098, %v5222_v57  }
0x121a   : > { %v5484_v18 = vpop.permute.xlu0 %5483 }
0x121b   : > { %v5410_v58 = vpop.permute.xlu2 %5409  ;;  %5731 = vmatpush.bf16.msrb.mxu1 %v5412_v59 }
0x121f   : > { %5732 = vmatpush.bf16.msrb.mxu1 %v5410_v58  ;;  %v9624_v58 = vld [vmem:[%s14499_s18 + $0xc] sm:$0xf] }
0x1220   : > { %6106 = vperm.xlu0 %10096, %v5217_v36   ;;  %6111 = vperm.xlu1 %10097, %v5218_v43   ;;  %v9036_v36 = vld [vmem:[%s14499_s18 + $0x1c] sm:$0xf0] }
0x1221   : > { %6232 = vperm.xlu2 %10098, %v5239_v7  }
0x1223   : > { %v5438_v23 = vpop.permute.xlu2 %5437  ;;  %5733 = vmatpush.bf16.msrb.mxu1 %v13185_v50 }
0x1227   : > { %5734 = vmatpush.bf16.msrb.mxu1 %v13165_v33 }
0x1228   : > { %6091 = vperm.xlu0 %10096, %v5214_v61   ;;  %6212 = vperm.xlu1 %10097, %v5235_v51   ;;  %v9645_v61 = vld [vmem:[%s14499_s18 + $0xb0] sm:$0xf0]  ;;  %v9628_v51 = vld [vmem:[%s14499_s18 + $0x2c] sm:$0xf] }
0x1229   : > { %6217 = vperm.xlu2 %10098, %v5236_v32   ;;  %v9048_v32 = vld [vmem:[%s14499_s18 + $0x3c] sm:$0xf0] }
0x122a   : > { %v9051_v16 = vor.u32 %v9628_v51, %v9048_v32  ;;  %v9653_v32 = vld [vmem:[%s14499_s18 + $0xf4] sm:$0xf] }
0x122b   : > { %v5460_v47 = vpop.permute.xlu2 %5459  ;;  %5735 = vmatpush.bf16.msrb.mxu1 %v13171_v1  ;;  %v9635_v1 = vld [vmem:[%s14499_s18 + $0x60] sm:$0xf0] }
0x122c   : > { %v9067_v50 = vor.u32 %v9635_v1, %v9066_v17 }
0x122f   : > { %5736 = vmatpush.bf16.msrb.mxu1 %v13191_v25 }
0x1230   : > { %6192 = vperm.xlu0 %10096, %v5231_v28   ;;  %6197 = vperm.xlu1 %10097, %v5232_v19   ;;  %v9629_v19 = vld [vmem:[%s14499_s18 + $0x34] sm:$0xf] }
0x1231   : > { %6116 = vperm.xlu2 %10098, %v5219_v0   ;;  %v9056_v0 = vld [vmem:[%s14499_s18 + $0x44] sm:$0xf0] }
0x1232   : > { %v5482_v30 = vpop.permute.xlu0 %5481  ;;  %5737 = vmatmul.bf16.vlgmr.msrb.gmra.mxu1 %v9027_v22  ;;  %v5434_v41 = vpop.permute.xlu1 %5433  ;;  %v9059_v22 = vor.u32 %v9629_v19, %v9056_v0 }
0x1233   : > { %v5458_v34 = vpop.permute.xlu2 %5457 }
0x1238   : > { %6177 = vperm.xlu0 %10096, %v5228_v31   ;;  %6096 = vperm.xlu1 %10097, %v5215_v39   ;;  %v9068_v31 = vld [vmem:[%s14499_s18 + $0x64] sm:$0xf0]  ;;  %v9074_v39 = vld [vmem:[%s14499_s18 + $0x58] sm:$0xf] }
0x1239   : > { %6101 = vperm.xlu2 %10098, %v5216_v53   ;;  %v9636_v53 = vld [vmem:[%s14499_s18 + $0x68] sm:$0xf0] }
0x123a   : > { %v5440_v9 = vpop.permute.xlu0 %5439  ;;  %v5426_v54 = vpop.permute.xlu1 %5425  ;;  %v9075_v20 = vor.u32 %v9636_v53, %v9074_v39  ;;  %v9658_v39 = vld [vmem:[%s14499_s18 + $0x11c] sm:$0xf]  ;;  %v9168_v53 = vld [vmem:[%s14499_s18 + $0x12c] sm:$0xf0] }
0x123b   : > { %v13251_v12 = vpop.permute.xlu2 %5449  ;;  %5778 = vmatpush.bf16.msrb.mxu2 %v5440_v9 }
0x123f   : > { %5779 = vmatpush.bf16.msrb.mxu2 %v5438_v23  ;;  %v9106_v23 = vld [vmem:[%s14499_s18 + $0xa0] sm:$0xf] }
0x1240   : > { %6076 = vperm.xlu0 %10096, %v5211_v13   ;;  %6081 = vperm.xlu1 %10097, %v5212_v4   ;;  %v9107_v24 = vor.u32 %v9645_v61, %v9106_v23  ;;  %v9076_v13 = vld [vmem:[%s14499_s18 + $0x6c] sm:$0xf0]  ;;  %v9649_v23 = vld [vmem:[%s14499_s18 + $0xd4] sm:$0xf]  ;;  %v9136_v61 = vld [vmem:[%s14499_s18 + $0xe4] sm:$0xf0] }
0x1241   : > { %6202 = vperm.xlu2 %10098, %v5233_v14   ;;  %v9079_v4 = vor.u32 %v9634_v44, %v9076_v13  ;;  %v9146_v14 = vld [vmem:[%s14499_s18 + $0xf0] sm:$0xf]  ;;  %v9139_v51 = vor.u32 %v9649_v23, %v9136_v61  ;;  %v9661_v44 = vld [vmem:[%s14499_s18 + $0x130] sm:$0xf0]  ;;  %v9171_v13 = vor.u32 %v9658_v39, %v9168_v53 }
0x1242   : > { %v5488_v42 = vpop.permute.xlu0 %5487  ;;  %5742 = vmatmul.bf16.gmra.mxu1 %v9047_v35  ;;  %v5464_v52 = vpop.permute.xlu1 %5463  ;;  %v9655_v35 = vld [vmem:[%s14499_s18 + $0x100] sm:$0xf0] }
0x1243   : > { %v13255_v11 = vpop.permute.xlu2 %5447  ;;  %5780 = vmatpush.bf16.msrb.mxu2 %v5436_v29  ;;  %5827 = vmatpush.bf16.msra.mxu3 %v5464_v52  ;;  %v9054_v29 = vld [vmem:[%s14499_s18 + $0x30] sm:$0xf] }
0x1244   : > { %5876 = vmatpush.bf16.msrb.mxu0 %v5488_v42  ;;  %v9638_v42 = vld [vmem:[%s14499_s18 + $0x7c] sm:$0xf]  ;;  %v9088_v52 = vld [vmem:[%s14499_s18 + $0x8c] sm:$0xf0] }
0x1245   : > { %v9091_v17 = vor.u32 %v9638_v42, %v9088_v52  ;;  %v9659_v52 = vld [vmem:[%s14499_s18 + $0x124] sm:$0xf] }
0x1247   : > { %5781 = vmatpush.bf16.msrb.mxu2 %v5434_v41  ;;  %5828 = vmatpush.bf16.msra.mxu3 %v13243_v5  ;;  %v9035_v5 = vor.u32 %v9626_v21, %v9034_v37  ;;  %v9650_v41 = vld [vmem:[%s14499_s18 + $0xd8] sm:$0xf0]  ;;  %v9116_v37 = vld [vmem:[%s14499_s18 + $0xbc] sm:$0xf0] }
0x1248   : > { %5877 = vmatpush.bf16.msrb.mxu0 %v5486_v10  ;;  %6182 = vperm.xlu1 %10097, %v5229_v8   ;;  %v9039_v10 = vor.u32 %v9624_v58, %v9036_v36  ;;  %v9094_v8 = vld [vmem:[%s14499_s18 + $0x80] sm:$0xf]  ;;  %v9119_v21 = vor.u32 %v9644_v27, %v9116_v37 }
0x1249   : > { %6187 = vperm.xlu2 %10098, %v5230_v45   ;;  %v9641_v45 = vld [vmem:[%s14499_s18 + $0x90] sm:$0xf0] }
0x124a   : > { %v13258_v63 = vpop.permute.xlu0 %5445  ;;  %v5424_v33 = vpop.permute.xlu1 %5423  ;;  %v9095_v1 = vor.u32 %v9641_v45, %v9094_v8  ;;  %v9176_v8 = vld [vmem:[%s14499_s18 + $0x134] sm:$0xf0] }
0x124b   : > { %v13260_v6 = vpop.permute.xlu2 %5451  ;;  %5829 = vmatpush.bf16.msra.mxu3 %v5460_v47  ;;  %v9179_v45 = vor.u32 %v9659_v52, %v9176_v8 }
0x124c   : > { %5878 = vmatpush.bf16.msrb.mxu0 %v5484_v18  ;;  %v9631_v18 = vld [vmem:[%s14499_s18 + $0x40] sm:$0xf0] }
0x124d   : > { %v9055_v28 = vor.u32 %v9631_v18, %v9054_v29  ;;  %v9148_v29 = vld [vmem:[%s14499_s18 + $0x104] sm:$0xf0]  ;;  %v9062_v18 = vld [vmem:[%s14499_s18 + $0x38] sm:$0xf] }
0x124f   : > { %5830 = vmatpush.bf16.msra.mxu3 %v5458_v34  ;;  %v9633_v34 = vld [vmem:[%s14499_s18 + $0x54] sm:$0xf] }
0x1250   : > { %5879 = vmatpush.bf16.msrb.mxu0 %v5482_v30  ;;  %6167 = vperm.xlu1 %10097, %v5226_v40   ;;  %v9126_v30 = vld [vmem:[%s14499_s18 + $0xc8] sm:$0xf]  ;;  %v9639_v40 = vld [vmem:[%s14499_s18 + $0x84] sm:$0xf] }
0x1251   : > { %6086 = vperm.xlu2 %10098, %v5213_v49   ;;  %v9127_v9 = vor.u32 %v9650_v41, %v9126_v30  ;;  %v9096_v49 = vld [vmem:[%s14499_s18 + $0x94] sm:$0xf0]  ;;  %v9654_v41 = vld [vmem:[%s14499_s18 + $0xfc] sm:$0xf] }
0x1252   : > { %v5476_v2 = vpop.permute.xlu0 %5475  ;;  %5747 = vmatmul.bf16.gmra.mxu1 %v9067_v50  ;;  %v5428_v62 = vpop.permute.xlu1 %5427  ;;  %v9099_v50 = vor.u32 %v9639_v40, %v9096_v49 }
0x1253   : > { %v5500_v25 = vpop.permute.xlu2 %5499  ;;  %5782 = vmatpush.bf16.msrb.mxu2 %v5428_v62  ;;  %5831 = vmatpush.bf16.msra.mxu3 %v13260_v6  ;;  %v9660_v62 = vld [vmem:[%s14499_s18 + $0x128] sm:$0xf0] }
0x1254   : > { %5880 = vmatpush.bf16.msrb.mxu0 %v5476_v2  ;;  %5929 = vmatpush.bf16.msra.mxu1 %v5500_v25  ;;  %v9166_v2 = vld [vmem:[%s14499_s18 + $0x118] sm:$0xf]  ;;  %v9643_v25 = vld [vmem:[%s14499_s18 + $0xa4] sm:$0xf] }
0x1257   : > { %5783 = vmatpush.bf16.msrb.mxu2 %v5426_v54  ;;  %5832 = vmatpush.bf16.msra.mxu3 %v13251_v12  ;;  %v9071_v54 = vor.u32 %v9633_v34, %v9068_v31  ;;  %v9156_v34 = vld [vmem:[%s14499_s18 + $0x10c] sm:$0xf0] }
0x1258   : > { %v9159_v31 = vor.u32 %v9654_v41, %v9156_v34 }
0x1259   : > { %6071 = vperm.xlu2 %10098, %v5210_v48   ;;  %v9108_v48 = vld [vmem:[%s14499_s18 + $0xb4] sm:$0xf0] }
0x125a   : > { %v5422_v3 = vpop.permute.xlu1 %5421  ;;  %v5472_v59 = vpop.permute.xlu0 %5471  ;;  %v9111_v56 = vor.u32 %v9643_v25, %v9108_v48 }
0x125b   : > { %v5498_v46 = vpop.permute.xlu2 %5497  ;;  %5784 = vmatpush.bf16.msrb.mxu2 %v5424_v33  ;;  %5833 = vmatpush.bf16.msra.mxu3 %v13255_v11  ;;  %v9147_v33 = vor.u32 %v9655_v35, %v9146_v14 }
0x125c   : > { %5930 = vmatpush.bf16.msra.mxu1 %v5498_v46  ;;  %v9167_v46 = vor.u32 %v9660_v62, %v9166_v2  ;;  %v9647_v2 = vld [vmem:[%s14499_s18 + $0xc0] sm:$0xf0] }
0x125f   : > { %5785 = vmatpush.bf16.msrb.mxu2 %v5422_v3  ;;  %5834 = vmatpush.bf16.msra.mxu3 %v13258_v63  ;;  %v9114_v3 = vld [vmem:[%s14499_s18 + $0xa8] sm:$0xf] }
0x1260   : > { %v9115_v60 = vor.u32 %v9646_v26, %v9114_v3  ;;  %v5404_v3 = vld [vmem:[#allocation55 + $0x8] sm:$0x7] }
0x1261   : > { %6172 = vperm.xlu2 %10098, %v5227_v15   ;;  %v9648_v15 = vld [vmem:[%s14499_s18 + $0xcc] sm:$0xf]  ;;  %v5987_v26 = vunpack.c.l.b16 %v5404_v3 }
0x1262   : > { %5752 = vmatmul.bf16.gmra.mxu1 %v9087_v55  ;;  %5786 = vmatmul.bf16.vlgmr.msrb.gmra.mxu2 %v9031_v38  ;;  %v5474_v57 = vpop.permute.xlu1 %5473  ;;  %v5494_v47 = vpop.permute.xlu0 %5493  ;;  %v9128_v55 = vld [vmem:[%s14499_s18 + $0xdc] sm:$0xf0]  ;;  %v9042_v38 = vld [vmem:[%s14499_s18 + $0x10] sm:$0xf] }
0x1263   : > { %5881 = vmatpush.bf16.msrb.mxu0 %v5474_v57  ;;  %5835 = vmatmul.bf16.vlgmr.msra.gmra.mxu3 %v9035_v5  ;;  %v5470_v43 = vpop.permute.xlu2 %5469  ;;  %v9627_v5 = vld [vmem:[%s14499_s18 + $0x20] sm:$0xf0]  ;;  %v9134_v57 = vld [vmem:[%s14499_s18 + $0xd0] sm:$0xf]  ;;  %v9131_v58 = vor.u32 %v9648_v15, %v9128_v55 }
0x1264   : > { %v9043_v36 = vor.u32 %v9627_v5, %v9042_v38  ;;  %v9162_v5 = vld [vmem:[%s14499_s18 + $0x100] sm:$0xf] }
0x1267   : > { %5882 = vmatpush.bf16.msrb.mxu0 %v5472_v59  ;;  %v9651_v59 = vld [vmem:[%s14499_s18 + $0xe0] sm:$0xf0] }
0x126a   : > { %v5496_v7 = vpop.permute.xlu1 %5495 }
0x126b   : > { %5883 = vmatpush.bf16.msrb.mxu0 %v5470_v43  ;;  %5931 = vmatpush.bf16.msra.mxu1 %v5496_v7  ;;  %v9135_v7 = vor.u32 %v9651_v59, %v9134_v57  ;;  %v9657_v57 = vld [vmem:[%s14499_s18 + $0x110] sm:$0xf0] }
0x126e   : > { %5884 = vmatmul.bf16.vlgmr.msrb.gmra.mxu0 %v9039_v10 }
0x126f   : > { %5932 = vmatpush.bf16.msra.mxu1 %v5494_v47  ;;  %v9632_v47 = vld [vmem:[%s14499_s18 + $0x48] sm:$0xf0] }
0x1270   : > { %v9063_v19 = vor.u32 %v9632_v47, %v9062_v18  ;;  %v9182_v18 = vld [vmem:[%s14499_s18 + $0x128] sm:$0xf]  ;;  %v9662_v47 = vld [vmem:[%s14499_s18 + $0x138] sm:$0xf0] }
0x1272   : > { %5757 = vmatmul.bf16.gmra.mxu1 %v9107_v24  ;;  %5791 = vmatmul.bf16.gmra.mxu2 %v9051_v16  ;;  %v9154_v24 = vld [vmem:[%s14499_s18 + $0xf8] sm:$0xf]  ;;  %v9656_v16 = vld [vmem:[%s14499_s18 + $0x108] sm:$0xf0] }
0x1273   : > { %5840 = vmatmul.bf16.gmra.mxu3 %v9055_v28  ;;  %v9151_v28 = vor.u32 %v9653_v32, %v9148_v29  ;;  %v13378_v32 = vld [vmem:[#allocation55] sm:$0xff] }
0x127e   : > { %5889 = vmatmul.bf16.gmra.mxu0 %v9059_v22  ;;  %v9155_v22 = vor.u32 %v9656_v16, %v9154_v24  ;;  %v9183_v24 = vor.u32 %v9662_v47, %v9182_v18 }
0x1282   : > { %5762 = vmatmul.bf16.gmra.mxu1 %v9127_v9  ;;  %5796 = vmatmul.bf16.gmra.mxu2 %v9071_v54  ;;  %v9082_v9 = vld [vmem:[%s14499_s18 + $0x60] sm:$0xf]  ;;  %v9637_v54 = vld [vmem:[%s14499_s18 + $0x70] sm:$0xf0] }
0x1283   : > { %5845 = vmatmul.bf16.gmra.mxu3 %v9075_v20  ;;  %v9174_v20 = vld [vmem:[%s14499_s18 + $0x120] sm:$0xf] }
0x1284   : > { %v9175_v35 = vor.u32 %v9661_v44, %v9174_v20 }
0x128e   : > { %5894 = vmatmul.bf16.gmra.mxu0 %v9079_v4  ;;  %v9083_v4 = vor.u32 %v9637_v54, %v9082_v9 }
0x1292   : > { %5767 = vmatmul.bf16.gmra.mxu1 %v9147_v33  ;;  %5801 = vmatmul.bf16.gmra.mxu2 %v9091_v17  ;;  %v9102_v33 = vld [vmem:[%s14499_s18 + $0x88] sm:$0xf]  ;;  %v9642_v17 = vld [vmem:[%s14499_s18 + $0x98] sm:$0xf0] }
0x1293   : > { %5850 = vmatmul.bf16.gmra.mxu3 %v9095_v1  ;;  %v9103_v1 = vor.u32 %v9642_v17, %v9102_v33 }
0x129e   : > { %5899 = vmatmul.bf16.gmra.mxu0 %v9099_v50  ;;  %v9122_v50 = vld [vmem:[%s14499_s18 + $0xb0] sm:$0xf] }
0x129f   : > { %v9123_v62 = vor.u32 %v9647_v2, %v9122_v50 }
0x12a2   : > { %5772 = vmatmul.bf16.gmra.mxu1 %v9167_v46  ;;  %5806 = vmatmul.bf16.gmra.mxu2 %v9111_v56  ;;  %v9142_v46 = vld [vmem:[%s14499_s18 + $0xd8] sm:$0xf]  ;;  %v9652_v56 = vld [vmem:[%s14499_s18 + $0xe8] sm:$0xf0] }
0x12a3   : > { %5855 = vmatmul.bf16.gmra.mxu3 %v9115_v60  ;;  %v5989_v60 = vpack.c.b16 %v5987_v26, %v5987_v26  ;;  %v9143_v37 = vor.u32 %v9652_v56, %v9142_v46 }
0x12a5   : > { %v13363_v27 = vsel %vm6016_vm13, %v5989_v60, 0 }
0x12a6   : > { %6026 = vmatpush.bf16.msra.mxu2 %v13363_v27 }
0x12aa   : > { %6027 = vmatpush.bf16.msra.mxu2 %v13378_v32 }
0x12ae   : > { %5904 = vmatmul.bf16.gmra.mxu0 %v9119_v21 }
0x12af   : > { %v13314_v43 = vpop.f32.mrf.mxu1 }
0x12b2   : > { %5811 = vmatmul.bf16.gmra.mxu2 %v9131_v58  ;;  %9184 = vmatmul.msk.bf16.vlgmr.msra.gmra.mxu1 %vm4648_vm15, %v9043_v36  ;;  %v9163_v58 = vor.u32 %v9657_v57, %v9162_v5 }
0x12b3   : > { %5860 = vmatmul.bf16.gmra.mxu3 %v9135_v7 }
0x12b7   : > { %v13317_v10 = vpop.f32.mrf.mxu1 }
0x12be   : > { %5909 = vmatmul.bf16.gmra.mxu0 %v9139_v51 }
0x12bf   : > { %v13327_v0 = vpop.f32.mrf.mxu1 }
0x12c2   : > { %5816 = vmatmul.bf16.gmra.mxu2 %v9151_v28  ;;  %9185 = vmatmul.msk.bf16.gmra.mxu1 %vm4648_vm15, %v9063_v19 }
0x12c3   : > { %5865 = vmatmul.bf16.gmra.mxu3 %v9155_v22 }
0x12c7   : > { %v13330_v30 = vpop.f32.mrf.mxu1 }
0x12ce   : > { %5914 = vmatmul.bf16.gmra.mxu0 %v9159_v31 }
0x12cf   : > { %v13340_v14 = vpop.f32.mrf.mxu1 }
0x12d2   : > { %5821 = vmatmul.bf16.gmra.mxu2 %v9171_v13  ;;  %9186 = vmatmul.msk.bf16.gmra.mxu1 %vm4648_vm15, %v9083_v4 }
0x12d3   : > { %5870 = vmatmul.bf16.gmra.mxu3 %v9175_v35 }
0x12d7   : > { %v13343_v42 = vpop.f32.mrf.mxu1 }
0x12de   : > { %5919 = vmatmul.bf16.gmra.mxu0 %v9179_v45 }
0x12df   : > { %v13349_v40 = vpop.f32.mrf.mxu1 }
0x12e2   : > { %9187 = vmatmul.msk.bf16.gmra.mxu1 %vm4648_vm15, %v9103_v1 }
0x12e5   : > { %v5787_v15 = vpop.f32.mrf.mxu2 }
0x12e6   : > { %v5836_v38 = vpop.f32.mrf.mxu3  ;;  %v5788_v9 = vadd.f32 %v5787_v15, %v13314_v43 }
0x12e7   : > { %v13352_v49 = vpop.f32.mrf.mxu1 }
0x12e8   : > { %v5837_v44 = vadd.f32 %v5836_v38, %v5788_v9 }
0x12eb   : > { %v5885_v59 = vpop.f32.mrf.mxu0 }
0x12ec   : > { %v5886_v35 = vadd.f32 %v5885_v59, %v5837_v44 }
0x12ed   : > { %v5789_v7 = vpop.f32.mrf.mxu2 }
0x12ee   : > { %v5838_v23 = vpop.f32.mrf.mxu3  ;;  %v5790_v54 = vadd.f32 %v5789_v7, %v13317_v10 }
0x12ef   : > { %v13356_v25 = vpop.f32.mrf.mxu1 }
0x12f0   : > { %v5839_v13 = vadd.f32 %v5838_v23, %v5790_v54 }
0x12f2   : > { %9188 = vmatmul.msk.bf16.gmra.mxu1 %vm4648_vm15, %v9123_v62 }
0x12f3   : > { %v5887_v61 = vpop.f32.mrf.mxu0 }
0x12f4   : > { %v5888_v52 = vadd.f32 %v5887_v61, %v5839_v13 }
0x12f5   : > { %v5792_v29 = vpop.f32.mrf.mxu2 }
0x12f6   : > { %v5841_v16 = vpop.f32.mrf.mxu3  ;;  %v5793_v43 = vadd.f32 %v5792_v29, %v13327_v0 }
0x12f7   : > { %v13359_v48 = vpop.f32.mrf.mxu1 }
0x12f8   : > { %v5842_v26 = vadd.f32 %v5841_v16, %v5793_v43 }
0x12fb   : > { %v5890_v19 = vpop.f32.mrf.mxu0 }
0x12fc   : > { %v5891_v56 = vadd.f32 %v5890_v19, %v5842_v26 }
0x12fd   : > { %v5794_v22 = vpop.f32.mrf.mxu2 }
0x12fe   : > { %v5843_v34 = vpop.f32.mrf.mxu3  ;;  %v5795_v10 = vadd.f32 %v5794_v22, %v13330_v30 }
0x12ff   : > { %v13366_v21 = vpop.f32.mrf.mxu1 }
0x1300   : > { %v5844_v46 = vadd.f32 %v5843_v34, %v5795_v10 }
0x1302   : > { %9189 = vmatmul.msk.bf16.gmra.mxu1 %vm4648_vm15, %v9143_v37 }
0x1303   : > { %v5892_v31 = vpop.f32.mrf.mxu0 }
0x1304   : > { %v5893_v60 = vadd.f32 %v5892_v31, %v5844_v46 }
0x1305   : > { %v5797_v39 = vpop.f32.mrf.mxu2 }
0x1306   : > { %v5846_v20 = vpop.f32.mrf.mxu3  ;;  %v5798_v23 = vadd.f32 %v5797_v39, %v13340_v14 }
0x1307   : > { %v13369_v55 = vpop.f32.mrf.mxu1 }
0x1308   : > { %v5847_v29 = vadd.f32 %v5846_v20, %v5798_v23 }
0x130b   : > { %v5895_v4 = vpop.f32.mrf.mxu0 }
0x130c   : > { %v5896_v47 = vadd.f32 %v5895_v4, %v5847_v29 }
0x130d   : > { %v5799_v17 = vpop.f32.mrf.mxu2 }
0x130e   : > { %v5848_v50 = vpop.f32.mrf.mxu3  ;;  %v5800_v0 = vadd.f32 %v5799_v17, %v13343_v42 }
0x130f   : > { %v13373_v36 = vpop.f32.mrf.mxu1 }
0x1310   : > { %v5849_v18 = vadd.f32 %v5848_v50, %v5800_v0 }
0x1312   : > { %9190 = vmatmul.msk.bf16.gmra.mxu1 %vm4648_vm15, %v9163_v58 }
0x1313   : > { %v5897_v2 = vpop.f32.mrf.mxu0 }
0x1315   : > { %v5802_v3 = vpop.f32.mrf.mxu2 }
0x1316   : > { %v5851_v37 = vpop.f32.mrf.mxu3  ;;  %v5803_v14 = vadd.f32 %v5802_v3, %v13349_v40 }
0x1317   : > { %v13376_v51 = vpop.f32.mrf.mxu1 }
0x1318   : > { %v5852_v44 = vadd.f32 %v5851_v37, %v5803_v14 }
0x131b   : > { %v5900_v57 = vpop.f32.mrf.mxu0 }
0x131c   : > { %v5901_v4 = vadd.f32 %v5900_v57, %v5852_v44 }
0x131d   : > { %v5804_v58 = vpop.f32.mrf.mxu2 }
0x131e   : > { %v5853_v30 = vpop.f32.mrf.mxu3  ;;  %v5805_v42 = vadd.f32 %v5804_v58, %v13352_v49 }
0x131f   : > { %v13383_v28 = vpop.f32.mrf.mxu1 }
0x1320   : > { %v5854_v20 = vadd.f32 %v5853_v30, %v5805_v42 }
0x1322   : > { %9191 = vmatmul.msk.bf16.gmra.mxu1 %vm4648_vm15, %v9183_v24  ;;  %v5898_v24 = vadd.f32 %v5897_v2, %v5849_v18 }
0x1323   : > { %v5902_v61 = vpop.f32.mrf.mxu0 }
0x1325   : > { %v5807_v16 = vpop.f32.mrf.mxu2 }
0x1326   : > { %v5808_v40 = vadd.f32 %v5807_v16, %v13356_v25 }
0x1327   : > { %v13386_v41 = vpop.f32.mrf.mxu1 }
0x132b   : > { %v5905_v9 = vpop.f32.mrf.mxu0 }
0x132d   : > { %v5809_v39 = vpop.f32.mrf.mxu2 }
0x132e   : > { %v5810_v49 = vadd.f32 %v5809_v39, %v13359_v48 }
0x132f   : > { %v5934_v53 = vpop.f32.mrf.mxu1 }
0x1330   : > { %v5935_v45 = vadd.f32 %v5934_v53, %v5886_v35  ;;  %v5856_v53 = vpop.f32.mrf.mxu3  ;;  %v5903_v35 = vadd.f32 %v5902_v61, %v5854_v20 }
0x1331   : > { %v5857_v43 = vadd.f32 %v5856_v53, %v5808_v40 }
0x1333   : > { %v5906_v26 = vadd.f32 %v5905_v9, %v5857_v43 }
0x1337   : > { %v5936_v8 = vpop.f32.mrf.mxu1 }
0x1338   : > { %v5937_v33 = vadd.f32 %v5936_v8, %v5888_v52  ;;  %v5858_v13 = vpop.f32.mrf.mxu3  ;;  %v5907_v52 = vpop.f32.mrf.mxu0 }
0x1339   : > { %v5859_v10 = vadd.f32 %v5858_v13, %v5810_v49 }
0x133a   : > { %v5974_v1 = vpack.c.bf16 %v5937_v33, %v5935_v45 }
0x133b   : > { %v5908_v46 = vadd.f32 %v5907_v52, %v5859_v10 }
0x133c   : > { %9196 = vmatmul.msk.bf16.vlgmr.msra.gmra.mxu2 %vm5991_vm1, %v5974_v1  ;;  %v5812_v1 = vpop.f32.mrf.mxu2 }
0x133d   : > { %v5813_v25 = vadd.f32 %v5812_v1, %v13366_v21 }
0x133f   : > { %v5939_v62 = vpop.f32.mrf.mxu1 }
0x1340   : > { %v5940_v38 = vadd.f32 %v5939_v62, %v5891_v56  ;;  %v5861_v50 = vpop.f32.mrf.mxu3  ;;  %v5910_v62 = vpop.f32.mrf.mxu0 }
0x1344   : > { %v5814_v3 = vpop.f32.mrf.mxu2 }
0x1345   : > { %v5815_v48 = vadd.f32 %v5814_v3, %v13369_v55  ;;  %v13416_v3 = vpop.permute.xlu2 %6146 }
0x1347   : > { %v5941_v15 = vpop.f32.mrf.mxu1 }
0x1348   : > { %v5942_v5 = vadd.f32 %v5941_v15, %v5893_v60  ;;  %v5863_v15 = vpop.f32.mrf.mxu3 }
0x1349   : > { %v5864_v23 = vadd.f32 %v5863_v15, %v5815_v48 }
0x134a   : > { %v5975_v59 = vpack.c.bf16 %v5942_v5, %v5940_v38  ;;  %v5912_v5 = vpop.f32.mrf.mxu0 }
0x134b   : > { %v5913_v61 = vadd.f32 %v5912_v5, %v5864_v23 }
0x134c   : > { %9197 = vmatmul.msk.bf16.gmra.mxu2 %vm5991_vm1, %v5975_v59  ;;  %v5817_v57 = vpop.f32.mrf.mxu2 }
0x134d   : > { %v5818_v21 = vadd.f32 %v5817_v57, %v13373_v36 }
0x134f   : > { %v5944_v7 = vpop.f32.mrf.mxu1 }
0x1350   : > { %v5945_v22 = vadd.f32 %v5944_v7, %v5896_v47  ;;  %v5866_v58 = vpop.f32.mrf.mxu3  ;;  %v5862_v7 = vadd.f32 %v5861_v50, %v5813_v25 }
0x1351   : > { %v5867_v53 = vadd.f32 %v5866_v58, %v5818_v21 }
0x1352   : > { %v5915_v0 = vpop.f32.mrf.mxu0  ;;  %v5911_v30 = vadd.f32 %v5910_v62, %v5862_v7 }
0x1357   : > { %v5946_v19 = vpop.f32.mrf.mxu1 }
0x1358   : > { %v5947_v34 = vadd.f32 %v5946_v19, %v5898_v24  ;;  %v5819_v24 = vpop.f32.mrf.mxu2  ;;  %v5868_v19 = vpop.f32.mrf.mxu3 }
0x1359   : > { %v5820_v55 = vadd.f32 %v5819_v24, %v13376_v51 }
0x135a   : > { %v5976_v31 = vpack.c.bf16 %v5947_v34, %v5945_v22  ;;  %v5917_v22 = vpop.f32.mrf.mxu0 }
0x135b   : > { %v5869_v9 = vadd.f32 %v5868_v19, %v5820_v55 }
0x135c   : > { %9198 = vmatmul.msk.bf16.gmra.mxu2 %vm5991_vm1, %v5976_v31 }
0x135d   : > { %v5918_v14 = vadd.f32 %v5917_v22, %v5869_v9 }
0x135f   : > { %v5949_v54 = vpop.f32.mrf.mxu1 }
0x1360   : > { %v5950_v45 = vadd.f32 %v5949_v54, %v5901_v4  ;;  %v5822_v31 = vpop.f32.mrf.mxu2  ;;  %v5916_v54 = vadd.f32 %v5915_v0, %v5867_v53  ;;  %v5871_v42 = vpop.f32.mrf.mxu3 }
0x1362   : > { %v5920_v13 = vpop.f32.mrf.mxu0 }
0x1367   : > { %v5951_v8 = vpop.f32.mrf.mxu1 }
0x1368   : > { %v5952_v33 = vadd.f32 %v5951_v8, %v5903_v35  ;;  %v5824_v35 = vpop.f32.mrf.mxu2  ;;  %v5823_v8 = vadd.f32 %v5822_v31, %v13383_v28  ;;  %v5873_v51 = vpop.f32.mrf.mxu3 }
0x1369   : > { %v5825_v36 = vadd.f32 %v5824_v35, %v13386_v41  ;;  %v13418_v28 = vpop.permute.xlu1 %6141 }
0x136a   : > { %v5977_v17 = vpack.c.bf16 %v5952_v33, %v5950_v45  ;;  %v5922_v45 = vpop.f32.mrf.mxu0  ;;  %v5872_v33 = vadd.f32 %v5871_v42, %v5823_v8 }
0x136c   : > { %9199 = vmatmul.msk.bf16.gmra.mxu2 %vm5991_vm1, %v5977_v17  ;;  %v5874_v17 = vadd.f32 %v5873_v51, %v5825_v36  ;;  %v5921_v1 = vadd.f32 %v5920_v13, %v5872_v33 }
0x136e   : > { %v5923_v50 = vadd.f32 %v5922_v45, %v5874_v17 }
0x136f   : > { %v5954_v2 = vpop.f32.mrf.mxu1 }
0x1370   : > { %v5955_v60 = vadd.f32 %v5954_v2, %v5906_v26  ;;  %v13422_v26 = vpop.permute.xlu0 %6237 }
0x1377   : > { %v5956_v56 = vpop.f32.mrf.mxu1 }
0x1378   : > { %v5957_v37 = vadd.f32 %v5956_v56, %v5908_v46  ;;  %v6132_v46 = vpop.permute.xlu2 %6131  ;;  %v13424_v56 = vpop.permute.xlu1 %6242 }
0x137a   : > { %v5978_v38 = vpack.c.bf16 %v5957_v37, %v5955_v60  ;;  %v13428_v37 = vpop.permute.xlu0 %6136 }
0x137c   : > { %9200 = vmatmul.msk.bf16.gmra.mxu2 %vm5991_vm1, %v5978_v38 }
0x137f   : > { %v5959_v59 = vpop.f32.mrf.mxu1 }
0x1380   : > { %v5960_v18 = vadd.f32 %v5959_v59, %v5911_v30  ;;  %v13430_v15 = vpop.permute.xlu2 %6232  ;;  %v6228_v5 = vpop.permute.xlu1 %6227 }
0x1382   : > { %v6122_v57 = vpop.permute.xlu0 %6121 }
0x1387   : > { %v5961_v29 = vpop.f32.mrf.mxu1 }
0x1388   : > { %v5962_v47 = vadd.f32 %v5961_v29, %v5913_v61  ;;  %v6218_v25 = vpop.permute.xlu2 %6217  ;;  %v6127_v48 = vpop.permute.xlu1 %6126 }
0x138a   : > { %v5979_v16 = vpack.c.bf16 %v5962_v47, %v5960_v18  ;;  %v6223_v58 = vpop.permute.xlu0 %6222 }
0x138c   : > { %9201 = vmatmul.msk.bf16.gmra.mxu2 %vm5991_vm1, %v5979_v16 }
0x138f   : > { %v5964_v34 = vpop.f32.mrf.mxu1 }
0x1390   : > { %v5965_v44 = vadd.f32 %v5964_v34, %v5916_v54  ;;  %v13432_v23 = vpop.permute.xlu2 %6116  ;;  %v13434_v0 = vpop.permute.xlu1 %6111 }
0x1392   : > { %v13436_v61 = vpop.permute.xlu0 %6207 }
0x1397   : > { %v5966_v39 = vpop.f32.mrf.mxu1 }
0x1398   : > { %v5967_v20 = vadd.f32 %v5966_v39, %v5918_v14  ;;  %v6102_v29 = vpop.permute.xlu2 %6101  ;;  %v13438_v18 = vpop.permute.xlu1 %6212  ;;  %v14500_v14 = vld [vmem:[#allocation115_spill] sm:$0xff] }
0x1399   : > { %v6281_v42 = vand.u32 3, %v14500_v14 }
0x139a   : > { %v5980_v4 = vpack.c.bf16 %v5967_v20, %v5965_v44  ;;  %v6107_v24 = vpop.permute.xlu0 %6106 }
0x139b   : > { %vm13445_vm2 = vcmp.lt.s32.totalorder %v6281_v42, 2 }
0x139c   : > { %9202 = vmatmul.msk.bf16.gmra.mxu2 %vm5991_vm1, %v5980_v4 }
0x139f   : > { %v5969_v52 = vpop.f32.mrf.mxu1 }
0x13a0   : > { %v5970_v40 = vadd.f32 %v5969_v52, %v5921_v1  ;;  %v6203_v16 = vpop.permute.xlu2 %6202  ;;  %v6198_v22 = vpop.permute.xlu1 %6197 }
0x13a2   : > { %v6092_v34 = vpop.permute.xlu0 %6091 }
0x13a7   : > { %v5971_v2 = vpop.f32.mrf.mxu1 }
0x13a8   : > { %v5972_v49 = vadd.f32 %v5971_v2, %v5923_v50  ;;  %v6188_v31 = vpop.permute.xlu2 %6187  ;;  %v6097_v9 = vpop.permute.xlu1 %6096 }
0x13aa   : > { %v5981_v62 = vpack.c.bf16 %v5972_v49, %v5970_v40  ;;  %v6193_v20 = vpop.permute.xlu0 %6192 }
0x13ac   : > { %9203 = vmatmul.msk.bf16.gmra.mxu2 %vm5991_vm1, %v5981_v62 }
0x13b0   : > { %v13451_v45 = vpop.permute.xlu2 %6086  ;;  %v13453_v1 = vpop.permute.xlu1 %6081 }
0x13b8   : > { %v13464_v42 = vpop.permute.xlu1 %6182 }
0x13bf   : > { %v13412_v43 = vpop.f32.mrf.mxu2 }
0x13c7   : > { %v13414_v10 = vpop.f32.mrf.mxu2 }
0x13cf   : > { %v13420_v41 = vpop.f32.mrf.mxu2 }
0x13d7   : > { %v13426_v60 = vpop.f32.mrf.mxu2 }
0x13df   : > { %v6039_v38 = vpop.f32.mrf.mxu2 }
0x13e0   : > { %v6153_v39 = vmul.f32 %v6092_v34, %v6039_v38 }
0x13e2   : > { %v6249_v8 = vadd.f32 %v6188_v31, %v6153_v39 }
0x13e4   : > { %v6265_v2 = vmax.f32 %v6249_v8, 0.0 }
0x13e7   : > { %v6041_v59 = vpop.f32.mrf.mxu2 }
0x13e8   : > { %v6154_v54 = vmul.f32 %v6097_v9, %v6041_v59  ;;  %v13459_v59 = vpop.permute.xlu0 %6177 }
0x13ea   : > { %v6250_v4 = vadd.f32 %v6193_v20, %v6154_v54 }
0x13ec   : > { %v6266_v33 = vmax.f32 %v6250_v4, 0.0 }
0x13ee   : > { %v6297_v38 = vsel %vm13445_vm2, %v6266_v33, 0.0 }
0x13ef   : > { %v6044_v7 = vpop.f32.mrf.mxu2 }
0x13f0   : > { %v6155_v54 = vmul.f32 %v6102_v29, %v6044_v7 }
0x13f2   : > { %v6251_v4 = vadd.f32 %v6198_v22, %v6155_v54 }
0x13f7   : > { %v6046_v30 = vpop.f32.mrf.mxu2 }
0x13f8   : > { %v6156_v31 = vmul.f32 %v6107_v24, %v6046_v30  ;;  %v6077_v24 = vpop.permute.xlu0 %6076 }
0x13f9   : > { %v6150_v8 = vmul.f32 %v6077_v24, %v13414_v10 }
0x13ff   : > { %v13440_v47 = vpop.f32.mrf.mxu2 }
0x1407   : > { %v13442_v19 = vpop.f32.mrf.mxu2 }
0x140f   : > { %v6054_v21 = vpop.f32.mrf.mxu2 }
0x1410   : > { %v6159_v55 = vmul.f32 %v6122_v57, %v6054_v21  ;;  %v6313_v21 = vpack.c.bf16 %v6297_v38, %v6297_v38 }
0x1412   : > { %v6255_v53 = vadd.f32 %v6218_v25, %v6159_v55 }
0x1414   : > { %v6271_v44 = vmax.f32 %v6255_v53, 0.0  ;;  %v6072_v53 = vpop.permute.xlu2 %6071 }
0x1416   : > { %v6302_v36 = vsel %vm13445_vm2, %v6271_v44, 0.0  ;;  %v6252_v44 = vadd.f32 %v6203_v16, %v6156_v31  ;;  %v6149_v16 = vmul.f32 %v6072_v53, %v13412_v43 }
0x1417   : > { %v6056_v13 = vpop.f32.mrf.mxu2  ;;  %v6318_v50 = vpack.c.bf16 %v6302_v36, %v6302_v36 }
0x1418   : > { %v6160_v35 = vmul.f32 %v6127_v48, %v6056_v13  ;;  %v6268_v7 = vmax.f32 %v6252_v44, 0.0  ;;  %v6152_v44 = vmul.f32 %v13451_v45, %v13426_v60 }
0x1419   : > { %v6350_v25 = vunpack.c.l.b16 %v6318_v50 }
0x141a   : > { %v6256_v51 = vadd.f32 %v6223_v58, %v6160_v35  ;;  %v6296_v58 = vsel %vm13445_vm2, %v6265_v2, 0.0  ;;  %v6168_v2 = vpop.permute.xlu1 %6167  ;;  %v6248_v24 = vadd.f32 %v13464_v42, %v6152_v44  ;;  %v9206_v44 = vld [vmem:[%s14503_s23] sm:$0xf] }
0x141b   : > { %v6312_v9 = vpack.c.bf16 %v6296_v58, %v6296_v58  ;;  %v6158_v58 = vmul.f32 %v13432_v23, %v13442_v19 }
0x141c   : > { %v6272_v17 = vmax.f32 %v6256_v51, 0.0  ;;  %v6267_v51 = vmax.f32 %v6251_v4, 0.0  ;;  %v6173_v22 = vpop.permute.xlu2 %6172  ;;  %v6151_v4 = vmul.f32 %v13453_v1, %v13420_v41 }
0x141d   : > { %v6344_v13 = vunpack.c.l.b16 %v6312_v9  ;;  %v6246_v50 = vadd.f32 %v6173_v22, %v6150_v8 }
0x141e   : > { %v6303_v40 = vsel %vm13445_vm2, %v6272_v17, 0.0  ;;  %v6298_v43 = vsel %vm13445_vm2, %v6267_v51, 0.0 }
0x141f   : > { %v6319_v49 = vpack.c.bf16 %v6303_v40, %v6303_v40  ;;  %v6059_v62 = vpop.f32.mrf.mxu2 }
0x1420   : > { %v6161_v57 = vmul.f32 %v6132_v46, %v6059_v62  ;;  %v6345_v46 = vunpack.c.l.b16 %v6313_v21  ;;  %v6245_v62 = vadd.f32 %v6168_v2, %v6149_v16  ;;  %v6264_v16 = vmax.f32 %v6248_v24, 0.0  ;;  %v9694_v24 = vld [vmem:[%s14503_s23 + $0xf8] sm:$0xf0] }
0x1421   : > { %v6351_v48 = vunpack.c.l.b16 %v6319_v49 }
0x1422   : > { %v6257_v34 = vadd.f32 %v6228_v5, %v6161_v57  ;;  %v6358_v35 = vpack.c.b16 %v6345_v46, %v6344_v13  ;;  %v6261_v21 = vmax.f32 %v6245_v62, 0.0  ;;  %v6295_v22 = vsel %vm13445_vm2, %v6264_v16, 0.0 }
0x1423   : > { %v6361_v55 = vpack.c.b16 %v6351_v48, %v6350_v25  ;;  %v6262_v48 = vmax.f32 %v6246_v50, 0.0 }
0x1424   : > { %v6273_v14 = vmax.f32 %v6257_v34, 0.0  ;;  %v6314_v34 = vpack.c.bf16 %v6298_v43, %v6298_v43  ;;  %v6292_v23 = vsel %vm13445_vm2, %v6261_v21, 0.0 }
0x1425   : > { %6374 = vrot.lane.b32.xlu2 %v6361_v55, %s11376_s11  ;;  %v6293_v9 = vsel %vm13445_vm2, %v6262_v48, 0.0  ;;  %v6308_v13 = vpack.c.bf16 %v6292_v23, %v6292_v23 }
0x1426   : > { %v6304_v5 = vsel %vm13445_vm2, %v6273_v14, 0.0  ;;  %v6346_v14 = vunpack.c.l.b16 %v6314_v34 }
0x1427   : > { %v6061_v39 = vpop.f32.mrf.mxu2  ;;  %v6320_v36 = vpack.c.bf16 %v6304_v5, %v6304_v5  ;;  %v6340_v45 = vunpack.c.l.b16 %v6308_v13  ;;  %v9242_v13 = vld [vmem:[%s14503_s23 + $0x48] sm:$0xf] }
0x1428   : > { %v6162_v20 = vmul.f32 %v13428_v37, %v6061_v39 }
0x1429   : > { %v6352_v40 = vunpack.c.l.b16 %v6320_v36 }
0x142a   : > { %v6258_v30 = vadd.f32 %v13430_v15, %v6162_v20  ;;  %v6299_v15 = vsel %vm13445_vm2, %v6268_v7, 0.0  ;;  %v6247_v7 = vadd.f32 %v13459_v59, %v6151_v4 }
0x142b   : > { %v6315_v57 = vpack.c.bf16 %v6299_v15, %v6299_v15 }
0x142c   : > { %v6274_v29 = vmax.f32 %v6258_v30, 0.0  ;;  %v6263_v42 = vmax.f32 %v6247_v7, 0.0 }
0x142d   : > { %6368 = vrot.lane.b32.xlu2 %v6358_v35, %s11376_s11  ;;  %v6347_v31 = vunpack.c.l.b16 %v6315_v57 }
0x142e   : > { %v6305_v37 = vsel %vm13445_vm2, %v6274_v29, 0.0  ;;  %v6294_v59 = vsel %vm13445_vm2, %v6263_v42, 0.0 }
0x142f   : > { %v6321_v33 = vpack.c.bf16 %v6305_v37, %v6305_v37  ;;  %v6064_v17 = vpop.f32.mrf.mxu2  ;;  %v6359_v39 = vpack.c.b16 %v6347_v31, %v6346_v14  ;;  %v6310_v15 = vpack.c.bf16 %v6294_v59, %v6294_v59  ;;  %v9712_v59 = vld [vmem:[%s14503_s23 + $0x188] sm:$0xf0] }
0x1430   : > { %v6163_v10 = vmul.f32 %v13418_v28, %v6064_v17  ;;  %v6157_v28 = vmul.f32 %v13434_v0, %v13440_v47  ;;  %v6309_v47 = vpack.c.bf16 %v6293_v9, %v6293_v9  ;;  %v6311_v17 = vpack.c.bf16 %v6295_v22, %v6295_v22 }
0x1431   : > { %v6353_v49 = vunpack.c.l.b16 %v6321_v33  ;;  %v6342_v2 = vunpack.c.l.b16 %v6310_v15 }
0x1432   : > { %v6259_v38 = vadd.f32 %v13422_v26, %v6163_v10  ;;  %v6254_v26 = vadd.f32 %v13438_v18, %v6158_v58  ;;  %v6253_v19 = vadd.f32 %v13436_v61, %v6157_v28  ;;  %v6341_v30 = vunpack.c.l.b16 %v6309_v47 }
0x1433   : > { %v6362_v25 = vpack.c.b16 %v6353_v49, %v6352_v40  ;;  %v6343_v10 = vunpack.c.l.b16 %v6311_v17  ;;  %v9663_v17 = vld [vmem:[%s14503_s23 + $0x4] sm:$0xf] }
0x1434   : > { %v6275_v55 = vmax.f32 %v6259_v38, 0.0  ;;  %v6270_v20 = vmax.f32 %v6254_v26, 0.0  ;;  %v6269_v61 = vmax.f32 %v6253_v19, 0.0  ;;  %v6356_v36 = vpack.c.b16 %v6341_v30, %v6340_v45 }
0x1435   : > { %6376 = vrot.lane.b32.xlu1 %v6362_v25, %s11376_s11  ;;  %v6357_v40 = vpack.c.b16 %v6343_v10, %v6342_v2 }
0x1436   : > { %v6306_v46 = vsel %vm13445_vm2, %v6275_v55, 0.0  ;;  %v6301_v60 = vsel %vm13445_vm2, %v6270_v20, 0.0  ;;  %v6300_v29 = vsel %vm13445_vm2, %v6269_v61, 0.0  ;;  %v9667_v20 = vld [vmem:[%s14503_s23 + $0x20] sm:$0xf0] }
0x1437   : > { %v6066_v53 = vpop.f32.mrf.mxu2  ;;  %v6317_v41 = vpack.c.bf16 %v6301_v60, %v6301_v60  ;;  %v6316_v51 = vpack.c.bf16 %v6300_v29, %v6300_v29  ;;  %v9278_v61 = vld [vmem:[%s14503_s23 + $0x90] sm:$0xf]  ;;  %v9350_v29 = vld [vmem:[%s14503_s23 + $0x120] sm:$0xf] }
0x1438   : > { %v6164_v54 = vmul.f32 %v13416_v3, %v6066_v53  ;;  %v6322_v3 = vpack.c.bf16 %v6306_v46, %v6306_v46 }
0x1439   : > { %v6349_v37 = vunpack.c.l.b16 %v6317_v41  ;;  %v6348_v33 = vunpack.c.l.b16 %v6316_v51  ;;  %v9703_v41 = vld [vmem:[%s14503_s23 + $0x140] sm:$0xf0] }
0x143a   : > { %v6260_v0 = vadd.f32 %v13424_v56, %v6164_v54  ;;  %v6354_v35 = vunpack.c.l.b16 %v6322_v3  ;;  %v9676_v3 = vld [vmem:[%s14503_s23 + $0x68] sm:$0xf0] }
0x143b   : > { %v6360_v50 = vpack.c.b16 %v6349_v37, %v6348_v33  ;;  %v9243_v4 = vor.u32 %v9676_v3, %v9242_v13  ;;  %v9386_v33 = vld [vmem:[%s14503_s23 + $0x168] sm:$0xf] }
0x143c   : > { %v6276_v18 = vmax.f32 %v6260_v0, 0.0  ;;  %v9387_v15 = vor.u32 %v9712_v59, %v9386_v33  ;;  %v9699_v33 = vld [vmem:[%s14503_s23 + $0x124] sm:$0xf]  ;;  %v9352_v59 = vld [vmem:[%s14503_s23 + $0x144] sm:$0xf0] }
0x143d   : > { %6370 = vrot.lane.b32.xlu1 %v6359_v39, %s11376_s11 }
0x143e   : > { %v6307_v5 = vsel %vm13445_vm2, %v6276_v18, 0.0  ;;  %v9207_v18 = vor.u32 %v9667_v20, %v9206_v44  ;;  %v9458_v44 = vld [vmem:[%s14503_s23 + $0x1f8] sm:$0xf]  ;;  %v9730_v20 = vld [vmem:[%s14503_s23 + $0x218] sm:$0xf0] }
0x143f   : > { %v6323_v56 = vpack.c.bf16 %v6307_v5, %v6307_v5  ;;  %v9685_v5 = vld [vmem:[%s14503_s23 + $0xb0] sm:$0xf0] }
0x1440   : > { %v9279_v30 = vor.u32 %v9685_v5, %v9278_v61  ;;  %v5374_v61 = vld [vmem:[#allocation52 + $0x20] sm:$0xff]  ;;  %v5373_v5 = vld [vmem:[#allocation52 + $0x18] sm:$0xff] }
0x1441   : > { %v6355_v8 = vunpack.c.l.b16 %v6323_v56  ;;  %v9314_v56 = vld [vmem:[%s14503_s23 + $0xd8] sm:$0xf] }
0x1442   : > { %v9315_v60 = vor.u32 %v9694_v24, %v9314_v56  ;;  %v5376_v24 = vld [vmem:[#allocation52 + $0x30] sm:$0xff] }
0x1443   : > { %v6363_v1 = vpack.c.b16 %v6355_v8, %v6354_v35 }
0x1445   : > { %6378 = vrot.lane.b32.xlu0 %v6363_v1, %s11376_s11  ;;  %6364 = vrot.lane.b32.xlu1 %v6356_v36, %s11376_s11  ;;  %v9351_v1 = vor.u32 %v9703_v41, %v9350_v29  ;;  %v5380_v29 = vld [vmem:[#allocation52 + $0x50] sm:$0xff] }
0x1446   : > { %v5372_v41 = vld [vmem:[#allocation52 + $0x10] sm:$0xff] }
0x144d   : > { %6372 = vrot.lane.b32.xlu0 %v6360_v50, %s11376_s11  ;;  %v9208_v50 = vld [vmem:[%s14503_s23 + $0x24] sm:$0xf0] }
0x144e   : > { %v9211_v2 = vor.u32 %v9663_v17, %v9208_v50  ;;  %v9355_v50 = vor.u32 %v9699_v33, %v9352_v59  ;;  %v5398_v59 = vld [vmem:[#allocation54 + $0x60] sm:$0xff] }
0x1455   : > { %6366 = vrot.lane.b32.xlu0 %v6357_v40, %s11376_s11 }
0x147f   : > { %v6375_v49 = vpop.permute.xlu2 %6374 }
0x1480   : > { %v6392_v62 = vsel %vm6380_vm3, 0, %v6375_v49 }
0x1481   : > { %v13519_v43 = vsel %vm3483_vm0, %v6392_v62, 0 }
0x1482   : > { %6431 = vrot.lane.b32.xlu1 %v13519_v43, %s11361_s8 }
0x1487   : > { %v6369_v38 = vpop.permute.xlu2 %6368 }
0x1488   : > { %v6386_v57 = vsel %vm6380_vm3, 0, %v6369_v38 }
0x1489   : > { %v13525_v25 = vsel %vm3483_vm0, %v6386_v57, 0  ;;  %v9672_v57 = vld [vmem:[%s14503_s23 + $0x4c] sm:$0xf] }
0x148a   : > { %6425 = vrot.lane.b32.xlu1 %v13525_v25, %s11361_s8 }
0x14a7   : > { %v6377_v48 = vpop.permute.xlu1 %6376 }
0x14a8   : > { %v6394_v58 = vsel %vm6380_vm3, 0, %v6377_v48  ;;  %v9244_v48 = vld [vmem:[%s14503_s23 + $0x6c] sm:$0xf0] }
0x14a9   : > { %v13531_v34 = vsel %vm3483_vm0, %v6394_v58, 0  ;;  %v9422_v58 = vld [vmem:[%s14503_s23 + $0x1b0] sm:$0xf] }
0x14aa   : > { %6433 = vrot.lane.b32.xlu0 %v13531_v34, %s11361_s8 }
0x14af   : > { %v6371_v21 = vpop.permute.xlu1 %6370 }
0x14b0   : > { %v6388_v28 = vsel %vm6380_vm3, 0, %v6371_v21 }
0x14b1   : > { %v13537_v55 = vsel %vm3483_vm0, %v6388_v28, 0 }
0x14b2   : > { %6427 = vrot.lane.b32.xlu0 %v13537_v55, %s11361_s8 }
0x14b7   : > { %v6379_v31 = vpop.permute.xlu0 %6378  ;;  %v6365_v53 = vpop.permute.xlu1 %6364 }
0x14b8   : > { %v6396_v9 = vsel %vm6380_vm3, 0, %v6379_v31  ;;  %v6382_v26 = vsel %vm6380_vm3, 0, %v6365_v53  ;;  %v9247_v31 = vor.u32 %v9672_v57, %v9244_v48  ;;  %v9664_v57 = vld [vmem:[%s14503_s23 + $0xc] sm:$0xf]  ;;  %v9216_v48 = vld [vmem:[%s14503_s23 + $0x2c] sm:$0xf0] }
0x14b9   : > { %v13544_v54 = vsel %vm3483_vm0, %v6396_v9, 0  ;;  %v13547_v14 = vsel %vm3483_vm0, %v6382_v26, 0 }
0x14ba   : > { %6981 = vmatpush.bf16.msrb.mxu3 %v13544_v54  ;;  %6435 = vrot.lane.b32.xlu2 %v13544_v54, %s11361_s8 }
0x14bb   : > { %6531 = vrot.lane.b32.xlu1 %v13544_v54, %s11371_s17  ;;  %6421 = vrot.lane.b32.xlu0 %v13547_v14, %s11361_s8 }
0x14be   : > { %6982 = vmatpush.bf16.msrb.mxu3 %v13531_v34 }
0x14bf   : > { %v6373_v23 = vpop.permute.xlu0 %6372 }
0x14c0   : > { %v6390_v19 = vsel %vm6380_vm3, 0, %v6373_v23 }
0x14c1   : > { %v13559_v46 = vsel %vm3483_vm0, %v6390_v19, 0  ;;  %v5371_v19 = vld [vmem:[#allocation52 + $0x8] sm:$0xff] }
0x14c2   : > { %6429 = vrot.lane.b32.xlu2 %v13559_v46, %s11361_s8  ;;  %6983 = vmatpush.bf16.msrb.mxu3 %v13519_v43 }
0x14c3   : > { %6525 = vrot.lane.b32.xlu1 %v13559_v46, %s11371_s17  ;;  %6527 = vrot.lane.b32.xlu0 %v13519_v43, %s11371_s17 }
0x14c6   : > { %6984 = vmatpush.bf16.msrb.mxu3 %v13559_v46 }
0x14c7   : > { %v6367_v0 = vpop.permute.xlu0 %6366 }
0x14c8   : > { %v6384_v47 = vsel %vm6380_vm3, 0, %v6367_v0  ;;  %v9681_v0 = vld [vmem:[%s14503_s23 + $0x94] sm:$0xf] }
0x14c9   : > { %v13571_v39 = vsel %vm3483_vm0, %v6384_v47, 0  ;;  %v9280_v47 = vld [vmem:[%s14503_s23 + $0xb4] sm:$0xf0]  ;;  %vm8016_vm0 = vcmask 48128  }
0x14ca   : > { %6423 = vrot.lane.b32.xlu2 %v13571_v39, %s11361_s8  ;;  %6985 = vmatpush.bf16.msrb.mxu3 %v13537_v55  ;;  %s11378_s8 = smov 124   ;;  %v9283_v13 = vor.u32 %v9681_v0, %v9280_v47  ;;  %v9708_v0 = vld [vmem:[%s14503_s23 + $0x16c] sm:$0xf]  ;;  %v9388_v47 = vld [vmem:[%s14503_s23 + $0x18c] sm:$0xf0] }
0x14cb   : > { %6519 = vrot.lane.b32.xlu1 %v13571_v39, %s11371_s17  ;;  %6521 = vrot.lane.b32.xlu0 %v13525_v25, %s11371_s17 }
0x14ce   : > { %6986 = vmatpush.bf16.msrb.mxu3 %v13525_v25 }
0x14d2   : > { %6529 = vrot.lane.b32.xlu2 %v13531_v34, %s11371_s17  ;;  %6987 = vmatpush.bf16.msrb.mxu3 %v13571_v39 }
0x14d3   : > { %6505 = vrot.lane.b32.xlu1 %v13531_v34, %s11377_s2  ;;  %6481 = vrot.lane.b32.xlu0 %v13531_v34, %s11378_s8 }
0x14d6   : > { %6988 = vmatpush.bf16.msrb.mxu3 %v13547_v14 }
0x14d9   : > { %6989 = vmatmul.bf16.vlgmr.msrb.gmra.mxu3 %v9207_v18 }
0x14da   : > { %6523 = vrot.lane.b32.xlu2 %v13537_v55, %s11371_s17 }
0x14db   : > { %6503 = vrot.lane.b32.xlu1 %v13519_v43, %s11377_s2  ;;  %6479 = vrot.lane.b32.xlu0 %v13519_v43, %s11378_s8 }
0x14e2   : > { %6517 = vrot.lane.b32.xlu2 %v13547_v14, %s11371_s17 }
0x14e3   : > { %6501 = vrot.lane.b32.xlu1 %v13559_v46, %s11377_s2  ;;  %6477 = vrot.lane.b32.xlu0 %v13559_v46, %s11378_s8 }
0x14e9   : > { %6994 = vmatmul.bf16.gmra.mxu3 %v9243_v4 }
0x14ea   : > { %6457 = vrot.lane.b32.xlu2 %v13531_v34, %s11360_s10 }
0x14eb   : > { %6507 = vrot.lane.b32.xlu1 %v13544_v54, %s11377_s2  ;;  %6483 = vrot.lane.b32.xlu0 %v13544_v54, %s11378_s8 }
0x14f2   : > { %6455 = vrot.lane.b32.xlu2 %v13519_v43, %s11360_s10 }
0x14f3   : > { %6499 = vrot.lane.b32.xlu1 %v13537_v55, %s11377_s2  ;;  %6475 = vrot.lane.b32.xlu0 %v13537_v55, %s11378_s8 }
0x14f4   : > { %v6432_v35 = vpop.permute.xlu1 %6431 }
0x14f9   : > { %6999 = vmatmul.bf16.gmra.mxu3 %v9279_v30 }
0x14fa   : > { %6453 = vrot.lane.b32.xlu2 %v13559_v46, %s11360_s10 }
0x14fb   : > { %6497 = vrot.lane.b32.xlu1 %v13525_v25, %s11377_s2  ;;  %6473 = vrot.lane.b32.xlu0 %v13525_v25, %s11378_s8 }
0x14fc   : > { %v6426_v51 = vpop.permute.xlu1 %6425 }
0x1502   : > { %6459 = vrot.lane.b32.xlu2 %v13544_v54, %s11360_s10 }
0x1503   : > { %6495 = vrot.lane.b32.xlu1 %v13571_v39, %s11377_s2  ;;  %6471 = vrot.lane.b32.xlu0 %v13571_v39, %s11378_s8 }
0x1509   : > { %7004 = vmatmul.bf16.gmra.mxu3 %v9315_v60  ;;  %v9690_v60 = vld [vmem:[%s14503_s23 + $0xdc] sm:$0xf] }
0x150a   : > { %6451 = vrot.lane.b32.xlu2 %v13537_v55, %s11360_s10 }
0x150b   : > { %6493 = vrot.lane.b32.xlu1 %v13547_v14, %s11377_s2  ;;  %6469 = vrot.lane.b32.xlu0 %v13547_v14, %s11378_s8 }
0x1512   : > { %6449 = vrot.lane.b32.xlu2 %v13525_v25, %s11360_s10 }
0x1513   : > { %6601 = vrot.lane.b32.xlu1 %v13531_v34, %s11365_s16  ;;  %6577 = vrot.lane.b32.xlu0 %v13531_v34, %s11379_s7 }
0x1514   : > { %v6436_v45 = vpop.permute.xlu2 %6435 }
0x1515   : > { %7030 = vmatpush.bf16.msra.mxu0 %v6436_v45  ;;  %v9316_v45 = vld [vmem:[%s14503_s23 + $0xfc] sm:$0xf0] }
0x1519   : > { %7009 = vmatmul.bf16.gmra.mxu3 %v9351_v1  ;;  %v5379_v1 = vld [vmem:[#allocation52 + $0x48] sm:$0xff] }
0x151a   : > { %6447 = vrot.lane.b32.xlu2 %v13571_v39, %s11360_s10 }
0x151b   : > { %6599 = vrot.lane.b32.xlu1 %v13519_v43, %s11365_s16  ;;  %6575 = vrot.lane.b32.xlu0 %v13519_v43, %s11379_s7 }
0x151c   : > { %v6430_v8 = vpop.permute.xlu2 %6429  ;;  %v6434_v7 = vpop.permute.xlu0 %6433 }
0x151d   : > { %7031 = vmatpush.bf16.msra.mxu0 %v6434_v7 }
0x1521   : > { %7032 = vmatpush.bf16.msra.mxu0 %v6432_v35 }
0x1522   : > { %6445 = vrot.lane.b32.xlu2 %v13547_v14, %s11360_s10  ;;  %s9542_s10 = sshll.u32 %s14571_s15, 4 }
0x1523   : > { %6597 = vrot.lane.b32.xlu1 %v13559_v46, %s11365_s16  ;;  %6573 = vrot.lane.b32.xlu0 %v13559_v46, %s11379_s7 }
0x1524   : > { %v6424_v36 = vpop.permute.xlu2 %6423  ;;  %v6428_v16 = vpop.permute.xlu0 %6427 }
0x1525   : > { %7033 = vmatpush.bf16.msra.mxu0 %v6430_v8 }
0x1529   : > { %7034 = vmatpush.bf16.msra.mxu0 %v6428_v16  ;;  %7014 = vmatmul.bf16.gmra.mxu3 %v9387_v15 }
0x152a   : > { %6553 = vrot.lane.b32.xlu2 %v13531_v34, %s11372_s4  ;;  %v9721_v34 = vld [vmem:[%s14503_s23 + $0x1d0] sm:$0xf0] }
0x152b   : > { %6603 = vrot.lane.b32.xlu1 %v13544_v54, %s11365_s16  ;;  %6579 = vrot.lane.b32.xlu0 %v13544_v54, %s11379_s7  ;;  %v9423_v21 = vor.u32 %v9721_v34, %v9422_v58  ;;  %v9222_v58 = vld [vmem:[%s14503_s23 + $0x10] sm:$0xf]  ;;  %v9669_v34 = vld [vmem:[%s14503_s23 + $0x30] sm:$0xf0] }
0x152c   : > { %v6530_v42 = vpop.permute.xlu2 %6529 }
0x152d   : > { %v6422_v37 = vpop.permute.xlu0 %6421  ;;  %v6532_v22 = vpop.permute.xlu1 %6531  ;;  %7035 = vmatpush.bf16.msra.mxu0 %v6426_v51 }
0x1531   : > { %7036 = vmatpush.bf16.msra.mxu0 %v6424_v36 }
0x1532   : > { %6551 = vrot.lane.b32.xlu2 %v13519_v43, %s11372_s4 }
0x1533   : > { %6595 = vrot.lane.b32.xlu1 %v13537_v55, %s11365_s16  ;;  %6571 = vrot.lane.b32.xlu0 %v13537_v55, %s11379_s7 }
0x1534   : > { %v6524_v10 = vpop.permute.xlu2 %6523 }
0x1535   : > { %v6528_v40 = vpop.permute.xlu0 %6527  ;;  %v6526_v49 = vpop.permute.xlu1 %6525  ;;  %7037 = vmatpush.bf16.msra.mxu0 %v6422_v37  ;;  %v5375_v37 = vld [vmem:[#allocation52 + $0x28] sm:$0xff] }
0x1538   : > { %7038 = vmatmul.bf16.vlgmr.msra.gmra.mxu0 %v9211_v2 }
0x1539   : > { %7226 = vmatpush.bf16.msrb.mxu0 %v6532_v22  ;;  %7019 = vmatmul.bf16.gmra.mxu3 %v9423_v21  ;;  %v5382_v22 = vld [vmem:[#allocation52 + $0x60] sm:$0xff] }
0x153a   : > { %6549 = vrot.lane.b32.xlu2 %v13559_v46, %s11372_s4  ;;  %v5370_v46 = vld [vmem:[#allocation52] sm:$0xff] }
0x153b   : > { %6593 = vrot.lane.b32.xlu1 %v13525_v25, %s11365_s16  ;;  %6569 = vrot.lane.b32.xlu0 %v13525_v25, %s11379_s7 }
0x153c   : > { %v6518_v62 = vpop.permute.xlu2 %6517 }
0x153d   : > { %7227 = vmatpush.bf16.msrb.mxu0 %v6530_v42  ;;  %v6522_v43 = vpop.permute.xlu0 %6521  ;;  %v6520_v38 = vpop.permute.xlu1 %6519  ;;  %v5383_v42 = vld [vmem:[#allocation52 + $0x68] sm:$0xff] }
0x1541   : > { %7228 = vmatpush.bf16.msrb.mxu0 %v6528_v40  ;;  %v5386_v40 = vld [vmem:[#allocation54] sm:$0xff] }
0x1542   : > { %6555 = vrot.lane.b32.xlu2 %v13544_v54, %s11372_s4 }
0x1543   : > { %6591 = vrot.lane.b32.xlu1 %v13571_v39, %s11365_s16  ;;  %6567 = vrot.lane.b32.xlu0 %v13571_v39, %s11379_s7 }
0x1544   : > { %v6458_v28 = vpop.permute.xlu2 %6457 }
0x1545   : > { %7229 = vmatpush.bf16.msrb.mxu0 %v6526_v49  ;;  %v6482_v53 = vpop.permute.xlu0 %6481  ;;  %v6506_v9 = vpop.permute.xlu1 %6505  ;;  %v5378_v49 = vld [vmem:[#allocation52 + $0x40] sm:$0xff] }
0x1548   : > { %7043 = vmatmul.bf16.gmra.mxu0 %v9247_v31 }
0x1549   : > { %7230 = vmatpush.bf16.msrb.mxu0 %v6524_v10 }
0x154a   : > { %6547 = vrot.lane.b32.xlu2 %v13537_v55, %s11372_s4  ;;  %v9459_v55 = vor.u32 %v9730_v20, %v9458_v44  ;;  %v9391_v20 = vor.u32 %v9708_v0, %v9388_v47 }
0x154b   : > { %6589 = vrot.lane.b32.xlu1 %v13547_v14, %s11365_s16  ;;  %6565 = vrot.lane.b32.xlu0 %v13547_v14, %s11379_s7  ;;  %s1894_s16 = scalar_lea.vmem %s11598_s24, %s9542_s10 }
0x154c   : > { %v6456_v26 = vpop.permute.xlu2 %6455  ;;  %7024 = vmatmul.bf16.gmra.mxu3 %v9459_v55 }
0x154d   : > { %7231 = vmatpush.bf16.msrb.mxu0 %v6522_v43  ;;  %v6480_v54 = vpop.permute.xlu0 %6479  ;;  %v6504_v23 = vpop.permute.xlu1 %6503  ;;  %v9214_v43 = vld [vmem:[%s14503_s23 + $0x8] sm:$0xf] }
0x1551   : > { %7232 = vmatpush.bf16.msrb.mxu0 %v6520_v38  ;;  %v9668_v38 = vld [vmem:[%s14503_s23 + $0x28] sm:$0xf0] }
0x1552   : > { %6545 = vrot.lane.b32.xlu2 %v13525_v25, %s11372_s4 }
0x1553   : > { %7587 = vperm.xlu1 %10097, %v5371_v19   ;;  %7582 = vperm.xlu0 %10096, %v5370_v46   ;;  %v5388_v46 = vld [vmem:[#allocation54 + $0x10] sm:$0xff] }
0x1554   : > { %v6454_v18 = vpop.permute.xlu2 %6453 }
0x1555   : > { %7233 = vmatpush.bf16.msrb.mxu0 %v6518_v62  ;;  %v6478_v3 = vpop.permute.xlu0 %6477  ;;  %v6502_v4 = vpop.permute.xlu1 %6501  ;;  %v5385_v62 = vld [vmem:[#allocation52 + $0x78] sm:$0xff] }
0x1558   : > { %7048 = vmatmul.bf16.gmra.mxu0 %v9283_v13  ;;  %v5392_v13 = vld [vmem:[#allocation54 + $0x30] sm:$0xff] }
0x1559   : > { %7440 = vmatpush.bf16.msra.mxu0 %v13363_v27  ;;  %v5377_v27 = vld [vmem:[#allocation52 + $0x38] sm:$0xff] }
0x155a   : > { %6543 = vrot.lane.b32.xlu2 %v13571_v39, %s11372_s4  ;;  %v9319_v39 = vor.u32 %v9690_v60, %v9316_v45 }
0x155b   : > { %7602 = vperm.xlu1 %10097, %v5374_v61   ;;  %7597 = vperm.xlu0 %10096, %v5373_v5   ;;  %v9250_v61 = vld [vmem:[%s14503_s23 + $0x50] sm:$0xf]  ;;  %v9677_v5 = vld [vmem:[%s14503_s23 + $0x70] sm:$0xf0] }
0x155c   : > { %v6460_v25 = vpop.permute.xlu2 %6459  ;;  %v13711_v7 = vpop.f32.mrf.mxu3  ;;  %v9251_v45 = vor.u32 %v9677_v5, %v9250_v61  ;;  %v9324_v61 = vld [vmem:[%s14503_s23 + $0x104] sm:$0xf0] }
0x155d   : > { %7441 = vmatpush.bf16.msra.mxu0 %v13378_v32  ;;  %v6484_v30 = vpop.permute.xlu0 %6483  ;;  %v6508_v56 = vpop.permute.xlu1 %6507  ;;  %7079 = vmatpush.bf16.msrb.mxu1 %v6460_v25  ;;  %v9673_v25 = vld [vmem:[%s14503_s23 + $0x54] sm:$0xf] }
0x155e   : > { %7128 = vmatpush.bf16.msrb.mxu2 %v6484_v30  ;;  %7177 = vmatpush.bf16.msra.mxu3 %v6508_v56  ;;  %v9252_v30 = vld [vmem:[%s14503_s23 + $0x74] sm:$0xf0] }
0x155f   : > { %v9258_v56 = vld [vmem:[%s14503_s23 + $0x58] sm:$0xf] }
0x1561   : > { %7080 = vmatpush.bf16.msrb.mxu1 %v6458_v28  ;;  %v9215_v28 = vor.u32 %v9668_v38, %v9214_v43 }
0x1562   : > { %7129 = vmatpush.bf16.msrb.mxu2 %v6482_v53  ;;  %7178 = vmatpush.bf16.msra.mxu3 %v6506_v9  ;;  %v9219_v9 = vor.u32 %v9664_v57, %v9216_v48 }
0x1563   : > { %7617 = vperm.xlu1 %10097, %v5377_v27   ;;  %6541 = vrot.lane.b32.xlu2 %v13547_v14, %s11372_s4  ;;  %v9678_v27 = vld [vmem:[%s14503_s23 + $0x78] sm:$0xf0] }
0x1564   : > { %7612 = vperm.xlu0 %10096, %v5376_v24   ;;  %v6452_v32 = vpop.permute.xlu2 %6451  ;;  %v13713_v51 = vpop.f32.mrf.mxu3 }
0x1565   : > { %v6476_v35 = vpop.permute.xlu0 %6475  ;;  %v6500_v8 = vpop.permute.xlu1 %6499  ;;  %7081 = vmatpush.bf16.msrb.mxu1 %v6456_v26  ;;  %v9223_v26 = vor.u32 %v9669_v34, %v9222_v58  ;;  %v9294_v58 = vld [vmem:[%s14503_s23 + $0xa0] sm:$0xf]  ;;  %v9687_v34 = vld [vmem:[%s14503_s23 + $0xc0] sm:$0xf0] }
0x1566   : > { %7130 = vmatpush.bf16.msrb.mxu2 %v6480_v54  ;;  %7179 = vmatpush.bf16.msra.mxu3 %v6504_v23  ;;  %v5389_v54 = vld [vmem:[#allocation54 + $0x18] sm:$0xff] }
0x1567   : > { %v5381_v23 = vld [vmem:[#allocation52 + $0x58] sm:$0xff] }
0x1568   : > { %7053 = vmatmul.bf16.gmra.mxu0 %v9319_v39 }
0x1569   : > { %7082 = vmatpush.bf16.msrb.mxu1 %v6454_v18 }
0x156a   : > { %7131 = vmatpush.bf16.msrb.mxu2 %v6478_v3  ;;  %7180 = vmatpush.bf16.msra.mxu3 %v6502_v4  ;;  %v5384_v3 = vld [vmem:[#allocation52 + $0x70] sm:$0xff]  ;;  %v5391_v4 = vld [vmem:[#allocation54 + $0x28] sm:$0xff] }
0x156b   : > { %7632 = vperm.xlu1 %10097, %v5380_v29   ;;  %7592 = vperm.xlu2 %10098, %v5372_v41   ;;  %v5395_v29 = vld [vmem:[#allocation54 + $0x48] sm:$0xff] }
0x156c   : > { %7627 = vperm.xlu0 %10096, %v5379_v1   ;;  %v6450_v14 = vpop.permute.xlu2 %6449  ;;  %v13717_v2 = vpop.f32.mrf.mxu3  ;;  %v5387_v41 = vld [vmem:[#allocation54 + $0x8] sm:$0xff]  ;;  %v5394_v1 = vld [vmem:[#allocation54 + $0x40] sm:$0xff] }
0x156d   : > { %v6474_v36 = vpop.permute.xlu0 %6473  ;;  %v6498_v16 = vpop.permute.xlu1 %6497  ;;  %7083 = vmatpush.bf16.msrb.mxu1 %v6452_v32 }
0x156e   : > { %7132 = vmatpush.bf16.msrb.mxu2 %v6476_v35  ;;  %7181 = vmatpush.bf16.msra.mxu3 %v6500_v8  ;;  %v9255_v35 = vor.u32 %v9673_v25, %v9252_v30  ;;  %v9259_v8 = vor.u32 %v9678_v27, %v9258_v56 }
0x1571   : > { %7084 = vmatpush.bf16.msrb.mxu1 %v6450_v14  ;;  %v9717_v14 = vld [vmem:[%s14503_s23 + $0x1b4] sm:$0xf] }
0x1572   : > { %7133 = vmatpush.bf16.msrb.mxu2 %v6474_v36  ;;  %7182 = vmatpush.bf16.msra.mxu3 %v6498_v16  ;;  %v9424_v36 = vld [vmem:[%s14503_s23 + $0x1d4] sm:$0xf0] }
0x1573   : > { %7647 = vperm.xlu1 %10097, %v5383_v42   ;;  %7607 = vperm.xlu2 %10098, %v5375_v37   ;;  %v9427_v42 = vor.u32 %v9717_v14, %v9424_v36 }
0x1574   : > { %7642 = vperm.xlu0 %10096, %v5382_v22   ;;  %v6448_v17 = vpop.permute.xlu2 %6447  ;;  %v13725_v19 = vpop.f32.mrf.mxu3 }
0x1575   : > { %v6472_v15 = vpop.permute.xlu0 %6471  ;;  %v6496_v10 = vpop.permute.xlu1 %6495  ;;  %7085 = vmatpush.bf16.msrb.mxu1 %v6448_v17  ;;  %v5390_v17 = vld [vmem:[#allocation54 + $0x20] sm:$0xff] }
0x1576   : > { %7134 = vmatpush.bf16.msrb.mxu2 %v6472_v15  ;;  %7183 = vmatpush.bf16.msra.mxu3 %v6496_v10  ;;  %v9286_v15 = vld [vmem:[%s14503_s23 + $0x98] sm:$0xf]  ;;  %v9686_v10 = vld [vmem:[%s14503_s23 + $0xb8] sm:$0xf0] }
0x1577   : > { %v9287_v43 = vor.u32 %v9686_v10, %v9286_v15  ;;  %v9704_v15 = vld [vmem:[%s14503_s23 + $0x148] sm:$0xf0] }
0x1578   : > { %7058 = vmatmul.bf16.gmra.mxu0 %v9355_v50  ;;  %v5397_v50 = vld [vmem:[#allocation54 + $0x58] sm:$0xff]  ;;  %v9700_v10 = vld [vmem:[%s14503_s23 + $0x12c] sm:$0xf] }
0x157b   : > { %7678 = vperm.xlu1 %10097, %v5386_v40   ;;  %7622 = vperm.xlu2 %10098, %v5378_v49   ;;  %v9682_v40 = vld [vmem:[%s14503_s23 + $0x9c] sm:$0xf]  ;;  %v9288_v49 = vld [vmem:[%s14503_s23 + $0xbc] sm:$0xf0] }
0x157c   : > { %7657 = vperm.xlu0 %10096, %v5385_v62   ;;  %v6446_v21 = vpop.permute.xlu2 %6445  ;;  %v13741_v24 = vpop.f32.mrf.mxu3  ;;  %v9291_v48 = vor.u32 %v9682_v40, %v9288_v49  ;;  %v9360_v40 = vld [vmem:[%s14503_s23 + $0x14c] sm:$0xf0] }
0x157d   : > { %v6470_v31 = vpop.permute.xlu0 %6469  ;;  %v6494_v53 = vpop.permute.xlu1 %6493  ;;  %7086 = vmatpush.bf16.msrb.mxu1 %v6446_v21 }
0x157e   : > { %7135 = vmatpush.bf16.msrb.mxu2 %v6470_v31  ;;  %7184 = vmatpush.bf16.msra.mxu3 %v6494_v53  ;;  %v5393_v31 = vld [vmem:[#allocation54 + $0x38] sm:$0xff]  ;;  %v9295_v53 = vor.u32 %v9687_v34, %v9294_v58 }
0x157f   : > { %v9705_v58 = vld [vmem:[%s14503_s23 + $0x150] sm:$0xf0] }
0x1580   : > { %7087 = vmatmul.bf16.vlgmr.msrb.gmra.mxu1 %v9215_v28  ;;  %v5336_v28 = vld [vmem:[#allocation48 + $0x70] sm:$0xff] }
0x1581   : > { %7136 = vmatmul.bf16.vlgmr.msrb.gmra.mxu2 %v9219_v9  ;;  %7185 = vmatmul.bf16.vlgmr.msra.gmra.mxu3 %v9223_v26  ;;  %v5400_v9 = vld [vmem:[#allocation54 + $0x70] sm:$0xff]  ;;  %v9726_v26 = vld [vmem:[%s14503_s23 + $0x1fc] sm:$0xf] }
0x1583   : > { %7693 = vperm.xlu1 %10097, %v5389_v54   ;;  %7637 = vperm.xlu2 %10098, %v5381_v23   ;;  %v9460_v54 = vld [vmem:[%s14503_s23 + $0x21c] sm:$0xf0] }
0x1584   : > { %7688 = vperm.xlu0 %10096, %v5388_v46   ;;  %v13729_v44 = vpop.permute.xlu2 %6553  ;;  %v13745_v37 = vpop.f32.mrf.mxu3  ;;  %v9463_v46 = vor.u32 %v9726_v26, %v9460_v54  ;;  %v5348_v26 = vld [vmem:[#allocation49 + $0x50] sm:$0xff]  ;;  %v9674_v54 = vld [vmem:[%s14503_s23 + $0x5c] sm:$0xf] }
0x1585   : > { %v13731_v55 = vpop.permute.xlu0 %6577  ;;  %v13733_v18 = vpop.permute.xlu1 %6601 }
0x1588   : > { %7063 = vmatmul.bf16.gmra.mxu0 %v9391_v20  ;;  %v5396_v20 = vld [vmem:[#allocation54 + $0x50] sm:$0xff] }
0x158b   : > { %7708 = vperm.xlu1 %10097, %v5392_v13   ;;  %7652 = vperm.xlu2 %10098, %v5384_v3   ;;  %v9322_v13 = vld [vmem:[%s14503_s23 + $0xe0] sm:$0xf]  ;;  %v9695_v3 = vld [vmem:[%s14503_s23 + $0x100] sm:$0xf0] }
0x158c   : > { %7703 = vperm.xlu0 %10096, %v5391_v4   ;;  %v6552_v60 = vpop.permute.xlu2 %6551  ;;  %v13753_v21 = vpop.f32.mrf.mxu3  ;;  %v9691_v4 = vld [vmem:[%s14503_s23 + $0xe4] sm:$0xf]  ;;  %v9323_v25 = vor.u32 %v9695_v3, %v9322_v13  ;;  %v9394_v13 = vld [vmem:[%s14503_s23 + $0x170] sm:$0xf]  ;;  %v9713_v3 = vld [vmem:[%s14503_s23 + $0x190] sm:$0xf0] }
0x158d   : > { %v6576_v32 = vpop.permute.xlu0 %6575  ;;  %v6600_v39 = vpop.permute.xlu1 %6599  ;;  %v9327_v27 = vor.u32 %v9691_v4, %v9324_v61  ;;  %v9709_v4 = vld [vmem:[%s14503_s23 + $0x174] sm:$0xf]  ;;  %v9396_v61 = vld [vmem:[%s14503_s23 + $0x194] sm:$0xf0] }
0x1590   : > { %7092 = vmatmul.bf16.gmra.mxu1 %v9251_v45  ;;  %v9696_v45 = vld [vmem:[%s14503_s23 + $0x108] sm:$0xf0] }
0x1591   : > { %7141 = vmatmul.bf16.gmra.mxu2 %v9255_v35  ;;  %7190 = vmatmul.bf16.gmra.mxu3 %v9259_v8  ;;  %v5334_v8 = vld [vmem:[#allocation48 + $0x60] sm:$0xff] }
0x1593   : > { %7723 = vperm.xlu1 %10097, %v5395_v29   ;;  %7683 = vperm.xlu2 %10098, %v5387_v41   ;;  %v9665_v29 = vld [vmem:[%s14503_s23 + $0x14] sm:$0xf]  ;;  %v9224_v41 = vld [vmem:[%s14503_s23 + $0x34] sm:$0xf0] }
0x1594   : > { %7718 = vperm.xlu0 %10096, %v5394_v1   ;;  %v6550_v16 = vpop.permute.xlu2 %6549  ;;  %v9227_v36 = vor.u32 %v9665_v29, %v9224_v41 }
0x1595   : > { %v6574_v22 = vpop.permute.xlu0 %6573  ;;  %v6598_v33 = vpop.permute.xlu1 %6597 }
0x1598   : > { %7068 = vmatmul.bf16.gmra.mxu0 %v9427_v42 }
0x159b   : > { %7738 = vperm.xlu1 %10097, %v5398_v59   ;;  %7698 = vperm.xlu2 %10098, %v5390_v17   ;;  %v5337_v59 = vld [vmem:[#allocation48 + $0x78] sm:$0xff]  ;;  %v5351_v17 = vld [vmem:[#allocation49 + $0x68] sm:$0xff] }
0x159c   : > { %7733 = vperm.xlu0 %10096, %v5397_v50   ;;  %v6556_v62 = vpop.permute.xlu2 %6555  ;;  %v9358_v50 = vld [vmem:[%s14503_s23 + $0x128] sm:$0xf] }
0x159d   : > { %v6580_v38 = vpop.permute.xlu0 %6579  ;;  %v6604_v57 = vpop.permute.xlu1 %6603  ;;  %7275 = vmatpush.bf16.msra.mxu1 %v6556_v62  ;;  %v9359_v49 = vor.u32 %v9704_v15, %v9358_v50  ;;  %v9432_v50 = vld [vmem:[%s14503_s23 + $0x1dc] sm:$0xf0] }
0x159e   : > { %7324 = vmatpush.bf16.msra.mxu2 %v6580_v38  ;;  %7373 = vmatpush.bf16.msrb.mxu3 %v6604_v57  ;;  %v9363_v57 = vor.u32 %v9700_v10, %v9360_v40 }
0x15a0   : > { %7097 = vmatmul.bf16.gmra.mxu1 %v9287_v43 }
0x15a1   : > { %7146 = vmatmul.bf16.gmra.mxu2 %v9291_v48  ;;  %7276 = vmatpush.bf16.msra.mxu1 %v13729_v44  ;;  %v5352_v44 = vld [vmem:[#allocation49 + $0x70] sm:$0xff]  ;;  %v9366_v48 = vld [vmem:[%s14503_s23 + $0x130] sm:$0xf] }
0x15a2   : > { %7325 = vmatpush.bf16.msra.mxu2 %v13731_v55  ;;  %7374 = vmatpush.bf16.msrb.mxu3 %v13733_v18  ;;  %v13760_v55 = vpop.f32.mrf.mxu3  ;;  %v5401_v18 = vld [vmem:[#allocation54 + $0x78] sm:$0xff] }
0x15a3   : > { %7844 = vperm.xlu1 %10097, %v5336_v28   ;;  %7713 = vperm.xlu2 %10098, %v5393_v31   ;;  %v5349_v31 = vld [vmem:[#allocation49 + $0x58] sm:$0xff] }
0x15a4   : > { %7748 = vperm.xlu0 %10096, %v5400_v9   ;;  %7195 = vmatmul.bf16.gmra.mxu3 %v9295_v53  ;;  %v6548_v23 = vpop.permute.xlu2 %6547  ;;  %v5353_v53 = vld [vmem:[#allocation49 + $0x78] sm:$0xff]  ;;  %v9367_v9 = vor.u32 %v9705_v58, %v9366_v48  ;;  %v5347_v48 = vld [vmem:[#allocation49 + $0x48] sm:$0xff] }
0x15a5   : > { %v6572_v0 = vpop.permute.xlu0 %6571  ;;  %v6596_v47 = vpop.permute.xlu1 %6595  ;;  %7277 = vmatpush.bf16.msra.mxu1 %v6552_v60  ;;  %v9330_v60 = vld [vmem:[%s14503_s23 + $0xe8] sm:$0xf] }
0x15a6   : > { %7326 = vmatpush.bf16.msra.mxu2 %v6576_v32  ;;  %7375 = vmatpush.bf16.msrb.mxu3 %v6600_v39  ;;  %v5335_v32 = vld [vmem:[#allocation48 + $0x68] sm:$0xff]  ;;  %v9331_v35 = vor.u32 %v9696_v45, %v9330_v60  ;;  %v5329_v60 = vld [vmem:[#allocation48 + $0x38] sm:$0xff] }
0x15a7   : > { %v5399_v39 = vld [vmem:[#allocation54 + $0x68] sm:$0xff]  ;;  %v5333_v45 = vld [vmem:[#allocation48 + $0x58] sm:$0xff] }
0x15a8   : > { %7073 = vmatmul.bf16.gmra.mxu0 %v9463_v46 }
0x15a9   : > { %7278 = vmatpush.bf16.msra.mxu1 %v6550_v16 }
0x15aa   : > { %7327 = vmatpush.bf16.msra.mxu2 %v6574_v22  ;;  %7376 = vmatpush.bf16.msrb.mxu3 %v6598_v33  ;;  %v13770_v1 = vpop.f32.mrf.mxu3  ;;  %v5332_v33 = vld [vmem:[#allocation48 + $0x50] sm:$0xff] }
0x15ab   : > { %7940 = vperm.xlu1 %10097, %v5352_v44   ;;  %7728 = vperm.xlu2 %10098, %v5396_v20   ;;  %v5350_v44 = vld [vmem:[#allocation49 + $0x60] sm:$0xff] }
0x15ac   : > { %7753 = vperm.xlu0 %10096, %v5401_v18   ;;  %v6546_v5 = vpop.permute.xlu2 %6545  ;;  %v5331_v18 = vld [vmem:[#allocation48 + $0x48] sm:$0xff] }
0x15ad   : > { %v6570_v30 = vpop.permute.xlu0 %6569  ;;  %v6594_v56 = vpop.permute.xlu1 %6593  ;;  %7279 = vmatpush.bf16.msra.mxu1 %v6548_v23  ;;  %v9260_v23 = vld [vmem:[%s14503_s23 + $0x7c] sm:$0xf0] }
0x15ae   : > { %7328 = vmatpush.bf16.msra.mxu2 %v6572_v0  ;;  %7377 = vmatpush.bf16.msrb.mxu3 %v6596_v47  ;;  %v9263_v46 = vor.u32 %v9674_v54, %v9260_v23  ;;  %v5346_v47 = vld [vmem:[#allocation49 + $0x40] sm:$0xff]  ;;  %v5340_v23 = vld [vmem:[#allocation49 + $0x10] sm:$0xff] }
0x15b0   : > { %7102 = vmatmul.bf16.gmra.mxu1 %v9323_v25  ;;  %v9399_v25 = vor.u32 %v9709_v4, %v9396_v61 }
0x15b1   : > { %7151 = vmatmul.bf16.gmra.mxu2 %v9327_v27  ;;  %7280 = vmatpush.bf16.msra.mxu1 %v6546_v5  ;;  %v9395_v5 = vor.u32 %v9713_v3, %v9394_v13  ;;  %v9727_v13 = vld [vmem:[%s14503_s23 + $0x204] sm:$0xf]  ;;  %v9468_v3 = vld [vmem:[%s14503_s23 + $0x224] sm:$0xf0] }
0x15b2   : > { %7329 = vmatpush.bf16.msra.mxu2 %v6570_v30  ;;  %7378 = vmatpush.bf16.msrb.mxu3 %v6594_v56  ;;  %v13778_v62 = vpop.f32.mrf.mxu3  ;;  %v9402_v30 = vld [vmem:[%s14503_s23 + $0x178] sm:$0xf]  ;;  %v9714_v56 = vld [vmem:[%s14503_s23 + $0x198] sm:$0xf0]  ;;  %v9471_v61 = vor.u32 %v9727_v13, %v9468_v3 }
0x15b3   : > { %7839 = vperm.xlu1 %10097, %v5335_v32   ;;  %7743 = vperm.xlu2 %10098, %v5399_v39   ;;  %v9403_v32 = vor.u32 %v9714_v56, %v9402_v30  ;;  %v5328_v39 = vld [vmem:[#allocation48 + $0x30] sm:$0xff]  ;;  %v5323_v56 = vld [vmem:[#allocation48 + $0x8] sm:$0xff] }
0x15b4   : > { %7834 = vperm.xlu0 %10096, %v5334_v8   ;;  %7200 = vmatmul.bf16.gmra.mxu3 %v9331_v35  ;;  %v6544_v14 = vpop.permute.xlu2 %6543  ;;  %v9683_v35 = vld [vmem:[%s14503_s23 + $0xa4] sm:$0xf]  ;;  %v9296_v8 = vld [vmem:[%s14503_s23 + $0xc4] sm:$0xf0] }
0x15b5   : > { %v6568_v16 = vpop.permute.xlu0 %6567  ;;  %v6592_v42 = vpop.permute.xlu1 %6591  ;;  %7281 = vmatpush.bf16.msra.mxu1 %v6544_v14  ;;  %v9299_v41 = vor.u32 %v9683_v35, %v9296_v8  ;;  %v9701_v35 = vld [vmem:[%s14503_s23 + $0x134] sm:$0xf]  ;;  %v9368_v8 = vld [vmem:[%s14503_s23 + $0x154] sm:$0xf0] }
0x15b6   : > { %v13772_v22 = vpop.f32.mrf.mxu0  ;;  %7330 = vmatpush.bf16.msra.mxu2 %v6568_v16  ;;  %7379 = vmatpush.bf16.msrb.mxu3 %v6592_v42  ;;  %v5330_v16 = vld [vmem:[#allocation48 + $0x40] sm:$0xff]  ;;  %v5345_v42 = vld [vmem:[#allocation49 + $0x38] sm:$0xff] }
0x15b8   : > { %7234 = vmatmul.bf16.vlgmr.msrb.gmra.mxu0 %v9227_v36  ;;  %v5326_v36 = vld [vmem:[#allocation48 + $0x20] sm:$0xff] }
0x15ba   : > { %v13788_v20 = vpop.f32.mrf.mxu3 }
0x15bb   : > { %7824 = vperm.xlu1 %10097, %v5332_v33   ;;  %7849 = vperm.xlu2 %10098, %v5337_v59   ;;  %v9430_v33 = vld [vmem:[%s14503_s23 + $0x1b8] sm:$0xf]  ;;  %v9722_v59 = vld [vmem:[%s14503_s23 + $0x1d8] sm:$0xf0] }
0x15bc   : > { %7935 = vperm.xlu0 %10096, %v5351_v17   ;;  %v9718_v17 = vld [vmem:[%s14503_s23 + $0x1bc] sm:$0xf]  ;;  %v9431_v15 = vor.u32 %v9722_v59, %v9430_v33  ;;  %v9230_v33 = vld [vmem:[%s14503_s23 + $0x18] sm:$0xf] }
0x15bd   : > { %v6542_v43 = vpop.permute.xlu2 %6541  ;;  %v6566_v38 = vpop.permute.xlu0 %6565  ;;  %v9435_v40 = vor.u32 %v9718_v17, %v9432_v50  ;;  %v9670_v59 = vld [vmem:[%s14503_s23 + $0x38] sm:$0xf0] }
0x15be   : > { %v6590_v34 = vpop.permute.xlu1 %6589  ;;  %v13782_v28 = vpop.f32.mrf.mxu0  ;;  %7282 = vmatpush.bf16.msra.mxu1 %v6542_v43  ;;  %7331 = vmatpush.bf16.msra.mxu2 %v6566_v38  ;;  %v9723_v43 = vld [vmem:[%s14503_s23 + $0x1e0] sm:$0xf0]  ;;  %v9666_v50 = vld [vmem:[%s14503_s23 + $0x1c] sm:$0xf] }
0x15bf   : > { %7380 = vmatpush.bf16.msrb.mxu3 %v6590_v34  ;;  %v5342_v34 = vld [vmem:[#allocation49 + $0x20] sm:$0xff] }
0x15c0   : > { %7107 = vmatmul.bf16.gmra.mxu1 %v9359_v49  ;;  %v9438_v49 = vld [vmem:[%s14503_s23 + $0x1c0] sm:$0xf] }
0x15c1   : > { %7156 = vmatmul.bf16.gmra.mxu2 %v9363_v57  ;;  %v5343_v57 = vld [vmem:[#allocation49 + $0x28] sm:$0xff]  ;;  %v9439_v58 = vor.u32 %v9723_v43, %v9438_v49  ;;  %v9231_v49 = vor.u32 %v9670_v59, %v9230_v33  ;;  %v9680_v33 = vld [vmem:[%s14503_s23 + $0x88] sm:$0xf0] }
0x15c2   : > { %v13800_v29 = vpop.f32.mrf.mxu3 }
0x15c3   : > { %7925 = vperm.xlu1 %10097, %v5349_v31   ;;  %7945 = vperm.xlu2 %10098, %v5353_v53   ;;  %v9692_v31 = vld [vmem:[%s14503_s23 + $0xec] sm:$0xf]  ;;  %v9332_v53 = vld [vmem:[%s14503_s23 + $0x10c] sm:$0xf0] }
0x15c4   : > { %7920 = vperm.xlu0 %10096, %v5348_v26   ;;  %7205 = vmatmul.bf16.gmra.mxu3 %v9367_v9  ;;  %v9335_v9 = vor.u32 %v9692_v31, %v9332_v53  ;;  %v5341_v53 = vld [vmem:[#allocation49 + $0x18] sm:$0xff] }
0x15c6   : > { %v13786_v0 = vpop.f32.mrf.mxu0 }
0x15c8   : > { %7239 = vmatmul.bf16.gmra.mxu0 %v9263_v46  ;;  %v5344_v46 = vld [vmem:[#allocation49 + $0x30] sm:$0xff] }
0x15ca   : > { %v13808_v10 = vpop.f32.mrf.mxu3 }
0x15cb   : > { %7910 = vperm.xlu1 %10097, %v5346_v47   ;;  %7930 = vperm.xlu2 %10098, %v5350_v44   ;;  %v5325_v47 = vld [vmem:[#allocation48 + $0x18] sm:$0xff]  ;;  %v9466_v44 = vld [vmem:[%s14503_s23 + $0x200] sm:$0xf] }
0x15cc   : > { %7819 = vperm.xlu0 %10096, %v5331_v18   ;;  %v9731_v18 = vld [vmem:[%s14503_s23 + $0x220] sm:$0xf0] }
0x15cd   : > { %v9467_v4 = vor.u32 %v9731_v18, %v9466_v44 }
0x15ce   : > { %v13796_v27 = vpop.f32.mrf.mxu0 }
0x15d0   : > { %7112 = vmatmul.bf16.gmra.mxu1 %v9395_v5  ;;  %v9474_v5 = vld [vmem:[%s14503_s23 + $0x208] sm:$0xf] }
0x15d1   : > { %7161 = vmatmul.bf16.gmra.mxu2 %v9399_v25  ;;  %v9732_v25 = vld [vmem:[%s14503_s23 + $0x228] sm:$0xf0] }
0x15d2   : > { %v13816_v26 = vpop.f32.mrf.mxu3 }
0x15d3   : > { %7809 = vperm.xlu1 %10097, %v5329_v60   ;;  %7829 = vperm.xlu2 %10098, %v5333_v45   ;;  %v5327_v60 = vld [vmem:[#allocation48 + $0x28] sm:$0xff]  ;;  %v9475_v45 = vor.u32 %v9732_v25, %v9474_v5  ;;  %v5338_v5 = vld [vmem:[#allocation49] sm:$0xff] }
0x15d4   : > { %7804 = vperm.xlu0 %10096, %v5328_v39   ;;  %7210 = vmatmul.bf16.gmra.mxu3 %v9403_v32  ;;  %v5322_v39 = vld [vmem:[#allocation48] sm:$0xff]  ;;  %v9266_v25 = vld [vmem:[%s14503_s23 + $0x60] sm:$0xf] }
0x15d6   : > { %v13802_v14 = vpop.f32.mrf.mxu0 }
0x15d8   : > { %7244 = vmatmul.bf16.gmra.mxu0 %v9299_v41  ;;  %v9371_v41 = vor.u32 %v9701_v35, %v9368_v8 }
0x15da   : > { %v13828_v32 = vpop.f32.mrf.mxu3 }
0x15db   : > { %7794 = vperm.xlu1 %10097, %v5326_v36   ;;  %7814 = vperm.xlu2 %10098, %v5330_v16   ;;  %v5324_v16 = vld [vmem:[#allocation48 + $0x10] sm:$0xff] }
0x15dc   : > { %7905 = vperm.xlu0 %10096, %v5345_v42   ;;  %v5339_v42 = vld [vmem:[#allocation49 + $0x8] sm:$0xff] }
0x15de   : > { %v13812_v38 = vpop.f32.mrf.mxu0 }
0x15e0   : > { %7117 = vmatmul.bf16.gmra.mxu1 %v9431_v15  ;;  %v9232_v15 = vld [vmem:[%s14503_s23 + $0x3c] sm:$0xf0] }
0x15e1   : > { %7166 = vmatmul.bf16.gmra.mxu2 %v9435_v40  ;;  %v7040_v40 = vadd.f32 %v13772_v22, %v13711_v7  ;;  %v7042_v7 = vadd.f32 %v13782_v28, %v13713_v51  ;;  %v7045_v51 = vadd.f32 %v13786_v0, %v13717_v2  ;;  %v9719_v2 = vld [vmem:[%s14503_s23 + $0x1c4] sm:$0xf]  ;;  %v9440_v0 = vld [vmem:[%s14503_s23 + $0x1e4] sm:$0xf0] }
0x15e2   : > { %v13836_v17 = vpop.f32.mrf.mxu3 }
0x15e3   : > { %7895 = vperm.xlu1 %10097, %v5343_v57   ;;  %7915 = vperm.xlu2 %10098, %v5347_v48   ;;  %v9235_v57 = vor.u32 %v9666_v50, %v9232_v15  ;;  %v9238_v48 = vld [vmem:[%s14503_s23 + $0x20] sm:$0xf] }
0x15e4   : > { %7890 = vperm.xlu0 %10096, %v5342_v34   ;;  %7215 = vmatmul.bf16.gmra.mxu3 %v9439_v58  ;;  %v9671_v58 = vld [vmem:[%s14503_s23 + $0x40] sm:$0xf0] }
0x15e6   : > { %v13818_v54 = vpop.f32.mrf.mxu0 }
0x15e8   : > { %7249 = vmatmul.bf16.gmra.mxu0 %v9335_v9  ;;  %v9239_v9 = vor.u32 %v9671_v58, %v9238_v48  ;;  %v9443_v48 = vor.u32 %v9719_v2, %v9440_v0  ;;  %v9338_v2 = vld [vmem:[%s14503_s23 + $0xf0] sm:$0xf]  ;;  %v9697_v0 = vld [vmem:[%s14503_s23 + $0x110] sm:$0xf0] }
0x15eb   : > { %7880 = vperm.xlu1 %10097, %v5340_v23   ;;  %7900 = vperm.xlu2 %10098, %v5344_v46   ;;  %v9710_v23 = vld [vmem:[%s14503_s23 + $0x17c] sm:$0xf]  ;;  %v9404_v46 = vld [vmem:[%s14503_s23 + $0x19c] sm:$0xf0] }
0x15ec   : > { %7789 = vperm.xlu0 %10096, %v5325_v47   ;;  %v9407_v44 = vor.u32 %v9710_v23, %v9404_v46  ;;  %v9302_v46 = vld [vmem:[%s14503_s23 + $0xa8] sm:$0xf] }
0x15ee   : > { %v13826_v30 = vpop.f32.mrf.mxu0 }
0x15f0   : > { %7122 = vmatmul.bf16.gmra.mxu1 %v9467_v4 }
0x15f1   : > { %7171 = vmatmul.bf16.gmra.mxu2 %v9471_v61 }
0x15f3   : > { %7779 = vperm.xlu1 %10097, %v5323_v56   ;;  %7799 = vperm.xlu2 %10098, %v5327_v60   ;;  %v9679_v56 = vld [vmem:[%s14503_s23 + $0x80] sm:$0xf0] }
0x15f4   : > { %7774 = vperm.xlu0 %10096, %v5322_v39   ;;  %7220 = vmatmul.bf16.gmra.mxu3 %v9475_v45  ;;  %v9675_v60 = vld [vmem:[%s14503_s23 + $0x64] sm:$0xf]  ;;  %v9268_v45 = vld [vmem:[%s14503_s23 + $0x84] sm:$0xf0]  ;;  %v9267_v35 = vor.u32 %v9679_v56, %v9266_v25  ;;  %v9310_v25 = vld [vmem:[%s14503_s23 + $0xb0] sm:$0xf] }
0x15f5   : > { %v9689_v56 = vld [vmem:[%s14503_s23 + $0xd0] sm:$0xf0] }
0x15f6   : > { %v13832_v36 = vpop.f32.mrf.mxu0 }
0x15f8   : > { %7254 = vmatmul.bf16.gmra.mxu0 %v9371_v41 }
0x15fb   : > { %7784 = vperm.xlu2 %10098, %v5324_v16   ;;  %v9271_v16 = vor.u32 %v9675_v60, %v9268_v45 }
0x15fc   : > { %7875 = vperm.xlu0 %10096, %v5339_v42   ;;  %v9274_v42 = vld [vmem:[%s14503_s23 + $0x68] sm:$0xf] }
0x15fd   : > { %v7088_v43 = vpop.f32.mrf.mxu1 }
0x15fe   : > { %v7089_v34 = vadd.f32 %v7088_v43, %v7040_v40  ;;  %v13844_v31 = vpop.f32.mrf.mxu0  ;;  %v9275_v40 = vor.u32 %v9680_v33, %v9274_v42 }
0x1600   : > { %7283 = vmatmul.bf16.vlgmr.msra.gmra.mxu1 %v9231_v49  ;;  %v7047_v49 = vadd.f32 %v13796_v27, %v13725_v19  ;;  %v7050_v19 = vadd.f32 %v13802_v14, %v13741_v24  ;;  %v9728_v24 = vld [vmem:[%s14503_s23 + $0x20c] sm:$0xf]  ;;  %v9476_v14 = vld [vmem:[%s14503_s23 + $0x22c] sm:$0xf0] }
0x1601   : > { %7332 = vmatmul.bf16.vlgmr.msra.gmra.mxu2 %v9235_v57 }
0x1603   : > { %7885 = vperm.xlu2 %10098, %v5341_v53  }
0x1604   : > { %7381 = vmatmul.bf16.vlgmr.msrb.gmra.mxu3 %v9239_v9  ;;  %v7137_v22 = vpop.f32.mrf.mxu2  ;;  %v7186_v47 = vpop.f32.mrf.mxu3 }
0x1605   : > { %v7138_v18 = vadd.f32 %v7137_v22, %v7089_v34  ;;  %v7090_v13 = vpop.f32.mrf.mxu1  ;;  %v9684_v22 = vld [vmem:[%s14503_s23 + $0xac] sm:$0xf] }
0x1606   : > { %v7091_v3 = vadd.f32 %v7090_v13, %v7042_v7  ;;  %v13850_v4 = vpop.f32.mrf.mxu0  ;;  %v9688_v7 = vld [vmem:[%s14503_s23 + $0xc8] sm:$0xf0] }
0x1607   : > { %v13852_v61 = vadd.f32 %v7186_v47, %v7138_v18  ;;  %v9304_v47 = vld [vmem:[%s14503_s23 + $0xcc] sm:$0xf0]  ;;  %v9303_v18 = vor.u32 %v9688_v7, %v9302_v46  ;;  %v9698_v46 = vld [vmem:[%s14503_s23 + $0x118] sm:$0xf0] }
0x1608   : > { %7259 = vmatmul.bf16.gmra.mxu0 %v9407_v44 }
0x160b   : > { %7870 = vperm.xlu2 %10098, %v5338_v5   ;;  %v9307_v5 = vor.u32 %v9684_v22, %v9304_v47 }
0x160c   : > { %v7139_v28 = vpop.f32.mrf.mxu2  ;;  %v7188_v39 = vpop.f32.mrf.mxu3 }
0x160d   : > { %v7140_v8 = vadd.f32 %v7139_v28, %v7091_v3  ;;  %v7093_v41 = vpop.f32.mrf.mxu1  ;;  %v9311_v28 = vor.u32 %v9689_v56, %v9310_v25 }
0x160e   : > { %v7094_v59 = vadd.f32 %v7093_v41, %v7045_v51  ;;  %v13862_v50 = vpop.f32.mrf.mxu0 }
0x160f   : > { %v13864_v15 = vadd.f32 %v7188_v39, %v7140_v8  ;;  %v7052_v39 = vadd.f32 %v13812_v38, %v13745_v37  ;;  %v9479_v8 = vor.u32 %v9728_v24, %v9476_v14  ;;  %v7055_v37 = vadd.f32 %v13818_v54, %v13753_v21 }
0x1610   : > { %7288 = vmatmul.bf16.gmra.mxu1 %v9267_v35  ;;  %v7057_v54 = vadd.f32 %v13826_v30, %v13760_v55  ;;  %v9702_v55 = vld [vmem:[%s14503_s23 + $0x13c] sm:$0xf]  ;;  %v9376_v30 = vld [vmem:[%s14503_s23 + $0x15c] sm:$0xf0]  ;;  %v7060_v24 = vadd.f32 %v13832_v36, %v13770_v1 }
0x1611   : > { %7337 = vmatmul.bf16.gmra.mxu2 %v9271_v16 }
0x1614   : > { %7386 = vmatmul.bf16.gmra.mxu3 %v9275_v40  ;;  %v7142_v43 = vpop.f32.mrf.mxu2  ;;  %v7191_v57 = vpop.f32.mrf.mxu3 }
0x1615   : > { %v7143_v58 = vadd.f32 %v7142_v43, %v7094_v59  ;;  %v7095_v34 = vpop.f32.mrf.mxu1  ;;  %v9340_v43 = vld [vmem:[%s14503_s23 + $0x114] sm:$0xf0] }
0x1616   : > { %v7096_v53 = vadd.f32 %v7095_v34, %v7047_v49  ;;  %v13870_v9 = vpop.f32.mrf.mxu0  ;;  %v9693_v49 = vld [vmem:[%s14503_s23 + $0xf4] sm:$0xf] }
0x1617   : > { %v13872_v23 = vadd.f32 %v7191_v57, %v7143_v58  ;;  %v9339_v57 = vor.u32 %v9697_v0, %v9338_v2  ;;  %v9343_v34 = vor.u32 %v9693_v49, %v9340_v43 }
0x1618   : > { %7264 = vmatmul.bf16.gmra.mxu0 %v9443_v48 }
0x161c   : > { %v7144_v27 = vpop.f32.mrf.mxu2  ;;  %v7193_v44 = vpop.f32.mrf.mxu3 }
0x161d   : > { %v7145_v13 = vadd.f32 %v7144_v27, %v7096_v53  ;;  %v7098_v3 = vpop.f32.mrf.mxu1  ;;  %v9346_v53 = vld [vmem:[%s14503_s23 + $0xf8] sm:$0xf] }
0x161e   : > { %v7099_v60 = vadd.f32 %v7098_v3, %v7050_v19  ;;  %v13882_v45 = vpop.f32.mrf.mxu0  ;;  %v9347_v21 = vor.u32 %v9698_v46, %v9346_v53  ;;  %v9711_v53 = vld [vmem:[%s14503_s23 + $0x184] sm:$0xf]  ;;  %v9412_v46 = vld [vmem:[%s14503_s23 + $0x1a4] sm:$0xf0] }
0x161f   : > { %v13884_v51 = vadd.f32 %v7193_v44, %v7145_v13 }
0x1620   : > { %7293 = vmatmul.bf16.gmra.mxu1 %v9303_v18 }
0x1621   : > { %7342 = vmatmul.bf16.gmra.mxu2 %v9307_v5 }
0x1624   : > { %7391 = vmatmul.bf16.gmra.mxu3 %v9311_v28  ;;  %v7147_v35 = vpop.f32.mrf.mxu2  ;;  %v9706_v28 = vld [vmem:[%s14503_s23 + $0x158] sm:$0xf0] }
0x1625   : > { %v7148_v41 = vadd.f32 %v7147_v35, %v7099_v60  ;;  %v7100_v16 = vpop.f32.mrf.mxu1  ;;  %v9374_v60 = vld [vmem:[%s14503_s23 + $0x138] sm:$0xf] }
0x1626   : > { %v7101_v42 = vadd.f32 %v7100_v16, %v7052_v39  ;;  %v13890_v33 = vpop.f32.mrf.mxu0  ;;  %v9375_v39 = vor.u32 %v9706_v28, %v9374_v60  ;;  %v9382_v16 = vld [vmem:[%s14503_s23 + $0x140] sm:$0xf] }
0x1627   : > { %v7196_v59 = vpop.f32.mrf.mxu3 }
0x1628   : > { %v13892_v40 = vadd.f32 %v7196_v59, %v7148_v41  ;;  %7269 = vmatmul.bf16.gmra.mxu0 %v9479_v8  ;;  %v9379_v41 = vor.u32 %v9702_v55, %v9376_v30 }
0x162c   : > { %v7149_v38 = vpop.f32.mrf.mxu2 }
0x162d   : > { %v7150_v48 = vadd.f32 %v7149_v38, %v7101_v42  ;;  %v7103_v58 = vpop.f32.mrf.mxu1  ;;  %v9707_v42 = vld [vmem:[%s14503_s23 + $0x160] sm:$0xf0] }
0x162e   : > { %v7104_v7 = vadd.f32 %v7103_v58, %v7055_v37  ;;  %v7076_v22 = vpop.f32.mrf.mxu0  ;;  %v9383_v0 = vor.u32 %v9707_v42, %v9382_v16  ;;  %v9410_v58 = vld [vmem:[%s14503_s23 + $0x180] sm:$0xf] }
0x162f   : > { %v7198_v47 = vpop.f32.mrf.mxu3  ;;  %v13903_v19 = vadd.f32 %v7076_v22, %v13836_v17  ;;  %v7065_v22 = vadd.f32 %v13850_v4, %v13788_v20  ;;  %v7067_v20 = vadd.f32 %v13862_v50, %v13800_v29  ;;  %v9720_v29 = vld [vmem:[%s14503_s23 + $0x1cc] sm:$0xf]  ;;  %v9448_v50 = vld [vmem:[%s14503_s23 + $0x1ec] sm:$0xf0] }
0x1630   : > { %v13905_v27 = vadd.f32 %v7198_v47, %v7150_v48  ;;  %7298 = vmatmul.bf16.gmra.mxu1 %v9339_v57  ;;  %v7062_v48 = vadd.f32 %v13844_v31, %v13778_v62 }
0x1631   : > { %7347 = vmatmul.bf16.gmra.mxu2 %v9343_v34  ;;  %v9715_v34 = vld [vmem:[%s14503_s23 + $0x1a0] sm:$0xf0] }
0x1634   : > { %7396 = vmatmul.bf16.gmra.mxu3 %v9347_v21  ;;  %v7152_v44 = vpop.f32.mrf.mxu2  ;;  %v9411_v21 = vor.u32 %v9715_v34, %v9410_v58 }
0x1635   : > { %v7153_v18 = vadd.f32 %v7152_v44, %v7104_v7  ;;  %v7105_v13 = vpop.f32.mrf.mxu1 }
0x1636   : > { %v7106_v3 = vadd.f32 %v7105_v13, %v7057_v54  ;;  %v7235_v5 = vpop.f32.mrf.mxu0  ;;  %v9716_v13 = vld [vmem:[%s14503_s23 + $0x1a8] sm:$0xf0] }
0x1637   : > { %v7201_v17 = vpop.f32.mrf.mxu3  ;;  %v13912_v56 = vadd.f32 %v7235_v5, %v13852_v61 }
0x1638   : > { %v13909_v25 = vadd.f32 %v7201_v17, %v7153_v18  ;;  %9492 = vmatmul.msk.bf16.vlgmr.msra.gmra.mxu0 %vm5991_vm1, %v13258_v63  ;;  %v9418_v18 = vld [vmem:[%s14503_s23 + $0x188] sm:$0xf] }
0x1639   : > { %v9419_v31 = vor.u32 %v9716_v13, %v9418_v18 }
0x163c   : > { %v7154_v14 = vpop.f32.mrf.mxu2 }
0x163d   : > { %v7155_v35 = vadd.f32 %v7154_v14, %v7106_v3  ;;  %v7108_v8 = vpop.f32.mrf.mxu1 }
0x163e   : > { %v7109_v59 = vadd.f32 %v7108_v8, %v7060_v24  ;;  %v13924_v2 = vpop.f32.mrf.mxu0  ;;  %v7070_v8 = vadd.f32 %v13870_v9, %v13808_v10  ;;  %v7072_v10 = vadd.f32 %v13882_v45, %v13816_v26  ;;  %v9484_v26 = vld [vmem:[%s14503_s23 + $0x234] sm:$0xf0]  ;;  %v7075_v45 = vadd.f32 %v13890_v33, %v13828_v32 }
0x163f   : > { %v7203_v61 = vpop.f32.mrf.mxu3 }
0x1640   : > { %v13926_v63 = vadd.f32 %v7203_v61, %v7155_v35  ;;  %7303 = vmatmul.bf16.gmra.mxu1 %v9375_v39  ;;  %v9446_v39 = vld [vmem:[%s14503_s23 + $0x1c8] sm:$0xf]  ;;  %v9724_v35 = vld [vmem:[%s14503_s23 + $0x1e8] sm:$0xf0]  ;;  %v9451_v61 = vor.u32 %v9720_v29, %v9448_v50 }
0x1641   : > { %7352 = vmatmul.bf16.gmra.mxu2 %v9379_v41  ;;  %v9447_v16 = vor.u32 %v9724_v35, %v9446_v39 }
0x1644   : > { %7401 = vmatmul.bf16.gmra.mxu3 %v9383_v0  ;;  %v7157_v1 = vpop.f32.mrf.mxu2  ;;  %v9454_v0 = vld [vmem:[%s14503_s23 + $0x1d0] sm:$0xf] }
0x1645   : > { %v7158_v36 = vadd.f32 %v7157_v1, %v7109_v59  ;;  %v7110_v49 = vpop.f32.mrf.mxu1  ;;  %v9725_v1 = vld [vmem:[%s14503_s23 + $0x1f0] sm:$0xf0] }
0x1646   : > { %v7240_v37 = vpop.f32.mrf.mxu0  ;;  %v7111_v7 = vadd.f32 %v7110_v49, %v7062_v48 }
0x1647   : > { %v7206_v43 = vpop.f32.mrf.mxu3  ;;  %v13931_v57 = vadd.f32 %v7240_v37, %v13872_v23  ;;  %v9415_v23 = vor.u32 %v9711_v53, %v9412_v46 }
0x1648   : > { %v13928_v38 = vadd.f32 %v7206_v43, %v7158_v36  ;;  %9493 = vmatmul.msk.bf16.gmra.mxu0 %vm5991_vm1, %v13255_v11  ;;  %v9455_v43 = vor.u32 %v9725_v1, %v9454_v0 }
0x164c   : > { %v7159_v47 = vpop.f32.mrf.mxu2 }
0x164d   : > { %v7160_v54 = vadd.f32 %v7159_v47, %v7111_v7  ;;  %v7113_v44 = vpop.f32.mrf.mxu1  ;;  %v9733_v47 = vld [vmem:[%s14503_s23 + $0x230] sm:$0xf0] }
0x164e   : > { %v7114_v3 = vadd.f32 %v7113_v44, %v7065_v22  ;;  %v13945_v17 = vpop.f32.mrf.mxu0  ;;  %v9482_v22 = vld [vmem:[%s14503_s23 + $0x210] sm:$0xf] }
0x164f   : > { %v7208_v11 = vpop.f32.mrf.mxu3  ;;  %v9483_v44 = vor.u32 %v9733_v47, %v9482_v22 }
0x1650   : > { %v13947_v62 = vadd.f32 %v7208_v11, %v7160_v54  ;;  %7308 = vmatmul.bf16.gmra.mxu1 %v9411_v21  ;;  %v9729_v21 = vld [vmem:[%s14503_s23 + $0x214] sm:$0xf]  ;;  %v9734_v11 = vld [vmem:[%s14503_s23 + $0x238] sm:$0xf0] }
0x1651   : > { %7357 = vmatmul.bf16.gmra.mxu2 %v9415_v23  ;;  %v9487_v13 = vor.u32 %v9729_v21, %v9484_v26 }
0x1652   : > { %14504 = vst [vmem:[#allocation116_spill] sm:$0xff] %v13947_v62 }
0x1654   : > { %7406 = vmatmul.bf16.gmra.mxu3 %v9419_v31  ;;  %v7162_v4 = vpop.f32.mrf.mxu2 }
0x1655   : > { %v7163_v5 = vadd.f32 %v7162_v4, %v7114_v3  ;;  %v7115_v60 = vpop.f32.mrf.mxu1  ;;  %v9490_v3 = vld [vmem:[%s14503_s23 + $0x218] sm:$0xf] }
0x1656   : > { %v7116_v28 = vadd.f32 %v7115_v60, %v7067_v20  ;;  %v7245_v30 = vpop.f32.mrf.mxu0 }
0x1657   : > { %v7211_v55 = vpop.f32.mrf.mxu3  ;;  %v13954_v14 = vadd.f32 %v7245_v30, %v13892_v40 }
0x1658   : > { %v13951_v24 = vadd.f32 %v7211_v55, %v7163_v5  ;;  %9494 = vmatmul.msk.bf16.gmra.mxu0 %vm5991_vm1, %v13251_v12 }
0x165c   : > { %v7164_v41 = vpop.f32.mrf.mxu2 }
0x165d   : > { %v7165_v42 = vadd.f32 %v7164_v41, %v7116_v28  ;;  %v7118_v59 = vpop.f32.mrf.mxu1 }
0x165e   : > { %v7119_v36 = vadd.f32 %v7118_v59, %v7070_v8  ;;  %v13966_v49 = vpop.f32.mrf.mxu0  ;;  %v7238_v59 = vadd.f32 %v13924_v2, %v13864_v15  ;;  %v7243_v2 = vadd.f32 %v13945_v17, %v13884_v51 }
0x165f   : > { %v7213_v40 = vpop.f32.mrf.mxu3  ;;  %v7248_v51 = vadd.f32 %v13966_v49, %v13905_v27  ;;  %v14032_v27 = vpop.permute.xlu0 %7582 }
0x1660   : > { %v13968_v12 = vadd.f32 %v7213_v40, %v7165_v42  ;;  %7313 = vmatmul.bf16.gmra.mxu1 %v9447_v16 }
0x1661   : > { %7362 = vmatmul.bf16.gmra.mxu2 %v9451_v61 }
0x1662   : > { %14505 = vst [vmem:[#allocation117_spill] sm:$0xff] %v13968_v12 }
0x1664   : > { %7411 = vmatmul.bf16.gmra.mxu3 %v9455_v43  ;;  %v7167_v9 = vpop.f32.mrf.mxu2 }
0x1665   : > { %v7168_v37 = vadd.f32 %v7167_v9, %v7119_v36  ;;  %v7120_v48 = vpop.f32.mrf.mxu1 }
0x1666   : > { %v7121_v58 = vadd.f32 %v7120_v48, %v7072_v10  ;;  %v7250_v53 = vpop.f32.mrf.mxu0 }
0x1667   : > { %v7216_v34 = vpop.f32.mrf.mxu3  ;;  %v13973_v7 = vadd.f32 %v7250_v53, %v13909_v25 }
0x1668   : > { %v7217_v46 = vadd.f32 %v7216_v34, %v7168_v37  ;;  %9495 = vmatmul.msk.bf16.gmra.mxu0 %vm5991_vm1, %v13260_v6  ;;  %v9491_v6 = vor.u32 %v9734_v11, %v9490_v3 }
0x166c   : > { %v7169_v54 = vpop.f32.mrf.mxu2 }
0x166d   : > { %v7170_v23 = vadd.f32 %v7169_v54, %v7121_v58  ;;  %v7123_v18 = vpop.f32.mrf.mxu1 }
0x166e   : > { %v7124_v31 = vadd.f32 %v7123_v18, %v7075_v45  ;;  %v13985_v20 = vpop.f32.mrf.mxu0 }
0x166f   : > { %v7218_v25 = vpop.f32.mrf.mxu3 }
0x1670   : > { %v13987_v4 = vadd.f32 %v7218_v25, %v7170_v23  ;;  %7318 = vmatmul.bf16.gmra.mxu1 %v9483_v44 }
0x1671   : > { %7367 = vmatmul.bf16.gmra.mxu2 %v9487_v13 }
0x1674   : > { %7416 = vmatmul.bf16.gmra.mxu3 %v9491_v6  ;;  %v7172_v5 = vpop.f32.mrf.mxu2 }
0x1675   : > { %v7173_v60 = vadd.f32 %v7172_v5, %v7124_v31  ;;  %v7125_v32 = vpop.f32.mrf.mxu1 }
0x1676   : > { %v7126_v33 = vadd.f32 %v7125_v32, %v13903_v19  ;;  %v7255_v55 = vpop.f32.mrf.mxu0 }
0x1677   : > { %v7221_v28 = vpop.f32.mrf.mxu3  ;;  %v13991_v39 = vadd.f32 %v7255_v55, %v13928_v38 }
0x1678   : > { %v7222_v30 = vadd.f32 %v7221_v28, %v7173_v60 }
0x167c   : > { %v7174_v35 = vpop.f32.mrf.mxu2 }
0x167d   : > { %v7175_v29 = vadd.f32 %v7174_v35, %v7126_v33  ;;  %v7284_v50 = vpop.f32.mrf.mxu1 }
0x167e   : > { %v7285_v8 = vadd.f32 %v7284_v50, %v13912_v56  ;;  %v13994_v16 = vpop.f32.mrf.mxu0 }
0x167f   : > { %v7223_v41 = vpop.f32.mrf.mxu3  ;;  %14506 = vst [vmem:[#allocation115_spill] sm:$0xff] %v13994_v16 }
0x1680   : > { %v13996_v42 = vadd.f32 %v7223_v41, %v7175_v29 }
0x1682   : > { %14507 = vst [vmem:[#allocation118_spill] sm:$0xff] %v13996_v42 }
0x1684   : > { %v7333_v19 = vpop.f32.mrf.mxu2 }
0x1685   : > { %v7334_v61 = vadd.f32 %v7333_v19, %v7285_v8  ;;  %v7286_v0 = vpop.f32.mrf.mxu1  ;;  %v14038_v19 = vpop.permute.xlu1 %7587 }
0x1686   : > { %v7287_v1 = vadd.f32 %v7286_v0, %v7238_v59  ;;  %v7260_v36 = vpop.f32.mrf.mxu0 }
0x1687   : > { %v7382_v38 = vpop.f32.mrf.mxu3  ;;  %v14001_v40 = vadd.f32 %v7260_v36, %v13951_v24 }
0x1688   : > { %v14003_v43 = vadd.f32 %v7382_v38, %v7334_v61  ;;  %v14040_v61 = vpop.permute.xlu0 %7597 }
0x168c   : > { %v7335_v56 = vpop.f32.mrf.mxu2 }
0x168d   : > { %v7336_v10 = vadd.f32 %v7335_v56, %v7287_v1  ;;  %v7289_v9 = vpop.f32.mrf.mxu1  ;;  %v14044_v1 = vpop.permute.xlu1 %7602 }
0x168e   : > { %v7290_v37 = vadd.f32 %v7289_v9, %v13931_v57  ;;  %v14006_v48 = vpop.f32.mrf.mxu0 }
0x168f   : > { %14508 = vst [vmem:[#allocation119_spill] sm:$0xff] %v14006_v48  ;;  %v7384_v58 = vpop.f32.mrf.mxu3 }
0x1690   : > { %v14008_v15 = vadd.f32 %v7384_v58, %v7336_v10  ;;  %v14046_v38 = vpop.permute.xlu0 %7612 }
0x1694   : > { %v7338_v34 = vpop.f32.mrf.mxu2 }
0x1695   : > { %v7339_v53 = vadd.f32 %v7338_v34, %v7290_v37  ;;  %v7291_v22 = vpop.f32.mrf.mxu1  ;;  %v14050_v9 = vpop.permute.xlu1 %7617 }
0x1696   : > { %v7292_v24 = vadd.f32 %v7291_v22, %v7243_v2  ;;  %v7265_v47 = vpop.f32.mrf.mxu0  ;;  %14511 = vst [vmem:[#allocation122_spill] sm:$0xff] %v14050_v9 }
0x1697   : > { %v7387_v21 = vpop.f32.mrf.mxu3  ;;  %v14012_v26 = vadd.f32 %v7265_v47, %v7217_v46 }
0x1698   : > { %v14014_v45 = vadd.f32 %v7387_v21, %v7339_v53  ;;  %v14052_v37 = vpop.permute.xlu0 %7627 }
0x1699   : > { %14512 = vst [vmem:[#allocation123_spill] sm:$0xff] %v14052_v37 }
0x169c   : > { %v7340_v54 = vpop.f32.mrf.mxu2 }
0x169d   : > { %v7341_v57 = vadd.f32 %v7340_v54, %v7292_v24  ;;  %v7294_v44 = vpop.f32.mrf.mxu1  ;;  %v14056_v34 = vpop.permute.xlu1 %7632 }
0x169e   : > { %v7295_v23 = vadd.f32 %v7294_v44, %v13954_v14  ;;  %v14017_v18 = vpop.f32.mrf.mxu0 }
0x169f   : > { %v7389_v13 = vpop.f32.mrf.mxu3 }
0x16a0   : > { %v14019_v3 = vadd.f32 %v7389_v13, %v7341_v57  ;;  %v14058_v53 = vpop.permute.xlu0 %7642 }
0x16a4   : > { %v7343_v17 = vpop.f32.mrf.mxu2 }
0x16a5   : > { %v7344_v11 = vadd.f32 %v7343_v17, %v7295_v23  ;;  %v7296_v31 = vpop.f32.mrf.mxu1  ;;  %v14062_v47 = vpop.permute.xlu1 %7647 }
0x16a6   : > { %v7297_v46 = vadd.f32 %v7296_v31, %v7248_v51  ;;  %v7270_v25 = vpop.f32.mrf.mxu0  ;;  %14515 = vst [vmem:[#allocation126_spill] sm:$0xff] %v14062_v47 }
0x16a7   : > { %v7392_v6 = vpop.f32.mrf.mxu3  ;;  %v14023_v5 = vadd.f32 %v7270_v25, %v7222_v30  ;;  %v14034_v30 = vpop.permute.xlu2 %7592 }
0x16a8   : > { %v14025_v60 = vadd.f32 %v7392_v6, %v7344_v11  ;;  %v14064_v21 = vpop.permute.xlu0 %7657 }
0x16a9   : > { %14509 = vst [vmem:[#allocation120_spill] sm:$0xff] %v14023_v5 }
0x16aa   : > { %14516 = vst [vmem:[#allocation127_spill] sm:$0xff] %v14064_v21 }
0x16ac   : > { %v7345_v32 = vpop.f32.mrf.mxu2 }
0x16ad   : > { %v7346_v14 = vadd.f32 %v7345_v32, %v7297_v46  ;;  %v7299_v33 = vpop.f32.mrf.mxu1  ;;  %v14068_v44 = vpop.permute.xlu1 %7678  ;;  %v9735_v32 = vld [vmem:[#allocation51] sm:$0xff] }
0x16ae   : > { %v7300_v28 = vadd.f32 %v7299_v33, %v13973_v7  ;;  %v14028_v55 = vpop.f32.mrf.mxu0 }
0x16af   : > { %14510 = vst [vmem:[#allocation121_spill] sm:$0xff] %v14028_v55  ;;  %v7394_v35 = vpop.f32.mrf.mxu3  ;;  %v14042_v0 = vpop.permute.xlu2 %7607 }
0x16b0   : > { %v14030_v29 = vadd.f32 %v7394_v35, %v7346_v14  ;;  %v14070_v13 = vpop.permute.xlu0 %7688 }
0x16b4   : > { %v7348_v49 = vpop.f32.mrf.mxu2 }
0x16b5   : > { %v7349_v50 = vadd.f32 %v7348_v49, %v7300_v28  ;;  %v14074_v31 = vpop.permute.xlu1 %7693 }
0x16b6   : > { %v7443_v41 = vpop.f32.mrf.mxu0 }
0x16b7   : > { %v7397_v8 = vpop.f32.mrf.mxu3  ;;  %v14048_v56 = vpop.permute.xlu2 %7622 }
0x16b8   : > { %v14036_v59 = vadd.f32 %v7397_v8, %v7349_v50  ;;  %v14076_v25 = vpop.permute.xlu0 %7703  ;;  %v9736_v50 = vld [vmem:[#allocation51 + $0x8] sm:$0xff] }
0x16bd   : > { %v14081_v33 = vpop.permute.xlu1 %7708 }
0x16be   : > { %v7445_v7 = vpop.f32.mrf.mxu0 }
0x16bf   : > { %v14054_v58 = vpop.permute.xlu2 %7637  ;;  %v7463_v6 = vpack.c.bf16 %v7445_v7, %v7443_v41 }
0x16c0   : > { %14513 = vst [vmem:[#allocation124_spill] sm:$0xff] %v14054_v58  ;;  %v14083_v28 = vpop.permute.xlu0 %7718 }
0x16c5   : > { %v14087_v49 = vpop.permute.xlu1 %7723 }
0x16c6   : > { %v7448_v36 = vpop.f32.mrf.mxu0  ;;  %14518 = vst [vmem:[#allocation129_spill] sm:$0xff] %v14087_v49 }
0x16c7   : > { %v14060_v24 = vpop.permute.xlu2 %7652 }
0x16c8   : > { %14514 = vst [vmem:[#allocation125_spill] sm:$0xff] %v14060_v24  ;;  %v14089_v8 = vpop.permute.xlu0 %7733 }
0x16c9   : > { %14519 = vst [vmem:[#allocation130_spill] sm:$0xff] %v14089_v8 }
0x16cd   : > { %v14094_v7 = vpop.permute.xlu1 %7738 }
0x16ce   : > { %v7450_v10 = vpop.f32.mrf.mxu0  ;;  %14521 = vst [vmem:[#allocation132_spill] sm:$0xff] %v14094_v7 }
0x16cf   : > { %v14066_v57 = vpop.permute.xlu2 %7683  ;;  %v7464_v46 = vpack.c.bf16 %v7450_v10, %v7448_v36 }
0x16d0   : > { %v14096_v36 = vpop.permute.xlu0 %7748 }
0x16d1   : > { %14522 = vst [vmem:[#allocation133_spill] sm:$0xff] %v14096_v36 }
0x16d6   : > { %v7453_v2 = vpop.f32.mrf.mxu0 }
0x16d7   : > { %v14072_v17 = vpop.permute.xlu2 %7698 }
0x16de   : > { %v7455_v22 = vpop.f32.mrf.mxu0 }
0x16df   : > { %v7465_v11 = vpack.c.bf16 %v7455_v22, %v7453_v2  ;;  %v14078_v14 = vpop.permute.xlu2 %7713  ;;  %v9737_v2 = vld [vmem:[#allocation51 + $0x10] sm:$0xff]  ;;  %v14100_v22 = vpop.permute.xlu1 %7844 }
0x16e0   : > { %14517 = vst [vmem:[#allocation128_spill] sm:$0xff] %v14078_v14 }
0x16e1   : > { %14524 = vst [vmem:[#allocation135_spill] sm:$0xff] %v14100_v22 }
0x16e6   : > { %v7458_v54 = vpop.f32.mrf.mxu0 }
0x16e7   : > { %v14085_v35 = vpop.permute.xlu2 %7728 }
0x16ee   : > { %v7460_v23 = vpop.f32.mrf.mxu0 }
0x16ef   : > { %v7466_v51 = vpack.c.bf16 %v7460_v23, %v7458_v54  ;;  %v14092_v41 = vpop.permute.xlu2 %7743  ;;  %v14103_v54 = vpop.permute.xlu0 %7753 }
0x16f0   : > { %14520 = vst [vmem:[#allocation131_spill] sm:$0xff] %v14092_v41 }
0x16f1   : > { %7535 = vmatpush.bf16.msrb.mxu0 %v7466_v51  ;;  %14525 = vst [vmem:[#allocation136_spill] sm:$0xff] %v14103_v54  ;;  %v14107_v51 = vpop.permute.xlu1 %7940 }
0x16f2   : > { %14527 = vst [vmem:[#allocation138_spill] sm:$0xff] %v14107_v51 }
0x16f5   : > { %7536 = vmatpush.bf16.msrb.mxu0 %v7465_v11 }
0x16f7   : > { %v14098_v10 = vpop.permute.xlu2 %7849  ;;  %v14109_v11 = vpop.permute.xlu0 %7834 }
0x16f8   : > { %14523 = vst [vmem:[#allocation134_spill] sm:$0xff] %v14098_v10 }
0x16f9   : > { %7537 = vmatpush.bf16.msrb.mxu0 %v7464_v46  ;;  %v9738_v46 = vld [vmem:[#allocation51 + $0x18] sm:$0xff] }
0x16fd   : > { %7538 = vmatpush.bf16.msrb.mxu0 %v7463_v6 }
0x16ff   : > { %v14105_v23 = vpop.permute.xlu2 %7945 }
0x1700   : > { %9528 = vmatmul.msk.bf16.vlgmr.msrb.gmra.mxu0 %vm4648_vm15, %v9735_v32  ;;  %14526 = vst [vmem:[#allocation137_spill] sm:$0xff] %v14105_v23  ;;  %v14114_v32 = vpop.permute.xlu1 %7839 }
0x1701   : > { %14528 = vst [vmem:[#allocation139_spill] sm:$0xff] %v14114_v32 }
0x1707   : > { %v14111_v6 = vpop.permute.xlu2 %7930 }
0x1708   : > { %v14120_v21 = vpop.permute.xlu1 %7824 }
0x170f   : > { %v14118_v8 = vpop.permute.xlu2 %7829 }
0x1710   : > { %9529 = vmatmul.msk.bf16.gmra.mxu0 %vm4648_vm15, %v9736_v50  ;;  %v14116_v50 = vpop.permute.xlu0 %7935  ;;  %14530 = vst [vmem:[#allocation141_spill] sm:$0xff] %v14118_v8  ;;  %v14127_v58 = vpop.permute.xlu1 %7925 }
0x1711   : > { %14529 = vst [vmem:[#allocation140_spill] sm:$0xff] %v14116_v50 }
0x1712   : > { %14531 = vst [vmem:[#allocation142_spill] sm:$0xff] %v14127_v58 }
0x1717   : > { %v14125_v23 = vpop.permute.xlu2 %7814 }
0x1718   : > { %v14122_v54 = vpop.permute.xlu0 %7920  ;;  %v14134_v49 = vpop.permute.xlu1 %7910 }
0x1719   : > { %14534 = vst [vmem:[#allocation145_spill] sm:$0xff] %v14134_v49 }
0x171f   : > { %v14131_v36 = vpop.permute.xlu2 %7915 }
0x1720   : > { %9530 = vmatmul.msk.bf16.gmra.mxu0 %vm4648_vm15, %v9737_v2  ;;  %v9739_v2 = vld [vmem:[#allocation51 + $0x20] sm:$0xff]  ;;  %v14129_v10 = vpop.permute.xlu0 %7819  ;;  %14533 = vst [vmem:[#allocation144_spill] sm:$0xff] %v14131_v36  ;;  %v14140_v24 = vpop.permute.xlu1 %7809  ;;  %v9742_v36 = vld [vmem:[#allocation51 + $0x38] sm:$0xff] }
0x1721   : > { %14532 = vst [vmem:[#allocation143_spill] sm:$0xff] %v14129_v10 }
0x1722   : > { %14535 = vst [vmem:[#allocation146_spill] sm:$0xff] %v14140_v24 }
0x1727   : > { %v14138_v51 = vpop.permute.xlu2 %7900 }
0x1728   : > { %v14136_v8 = vpop.permute.xlu0 %7804  ;;  %v7795_v10 = vpop.permute.xlu1 %7794 }
0x172f   : > { %v7800_v58 = vpop.permute.xlu2 %7799 }
0x1730   : > { %9531 = vmatmul.msk.bf16.gmra.mxu0 %vm4648_vm15, %v9738_v46  ;;  %v9740_v46 = vld [vmem:[#allocation51 + $0x28] sm:$0xff]  ;;  %v14142_v37 = vpop.permute.xlu0 %7905  ;;  %v7896_v12 = vpop.permute.xlu1 %7895 }
0x1731   : > { %14536 = vst [vmem:[#allocation147_spill] sm:$0xff] %v14142_v37 }
0x1737   : > { %v7785_v48 = vpop.permute.xlu2 %7784 }
0x1738   : > { %v7891_v22 = vpop.permute.xlu0 %7890  ;;  %v7881_v14 = vpop.permute.xlu1 %7880 }
0x173f   : > { %v7886_v41 = vpop.permute.xlu2 %7885 }
0x1740   : > { %9532 = vmatmul.msk.bf16.gmra.mxu0 %vm4648_vm15, %v9739_v2  ;;  %v9741_v2 = vld [vmem:[#allocation51 + $0x30] sm:$0xff]  ;;  %v7780_v32 = vpop.permute.xlu1 %7779 }
0x1741   : > { %v7853_v49 = vmul.f32 %v7780_v32, %v14008_v15 }
0x1747   : > { %v7871_v37 = vpop.permute.xlu2 %7870 }
0x1750   : > { %9533 = vmatmul.msk.bf16.gmra.mxu0 %vm4648_vm15, %v9740_v46  ;;  %v7790_v46 = vpop.permute.xlu0 %7789 }
0x1751   : > { %v7855_v15 = vmul.f32 %v7790_v46, %v14019_v3 }
0x1758   : > { %v7775_v50 = vpop.permute.xlu0 %7774 }
0x1759   : > { %v7852_v55 = vmul.f32 %v7775_v50, %v14003_v43 }
0x175b   : > { %v7948_v24 = vadd.f32 %v7871_v37, %v7852_v55 }
0x1760   : > { %9534 = vmatmul.msk.bf16.gmra.mxu0 %vm4648_vm15, %v9741_v2  ;;  %v7876_v16 = vpop.permute.xlu0 %7875 }
0x1761   : > { %v7949_v62 = vadd.f32 %v7876_v16, %v7853_v49 }
0x1770   : > { %9535 = vmatmul.msk.bf16.gmra.mxu0 %vm4648_vm15, %v9742_v36 }
0x177d   : > { %v7540_v42 = vpop.f32.mrf.mxu0 }
0x177e   : > { %v7660_v47 = vmul.f32 %v14032_v27, %v7540_v42  ;;  %v7854_v42 = vmul.f32 %v7785_v48, %v14014_v45 }
0x1780   : > { %v7756_v2 = vadd.f32 %v14068_v44, %v7660_v47  ;;  %v7950_v37 = vadd.f32 %v7881_v14, %v7854_v42 }
0x1782   : > { %v14149_v9 = vadd.f32 %v7948_v24, %v7756_v2 }
0x1785   : > { %v7542_v5 = vpop.f32.mrf.mxu0 }
0x1786   : > { %v7661_v36 = vmul.f32 %v14038_v19, %v7542_v5  ;;  %v14162_v5 = vpop.f32.mrf.mxu1  ;;  %v7951_v19 = vadd.f32 %v7886_v41, %v7855_v15  ;;  %v7857_v41 = vmul.f32 %v7800_v58, %v14030_v29 }
0x1788   : > { %v7757_v7 = vadd.f32 %v14066_v57, %v7661_v36  ;;  %v14171_v57 = vpop.f32.mrf.mxu3  ;;  %v7953_v2 = vadd.f32 %v7896_v12, %v7857_v41 }
0x178a   : > { %v14154_v43 = vadd.f32 %v7949_v62, %v7757_v7  ;;  %v14165_v62 = vpop.f32.mrf.mxu2 }
0x178d   : > { %v7545_v27 = vpop.f32.mrf.mxu0 }
0x178e   : > { %v7662_v55 = vmul.f32 %v14034_v30, %v7545_v27  ;;  %v7856_v30 = vmul.f32 %v7795_v10, %v14025_v60  ;;  %v7304_v49 = vpop.f32.mrf.mxu1 }
0x1790   : > { %v7758_v24 = vadd.f32 %v14070_v13, %v7662_v55  ;;  %v7952_v3 = vadd.f32 %v7891_v22, %v7856_v30 }
0x1792   : > { %v14159_v47 = vadd.f32 %v7950_v37, %v7758_v24  ;;  %v7353_v32 = vpop.f32.mrf.mxu2 }
0x1795   : > { %v7547_v44 = vpop.f32.mrf.mxu0 }
0x1796   : > { %v7663_v16 = vmul.f32 %v14040_v61, %v7547_v44  ;;  %v14180_v10 = vpop.f32.mrf.mxu1 }
0x1798   : > { %v7759_v48 = vadd.f32 %v14074_v31, %v7663_v16  ;;  %v7402_v31 = vpop.f32.mrf.mxu3 }
0x179a   : > { %v14168_v45 = vadd.f32 %v7951_v19, %v7759_v48 }
0x179d   : > { %v7550_v13 = vpop.f32.mrf.mxu0 }
0x179e   : > { %v7664_v14 = vmul.f32 %v14044_v1, %v7550_v13  ;;  %v7858_v1 = vmul.f32 %v14136_v8, %v14036_v59 }
0x17a0   : > { %v7760_v7 = vadd.f32 %v14072_v17, %v7664_v14  ;;  %v14186_v17 = vpop.f32.mrf.mxu2  ;;  %v7954_v29 = vadd.f32 %v14138_v51, %v7858_v1  ;;  %v14190_v58 = vpop.f32.mrf.mxu3 }
0x17a2   : > { %v14175_v61 = vadd.f32 %v7952_v3, %v7760_v7 }
0x17a5   : > { %v7552_v50 = vpop.f32.mrf.mxu0 }
0x17a6   : > { %v7665_v46 = vmul.f32 %v14042_v0, %v7552_v50 }
0x17a8   : > { %v7761_v60 = vadd.f32 %v14076_v25, %v7665_v46  ;;  %v7309_v25 = vpop.f32.mrf.mxu1  ;;  %v7358_v55 = vpop.f32.mrf.mxu2  ;;  %v7305_v46 = vadd.f32 %v7304_v49, %v13991_v39  ;;  %v7253_v39 = vadd.f32 %v13985_v20, %v13926_v63 }
0x17a9   : > { %v7407_v37 = vpop.f32.mrf.mxu3  ;;  %v7310_v8 = vadd.f32 %v7309_v25, %v14001_v40 }
0x17aa   : > { %v14182_v36 = vadd.f32 %v7953_v2, %v7761_v60 }
0x17ad   : > { %v7555_v22 = vpop.f32.mrf.mxu0 }
0x17ae   : > { %v7666_v42 = vmul.f32 %v14046_v38, %v7555_v22  ;;  %v7359_v38 = vadd.f32 %v7358_v55, %v7310_v8 }
0x17b0   : > { %v7762_v12 = vadd.f32 %v14081_v33, %v7666_v42  ;;  %v14195_v15 = vpop.f32.mrf.mxu1  ;;  %v14197_v59 = vpop.f32.mrf.mxu2  ;;  %v7408_v16 = vadd.f32 %v7407_v37, %v7359_v38 }
0x17b1   : > { %v14200_v44 = vpop.f32.mrf.mxu3 }
0x17b2   : > { %v14193_v0 = vadd.f32 %v7954_v29, %v7762_v12  ;;  %v7862_v48 = vmul.f32 %v14120_v21, %v7408_v16  ;;  %v7354_v21 = vadd.f32 %v7353_v32, %v7305_v46  ;;  %v7302_v12 = vadd.f32 %v14162_v5, %v7253_v39  ;;  %v14537_v5 = vld [vmem:[#allocation132_spill] sm:$0xff] }
0x17b4   : > { %v7958_v3 = vadd.f32 %v14122_v54, %v7862_v48  ;;  %v7403_v49 = vadd.f32 %v7402_v31, %v7354_v21  ;;  %v7351_v38 = vadd.f32 %v14165_v62, %v7302_v12  ;;  %v14541_v62 = vld [vmem:[#allocation145_spill] sm:$0xff]  ;;  %v14549_v12 = vld [vmem:[#allocation128_spill] sm:$0xff] }
0x17b5   : > { %v7557_v27 = vpop.f32.mrf.mxu0 }
0x17b8   : > { %v7314_v33 = vpop.f32.mrf.mxu1  ;;  %v7363_v19 = vpop.f32.mrf.mxu2 }
0x17b9   : > { %v7412_v13 = vpop.f32.mrf.mxu3  ;;  %v7315_v40 = vadd.f32 %v7314_v33, %v14012_v26 }
0x17bb   : > { %v7364_v2 = vadd.f32 %v7363_v19, %v7315_v40  ;;  %v14539_v19 = vld [vmem:[#allocation115_spill] sm:$0xff]  ;;  %v14543_v40 = vld [vmem:[#allocation122_spill] sm:$0xff] }
0x17bd   : > { %v7560_v24 = vpop.f32.mrf.mxu0  ;;  %v7413_v26 = vadd.f32 %v7412_v13, %v7364_v2  ;;  %v14544_v2 = vld [vmem:[#allocation146_spill] sm:$0xff] }
0x17be   : > { %v7668_v37 = vmul.f32 %v14048_v56, %v7560_v24  ;;  %v7400_v24 = vadd.f32 %v14171_v57, %v7351_v38  ;;  %v14545_v57 = vld [vmem:[#allocation126_spill] sm:$0xff] }
0x17bf   : > { %v7864_v32 = vmul.f32 %v14109_v11, %v7413_v26  ;;  %v14538_v11 = vld [vmem:[#allocation116_spill] sm:$0xff] }
0x17c0   : > { %v7316_v41 = vpop.f32.mrf.mxu1  ;;  %v7365_v60 = vpop.f32.mrf.mxu2  ;;  %v7764_v31 = vadd.f32 %v14083_v28, %v7668_v37  ;;  %v7258_v48 = vadd.f32 %v14539_v19, %v14538_v11  ;;  %v7667_v28 = vmul.f32 %v14543_v40, %v7557_v27  ;;  %v14548_v27 = vld [vmem:[#allocation140_spill] sm:$0xff]  ;;  %v14551_v37 = vld [vmem:[#allocation117_spill] sm:$0xff] }
0x17c1   : > { %v7414_v54 = vpop.f32.mrf.mxu3  ;;  %v7960_v63 = vadd.f32 %v14111_v6, %v7864_v32  ;;  %v14542_v6 = vld [vmem:[#allocation139_spill] sm:$0xff] }
0x17c2   : > { %v7763_v32 = vadd.f32 %v14549_v12, %v7667_v28  ;;  %v14565_v12 = vld [vmem:[#allocation127_spill] sm:$0xff] }
0x17c5   : > { %v14202_v51 = vpop.f32.mrf.mxu0 }
0x17c8   : > { %v7319_v55 = vpop.f32.mrf.mxu1 }
0x17cd   : > { %v7565_v30 = vpop.f32.mrf.mxu0 }
0x17ce   : > { %v7670_v14 = vmul.f32 %v14056_v34, %v7565_v30  ;;  %v14540_v30 = vld [vmem:[#allocation120_spill] sm:$0xff] }
0x17cf   : > { %v7320_v56 = vadd.f32 %v7319_v55, %v14540_v30  ;;  %v14555_v30 = vld [vmem:[#allocation123_spill] sm:$0xff] }
0x17d0   : > { %v7766_v7 = vadd.f32 %v14085_v35, %v7670_v14  ;;  %v7268_v35 = vadd.f32 %v14017_v18, %v13987_v4  ;;  %v7860_v4 = vmul.f32 %v14125_v23, %v7403_v49  ;;  %v7368_v18 = vpop.f32.mrf.mxu2  ;;  %v7417_v23 = vpop.f32.mrf.mxu3 }
0x17d1   : > { %v7321_v21 = vpop.f32.mrf.mxu1 }
0x17d2   : > { %v7974_v50 = vadd.f32 %v7958_v3, %v7766_v7  ;;  %v7317_v29 = vadd.f32 %v7316_v41, %v7268_v35  ;;  %v7956_v13 = vadd.f32 %v14541_v62, %v7860_v4  ;;  %v7369_v3 = vadd.f32 %v7368_v18, %v7320_v56  ;;  %v14546_v35 = vld [vmem:[#allocation118_spill] sm:$0xff]  ;;  %v14553_v18 = vld [vmem:[#allocation147_spill] sm:$0xff] }
0x17d3   : > { %v7669_v56 = vmul.f32 %v14555_v30, %v14202_v51  ;;  %v14558_v51 = vld [vmem:[#allocation138_spill] sm:$0xff] }
0x17d4   : > { %v7990_v1 = vmax.f32 %v7974_v50, 0.0  ;;  %v7366_v25 = vadd.f32 %v7365_v60, %v7317_v29  ;;  %v7972_v41 = vadd.f32 %v7956_v13, %v7764_v31  ;;  %v7859_v60 = vmul.f32 %v14544_v2, %v7400_v24 }
0x17d5   : > { %v14210_v22 = vpop.f32.mrf.mxu0 }
0x17d6   : > { %v8006_v42 = vsel %vm13445_vm2, %v7990_v1, 0.0  ;;  %v7415_v20 = vadd.f32 %v7414_v54, %v7366_v25  ;;  %v7418_v54 = vadd.f32 %v7417_v23, %v7369_v3  ;;  %v14550_v25 = vld [vmem:[#allocation131_spill] sm:$0xff] }
0x17d7   : > { %v8047_v34 = vsel %vm8016_vm0, %v8006_v42, 0.0  ;;  %v14556_v23 = vld [vmem:[#allocation143_spill] sm:$0xff] }
0x17d8   : > { %8048 = vadd.xlane.f32.xlu1 %v8047_v34  ;;  %v7865_v7 = vmul.f32 %v14542_v6, %v7415_v20  ;;  %v7370_v29 = vpop.f32.mrf.mxu2  ;;  %v7419_v19 = vpop.f32.mrf.mxu3 }
0x17da   : > { %v7961_v49 = vadd.f32 %v14548_v27, %v7865_v7 }
0x17dd   : > { %v7570_v8 = vpop.f32.mrf.mxu0 }
0x17de   : > { %v7672_v16 = vmul.f32 %v14058_v53, %v7570_v8  ;;  %v7307_v53 = vadd.f32 %v14180_v10, %v7258_v48  ;;  %v14547_v10 = vld [vmem:[#allocation121_spill] sm:$0xff]  ;;  %v14552_v8 = vld [vmem:[#allocation119_spill] sm:$0xff] }
0x17df   : > { %v7273_v26 = vadd.f32 %v14547_v10, %v14546_v35  ;;  %v7263_v38 = vadd.f32 %v14552_v8, %v14551_v37  ;;  %v14563_v10 = vld [vmem:[#allocation124_spill] sm:$0xff]  ;;  %v14567_v8 = vld [vmem:[#allocation130_spill] sm:$0xff] }
0x17e0   : > { %v7768_v33 = vadd.f32 %v14537_v5, %v7672_v16  ;;  %v7356_v1 = vadd.f32 %v14186_v17, %v7307_v53  ;;  %v7988_v17 = vmax.f32 %v7972_v41, 0.0  ;;  %v7955_v16 = vadd.f32 %v14553_v18, %v7859_v60  ;;  %v14554_v5 = vld [vmem:[#allocation135_spill] sm:$0xff]  ;;  %v14557_v53 = vld [vmem:[#allocation125_spill] sm:$0xff] }
0x17e1   : > { %v7322_v4 = vadd.f32 %v7321_v21, %v7273_v26  ;;  %v7312_v31 = vadd.f32 %v14195_v15, %v7263_v38  ;;  %v14559_v41 = vld [vmem:[#allocation129_spill] sm:$0xff]  ;;  %v7671_v26 = vmul.f32 %v14563_v10, %v14210_v22  ;;  %v14568_v38 = vld [vmem:[#allocation136_spill] sm:$0xff] }
0x17e2   : > { %v7976_v14 = vadd.f32 %v7960_v63, %v7768_v33  ;;  %v7405_v63 = vadd.f32 %v14190_v58, %v7356_v1  ;;  %v7866_v33 = vmul.f32 %v14554_v5, %v7418_v54  ;;  %v7971_v48 = vadd.f32 %v7955_v16, %v7763_v32 }
0x17e3   : > { %v7371_v11 = vadd.f32 %v7370_v29, %v7322_v4  ;;  %v8004_v62 = vsel %vm13445_vm2, %v7988_v17, 0.0  ;;  %v7361_v58 = vadd.f32 %v14197_v59, %v7312_v31  ;;  %v14561_v59 = vld [vmem:[#allocation144_spill] sm:$0xff]  ;;  %v14566_v17 = vld [vmem:[#allocation137_spill] sm:$0xff]  ;;  %v7767_v22 = vadd.f32 %v14567_v8, %v7671_v26 }
0x17e4   : > { %v7992_v50 = vmax.f32 %v7976_v14, 0.0  ;;  %v7861_v14 = vmul.f32 %v14556_v23, %v7405_v63  ;;  %v8041_v40 = vsel %vm8016_vm0, %v8004_v62, 0.0  ;;  %v7962_v28 = vadd.f32 %v14558_v51, %v7866_v33  ;;  %v14569_v63 = vld [vmem:[#allocation142_spill] sm:$0xff] }
0x17e5   : > { %v7572_v46 = vpop.f32.mrf.mxu0  ;;  %v7420_v6 = vadd.f32 %v7419_v19, %v7371_v11  ;;  %v7987_v60 = vmax.f32 %v7971_v48, 0.0  ;;  %v7410_v21 = vadd.f32 %v14200_v44, %v7361_v58  ;;  %v7982_v16 = vmax.f32 %v14159_v47, 0.0 }
0x17e6   : > { %v7673_v42 = vmul.f32 %v14545_v57, %v7572_v46  ;;  %v8008_v34 = vsel %vm13445_vm2, %v7992_v50, 0.0  ;;  %v7765_v50 = vadd.f32 %v14559_v41, %v7669_v56  ;;  %v14560_v46 = vld [vmem:[#allocation133_spill] sm:$0xff]  ;;  %v7957_v1 = vadd.f32 %v14561_v59, %v7861_v14 }
0x17e7   : > { %v8053_v39 = vsel %vm8016_vm0, %v8008_v34, 0.0  ;;  %v7998_v19 = vsel %vm13445_vm2, %v7982_v16, 0.0  ;;  %v7984_v62 = vmax.f32 %v14175_v61, 0.0  ;;  %v7980_v41 = vmax.f32 %v14149_v9, 0.0 }
0x17e8   : > { %v7769_v55 = vadd.f32 %v14550_v25, %v7673_v42  ;;  %8054 = vadd.xlane.f32.xlu0 %v8053_v39  ;;  %v14562_v42 = vld [vmem:[#allocation134_spill] sm:$0xff]  ;;  %v7973_v35 = vadd.f32 %v7957_v1, %v7765_v50  ;;  %v8003_v39 = vsel %vm13445_vm2, %v7987_v60, 0.0  ;;  %v8023_v47 = vsel %vm8016_vm0, %v7998_v19, 0.0 }
0x17e9   : > { %v7867_v34 = vmul.f32 %v14562_v42, %v7420_v6  ;;  %v8000_v14 = vsel %vm13445_vm2, %v7984_v62, 0.0  ;;  %v7996_v50 = vsel %vm13445_vm2, %v7980_v41, 0.0 }
0x17ea   : > { %v7977_v20 = vadd.f32 %v7961_v49, %v7769_v55  ;;  %v14564_v49 = vld [vmem:[#allocation141_spill] sm:$0xff]  ;;  %v8038_v55 = vsel %vm8016_vm0, %v8003_v39, 0.0  ;;  %v7989_v18 = vmax.f32 %v7973_v35, 0.0 }
0x17eb   : > { %v7863_v29 = vmul.f32 %v14564_v49, %v7410_v21  ;;  %v7963_v37 = vadd.f32 %v14566_v17, %v7867_v34 }
0x17ec   : > { %v7993_v24 = vmax.f32 %v7977_v20, 0.0  ;;  %v8005_v11 = vsel %vm13445_vm2, %v7989_v18, 0.0 }
0x17ed   : > { %v7575_v13 = vpop.f32.mrf.mxu0  ;;  %v7959_v20 = vadd.f32 %v14569_v63, %v7863_v29  ;;  %v8044_v56 = vsel %vm8016_vm0, %v8005_v11, 0.0 }
0x17ee   : > { %v7674_v3 = vmul.f32 %v14557_v53, %v7575_v13  ;;  %v8009_v15 = vsel %vm13445_vm2, %v7993_v24, 0.0  ;;  %v7981_v13 = vmax.f32 %v14154_v43, 0.0  ;;  %v7983_v43 = vmax.f32 %v14168_v45, 0.0 }
0x17ef   : > { %v8056_v7 = vsel %vm8016_vm0, %v8009_v15, 0.0  ;;  %v7975_v5 = vadd.f32 %v7959_v20, %v7767_v22  ;;  %v7986_v15 = vmax.f32 %v14193_v0, 0.0 }
0x17f0   : > { %v7770_v2 = vadd.f32 %v14560_v46, %v7674_v3  ;;  %8057 = vadd.xlane.f32.xlu2 %v8056_v7  ;;  %8042 = vadd.xlane.f32.xlu0 %v8041_v40  ;;  %v7997_v58 = vsel %vm13445_vm2, %v7981_v13, 0.0  ;;  %v8029_v3 = vsel %vm8016_vm0, %v8000_v14, 0.0  ;;  %v7999_v7 = vsel %vm13445_vm2, %v7983_v43, 0.0 }
0x17f1   : > { %v7991_v24 = vmax.f32 %v7975_v5, 0.0  ;;  %v8020_v61 = vsel %vm8016_vm0, %v7997_v58, 0.0  ;;  %v8002_v6 = vsel %vm13445_vm2, %v7986_v15, 0.0  ;;  %v8026_v51 = vsel %vm8016_vm0, %v7999_v7, 0.0 }
0x17f2   : > { %v7978_v57 = vadd.f32 %v7962_v28, %v7770_v2  ;;  %v8035_v40 = vsel %vm8016_vm0, %v8002_v6, 0.0  ;;  %v7985_v28 = vmax.f32 %v14182_v36, 0.0  ;;  %v8017_v46 = vsel %vm8016_vm0, %v7996_v50, 0.0 }
0x17f3   : > { %v8007_v23 = vsel %vm13445_vm2, %v7991_v24, 0.0  ;;  %v8014_v24 = vld [vmem:[#allocation58] sm:$0xff] }
0x17f4   : > { %v7994_v54 = vmax.f32 %v7978_v57, 0.0  ;;  %v8050_v53 = vsel %vm8016_vm0, %v8007_v23, 0.0  ;;  %v8001_v0 = vsel %vm13445_vm2, %v7985_v28, 0.0  ;;  %v8015_v23 = vld [vmem:[#allocation58 + $0x8] sm:$0x3] }
0x17f5   : > { %v7577_v27 = vpop.f32.mrf.mxu0  ;;  %v8032_v45 = vsel %vm8016_vm0, %v8001_v0, 0.0 }
0x17f6   : > { %v7675_v32 = vmul.f32 %v14565_v12, %v7577_v27  ;;  %v8010_v25 = vsel %vm13445_vm2, %v7994_v54, 0.0 }
0x17f7   : > { %v8059_v44 = vsel %vm8016_vm0, %v8010_v25, 0.0 }
0x17f8   : > { %v7771_v4 = vadd.f32 %v14568_v38, %v7675_v32  ;;  %8060 = vadd.xlane.f32.xlu1 %v8059_v44  ;;  %8039 = vadd.xlane.f32.xlu0 %v8038_v55 }
0x17fa   : > { %v7979_v31 = vadd.f32 %v7963_v37, %v7771_v4 }
0x17fc   : > { %v7995_v33 = vmax.f32 %v7979_v31, 0.0 }
0x17fe   : > { %v8011_v48 = vsel %vm13445_vm2, %v7995_v33, 0.0 }
0x17ff   : > { %v8062_v30 = vsel %vm8016_vm0, %v8011_v48, 0.0  ;;  %v9538_v48 = vld [vmem:[#allocation57] sm:$0xf] }
0x1800   : > { %8063 = vadd.xlane.f32.xlu2 %v8062_v30  ;;  %8045 = vadd.xlane.f32.xlu1 %v8044_v56  ;;  %v9744_v30 = vld [vmem:[#allocation57] sm:$0x10] }
0x1801   : > { %8024 = vadd.xlane.f32.xlu0 %v8023_v47  ;;  %v9539_v47 = vor.u32 %v9744_v30, %v9538_v48 }
0x1808   : > { %8051 = vadd.xlane.f32.xlu2 %v8050_v53  ;;  %8030 = vadd.xlane.f32.xlu1 %v8029_v3 }
0x1809   : > { %8021 = vadd.xlane.f32.xlu0 %v8020_v61 }
0x1810   : > { %8036 = vadd.xlane.f32.xlu2 %v8035_v40  ;;  %8027 = vadd.xlane.f32.xlu1 %v8026_v51 }
0x1818   : > { %8033 = vadd.xlane.f32.xlu2 %v8032_v45 }
0x1820   : > { %8018 = vadd.xlane.f32.xlu2 %v8017_v46 }
0x184b   : > { %v8049_v2 = vpop.xlane.xlu1 %8048 }
0x184c   : > { %v8075_v52 = vmul.f32 0.25, %v8049_v2 }
0x185b   : > { %v8055_v60 = vpop.xlane.xlu0 %8054 }
0x185c   : > { %v8077_v26 = vmul.f32 0.25, %v8055_v60 }
0x1863   : > { %v8058_v59 = vpop.xlane.xlu2 %8057  ;;  %v8043_v21 = vpop.xlane.xlu0 %8042 }
0x1864   : > { %v8078_v34 = vmul.f32 0.25, %v8058_v59  ;;  %v8073_v12 = vmul.f32 0.25, %v8043_v21 }
0x1866   : > { %v8087_v9 = vpack.c.bf16 %v8078_v34, %v8077_v26 }
0x186b   : > { %v8061_v1 = vpop.xlane.xlu1 %8060  ;;  %v8040_v27 = vpop.xlane.xlu0 %8039 }
0x186c   : > { %v8079_v57 = vmul.f32 0.25, %v8061_v1  ;;  %v8072_v55 = vmul.f32 0.25, %v8040_v27 }
0x1873   : > { %v8064_v36 = vpop.xlane.xlu2 %8063  ;;  %v8046_v10 = vpop.xlane.xlu1 %8045 }
0x1874   : > { %v8080_v42 = vmul.f32 0.25, %v8064_v36  ;;  %v8074_v49 = vmul.f32 0.25, %v8046_v10  ;;  %v8025_v8 = vpop.xlane.xlu0 %8024 }
0x1875   : > { %v8067_v20 = vmul.f32 0.25, %v8025_v8 }
0x1876   : > { %v8088_v35 = vpack.c.bf16 %v8080_v42, %v8079_v57  ;;  %v8085_v25 = vpack.c.bf16 %v8074_v49, %v8073_v12 }
0x1878   : > { %8095 = vmatpush.bf16.msrb.mxu1 %v8088_v35 }
0x187b   : > { %v8052_v54 = vpop.xlane.xlu2 %8051  ;;  %v8031_v32 = vpop.xlane.xlu1 %8030 }
0x187c   : > { %v8076_v39 = vmul.f32 0.25, %v8052_v54  ;;  %8096 = vmatpush.bf16.msrb.mxu1 %v8087_v9  ;;  %v8069_v4 = vmul.f32 0.25, %v8031_v32  ;;  %v8022_v31 = vpop.xlane.xlu0 %8021 }
0x187d   : > { %v8066_v11 = vmul.f32 0.25, %v8022_v31 }
0x187e   : > { %v8086_v29 = vpack.c.bf16 %v8076_v39, %v8075_v52 }
0x1880   : > { %8097 = vmatpush.bf16.msrb.mxu1 %v8086_v29 }
0x1883   : > { %v8037_v44 = vpop.xlane.xlu2 %8036  ;;  %v8028_v22 = vpop.xlane.xlu1 %8027 }
0x1884   : > { %v8071_v17 = vmul.f32 0.25, %v8037_v44  ;;  %8098 = vmatpush.bf16.msrb.mxu1 %v8085_v25  ;;  %v8068_v16 = vmul.f32 0.25, %v8028_v22 }
0x1886   : > { %v8084_v37 = vpack.c.bf16 %v8072_v55, %v8071_v17  ;;  %v8082_v5 = vpack.c.bf16 %v8068_v16, %v8067_v20 }
0x1888   : > { %8099 = vmatpush.bf16.msrb.mxu1 %v8084_v37 }
0x188b   : > { %v8034_v38 = vpop.xlane.xlu2 %8033 }
0x188c   : > { %v8070_v18 = vmul.f32 0.25, %v8034_v38 }
0x188e   : > { %v8083_v63 = vpack.c.bf16 %v8070_v18, %v8069_v4 }
0x1890   : > { %8100 = vmatpush.bf16.msrb.mxu1 %v8083_v63 }
0x1893   : > { %v8019_v33 = vpop.xlane.xlu2 %8018 }
0x1894   : > { %v8065_v19 = vmul.f32 0.25, %v8019_v33  ;;  %8101 = vmatpush.bf16.msrb.mxu1 %v8082_v5 }
0x1896   : > { %v8081_v56 = vpack.c.bf16 %v8066_v11, %v8065_v19 }
0x1898   : > { %8102 = vmatpush.bf16.msrb.mxu1 %v8081_v56 }
0x189b   : > { %8103 = vmatmul.bf16.vlgmr.msrb.gmra.mxu1 %v9539_v47 }
0x1918   : > { %v8104_v62 = vpop.f32.mrf.mxu1 }
0x1919   : > { %v8105_v13 = vadd.f32 %v8104_v62, %v8014_v24 }
0x191b   : > { %8110 = vst.msk [vmem:[%s1894_s16] sm:$0xff] %vm8109_vm4, %v8105_v13 }
0x1920   : > { %v8106_v14 = vpop.f32.mrf.mxu1 }
0x1921   : > { %v8107_v58 = vadd.f32 %v8106_v14, %v8015_v23 }
0x1923   : > { %8112 = vst.msk [vmem:[%s1894_s16 + $0x8] sm:$0x3] %vm8111_vm6, %v8107_v58 }
0x1924 PF: > { %s115_s0 = sadd.s32 1, %s11264_s0  }
0x1925   : > { %p112_p3 = scmp.ge.s32.totalorder %s115_s0, 4  }
0x1927   :  { %114 = sbr.rel (!%p112_p3) target bundleno = 100 (0x64), region = 413 }
0x192c   :  { %8134 = vsyncpa [#allocation3], 1 }
0x192d   :  { %8136 = vsyncpa [#allocation3 + $0x1], 1 }
0x192e   :  { %8137 = vsyncpa [#allocation5], 1 }
0x192f   :  { %8138 = vsyncpa [#allocation8], 1 }
0x1930   :  { %8139 = vsyncpa [#allocation11], 1 }
0x1931   :  { %8140 = vsyncpa [#allocation14], 1 }
0x1932   :  { %8141 = vsyncpa [#allocation17], 1 }
0x1933   :  { %8142 = vsyncpa [#allocation20], 1 }
0x1934   :  { %8143 = vsyncpa [#allocation23], 1 }
0x1935   :  { %8144 = vsyncpa [#allocation26], 1 }
0x1936   :  { %8145 = vsyncpa [#allocation29], 1 }
0x1937   :  { %8146 = vsyncpa [#allocation32], 1 }
0x1938   :  { %8147 = vsyncpa [#allocation35], 1 }
0x1939   :  { %8148 = vsyncpa [#allocation38], 1 }
0x193a   :  { %8149 = vsyncpa [#allocation41], 1 }
0x193b   :  { %8150 = vsyncpa [#allocation44], 1 }
0x193c   :  { %8151 = vsyncpa [#allocation47], 1 }
0x193d   :  { %8152 = vsyncpa [#allocation50], 1 }
0x193e   :  { %8153 = vsyncpa [#allocation53], 1 }
0x193f   :  { %8154 = vsyncpa [#allocation56], 1 }
0x1940   :  { %8155 = vsyncpa [#allocation59], 1 }

</bundles_post_ra>
